<compile_context>
chip_gen: v7x
topology: tpu7x:2x2x1
jax: 0.10.0
libtpu: 0.0.40
codegen_flags: <defaults>
</compile_context>

<pallas_src>
import math
import numpy as np
import jax
import jax.numpy as jnp
from jax import lax
from jax.experimental import pallas as pl
from jax.experimental.pallas import tpu as pltpu

# ---- small config (consistent with FoundationModelConfig semantics) ----
B = 2            # batch
S = 64           # sequence length (>= max temporal scale so the Conv1d path is taken)
D = 128          # d_model
H = 8            # n_heads
DK = D // H      # head dim
DFF = 256        # d_ff
SCALES = (1, 4, 16, 64)   # temporal_scales
NS = len(SCALES)
DC = D // NS     # per-scale conv output channels
EPS = 1e-5       # nn.LayerNorm eps
BF = jnp.bfloat16

# rows of the packed (NVEC, 128) f32 vector operand
(R_BATT, R_G1, R_BE1, R_BCONV, R_GT, R_BT,
 R_G2, R_BE2, R_B2, R_G3, R_BE3) = range(11)
NVEC = 16

# row offsets of each scale's wf-folded conv weight inside the stacked w_conv
CONV_OFF = {1: 0, 4: 1 * D, 16: 5 * D, 64: 21 * D}   # 0, 128, 640, 2688
CONV_ROWS = 85 * D                                    # 10880


def _ln(y, g, b):
    mu = jnp.mean(y, axis=-1, keepdims=True)
    var = jnp.mean(jnp.square(y - mu), axis=-1, keepdims=True)
    return (y - mu) * lax.rsqrt(var + EPS) * g + b


# --------------- single fused kernel: attention + temporal + FFN ---------------
def layer_kernel(x_ref, wqk_ref, wvo_ref, wconv_ref, t4_ref, t16_ref,
                 w1_ref, w2_ref, v256_ref, v128_ref, o_ref, x1_scr):
    f32 = jnp.float32
    vec = lambda r: v128_ref[r:r + 1, :]

    x = x_ref[...]                                   # (S, D) f32
    xb = x.astype(BF)

    # ---- stage 1: multi-head attention + residual + norm1 ----
    # q|k in one N=256 matmul; 1/sqrt(dk) pre-folded into wq/bq; k-bias dropped (exact).
    qk = jnp.dot(xb, wqk_ref[...], preferred_element_type=f32) + v256_ref[0:1, :]
    qb = qk[:, :D].astype(BF)
    kb = qk[:, D:].astype(BF)
    acc = x + vec(R_BATT)                            # residual + folded attention bias
    for h in range(H):                               # static unroll over heads
        lo = h * DK
        sc = lax.dot_general(qb[:, lo:lo + DK], kb[:, lo:lo + DK],
                             (((1,), (1,)), ((), ())), preferred_element_type=f32)
        sc = sc - jnp.max(sc, axis=-1, keepdims=True)
        p = jnp.exp(sc)
        p = p * pl.reciprocal(jnp.sum(p, axis=-1, keepdims=True), approx=True)
        # vo_h = x @ (wv_h @ wo_h): full-K matmul, no K=16 matmuls, no value slicing of v
        vo = jnp.dot(xb, wvo_ref[:, h * D:(h + 1) * D], preferred_element_type=f32)
        acc = acc + jnp.dot(p.astype(BF), vo.astype(BF), preferred_element_type=f32)
    x1 = _ln(acc, vec(R_G1), vec(R_BE1))             # (S, D) f32
    x1_scr[...] = x1                                 # VMEM copy for strided patch reads
    x1b = x1.astype(BF)

    # ---- stage 2: multi-scale temporal encoder (+ its LN) + residual + norm2 ----
    # fusion weight wf already folded into every conv weight -> lane-dense outputs.
    # scale 1: identity interpolation.
    fused = jnp.dot(x1b, wconv_ref[CONV_OFF[1]:CONV_OFF[1] + D, :],
                    preferred_element_type=f32) + vec(R_BCONV)

    # scale 4: (16, 512) patch matrix via lane-concat of strided sublane reads -> 1 matmul
    p4 = jnp.concatenate(
        [x1_scr[pl.ds(j, S // 4, stride=4), :] for j in range(4)], axis=-1)
    c4 = jnp.dot(p4.astype(BF), wconv_ref[CONV_OFF[4]:CONV_OFF[4] + 4 * D, :],
                 preferred_element_type=f32)
    fused = fused + jnp.dot(t4_ref[...], c4.astype(BF), preferred_element_type=f32)

    # scale 16: (4, 2048) patch matrix -> 1 matmul
    p16 = jnp.concatenate(
        [x1_scr[pl.ds(j, S // 16, stride=16), :] for j in range(16)], axis=-1)
    c16 = jnp.dot(p16.astype(BF), wconv_ref[CONV_OFF[16]:CONV_OFF[16] + 16 * D, :],
                  preferred_element_type=f32)
    fused = fused + jnp.dot(t16_ref[...], c16.astype(BF), preferred_element_type=f32)

    # scale 64: one full-sequence patch; reuse the scale-16 patch rows (4 x K=2048
    # matmuls instead of 64 x K=128); the l_in=1 interpolation is a row broadcast.
    c64 = jnp.dot(p16[0:1, :].astype(BF),
                  wconv_ref[CONV_OFF[64]:CONV_OFF[64] + 16 * D, :],
                  preferred_element_type=f32)
    for blk in range(1, 4):
        off = CONV_OFF[64] + blk * 16 * D
        c64 = c64 + jnp.dot(p16[blk:blk + 1, :].astype(BF),
                            wconv_ref[off:off + 16 * D, :],
                            preferred_element_type=f32)
    fused = fused + c64                              # (1, D) broadcasts over the sequence

    t_out = _ln(x1 + fused, vec(R_GT), vec(R_BT))    # encoder's internal LayerNorm
    x2 = _ln(x1 + t_out, vec(R_G2), vec(R_BE2))      # layer norm2

    # ---- stage 3: feed-forward + residual + norm3 ----
    hdn = jnp.dot(x2.astype(BF), w1_ref[...], preferred_element_type=f32) + v256_ref[1:2, :]
    hdn = jnp.maximum(hdn, 0.0)
    ff = jnp.dot(hdn.astype(BF), w2_ref[...], preferred_element_type=f32) + vec(R_B2)
    o_ref[...] = _ln(x2 + ff, vec(R_G3), vec(R_BE3))


# ---------------- pallas_call wrapper ----------------
def _act_spec():
    # per-batch block: squeeze the batch dim, full (S, D) tile in VMEM
    return pl.BlockSpec((None, S, D), lambda b: (b, 0, 0))


def _w_spec(a):
    return pl.BlockSpec(a.shape, lambda b: (0, 0))


def run_layer(x, w):
    ws = [w['wqk'], w['wvo'], w['wconv'], w['t4'], w['t16'],
          w['w1'], w['w2'], w['v256'], w['v128']]
    nb = x.shape[0]
    flops_b = (2 * S * D * 2 * D                                   # q|k projection
               + H * (2 * S * S * DK + 2 * S * D * D + 2 * S * S * D)  # attn per head
               + 2 * S * D * D                                     # scale-1 conv
               + 2 * (S // 4) * 4 * D * D + 2 * S * (S // 4) * D   # scale-4 conv + interp
               + 2 * (S // 16) * 16 * D * D + 2 * S * (S // 16) * D  # scale-16 conv + interp
               + 2 * 1 * S * D * D                                 # scale-64 conv
               + 2 * S * D * DFF + 2 * S * DFF * D)                # FFN
    bytes_w = sum(int(np.prod(a.shape)) * a.dtype.itemsize for a in ws)
    cost = pl.CostEstimate(flops=nb * flops_b,
                           transcendentals=nb * H * S * (S + 1),
                           bytes_accessed=2 * nb * S * D * 4 + bytes_w)
    return pl.pallas_call(
        layer_kernel,
        grid=(nb,),
        in_specs=[_act_spec()] + [_w_spec(a) for a in ws],
        out_specs=_act_spec(),
        out_shape=jax.ShapeDtypeStruct(x.shape, jnp.float32),
        scratch_shapes=[pltpu.VMEM((S, D), jnp.float32)],
        compiler_params=pltpu.CompilerParams(dimension_semantics=("parallel",)),
        cost_estimate=cost,
    )(x, *ws)


# ---------------- host-side exact folds / operand packing ----------------
def interp_matrix(l_in, l_out):
    """F.interpolate(mode='linear', align_corners=False) as a (l_out, l_in) matrix."""
    t = np.zeros((l_out, l_in), dtype=np.float32)
    scale = l_in / l_out
    for j in range(l_out):
        src = max((j + 0.5) * scale - 0.5, 0.0)
        i0 = min(int(np.floor(src)), l_in - 1)
        i1 = min(i0 + 1, l_in - 1)
        wgt = src - i0
        t[j, i0] += 1.0 - wgt
        t[j, i1] += wgt
    return jnp.asarray(t)


def fold_params(prm):
    f32 = jnp.float32
    inv = 1.0 / math.sqrt(DK)
    # q|k packed (one N=256 matmul); 1/sqrt(dk) folded into the q half; k-bias dropped
    # (it only shifts each score row by a constant, which softmax removes -> exact).
    wqk = jnp.concatenate([prm['wq'] * inv, prm['wk']], axis=1).astype(BF)
    bqk = jnp.concatenate([prm['bq'] * inv, jnp.zeros((1, D), f32)], axis=1)
    # per-head folded value->output projection; bias fold exact since softmax rows sum to 1.
    wvo = jnp.concatenate(
        [prm['wv'][:, h * DK:(h + 1) * DK] @ prm['wo'][h * DK:(h + 1) * DK, :]
         for h in range(H)], axis=1).astype(BF)
    b_att = prm['bv'] @ prm['wo'] + prm['bo']
    # conv weights with the fusion matrix folded in (Wc_i' = Wc_i @ wf_i); conv biases
    # commute through the interpolation (rows sum to 1) and fold with bf into one vector.
    wconv = jnp.concatenate(
        [prm[f'wc{i}'] @ prm['wf'][i * DC:(i + 1) * DC, :] for i in range(NS)],
        axis=0).astype(BF)
    b_conv = jnp.concatenate([prm[f'bc{i}'] for i in range(NS)], axis=1) @ prm['wf'] + prm['bf']
    v256 = jnp.concatenate([bqk, prm['b1']], axis=0)          # (2, 256)
    rows = [b_att, prm['g1'], prm['be1'], b_conv, prm['gt'], prm['bt'],
            prm['g2'], prm['be2'], prm['b2'], prm['g3'], prm['be3']]
    v128 = jnp.concatenate(rows + [jnp.zeros((NVEC - len(rows), D), f32)], axis=0)
    return dict(wqk=wqk, wvo=wvo, wconv=wconv,
                t4=interp_matrix(S // 4, S).astype(BF),
                t16=interp_matrix(S // 16, S).astype(BF),
                w1=prm['w1'].astype(BF), w2=prm['w2'].astype(BF),
                v256=v256, v128=v128)


# ---------------- parameters (deterministic, synthetic) ----------------
def init_params(key):
    keys = list(jax.random.split(key, 48))
    ki = iter(keys)

    def nrm(shape, s=0.05):
        return jax.random.normal(next(ki), shape, dtype=jnp.float32) * s

    prm = {}
    # ResourceAwareAttention (linear weights pre-transposed to (in, out))
    prm['wq'] = nrm((D, D)); prm['bq'] = nrm((1, D), 0.01)
    prm['wk'] = nrm((D, D)); prm['bk'] = nrm((1, D), 0.01)
    prm['wv'] = nrm((D, D)); prm['bv'] = nrm((1, D), 0.01)
    prm['wo'] = nrm((D, D)); prm['bo'] = nrm((1, D), 0.01)
    prm['g1'] = jnp.ones((1, D), jnp.float32); prm['be1'] = jnp.zeros((1, D), jnp.float32)
    # MultiScaleTemporalEncoder: Conv1d(D, D//NS, k=s, stride=s) as (s*D, D//NS) matmul
    for i, s in enumerate(SCALES):
        prm[f'wc{i}'] = nrm((s * D, DC), 0.05 / math.sqrt(s))
        prm[f'bc{i}'] = nrm((1, DC), 0.01)
    prm['wf'] = nrm((D, D)); prm['bf'] = nrm((1, D), 0.01)
    prm['gt'] = jnp.ones((1, D), jnp.float32); prm['bt'] = jnp.zeros((1, D), jnp.float32)
    prm['g2'] = jnp.ones((1, D), jnp.float32); prm['be2'] = jnp.zeros((1, D), jnp.float32)
    # feed-forward
    prm['w1'] = nrm((D, DFF)); prm['b1'] = nrm((1, DFF), 0.01)
    prm['w2'] = nrm((DFF, D)); prm['b2'] = nrm((1, D), 0.01)
    prm['g3'] = jnp.ones((1, D), jnp.float32); prm['be3'] = jnp.zeros((1, D), jnp.float32)
    return prm


# ---------------- pure-JAX f32 reference (unfolded math, for verification) ----------------
def reference_layer(x, prm):
    def ln(y, g, b):
        mu = y.mean(-1, keepdims=True)
        var = ((y - mu) ** 2).mean(-1, keepdims=True)
        return (y - mu) / jnp.sqrt(var + EPS) * g + b

    B_, S_, D_ = x.shape
    q = x @ prm['wq'] + prm['bq']
    k = x @ prm['wk'] + prm['bk']
    v = x @ prm['wv'] + prm['bv']
    qh = q.reshape(B_, S_, H, DK).transpose(0, 2, 1, 3)
    kh = k.reshape(B_, S_, H, DK).transpose(0, 2, 1, 3)
    vh = v.reshape(B_, S_, H, DK).transpose(0, 2, 1, 3)
    sc = qh @ kh.transpose(0, 1, 3, 2) / math.sqrt(DK)
    p = jax.nn.softmax(sc, axis=-1)
    ao = (p @ vh).transpose(0, 2, 1, 3).reshape(B_, S_, D_)
    ao = ao @ prm['wo'] + prm['bo']
    x1 = ln(x + ao, prm['g1'], prm['be1'])

    parts = []
    for i, s in enumerate(SCALES):
        t = interp_matrix(S_ // s, S_)
        pt = x1.reshape(B_, S_ // s, s * D_)
        c = pt @ prm[f'wc{i}'] + prm[f'bc{i}']
        parts.append(jnp.einsum('si,bic->bsc', t, c))
    ms = jnp.concatenate(parts, axis=-1)
    fused = ms @ prm['wf'] + prm['bf']
    t_out = ln(x1 + fused, prm['gt'], prm['bt'])
    x2 = ln(x1 + t_out, prm['g2'], prm['be2'])

    hdn = jnp.maximum(x2 @ prm['w1'] + prm['b1'], 0.0)
    ff = hdn @ prm['w2'] + prm['b2']
    return ln(x2 + ff, prm['g3'], prm['be3'])


# TODO(synk): avg_pool1d fallback branch (temporal_scales[i] > seq_len) not implemented;
#             S=64 >= max scale so the Conv1d path is always taken here.

if __name__ == "__main__":
    key = jax.random.PRNGKey(0)
    kx, kp = jax.random.split(key)
    x = jax.random.normal(kx, (B, S, D), dtype=jnp.float32)
    prm = init_params(kp)
    folded = fold_params(prm)

    out = jax.jit(run_layer)(x, folded)
    out = jax.block_until_ready(out)

    ref = jax.block_until_ready(reference_layer(x, prm))
    assert out.shape == (B, S, D)
    assert bool(jnp.all(jnp.isfinite(out)))
    # bf16 MXU inputs with f32 accumulation; host folds are numerically exact
    np.testing.assert_allclose(np.asarray(out), np.asarray(ref), rtol=2e-2, atol=2e-2)
    print("KERNEL_OK")
</pallas_src>

<mosaic_0001>
module attributes {stable_mosaic.version = 11 : i64} {
  func.func @layer_kernel(%arg0: i32, %arg1: memref<1x64x128xf32, #tpu.memory_space<vmem>>, %arg2: memref<128x256xbf16, #tpu.memory_space<vmem>>, %arg3: memref<128x1024xbf16, #tpu.memory_space<vmem>>, %arg4: memref<10880x128xbf16, #tpu.memory_space<vmem>>, %arg5: memref<64x16xbf16, #tpu.memory_space<vmem>>, %arg6: memref<64x4xbf16, #tpu.memory_space<vmem>>, %arg7: memref<128x256xbf16, #tpu.memory_space<vmem>>, %arg8: memref<256x128xbf16, #tpu.memory_space<vmem>>, %arg9: memref<2x256xf32, #tpu.memory_space<vmem>>, %arg10: memref<16x128xf32, #tpu.memory_space<vmem>>, %arg11: memref<1x64x128xf32, #tpu.memory_space<vmem>>, %arg12: memref<64x128xf32, #tpu.memory_space<vmem>>) attributes {dimension_semantics = [#tpu.dimension_semantics<parallel>], iteration_bounds = array<i64: 2>, scalar_prefetch = 0 : i64, scratch_operands = 1 : i64, tpu.core_type = #tpu.core_type<tc>, window_params = [{transform_indices = @transform_0, window_bounds = array<i64: 1, 64, 128>}, {pipeline_mode = #tpu.pipeline_mode<synchronous>, transform_indices = @transform_1, window_bounds = array<i64: 128, 256>}, {pipeline_mode = #tpu.pipeline_mode<synchronous>, transform_indices = @transform_2, window_bounds = array<i64: 128, 1024>}, {pipeline_mode = #tpu.pipeline_mode<synchronous>, transform_indices = @transform_3, window_bounds = array<i64: 10880, 128>}, {pipeline_mode = #tpu.pipeline_mode<synchronous>, transform_indices = @transform_4, window_bounds = array<i64: 64, 16>}, {pipeline_mode = #tpu.pipeline_mode<synchronous>, transform_indices = @transform_5, window_bounds = array<i64: 64, 4>}, {pipeline_mode = #tpu.pipeline_mode<synchronous>, transform_indices = @transform_6, window_bounds = array<i64: 128, 256>}, {pipeline_mode = #tpu.pipeline_mode<synchronous>, transform_indices = @transform_7, window_bounds = array<i64: 256, 128>}, {pipeline_mode = #tpu.pipeline_mode<synchronous>, transform_indices = @transform_8, window_bounds = array<i64: 2, 256>}, {pipeline_mode = #tpu.pipeline_mode<synchronous>, transform_indices = @transform_9, window_bounds = array<i64: 16, 128>}, {transform_indices = @transform_10, window_bounds = array<i64: 1, 64, 128>}]} {
    %c0 = arith.constant 0 : index
    %c0_0 = arith.constant 0 : index
    %c0_1 = arith.constant 0 : index
    %0 = vector.load %arg1[%c0, %c0_0, %c0_1] : memref<1x64x128xf32, #tpu.memory_space<vmem>>, vector<1x64x128xf32>
    %1 = vector.shape_cast %0 : vector<1x64x128xf32> to vector<64x128xf32>
    %2 = arith.truncf %1 : vector<64x128xf32> to vector<64x128xbf16>
    %c0_2 = arith.constant 0 : index
    %c0_3 = arith.constant 0 : index
    %3 = vector.load %arg2[%c0_2, %c0_3] : memref<128x256xbf16, #tpu.memory_space<vmem>>, vector<128x256xbf16>
    %cst = arith.constant dense<0.000000e+00> : vector<64x256xf32>
    %4 = tpu.matmul %2, %3, %cst {dimension_numbers = #tpu.dot_dimension_numbers<[1], [0], [0], [1], [0, 0, 1, 1], [], []>} : vector<64x128xbf16>, vector<128x256xbf16>, vector<64x256xf32> -> vector<64x256xf32>
    %c0_4 = arith.constant 0 : index
    %c0_5 = arith.constant 0 : index
    %5 = vector.load %arg9[%c0_4, %c0_5] : memref<2x256xf32, #tpu.memory_space<vmem>>, vector<1x256xf32>
    %6 = vector.broadcast %5 : vector<1x256xf32> to vector<64x256xf32>
    %7 = arith.addf %4, %6 : vector<64x256xf32>
    %8 = vector.extract_strided_slice %7 {offsets = [0, 0], sizes = [64, 128], strides = [1, 1]} : vector<64x256xf32> to vector<64x128xf32>
    %9 = arith.truncf %8 : vector<64x128xf32> to vector<64x128xbf16>
    %10 = vector.extract_strided_slice %7 {offsets = [0, 128], sizes = [64, 128], strides = [1, 1]} : vector<64x256xf32> to vector<64x128xf32>
    %11 = arith.truncf %10 : vector<64x128xf32> to vector<64x128xbf16>
    %c0_6 = arith.constant 0 : index
    %c0_7 = arith.constant 0 : index
    %12 = vector.load %arg10[%c0_6, %c0_7] : memref<16x128xf32, #tpu.memory_space<vmem>>, vector<1x128xf32>
    %13 = vector.broadcast %12 : vector<1x128xf32> to vector<64x128xf32>
    %14 = arith.addf %1, %13 : vector<64x128xf32>
    %15 = vector.extract_strided_slice %9 {offsets = [0, 0], sizes = [64, 16], strides = [1, 1]} : vector<64x128xbf16> to vector<64x16xbf16>
    %16 = vector.extract_strided_slice %11 {offsets = [0, 0], sizes = [64, 16], strides = [1, 1]} : vector<64x128xbf16> to vector<64x16xbf16>
    %cst_8 = arith.constant dense<0.000000e+00> : vector<64x64xf32>
    %17 = tpu.matmul %15, %16, %cst_8 {dimension_numbers = #tpu.dot_dimension_numbers<[1], [1], [0], [0], [0, 0, 1, 0], [], []>} : vector<64x16xbf16>, vector<64x16xbf16>, vector<64x64xf32> -> vector<64x64xf32>
    %cst_9 = arith.constant dense<0xFF800000> : vector<64xf32>
    %18 = vector.multi_reduction <maximumf>, %17, %cst_9 [1] : vector<64x64xf32> to vector<64xf32>
    %19 = vector.shape_cast %18 : vector<64xf32> to vector<64x1xf32>
    %20 = vector.broadcast %19 : vector<64x1xf32> to vector<64x64xf32>
    %21 = arith.subf %17, %20 : vector<64x64xf32>
    %22 = math.exp %21 : vector<64x64xf32>
    %cst_10 = arith.constant dense<0.000000e+00> : vector<64xf32>
    %23 = vector.multi_reduction <add>, %22, %cst_10 [1] : vector<64x64xf32> to vector<64xf32>
    %24 = vector.shape_cast %23 : vector<64xf32> to vector<64x1xf32>
    %25 = tpu.reciprocal %24 {approx = true} : vector<64x1xf32> -> vector<64x1xf32>
    %26 = vector.broadcast %25 : vector<64x1xf32> to vector<64x64xf32>
    %27 = arith.mulf %22, %26 : vector<64x64xf32>
    %c0_11 = arith.constant 0 : index
    %c0_12 = arith.constant 0 : index
    %28 = vector.load %arg3[%c0_11, %c0_12] : memref<128x1024xbf16, #tpu.memory_space<vmem>>, vector<128x128xbf16>
    %cst_13 = arith.constant dense<0.000000e+00> : vector<64x128xf32>
    %29 = tpu.matmul %2, %28, %cst_13 {dimension_numbers = #tpu.dot_dimension_numbers<[1], [0], [0], [1], [0, 0, 1, 1], [], []>} : vector<64x128xbf16>, vector<128x128xbf16>, vector<64x128xf32> -> vector<64x128xf32>
    %30 = arith.truncf %27 : vector<64x64xf32> to vector<64x64xbf16>
    %31 = arith.truncf %29 : vector<64x128xf32> to vector<64x128xbf16>
    %cst_14 = arith.constant dense<0.000000e+00> : vector<64x128xf32>
    %32 = tpu.matmul %30, %31, %cst_14 {dimension_numbers = #tpu.dot_dimension_numbers<[1], [0], [0], [1], [0, 0, 1, 1], [], []>} : vector<64x64xbf16>, vector<64x128xbf16>, vector<64x128xf32> -> vector<64x128xf32>
    %33 = arith.addf %14, %32 : vector<64x128xf32>
    %34 = vector.extract_strided_slice %9 {offsets = [0, 16], sizes = [64, 16], strides = [1, 1]} : vector<64x128xbf16> to vector<64x16xbf16>
    %35 = vector.extract_strided_slice %11 {offsets = [0, 16], sizes = [64, 16], strides = [1, 1]} : vector<64x128xbf16> to vector<64x16xbf16>
    %cst_15 = arith.constant dense<0.000000e+00> : vector<64x64xf32>
    %36 = tpu.matmul %34, %35, %cst_15 {dimension_numbers = #tpu.dot_dimension_numbers<[1], [1], [0], [0], [0, 0, 1, 0], [], []>} : vector<64x16xbf16>, vector<64x16xbf16>, vector<64x64xf32> -> vector<64x64xf32>
    %cst_16 = arith.constant dense<0xFF800000> : vector<64xf32>
    %37 = vector.multi_reduction <maximumf>, %36, %cst_16 [1] : vector<64x64xf32> to vector<64xf32>
    %38 = vector.shape_cast %37 : vector<64xf32> to vector<64x1xf32>
    %39 = vector.broadcast %38 : vector<64x1xf32> to vector<64x64xf32>
    %40 = arith.subf %36, %39 : vector<64x64xf32>
    %41 = math.exp %40 : vector<64x64xf32>
    %cst_17 = arith.constant dense<0.000000e+00> : vector<64xf32>
    %42 = vector.multi_reduction <add>, %41, %cst_17 [1] : vector<64x64xf32> to vector<64xf32>
    %43 = vector.shape_cast %42 : vector<64xf32> to vector<64x1xf32>
    %44 = tpu.reciprocal %43 {approx = true} : vector<64x1xf32> -> vector<64x1xf32>
    %45 = vector.broadcast %44 : vector<64x1xf32> to vector<64x64xf32>
    %46 = arith.mulf %41, %45 : vector<64x64xf32>
    %c0_18 = arith.constant 0 : index
    %c128 = arith.constant 128 : index
    %47 = vector.load %arg3[%c0_18, %c128] : memref<128x1024xbf16, #tpu.memory_space<vmem>>, vector<128x128xbf16>
    %cst_19 = arith.constant dense<0.000000e+00> : vector<64x128xf32>
    %48 = tpu.matmul %2, %47, %cst_19 {dimension_numbers = #tpu.dot_dimension_numbers<[1], [0], [0], [1], [0, 0, 1, 1], [], []>} : vector<64x128xbf16>, vector<128x128xbf16>, vector<64x128xf32> -> vector<64x128xf32>
    %49 = arith.truncf %46 : vector<64x64xf32> to vector<64x64xbf16>
    %50 = arith.truncf %48 : vector<64x128xf32> to vector<64x128xbf16>
    %cst_20 = arith.constant dense<0.000000e+00> : vector<64x128xf32>
    %51 = tpu.matmul %49, %50, %cst_20 {dimension_numbers = #tpu.dot_dimension_numbers<[1], [0], [0], [1], [0, 0, 1, 1], [], []>} : vector<64x64xbf16>, vector<64x128xbf16>, vector<64x128xf32> -> vector<64x128xf32>
    %52 = arith.addf %33, %51 : vector<64x128xf32>
    %53 = vector.extract_strided_slice %9 {offsets = [0, 32], sizes = [64, 16], strides = [1, 1]} : vector<64x128xbf16> to vector<64x16xbf16>
    %54 = vector.extract_strided_slice %11 {offsets = [0, 32], sizes = [64, 16], strides = [1, 1]} : vector<64x128xbf16> to vector<64x16xbf16>
    %cst_21 = arith.constant dense<0.000000e+00> : vector<64x64xf32>
    %55 = tpu.matmul %53, %54, %cst_21 {dimension_numbers = #tpu.dot_dimension_numbers<[1], [1], [0], [0], [0, 0, 1, 0], [], []>} : vector<64x16xbf16>, vector<64x16xbf16>, vector<64x64xf32> -> vector<64x64xf32>
    %cst_22 = arith.constant dense<0xFF800000> : vector<64xf32>
    %56 = vector.multi_reduction <maximumf>, %55, %cst_22 [1] : vector<64x64xf32> to vector<64xf32>
    %57 = vector.shape_cast %56 : vector<64xf32> to vector<64x1xf32>
    %58 = vector.broadcast %57 : vector<64x1xf32> to vector<64x64xf32>
    %59 = arith.subf %55, %58 : vector<64x64xf32>
    %60 = math.exp %59 : vector<64x64xf32>
    %cst_23 = arith.constant dense<0.000000e+00> : vector<64xf32>
    %61 = vector.multi_reduction <add>, %60, %cst_23 [1] : vector<64x64xf32> to vector<64xf32>
    %62 = vector.shape_cast %61 : vector<64xf32> to vector<64x1xf32>
    %63 = tpu.reciprocal %62 {approx = true} : vector<64x1xf32> -> vector<64x1xf32>
    %64 = vector.broadcast %63 : vector<64x1xf32> to vector<64x64xf32>
    %65 = arith.mulf %60, %64 : vector<64x64xf32>
    %c0_24 = arith.constant 0 : index
    %c256 = arith.constant 256 : index
    %66 = vector.load %arg3[%c0_24, %c256] : memref<128x1024xbf16, #tpu.memory_space<vmem>>, vector<128x128xbf16>
    %cst_25 = arith.constant dense<0.000000e+00> : vector<64x128xf32>
    %67 = tpu.matmul %2, %66, %cst_25 {dimension_numbers = #tpu.dot_dimension_numbers<[1], [0], [0], [1], [0, 0, 1, 1], [], []>} : vector<64x128xbf16>, vector<128x128xbf16>, vector<64x128xf32> -> vector<64x128xf32>
    %68 = arith.truncf %65 : vector<64x64xf32> to vector<64x64xbf16>
    %69 = arith.truncf %67 : vector<64x128xf32> to vector<64x128xbf16>
    %cst_26 = arith.constant dense<0.000000e+00> : vector<64x128xf32>
    %70 = tpu.matmul %68, %69, %cst_26 {dimension_numbers = #tpu.dot_dimension_numbers<[1], [0], [0], [1], [0, 0, 1, 1], [], []>} : vector<64x64xbf16>, vector<64x128xbf16>, vector<64x128xf32> -> vector<64x128xf32>
    %71 = arith.addf %52, %70 : vector<64x128xf32>
    %72 = vector.extract_strided_slice %9 {offsets = [0, 48], sizes = [64, 16], strides = [1, 1]} : vector<64x128xbf16> to vector<64x16xbf16>
    %73 = vector.extract_strided_slice %11 {offsets = [0, 48], sizes = [64, 16], strides = [1, 1]} : vector<64x128xbf16> to vector<64x16xbf16>
    %cst_27 = arith.constant dense<0.000000e+00> : vector<64x64xf32>
    %74 = tpu.matmul %72, %73, %cst_27 {dimension_numbers = #tpu.dot_dimension_numbers<[1], [1], [0], [0], [0, 0, 1, 0], [], []>} : vector<64x16xbf16>, vector<64x16xbf16>, vector<64x64xf32> -> vector<64x64xf32>
    %cst_28 = arith.constant dense<0xFF800000> : vector<64xf32>
    %75 = vector.multi_reduction <maximumf>, %74, %cst_28 [1] : vector<64x64xf32> to vector<64xf32>
    %76 = vector.shape_cast %75 : vector<64xf32> to vector<64x1xf32>
    %77 = vector.broadcast %76 : vector<64x1xf32> to vector<64x64xf32>
    %78 = arith.subf %74, %77 : vector<64x64xf32>
    %79 = math.exp %78 : vector<64x64xf32>
    %cst_29 = arith.constant dense<0.000000e+00> : vector<64xf32>
    %80 = vector.multi_reduction <add>, %79, %cst_29 [1] : vector<64x64xf32> to vector<64xf32>
    %81 = vector.shape_cast %80 : vector<64xf32> to vector<64x1xf32>
    %82 = tpu.reciprocal %81 {approx = true} : vector<64x1xf32> -> vector<64x1xf32>
    %83 = vector.broadcast %82 : vector<64x1xf32> to vector<64x64xf32>
    %84 = arith.mulf %79, %83 : vector<64x64xf32>
    %c0_30 = arith.constant 0 : index
    %c384 = arith.constant 384 : index
    %85 = vector.load %arg3[%c0_30, %c384] : memref<128x1024xbf16, #tpu.memory_space<vmem>>, vector<128x128xbf16>
    %cst_31 = arith.constant dense<0.000000e+00> : vector<64x128xf32>
    %86 = tpu.matmul %2, %85, %cst_31 {dimension_numbers = #tpu.dot_dimension_numbers<[1], [0], [0], [1], [0, 0, 1, 1], [], []>} : vector<64x128xbf16>, vector<128x128xbf16>, vector<64x128xf32> -> vector<64x128xf32>
    %87 = arith.truncf %84 : vector<64x64xf32> to vector<64x64xbf16>
    %88 = arith.truncf %86 : vector<64x128xf32> to vector<64x128xbf16>
    %cst_32 = arith.constant dense<0.000000e+00> : vector<64x128xf32>
    %89 = tpu.matmul %87, %88, %cst_32 {dimension_numbers = #tpu.dot_dimension_numbers<[1], [0], [0], [1], [0, 0, 1, 1], [], []>} : vector<64x64xbf16>, vector<64x128xbf16>, vector<64x128xf32> -> vector<64x128xf32>
    %90 = arith.addf %71, %89 : vector<64x128xf32>
    %91 = vector.extract_strided_slice %9 {offsets = [0, 64], sizes = [64, 16], strides = [1, 1]} : vector<64x128xbf16> to vector<64x16xbf16>
    %92 = vector.extract_strided_slice %11 {offsets = [0, 64], sizes = [64, 16], strides = [1, 1]} : vector<64x128xbf16> to vector<64x16xbf16>
    %cst_33 = arith.constant dense<0.000000e+00> : vector<64x64xf32>
    %93 = tpu.matmul %91, %92, %cst_33 {dimension_numbers = #tpu.dot_dimension_numbers<[1], [1], [0], [0], [0, 0, 1, 0], [], []>} : vector<64x16xbf16>, vector<64x16xbf16>, vector<64x64xf32> -> vector<64x64xf32>
    %cst_34 = arith.constant dense<0xFF800000> : vector<64xf32>
    %94 = vector.multi_reduction <maximumf>, %93, %cst_34 [1] : vector<64x64xf32> to vector<64xf32>
    %95 = vector.shape_cast %94 : vector<64xf32> to vector<64x1xf32>
    %96 = vector.broadcast %95 : vector<64x1xf32> to vector<64x64xf32>
    %97 = arith.subf %93, %96 : vector<64x64xf32>
    %98 = math.exp %97 : vector<64x64xf32>
    %cst_35 = arith.constant dense<0.000000e+00> : vector<64xf32>
    %99 = vector.multi_reduction <add>, %98, %cst_35 [1] : vector<64x64xf32> to vector<64xf32>
    %100 = vector.shape_cast %99 : vector<64xf32> to vector<64x1xf32>
    %101 = tpu.reciprocal %100 {approx = true} : vector<64x1xf32> -> vector<64x1xf32>
    %102 = vector.broadcast %101 : vector<64x1xf32> to vector<64x64xf32>
    %103 = arith.mulf %98, %102 : vector<64x64xf32>
    %c0_36 = arith.constant 0 : index
    %c512 = arith.constant 512 : index
    %104 = vector.load %arg3[%c0_36, %c512] : memref<128x1024xbf16, #tpu.memory_space<vmem>>, vector<128x128xbf16>
    %cst_37 = arith.constant dense<0.000000e+00> : vector<64x128xf32>
    %105 = tpu.matmul %2, %104, %cst_37 {dimension_numbers = #tpu.dot_dimension_numbers<[1], [0], [0], [1], [0, 0, 1, 1], [], []>} : vector<64x128xbf16>, vector<128x128xbf16>, vector<64x128xf32> -> vector<64x128xf32>
    %106 = arith.truncf %103 : vector<64x64xf32> to vector<64x64xbf16>
    %107 = arith.truncf %105 : vector<64x128xf32> to vector<64x128xbf16>
    %cst_38 = arith.constant dense<0.000000e+00> : vector<64x128xf32>
    %108 = tpu.matmul %106, %107, %cst_38 {dimension_numbers = #tpu.dot_dimension_numbers<[1], [0], [0], [1], [0, 0, 1, 1], [], []>} : vector<64x64xbf16>, vector<64x128xbf16>, vector<64x128xf32> -> vector<64x128xf32>
    %109 = arith.addf %90, %108 : vector<64x128xf32>
    %110 = vector.extract_strided_slice %9 {offsets = [0, 80], sizes = [64, 16], strides = [1, 1]} : vector<64x128xbf16> to vector<64x16xbf16>
    %111 = vector.extract_strided_slice %11 {offsets = [0, 80], sizes = [64, 16], strides = [1, 1]} : vector<64x128xbf16> to vector<64x16xbf16>
    %cst_39 = arith.constant dense<0.000000e+00> : vector<64x64xf32>
    %112 = tpu.matmul %110, %111, %cst_39 {dimension_numbers = #tpu.dot_dimension_numbers<[1], [1], [0], [0], [0, 0, 1, 0], [], []>} : vector<64x16xbf16>, vector<64x16xbf16>, vector<64x64xf32> -> vector<64x64xf32>
    %cst_40 = arith.constant dense<0xFF800000> : vector<64xf32>
    %113 = vector.multi_reduction <maximumf>, %112, %cst_40 [1] : vector<64x64xf32> to vector<64xf32>
    %114 = vector.shape_cast %113 : vector<64xf32> to vector<64x1xf32>
    %115 = vector.broadcast %114 : vector<64x1xf32> to vector<64x64xf32>
    %116 = arith.subf %112, %115 : vector<64x64xf32>
    %117 = math.exp %116 : vector<64x64xf32>
    %cst_41 = arith.constant dense<0.000000e+00> : vector<64xf32>
    %118 = vector.multi_reduction <add>, %117, %cst_41 [1] : vector<64x64xf32> to vector<64xf32>
    %119 = vector.shape_cast %118 : vector<64xf32> to vector<64x1xf32>
    %120 = tpu.reciprocal %119 {approx = true} : vector<64x1xf32> -> vector<64x1xf32>
    %121 = vector.broadcast %120 : vector<64x1xf32> to vector<64x64xf32>
    %122 = arith.mulf %117, %121 : vector<64x64xf32>
    %c0_42 = arith.constant 0 : index
    %c640 = arith.constant 640 : index
    %123 = vector.load %arg3[%c0_42, %c640] : memref<128x1024xbf16, #tpu.memory_space<vmem>>, vector<128x128xbf16>
    %cst_43 = arith.constant dense<0.000000e+00> : vector<64x128xf32>
    %124 = tpu.matmul %2, %123, %cst_43 {dimension_numbers = #tpu.dot_dimension_numbers<[1], [0], [0], [1], [0, 0, 1, 1], [], []>} : vector<64x128xbf16>, vector<128x128xbf16>, vector<64x128xf32> -> vector<64x128xf32>
    %125 = arith.truncf %122 : vector<64x64xf32> to vector<64x64xbf16>
    %126 = arith.truncf %124 : vector<64x128xf32> to vector<64x128xbf16>
    %cst_44 = arith.constant dense<0.000000e+00> : vector<64x128xf32>
    %127 = tpu.matmul %125, %126, %cst_44 {dimension_numbers = #tpu.dot_dimension_numbers<[1], [0], [0], [1], [0, 0, 1, 1], [], []>} : vector<64x64xbf16>, vector<64x128xbf16>, vector<64x128xf32> -> vector<64x128xf32>
    %128 = arith.addf %109, %127 : vector<64x128xf32>
    %129 = vector.extract_strided_slice %9 {offsets = [0, 96], sizes = [64, 16], strides = [1, 1]} : vector<64x128xbf16> to vector<64x16xbf16>
    %130 = vector.extract_strided_slice %11 {offsets = [0, 96], sizes = [64, 16], strides = [1, 1]} : vector<64x128xbf16> to vector<64x16xbf16>
    %cst_45 = arith.constant dense<0.000000e+00> : vector<64x64xf32>
    %131 = tpu.matmul %129, %130, %cst_45 {dimension_numbers = #tpu.dot_dimension_numbers<[1], [1], [0], [0], [0, 0, 1, 0], [], []>} : vector<64x16xbf16>, vector<64x16xbf16>, vector<64x64xf32> -> vector<64x64xf32>
    %cst_46 = arith.constant dense<0xFF800000> : vector<64xf32>
    %132 = vector.multi_reduction <maximumf>, %131, %cst_46 [1] : vector<64x64xf32> to vector<64xf32>
    %133 = vector.shape_cast %132 : vector<64xf32> to vector<64x1xf32>
    %134 = vector.broadcast %133 : vector<64x1xf32> to vector<64x64xf32>
    %135 = arith.subf %131, %134 : vector<64x64xf32>
    %136 = math.exp %135 : vector<64x64xf32>
    %cst_47 = arith.constant dense<0.000000e+00> : vector<64xf32>
    %137 = vector.multi_reduction <add>, %136, %cst_47 [1] : vector<64x64xf32> to vector<64xf32>
    %138 = vector.shape_cast %137 : vector<64xf32> to vector<64x1xf32>
    %139 = tpu.reciprocal %138 {approx = true} : vector<64x1xf32> -> vector<64x1xf32>
    %140 = vector.broadcast %139 : vector<64x1xf32> to vector<64x64xf32>
    %141 = arith.mulf %136, %140 : vector<64x64xf32>
    %c0_48 = arith.constant 0 : index
    %c768 = arith.constant 768 : index
    %142 = vector.load %arg3[%c0_48, %c768] : memref<128x1024xbf16, #tpu.memory_space<vmem>>, vector<128x128xbf16>
    %cst_49 = arith.constant dense<0.000000e+00> : vector<64x128xf32>
    %143 = tpu.matmul %2, %142, %cst_49 {dimension_numbers = #tpu.dot_dimension_numbers<[1], [0], [0], [1], [0, 0, 1, 1], [], []>} : vector<64x128xbf16>, vector<128x128xbf16>, vector<64x128xf32> -> vector<64x128xf32>
    %144 = arith.truncf %141 : vector<64x64xf32> to vector<64x64xbf16>
    %145 = arith.truncf %143 : vector<64x128xf32> to vector<64x128xbf16>
    %cst_50 = arith.constant dense<0.000000e+00> : vector<64x128xf32>
    %146 = tpu.matmul %144, %145, %cst_50 {dimension_numbers = #tpu.dot_dimension_numbers<[1], [0], [0], [1], [0, 0, 1, 1], [], []>} : vector<64x64xbf16>, vector<64x128xbf16>, vector<64x128xf32> -> vector<64x128xf32>
    %147 = arith.addf %128, %146 : vector<64x128xf32>
    %148 = vector.extract_strided_slice %9 {offsets = [0, 112], sizes = [64, 16], strides = [1, 1]} : vector<64x128xbf16> to vector<64x16xbf16>
    %149 = vector.extract_strided_slice %11 {offsets = [0, 112], sizes = [64, 16], strides = [1, 1]} : vector<64x128xbf16> to vector<64x16xbf16>
    %cst_51 = arith.constant dense<0.000000e+00> : vector<64x64xf32>
    %150 = tpu.matmul %148, %149, %cst_51 {dimension_numbers = #tpu.dot_dimension_numbers<[1], [1], [0], [0], [0, 0, 1, 0], [], []>} : vector<64x16xbf16>, vector<64x16xbf16>, vector<64x64xf32> -> vector<64x64xf32>
    %cst_52 = arith.constant dense<0xFF800000> : vector<64xf32>
    %151 = vector.multi_reduction <maximumf>, %150, %cst_52 [1] : vector<64x64xf32> to vector<64xf32>
    %152 = vector.shape_cast %151 : vector<64xf32> to vector<64x1xf32>
    %153 = vector.broadcast %152 : vector<64x1xf32> to vector<64x64xf32>
    %154 = arith.subf %150, %153 : vector<64x64xf32>
    %155 = math.exp %154 : vector<64x64xf32>
    %cst_53 = arith.constant dense<0.000000e+00> : vector<64xf32>
    %156 = vector.multi_reduction <add>, %155, %cst_53 [1] : vector<64x64xf32> to vector<64xf32>
    %157 = vector.shape_cast %156 : vector<64xf32> to vector<64x1xf32>
    %158 = tpu.reciprocal %157 {approx = true} : vector<64x1xf32> -> vector<64x1xf32>
    %159 = vector.broadcast %158 : vector<64x1xf32> to vector<64x64xf32>
    %160 = arith.mulf %155, %159 : vector<64x64xf32>
    %c0_54 = arith.constant 0 : index
    %c896 = arith.constant 896 : index
    %161 = vector.load %arg3[%c0_54, %c896] : memref<128x1024xbf16, #tpu.memory_space<vmem>>, vector<128x128xbf16>
    %cst_55 = arith.constant dense<0.000000e+00> : vector<64x128xf32>
    %162 = tpu.matmul %2, %161, %cst_55 {dimension_numbers = #tpu.dot_dimension_numbers<[1], [0], [0], [1], [0, 0, 1, 1], [], []>} : vector<64x128xbf16>, vector<128x128xbf16>, vector<64x128xf32> -> vector<64x128xf32>
    %163 = arith.truncf %160 : vector<64x64xf32> to vector<64x64xbf16>
    %164 = arith.truncf %162 : vector<64x128xf32> to vector<64x128xbf16>
    %cst_56 = arith.constant dense<0.000000e+00> : vector<64x128xf32>
    %165 = tpu.matmul %163, %164, %cst_56 {dimension_numbers = #tpu.dot_dimension_numbers<[1], [0], [0], [1], [0, 0, 1, 1], [], []>} : vector<64x64xbf16>, vector<64x128xbf16>, vector<64x128xf32> -> vector<64x128xf32>
    %166 = arith.addf %147, %165 : vector<64x128xf32>
    %c1 = arith.constant 1 : index
    %c0_57 = arith.constant 0 : index
    %167 = vector.load %arg10[%c1, %c0_57] : memref<16x128xf32, #tpu.memory_space<vmem>>, vector<1x128xf32>
    %c2 = arith.constant 2 : index
    %c0_58 = arith.constant 0 : index
    %168 = vector.load %arg10[%c2, %c0_58] : memref<16x128xf32, #tpu.memory_space<vmem>>, vector<1x128xf32>
    %cst_59 = arith.constant dense<0.000000e+00> : vector<64xf32>
    %169 = vector.multi_reduction <add>, %166, %cst_59 [1] : vector<64x128xf32> to vector<64xf32>
    %170 = vector.shape_cast %169 : vector<64xf32> to vector<64x1xf32>
    %cst_60 = arith.constant 1.280000e+02 : f32
    %171 = vector.broadcast %cst_60 : f32 to vector<64x1xf32>
    %172 = arith.divf %170, %171 : vector<64x1xf32>
    %173 = vector.broadcast %172 : vector<64x1xf32> to vector<64x128xf32>
    %174 = arith.subf %166, %173 : vector<64x128xf32>
    %175 = arith.mulf %174, %174 : vector<64x128xf32>
    %cst_61 = arith.constant dense<0.000000e+00> : vector<64xf32>
    %176 = vector.multi_reduction <add>, %175, %cst_61 [1] : vector<64x128xf32> to vector<64xf32>
    %177 = vector.shape_cast %176 : vector<64xf32> to vector<64x1xf32>
    %cst_62 = arith.constant 1.280000e+02 : f32
    %178 = vector.broadcast %cst_62 : f32 to vector<64x1xf32>
    %179 = arith.divf %177, %178 : vector<64x1xf32>
    %180 = vector.broadcast %172 : vector<64x1xf32> to vector<64x128xf32>
    %181 = arith.subf %166, %180 : vector<64x128xf32>
    %cst_63 = arith.constant 9.99999974E-6 : f32
    %182 = vector.broadcast %cst_63 : f32 to vector<64x1xf32>
    %183 = arith.addf %179, %182 : vector<64x1xf32>
    %184 = math.rsqrt %183 : vector<64x1xf32>
    %185 = vector.broadcast %184 : vector<64x1xf32> to vector<64x128xf32>
    %186 = arith.mulf %181, %185 : vector<64x128xf32>
    %187 = vector.broadcast %167 : vector<1x128xf32> to vector<64x128xf32>
    %188 = arith.mulf %186, %187 : vector<64x128xf32>
    %189 = vector.broadcast %168 : vector<1x128xf32> to vector<64x128xf32>
    %190 = arith.addf %188, %189 : vector<64x128xf32>
    %c0_64 = arith.constant 0 : index
    %c0_65 = arith.constant 0 : index
    %191 = vector.load %arg12[%c0_64, %c0_65] : memref<64x128xf32, #tpu.memory_space<vmem>>, vector<64x128xf32>
    tpu.vector_store %arg12[%c0_64, %c0_65], %190 {strides = array<i32>} : memref<64x128xf32, #tpu.memory_space<vmem>>, vector<64x128xf32>,
    %192 = arith.truncf %190 : vector<64x128xf32> to vector<64x128xbf16>
    %c0_66 = arith.constant 0 : index
    %c0_67 = arith.constant 0 : index
    %193 = vector.load %arg4[%c0_66, %c0_67] : memref<10880x128xbf16, #tpu.memory_space<vmem>>, vector<128x128xbf16>
    %cst_68 = arith.constant dense<0.000000e+00> : vector<64x128xf32>
    %194 = tpu.matmul %192, %193, %cst_68 {dimension_numbers = #tpu.dot_dimension_numbers<[1], [0], [0], [1], [0, 0, 1, 1], [], []>} : vector<64x128xbf16>, vector<128x128xbf16>, vector<64x128xf32> -> vector<64x128xf32>
    %c3 = arith.constant 3 : index
    %c0_69 = arith.constant 0 : index
    %195 = vector.load %arg10[%c3, %c0_69] : memref<16x128xf32, #tpu.memory_space<vmem>>, vector<1x128xf32>
    %196 = vector.broadcast %195 : vector<1x128xf32> to vector<64x128xf32>
    %197 = arith.addf %194, %196 : vector<64x128xf32>
    %c0_70 = arith.constant 0 : index
    %c0_71 = arith.constant 0 : index
    %198 = tpu.strided_load %arg12[%c0_70, %c0_71] {strides = array<i32: 4, 1>} : memref<64x128xf32, #tpu.memory_space<vmem>>, vector<16x128xf32>
    %c1_72 = arith.constant 1 : index
    %c0_73 = arith.constant 0 : index
    %199 = tpu.strided_load %arg12[%c1_72, %c0_73] {strides = array<i32: 4, 1>} : memref<64x128xf32, #tpu.memory_space<vmem>>, vector<16x128xf32>
    %c2_74 = arith.constant 2 : index
    %c0_75 = arith.constant 0 : index
    %200 = tpu.strided_load %arg12[%c2_74, %c0_75] {strides = array<i32: 4, 1>} : memref<64x128xf32, #tpu.memory_space<vmem>>, vector<16x128xf32>
    %c3_76 = arith.constant 3 : index
    %c0_77 = arith.constant 0 : index
    %201 = tpu.strided_load %arg12[%c3_76, %c0_77] {strides = array<i32: 4, 1>} : memref<64x128xf32, #tpu.memory_space<vmem>>, vector<16x128xf32>
    %202 = tpu.concatenate %198, %199, %200, %201 in 1 : vector<16x128xf32>, vector<16x128xf32>, vector<16x128xf32>, vector<16x128xf32> -> vector<16x512xf32>
    %203 = arith.truncf %202 : vector<16x512xf32> to vector<16x512xbf16>
    %c128_78 = arith.constant 128 : index
    %c0_79 = arith.constant 0 : index
    %204 = vector.load %arg4[%c128_78, %c0_79] : memref<10880x128xbf16, #tpu.memory_space<vmem>>, vector<512x128xbf16>
    %cst_80 = arith.constant dense<0.000000e+00> : vector<16x128xf32>
    %205 = tpu.matmul %203, %204, %cst_80 {dimension_numbers = #tpu.dot_dimension_numbers<[1], [0], [0], [1], [0, 0, 1, 1], [], []>} : vector<16x512xbf16>, vector<512x128xbf16>, vector<16x128xf32> -> vector<16x128xf32>
    %c0_81 = arith.constant 0 : index
    %c0_82 = arith.constant 0 : index
    %206 = vector.load %arg5[%c0_81, %c0_82] : memref<64x16xbf16, #tpu.memory_space<vmem>>, vector<64x16xbf16>
    %207 = arith.truncf %205 : vector<16x128xf32> to vector<16x128xbf16>
    %cst_83 = arith.constant dense<0.000000e+00> : vector<64x128xf32>
    %208 = tpu.matmul %206, %207, %cst_83 {dimension_numbers = #tpu.dot_dimension_numbers<[1], [0], [0], [1], [0, 0, 1, 1], [], []>} : vector<64x16xbf16>, vector<16x128xbf16>, vector<64x128xf32> -> vector<64x128xf32>
    %209 = arith.addf %197, %208 : vector<64x128xf32>
    %c0_84 = arith.constant 0 : index
    %c0_85 = arith.constant 0 : index
    %210 = tpu.strided_load %arg12[%c0_84, %c0_85] {strides = array<i32: 16, 1>} : memref<64x128xf32, #tpu.memory_space<vmem>>, vector<4x128xf32>
    %c1_86 = arith.constant 1 : index
    %c0_87 = arith.constant 0 : index
    %211 = tpu.strided_load %arg12[%c1_86, %c0_87] {strides = array<i32: 16, 1>} : memref<64x128xf32, #tpu.memory_space<vmem>>, vector<4x128xf32>
    %c2_88 = arith.constant 2 : index
    %c0_89 = arith.constant 0 : index
    %212 = tpu.strided_load %arg12[%c2_88, %c0_89] {strides = array<i32: 16, 1>} : memref<64x128xf32, #tpu.memory_space<vmem>>, vector<4x128xf32>
    %c3_90 = arith.constant 3 : index
    %c0_91 = arith.constant 0 : index
    %213 = tpu.strided_load %arg12[%c3_90, %c0_91] {strides = array<i32: 16, 1>} : memref<64x128xf32, #tpu.memory_space<vmem>>, vector<4x128xf32>
    %c4 = arith.constant 4 : index
    %c0_92 = arith.constant 0 : index
    %214 = tpu.strided_load %arg12[%c4, %c0_92] {strides = array<i32: 16, 1>} : memref<64x128xf32, #tpu.memory_space<vmem>>, vector<4x128xf32>
    %c5 = arith.constant 5 : index
    %c0_93 = arith.constant 0 : index
    %215 = tpu.strided_load %arg12[%c5, %c0_93] {strides = array<i32: 16, 1>} : memref<64x128xf32, #tpu.memory_space<vmem>>, vector<4x128xf32>
    %c6 = arith.constant 6 : index
    %c0_94 = arith.constant 0 : index
    %216 = tpu.strided_load %arg12[%c6, %c0_94] {strides = array<i32: 16, 1>} : memref<64x128xf32, #tpu.memory_space<vmem>>, vector<4x128xf32>
    %c7 = arith.constant 7 : index
    %c0_95 = arith.constant 0 : index
    %217 = tpu.strided_load %arg12[%c7, %c0_95] {strides = array<i32: 16, 1>} : memref<64x128xf32, #tpu.memory_space<vmem>>, vector<4x128xf32>
    %c8 = arith.constant 8 : index
    %c0_96 = arith.constant 0 : index
    %218 = tpu.strided_load %arg12[%c8, %c0_96] {strides = array<i32: 16, 1>} : memref<64x128xf32, #tpu.memory_space<vmem>>, vector<4x128xf32>
    %c9 = arith.constant 9 : index
    %c0_97 = arith.constant 0 : index
    %219 = tpu.strided_load %arg12[%c9, %c0_97] {strides = array<i32: 16, 1>} : memref<64x128xf32, #tpu.memory_space<vmem>>, vector<4x128xf32>
    %c10 = arith.constant 10 : index
    %c0_98 = arith.constant 0 : index
    %220 = tpu.strided_load %arg12[%c10, %c0_98] {strides = array<i32: 16, 1>} : memref<64x128xf32, #tpu.memory_space<vmem>>, vector<4x128xf32>
    %c11 = arith.constant 11 : index
    %c0_99 = arith.constant 0 : index
    %221 = tpu.strided_load %arg12[%c11, %c0_99] {strides = array<i32: 16, 1>} : memref<64x128xf32, #tpu.memory_space<vmem>>, vector<4x128xf32>
    %c12 = arith.constant 12 : index
    %c0_100 = arith.constant 0 : index
    %222 = tpu.strided_load %arg12[%c12, %c0_100] {strides = array<i32: 16, 1>} : memref<64x128xf32, #tpu.memory_space<vmem>>, vector<4x128xf32>
    %c13 = arith.constant 13 : index
    %c0_101 = arith.constant 0 : index
    %223 = tpu.strided_load %arg12[%c13, %c0_101] {strides = array<i32: 16, 1>} : memref<64x128xf32, #tpu.memory_space<vmem>>, vector<4x128xf32>
    %c14 = arith.constant 14 : index
    %c0_102 = arith.constant 0 : index
    %224 = tpu.strided_load %arg12[%c14, %c0_102] {strides = array<i32: 16, 1>} : memref<64x128xf32, #tpu.memory_space<vmem>>, vector<4x128xf32>
    %c15 = arith.constant 15 : index
    %c0_103 = arith.constant 0 : index
    %225 = tpu.strided_load %arg12[%c15, %c0_103] {strides = array<i32: 16, 1>} : memref<64x128xf32, #tpu.memory_space<vmem>>, vector<4x128xf32>
    %226 = tpu.concatenate %210, %211, %212, %213, %214, %215, %216, %217, %218, %219, %220, %221, %222, %223, %224, %225 in 1 : vector<4x128xf32>, vector<4x128xf32>, vector<4x128xf32>, vector<4x128xf32>, vector<4x128xf32>, vector<4x128xf32>, vector<4x128xf32>, vector<4x128xf32>, vector<4x128xf32>, vector<4x128xf32>, vector<4x128xf32>, vector<4x128xf32>, vector<4x128xf32>, vector<4x128xf32>, vector<4x128xf32>, vector<4x128xf32> -> vector<4x2048xf32>
    %227 = arith.truncf %226 : vector<4x2048xf32> to vector<4x2048xbf16>
    %c640_104 = arith.constant 640 : index
    %c0_105 = arith.constant 0 : index
    %228 = vector.load %arg4[%c640_104, %c0_105] : memref<10880x128xbf16, #tpu.memory_space<vmem>>, vector<2048x128xbf16>
    %cst_106 = arith.constant dense<0.000000e+00> : vector<4x128xf32>
    %229 = tpu.matmul %227, %228, %cst_106 {dimension_numbers = #tpu.dot_dimension_numbers<[1], [0], [0], [1], [0, 0, 1, 1], [], []>} : vector<4x2048xbf16>, vector<2048x128xbf16>, vector<4x128xf32> -> vector<4x128xf32>
    %c0_107 = arith.constant 0 : index
    %c0_108 = arith.constant 0 : index
    %230 = vector.load %arg6[%c0_107, %c0_108] : memref<64x4xbf16, #tpu.memory_space<vmem>>, vector<64x4xbf16>
    %231 = arith.truncf %229 : vector<4x128xf32> to vector<4x128xbf16>
    %cst_109 = arith.constant dense<0.000000e+00> : vector<64x128xf32>
    %232 = tpu.matmul %230, %231, %cst_109 {dimension_numbers = #tpu.dot_dimension_numbers<[1], [0], [0], [1], [0, 0, 1, 1], [], []>} : vector<64x4xbf16>, vector<4x128xbf16>, vector<64x128xf32> -> vector<64x128xf32>
    %233 = arith.addf %209, %232 : vector<64x128xf32>
    %234 = vector.extract_strided_slice %226 {offsets = [0, 0], sizes = [1, 2048], strides = [1, 1]} : vector<4x2048xf32> to vector<1x2048xf32>
    %235 = arith.truncf %234 : vector<1x2048xf32> to vector<1x2048xbf16>
    %c2688 = arith.constant 2688 : index
    %c0_110 = arith.constant 0 : index
    %236 = vector.load %arg4[%c2688, %c0_110] : memref<10880x128xbf16, #tpu.memory_space<vmem>>, vector<2048x128xbf16>
    %cst_111 = arith.constant dense<0.000000e+00> : vector<1x128xf32>
    %237 = tpu.matmul %235, %236, %cst_111 {dimension_numbers = #tpu.dot_dimension_numbers<[1], [0], [0], [1], [0, 0, 1, 1], [], []>} : vector<1x2048xbf16>, vector<2048x128xbf16>, vector<1x128xf32> -> vector<1x128xf32>
    %238 = vector.extract_strided_slice %226 {offsets = [1, 0], sizes = [1, 2048], strides = [1, 1]} : vector<4x2048xf32> to vector<1x2048xf32>
    %239 = arith.truncf %238 : vector<1x2048xf32> to vector<1x2048xbf16>
    %c4736 = arith.constant 4736 : index
    %c0_112 = arith.constant 0 : index
    %240 = vector.load %arg4[%c4736, %c0_112] : memref<10880x128xbf16, #tpu.memory_space<vmem>>, vector<2048x128xbf16>
    %cst_113 = arith.constant dense<0.000000e+00> : vector<1x128xf32>
    %241 = tpu.matmul %239, %240, %cst_113 {dimension_numbers = #tpu.dot_dimension_numbers<[1], [0], [0], [1], [0, 0, 1, 1], [], []>} : vector<1x2048xbf16>, vector<2048x128xbf16>, vector<1x128xf32> -> vector<1x128xf32>
    %242 = arith.addf %237, %241 : vector<1x128xf32>
    %243 = vector.extract_strided_slice %226 {offsets = [2, 0], sizes = [1, 2048], strides = [1, 1]} : vector<4x2048xf32> to vector<1x2048xf32>
    %244 = arith.truncf %243 : vector<1x2048xf32> to vector<1x2048xbf16>
    %c6784 = arith.constant 6784 : index
    %c0_114 = arith.constant 0 : index
    %245 = vector.load %arg4[%c6784, %c0_114] : memref<10880x128xbf16, #tpu.memory_space<vmem>>, vector<2048x128xbf16>
    %cst_115 = arith.constant dense<0.000000e+00> : vector<1x128xf32>
    %246 = tpu.matmul %244, %245, %cst_115 {dimension_numbers = #tpu.dot_dimension_numbers<[1], [0], [0], [1], [0, 0, 1, 1], [], []>} : vector<1x2048xbf16>, vector<2048x128xbf16>, vector<1x128xf32> -> vector<1x128xf32>
    %247 = arith.addf %242, %246 : vector<1x128xf32>
    %248 = vector.extract_strided_slice %226 {offsets = [3, 0], sizes = [1, 2048], strides = [1, 1]} : vector<4x2048xf32> to vector<1x2048xf32>
    %249 = arith.truncf %248 : vector<1x2048xf32> to vector<1x2048xbf16>
    %c8832 = arith.constant 8832 : index
    %c0_116 = arith.constant 0 : index
    %250 = vector.load %arg4[%c8832, %c0_116] : memref<10880x128xbf16, #tpu.memory_space<vmem>>, vector<2048x128xbf16>
    %cst_117 = arith.constant dense<0.000000e+00> : vector<1x128xf32>
    %251 = tpu.matmul %249, %250, %cst_117 {dimension_numbers = #tpu.dot_dimension_numbers<[1], [0], [0], [1], [0, 0, 1, 1], [], []>} : vector<1x2048xbf16>, vector<2048x128xbf16>, vector<1x128xf32> -> vector<1x128xf32>
    %252 = arith.addf %247, %251 : vector<1x128xf32>
    %253 = vector.broadcast %252 : vector<1x128xf32> to vector<64x128xf32>
    %254 = arith.addf %233, %253 : vector<64x128xf32>
    %255 = arith.addf %190, %254 : vector<64x128xf32>
    %c4_118 = arith.constant 4 : index
    %c0_119 = arith.constant 0 : index
    %256 = vector.load %arg10[%c4_118, %c0_119] : memref<16x128xf32, #tpu.memory_space<vmem>>, vector<1x128xf32>
    %c5_120 = arith.constant 5 : index
    %c0_121 = arith.constant 0 : index
    %257 = vector.load %arg10[%c5_120, %c0_121] : memref<16x128xf32, #tpu.memory_space<vmem>>, vector<1x128xf32>
    %cst_122 = arith.constant dense<0.000000e+00> : vector<64xf32>
    %258 = vector.multi_reduction <add>, %255, %cst_122 [1] : vector<64x128xf32> to vector<64xf32>
    %259 = vector.shape_cast %258 : vector<64xf32> to vector<64x1xf32>
    %cst_123 = arith.constant 1.280000e+02 : f32
    %260 = vector.broadcast %cst_123 : f32 to vector<64x1xf32>
    %261 = arith.divf %259, %260 : vector<64x1xf32>
    %262 = vector.broadcast %261 : vector<64x1xf32> to vector<64x128xf32>
    %263 = arith.subf %255, %262 : vector<64x128xf32>
    %264 = arith.mulf %263, %263 : vector<64x128xf32>
    %cst_124 = arith.constant dense<0.000000e+00> : vector<64xf32>
    %265 = vector.multi_reduction <add>, %264, %cst_124 [1] : vector<64x128xf32> to vector<64xf32>
    %266 = vector.shape_cast %265 : vector<64xf32> to vector<64x1xf32>
    %cst_125 = arith.constant 1.280000e+02 : f32
    %267 = vector.broadcast %cst_125 : f32 to vector<64x1xf32>
    %268 = arith.divf %266, %267 : vector<64x1xf32>
    %269 = vector.broadcast %261 : vector<64x1xf32> to vector<64x128xf32>
    %270 = arith.subf %255, %269 : vector<64x128xf32>
    %cst_126 = arith.constant 9.99999974E-6 : f32
    %271 = vector.broadcast %cst_126 : f32 to vector<64x1xf32>
    %272 = arith.addf %268, %271 : vector<64x1xf32>
    %273 = math.rsqrt %272 : vector<64x1xf32>
    %274 = vector.broadcast %273 : vector<64x1xf32> to vector<64x128xf32>
    %275 = arith.mulf %270, %274 : vector<64x128xf32>
    %276 = vector.broadcast %256 : vector<1x128xf32> to vector<64x128xf32>
    %277 = arith.mulf %275, %276 : vector<64x128xf32>
    %278 = vector.broadcast %257 : vector<1x128xf32> to vector<64x128xf32>
    %279 = arith.addf %277, %278 : vector<64x128xf32>
    %280 = arith.addf %190, %279 : vector<64x128xf32>
    %c6_127 = arith.constant 6 : index
    %c0_128 = arith.constant 0 : index
    %281 = vector.load %arg10[%c6_127, %c0_128] : memref<16x128xf32, #tpu.memory_space<vmem>>, vector<1x128xf32>
    %c7_129 = arith.constant 7 : index
    %c0_130 = arith.constant 0 : index
    %282 = vector.load %arg10[%c7_129, %c0_130] : memref<16x128xf32, #tpu.memory_space<vmem>>, vector<1x128xf32>
    %cst_131 = arith.constant dense<0.000000e+00> : vector<64xf32>
    %283 = vector.multi_reduction <add>, %280, %cst_131 [1] : vector<64x128xf32> to vector<64xf32>
    %284 = vector.shape_cast %283 : vector<64xf32> to vector<64x1xf32>
    %cst_132 = arith.constant 1.280000e+02 : f32
    %285 = vector.broadcast %cst_132 : f32 to vector<64x1xf32>
    %286 = arith.divf %284, %285 : vector<64x1xf32>
    %287 = vector.broadcast %286 : vector<64x1xf32> to vector<64x128xf32>
    %288 = arith.subf %280, %287 : vector<64x128xf32>
    %289 = arith.mulf %288, %288 : vector<64x128xf32>
    %cst_133 = arith.constant dense<0.000000e+00> : vector<64xf32>
    %290 = vector.multi_reduction <add>, %289, %cst_133 [1] : vector<64x128xf32> to vector<64xf32>
    %291 = vector.shape_cast %290 : vector<64xf32> to vector<64x1xf32>
    %cst_134 = arith.constant 1.280000e+02 : f32
    %292 = vector.broadcast %cst_134 : f32 to vector<64x1xf32>
    %293 = arith.divf %291, %292 : vector<64x1xf32>
    %294 = vector.broadcast %286 : vector<64x1xf32> to vector<64x128xf32>
    %295 = arith.subf %280, %294 : vector<64x128xf32>
    %cst_135 = arith.constant 9.99999974E-6 : f32
    %296 = vector.broadcast %cst_135 : f32 to vector<64x1xf32>
    %297 = arith.addf %293, %296 : vector<64x1xf32>
    %298 = math.rsqrt %297 : vector<64x1xf32>
    %299 = vector.broadcast %298 : vector<64x1xf32> to vector<64x128xf32>
    %300 = arith.mulf %295, %299 : vector<64x128xf32>
    %301 = vector.broadcast %281 : vector<1x128xf32> to vector<64x128xf32>
    %302 = arith.mulf %300, %301 : vector<64x128xf32>
    %303 = vector.broadcast %282 : vector<1x128xf32> to vector<64x128xf32>
    %304 = arith.addf %302, %303 : vector<64x128xf32>
    %305 = arith.truncf %304 : vector<64x128xf32> to vector<64x128xbf16>
    %c0_136 = arith.constant 0 : index
    %c0_137 = arith.constant 0 : index
    %306 = vector.load %arg7[%c0_136, %c0_137] : memref<128x256xbf16, #tpu.memory_space<vmem>>, vector<128x256xbf16>
    %cst_138 = arith.constant dense<0.000000e+00> : vector<64x256xf32>
    %307 = tpu.matmul %305, %306, %cst_138 {dimension_numbers = #tpu.dot_dimension_numbers<[1], [0], [0], [1], [0, 0, 1, 1], [], []>} : vector<64x128xbf16>, vector<128x256xbf16>, vector<64x256xf32> -> vector<64x256xf32>
    %c1_139 = arith.constant 1 : index
    %c0_140 = arith.constant 0 : index
    %308 = vector.load %arg9[%c1_139, %c0_140] : memref<2x256xf32, #tpu.memory_space<vmem>>, vector<1x256xf32>
    %309 = vector.broadcast %308 : vector<1x256xf32> to vector<64x256xf32>
    %310 = arith.addf %307, %309 : vector<64x256xf32>
    %cst_141 = arith.constant 0.000000e+00 : f32
    %311 = vector.broadcast %cst_141 : f32 to vector<64x256xf32>
    %312 = arith.maximumf %310, %311 : vector<64x256xf32>
    %313 = arith.truncf %312 : vector<64x256xf32> to vector<64x256xbf16>
    %c0_142 = arith.constant 0 : index
    %c0_143 = arith.constant 0 : index
    %314 = vector.load %arg8[%c0_142, %c0_143] : memref<256x128xbf16, #tpu.memory_space<vmem>>, vector<256x128xbf16>
    %cst_144 = arith.constant dense<0.000000e+00> : vector<64x128xf32>
    %315 = tpu.matmul %313, %314, %cst_144 {dimension_numbers = #tpu.dot_dimension_numbers<[1], [0], [0], [1], [0, 0, 1, 1], [], []>} : vector<64x256xbf16>, vector<256x128xbf16>, vector<64x128xf32> -> vector<64x128xf32>
    %c8_145 = arith.constant 8 : index
    %c0_146 = arith.constant 0 : index
    %316 = vector.load %arg10[%c8_145, %c0_146] : memref<16x128xf32, #tpu.memory_space<vmem>>, vector<1x128xf32>
    %317 = vector.broadcast %316 : vector<1x128xf32> to vector<64x128xf32>
    %318 = arith.addf %315, %317 : vector<64x128xf32>
    %319 = arith.addf %304, %318 : vector<64x128xf32>
    %c9_147 = arith.constant 9 : index
    %c0_148 = arith.constant 0 : index
    %320 = vector.load %arg10[%c9_147, %c0_148] : memref<16x128xf32, #tpu.memory_space<vmem>>, vector<1x128xf32>
    %c10_149 = arith.constant 10 : index
    %c0_150 = arith.constant 0 : index
    %321 = vector.load %arg10[%c10_149, %c0_150] : memref<16x128xf32, #tpu.memory_space<vmem>>, vector<1x128xf32>
    %cst_151 = arith.constant dense<0.000000e+00> : vector<64xf32>
    %322 = vector.multi_reduction <add>, %319, %cst_151 [1] : vector<64x128xf32> to vector<64xf32>
    %323 = vector.shape_cast %322 : vector<64xf32> to vector<64x1xf32>
    %cst_152 = arith.constant 1.280000e+02 : f32
    %324 = vector.broadcast %cst_152 : f32 to vector<64x1xf32>
    %325 = arith.divf %323, %324 : vector<64x1xf32>
    %326 = vector.broadcast %325 : vector<64x1xf32> to vector<64x128xf32>
    %327 = arith.subf %319, %326 : vector<64x128xf32>
    %328 = arith.mulf %327, %327 : vector<64x128xf32>
    %cst_153 = arith.constant dense<0.000000e+00> : vector<64xf32>
    %329 = vector.multi_reduction <add>, %328, %cst_153 [1] : vector<64x128xf32> to vector<64xf32>
    %330 = vector.shape_cast %329 : vector<64xf32> to vector<64x1xf32>
    %cst_154 = arith.constant 1.280000e+02 : f32
    %331 = vector.broadcast %cst_154 : f32 to vector<64x1xf32>
    %332 = arith.divf %330, %331 : vector<64x1xf32>
    %333 = vector.broadcast %325 : vector<64x1xf32> to vector<64x128xf32>
    %334 = arith.subf %319, %333 : vector<64x128xf32>
    %cst_155 = arith.constant 9.99999974E-6 : f32
    %335 = vector.broadcast %cst_155 : f32 to vector<64x1xf32>
    %336 = arith.addf %332, %335 : vector<64x1xf32>
    %337 = math.rsqrt %336 : vector<64x1xf32>
    %338 = vector.broadcast %337 : vector<64x1xf32> to vector<64x128xf32>
    %339 = arith.mulf %334, %338 : vector<64x128xf32>
    %340 = vector.broadcast %320 : vector<1x128xf32> to vector<64x128xf32>
    %341 = arith.mulf %339, %340 : vector<64x128xf32>
    %342 = vector.broadcast %321 : vector<1x128xf32> to vector<64x128xf32>
    %343 = arith.addf %341, %342 : vector<64x128xf32>
    %c0_156 = arith.constant 0 : index
    %c0_157 = arith.constant 0 : index
    %c0_158 = arith.constant 0 : index
    %344 = vector.load %arg11[%c0_156, %c0_157, %c0_158] : memref<1x64x128xf32, #tpu.memory_space<vmem>>, vector<1x64x128xf32>
    %345 = vector.shape_cast %344 : vector<1x64x128xf32> to vector<64x128xf32>
    %346 = vector.shape_cast %343 : vector<64x128xf32> to vector<1x64x128xf32>
    tpu.vector_store %arg11[%c0_156, %c0_157, %c0_158], %346 {strides = array<i32>} : memref<1x64x128xf32, #tpu.memory_space<vmem>>, vector<1x64x128xf32>,
    return
  }
  func.func @transform_0(%arg0: i32) -> (i32, i32, i32) {
    %c0_i32 = arith.constant 0 : i32
    %c0_i32_0 = arith.constant 0 : i32
    %c0_i32_1 = arith.constant 0 : i32
    return %arg0, %c0_i32, %c0_i32_0 : i32, i32, i32
  }
  func.func @transform_1(%arg0: i32) -> (i32, i32) {
    %c0_i32 = arith.constant 0 : i32
    %c0_i32_0 = arith.constant 0 : i32
    %c0_i32_1 = arith.constant 0 : i32
    return %c0_i32, %c0_i32_0 : i32, i32
  }
  func.func @transform_2(%arg0: i32) -> (i32, i32) {
    %c0_i32 = arith.constant 0 : i32
    %c0_i32_0 = arith.constant 0 : i32
    %c0_i32_1 = arith.constant 0 : i32
    return %c0_i32, %c0_i32_0 : i32, i32
  }
  func.func @transform_3(%arg0: i32) -> (i32, i32) {
    %c0_i32 = arith.constant 0 : i32
    %c0_i32_0 = arith.constant 0 : i32
    %c0_i32_1 = arith.constant 0 : i32
    return %c0_i32, %c0_i32_0 : i32, i32
  }
  func.func @transform_4(%arg0: i32) -> (i32, i32) {
    %c0_i32 = arith.constant 0 : i32
    %c0_i32_0 = arith.constant 0 : i32
    %c0_i32_1 = arith.constant 0 : i32
    return %c0_i32, %c0_i32_0 : i32, i32
  }
  func.func @transform_5(%arg0: i32) -> (i32, i32) {
    %c0_i32 = arith.constant 0 : i32
    %c0_i32_0 = arith.constant 0 : i32
    %c0_i32_1 = arith.constant 0 : i32
    return %c0_i32, %c0_i32_0 : i32, i32
  }
  func.func @transform_6(%arg0: i32) -> (i32, i32) {
    %c0_i32 = arith.constant 0 : i32
    %c0_i32_0 = arith.constant 0 : i32
    %c0_i32_1 = arith.constant 0 : i32
    return %c0_i32, %c0_i32_0 : i32, i32
  }
  func.func @transform_7(%arg0: i32) -> (i32, i32) {
    %c0_i32 = arith.constant 0 : i32
    %c0_i32_0 = arith.constant 0 : i32
    %c0_i32_1 = arith.constant 0 : i32
    return %c0_i32, %c0_i32_0 : i32, i32
  }
  func.func @transform_8(%arg0: i32) -> (i32, i32) {
    %c0_i32 = arith.constant 0 : i32
    %c0_i32_0 = arith.constant 0 : i32
    %c0_i32_1 = arith.constant 0 : i32
    return %c0_i32, %c0_i32_0 : i32, i32
  }
  func.func @transform_9(%arg0: i32) -> (i32, i32) {
    %c0_i32 = arith.constant 0 : i32
    %c0_i32_0 = arith.constant 0 : i32
    %c0_i32_1 = arith.constant 0 : i32
    return %c0_i32, %c0_i32_0 : i32, i32
  }
  func.func @transform_10(%arg0: i32) -> (i32, i32, i32) {
    %c0_i32 = arith.constant 0 : i32
    %c0_i32_0 = arith.constant 0 : i32
    %c0_i32_1 = arith.constant 0 : i32
    return %arg0, %c0_i32, %c0_i32_0 : i32, i32, i32
  }
}

</mosaic_0001>

<bundles_post_ra>
// kernel: run_layer.1
= control target key start
LH: loop header
LB: loop body
LE: loop exit
PB: predicated region body
PF: predicated region fallthrough
CT: control target
= control target key end

     0   :  { %s18926_s0 = inlined_call_operand.hbm [shape: f32[2,64,128], index: 0, kind: input, shape index: {}]   ;;  %s18927_s1 = inlined_call_operand.hbm [shape: bf16[128,256], index: 1, kind: input, shape index: {}]   ;;  %s18928_s2 = inlined_call_operand.hbm [shape: bf16[128,1024], index: 2, kind: input, shape index: {}]   ;;  %s18929_s3 = inlined_call_operand.hbm [shape: bf16[10880,128], index: 3, kind: input, shape index: {}]   ;;  %s18930_s4 = inlined_call_operand.vmem [shape: bf16[64,16], index: 4, kind: input, shape index: {}]   ;;  %s18931_s5 = inlined_call_operand.vmem [shape: bf16[64,4], index: 5, kind: input, shape index: {}]   ;;  %s18932_s6 = inlined_call_operand.hbm [shape: bf16[128,256], index: 6, kind: input, shape index: {}]   ;;  %s18933_s7 = inlined_call_operand.hbm [shape: bf16[256,128], index: 7, kind: input, shape index: {}]   ;;  %s18934_s8 = inlined_call_operand.hbm [shape: f32[2,256], index: 8, kind: input, shape index: {}]   ;;  %s18935_s9 = inlined_call_operand.hbm [shape: f32[16,128], index: 9, kind: input, shape index: {}]   ;;  %s18936_s10 = inlined_call_operand.hbm [shape: f32[2,64,128], index: 10, kind: output, shape index: {}]  }
   0x1   :  { %18947 = sst [smem:[#allocation24_spill]] %s18927_s1 }
   0x2   :  { %18948 = sst [smem:[#allocation25_spill]] %s18928_s2 }
   0x3   :  { %18949 = sst [smem:[#allocation26_spill]] %s18931_s5 }
   0x4   :  { %18950 = sst [smem:[#allocation27_spill]] %s18936_s10 }
   0x5   :  { %15 = vsyncpa [#allocation4], 0 }
   0x6   :  { %17 = vsyncpa [#allocation4 + $0x1], 0 }
   0x7   :  { %18 = vsyncpa [#allocation7], 0 }
   0x8   :  { %19 = vsyncpa [#allocation10], 0 }
   0x9   :  { %20 = vsyncpa [#allocation13], 0 }
   0xa   :  { %21 = vsyncpa [#allocation16], 0 }
   0xb   :  { %22 = vsyncpa [#allocation5], 0 }
   0xc   :  { %24 = vsyncpa [#allocation5 + $0x1], 0  ;;  %s17095_s13 = smov 0   ;;  %s17097_s14 = smov 0  }
   0xd   :  { %s17099_s15 = smov 0   ;;  %s17101_s16 = smov 0  }
   0xe LB: > { %s17015_s17 = smov [#allocation6]   ;;  %s17116_s19 = sadd.s32 4294967295, %s17013_s16   ;;  %s17013_s16 = sphi %s17101_s16, %s18981_s16   ;;  %s17009_s15 = sphi %s17099_s15, %s18980_s15   ;;  %s17005_s14 = sphi %s17097_s14, %s18979_s14   ;;  %s17001_s13 = sphi %s17095_s13, %s18978_s13  }
   0xf   : > { %s288_s18 = sshll.u32 %s17015_s17, 4  ;;  %p12749_p0 = scmp.ge.s32.totalorder %s17013_s16, 1  ;;  %s17121_s18 = int_to_ptr.vmem [resolvable:$true] %s288_s18 }
  0x10   : > { %p18941_p1 = scmp.eq.s32.totalorder %s17116_s19, 0  ;;  %p276_p2 = scmp.lt.s32.totalorder %s17013_s16, 3 }
  0x11   : > { %s17016_s21 = smov [#allocation9]   ;;  %s17017_s24 = smov [#allocation12]  }
  0x12   : > { %p17123_p3 = pnand %p12749_p0, %p276_p2  ;;  %s314_s22 = sshll.u32 %s17016_s21, 4  ;;  %s17136_s22 = int_to_ptr.vmem [resolvable:$true] %s314_s22 }
  0x13   : > { %s17138_s25 = sshll.u32 %s17017_s24, 4  ;;  %s18953_s1 = sld [smem:[#allocation24_spill]]  ;;  %s347_s25 = int_to_ptr.vmem [resolvable:$true] %s17138_s25 }
  0x14   : > { %s18951_s20 = scalar_select %p17123_p3, 1, 0 }
  0x15   : > { %p15516_p5 = pneg %p17123_p3 }
  0x17   : > { %p17132_p6 = pnand %p15516_p5, %p18941_p1 }
  0x19   : > { %s16705_s28 = scalar_lea.hbm %s18953_s1, 2048  ;;  %p17148_p8 = pneg %p17132_p6 }
  0x1a   : > { %p16706_p7 = scmp.ne.s32.totalorder %s18953_s1, %s16705_s28  ;;  %p16712_p11 = scmp.lt.u32.totalorder %s16705_s28, %s18953_s1 }
  0x1c   : > { %p16708_p9 = pnand %p17148_p8, %p16706_p7 }
  0x1e   : > { %p16709_p10 = pneg %p16708_p9 }
  0x20   : > { %p16714_p12 = pnand %p16712_p11, %p16709_p10 }
  0x22   : > { %16717 = shalt.err (!%p16714_p12)
}
  0x23   : > { %s16718_s21 = scalar_lea.vmem %s17121_s18, 2048  ;;  %p16726_p5 = scmp.lt.s32.totalorder %s17121_s18, %s17121_s18 }
  0x24   : > { %p16719_p13 = scmp.ne.s32.totalorder %s17121_s18, %s16718_s21  ;;  %p16727_p4 = scmp.lt.s32.totalorder %s16718_s21, %s16718_s21 }
  0x26   : > { %p16721_p0 = pnand %p16719_p13, %p17148_p8  ;;  %p16728_p7 = por %p16727_p4, %p16726_p5 }
  0x28   : > { %p16722_p2 = pneg %p16721_p0 }
  0x2a   : > { %p16729_p9 = pnand %p16728_p7, %p16722_p2 }
  0x2c   : > { %16732 = shalt.err (!%p16729_p9)
}
  0x2d   : > { %s18939_s24 = smov 128   ;;  %s18943_s26 = smov 8  }
  0x2e   : > { %15519 = dma.hbm_to_vmem [thread:$0]  (!%p17132_p6), %s18953_s1, 2048, %s17121_s18, [#allocation7], %s18939_s24, %s18939_s24, %s18943_s26  }
  0x2f   : > { %s16733_s12 = scalar_lea.hbm %s18929_s3, 87040 }
  0x30   : > { %p16734_p4 = scmp.ne.s32.totalorder %s18929_s3, %s16733_s12  ;;  %p16740_p12 = scmp.lt.u32.totalorder %s16733_s12, %s18929_s3 }
  0x32   : > { %p16736_p10 = pnand %p16734_p4, %p17148_p8 }
  0x34   : > { %p16737_p11 = pneg %p16736_p10 }
  0x36   : > { %p16742_p13 = pnand %p16740_p12, %p16737_p11 }
  0x38   : > { %16745 = shalt.err (!%p16742_p13)
}
  0x39   : > { %s16746_s18 = scalar_lea.vmem %s17136_s22, 87040  ;;  %p16754_p7 = scmp.lt.s32.totalorder %s17136_s22, %s17136_s22 }
  0x3a   : > { %p16747_p0 = scmp.ne.s32.totalorder %s17136_s22, %s16746_s18  ;;  %p16755_p9 = scmp.lt.s32.totalorder %s16746_s18, %s16746_s18 }
  0x3c   : > { %p16749_p2 = pnand %p16747_p0, %p17148_p8  ;;  %p16756_p4 = por %p16755_p9, %p16754_p7 }
  0x3e   : > { %p16750_p5 = pneg %p16749_p2 }
  0x40   : > { %p16757_p10 = pnand %p16756_p4, %p16750_p5 }
  0x42   : > { %16760 = shalt.err (!%p16757_p10)
}
  0x43   : > { %s17020_s27 = smov 64   ;;  %s17021_s5 = smov 4  }
  0x44   : > { %15525 = dma.hbm_to_vmem [thread:$0]  (!%p17132_p6), %s18929_s3, 87040, %s17136_s22, [#allocation10], %s17020_s27, %s17020_s27, %s17021_s5  }
  0x45   : > { %s16761_s12 = scalar_lea.hbm %s18933_s7, 2048 }
  0x46   : > { %p16762_p11 = scmp.ne.s32.totalorder %s18933_s7, %s16761_s12  ;;  %p16768_p0 = scmp.lt.u32.totalorder %s16761_s12, %s18933_s7 }
  0x48   : > { %p16764_p12 = pnand %p16762_p11, %p17148_p8 }
  0x4a   : > { %p16765_p13 = pneg %p16764_p12 }
  0x4c   : > { %p16770_p2 = pnand %p16768_p0, %p16765_p13 }
  0x4e   : > { %16773 = shalt.err (!%p16770_p2)
}
  0x4f   : > { %s16774_s10 = scalar_lea.vmem %s347_s25, 2048  ;;  %p16782_p4 = scmp.lt.s32.totalorder %s347_s25, %s347_s25 }
  0x50   : > { %p16775_p5 = scmp.ne.s32.totalorder %s347_s25, %s16774_s10  ;;  %p16783_p10 = scmp.lt.s32.totalorder %s16774_s10, %s16774_s10 }
  0x52   : > { %p16777_p7 = pnand %p16775_p5, %p17148_p8  ;;  %p16784_p1 = por %p16783_p10, %p16782_p4 }
  0x54   : > { %p16778_p9 = pneg %p16777_p7 }
  0x56   : > { %p16785_p3 = pnand %p16784_p1, %p16778_p9 }
  0x58   : > { %16788 = shalt.err (!%p16785_p3)
}
  0x59   : > { %15531 = dma.hbm_to_vmem [thread:$0]  (!%p17132_p6), %s18933_s7, 2048, %s347_s25, [#allocation13], %s17020_s27, %s17020_s27, %s17021_s5  }
  0x5a   : > { %s17022_s24 = smov [#allocation8]   ;;  %s18955_s2 = sld [smem:[#allocation25_spill]] }
  0x5b   : > { %s301_s29 = sshll.u32 %s17022_s24, 4  ;;  %s302_s29 = int_to_ptr.vmem [resolvable:$true] %s301_s29 }
  0x60   : > { %s16789_s17 = scalar_lea.hbm %s18955_s2, 8192 }
  0x61   : > { %p16790_p11 = scmp.ne.s32.totalorder %s18955_s2, %s16789_s17  ;;  %p16796_p12 = scmp.lt.u32.totalorder %s16789_s17, %s18955_s2 }
  0x63   : > { %p16792_p1 = pnand %p16790_p11, %p17148_p8 }
  0x65   : > { %p16793_p3 = pneg %p16792_p1 }
  0x67   : > { %p16798_p13 = pnand %p16796_p12, %p16793_p3 }
  0x69   : > { %16801 = shalt.err (!%p16798_p13)
}
  0x6a   : > { %s16802_s25 = scalar_lea.vmem %s302_s29, 8192  ;;  %p16810_p7 = scmp.lt.s32.totalorder %s302_s29, %s302_s29 }
  0x6b   : > { %p16803_p0 = scmp.ne.s32.totalorder %s302_s29, %s16802_s25  ;;  %p16811_p9 = scmp.lt.s32.totalorder %s16802_s25, %s16802_s25 }
  0x6d   : > { %p16805_p2 = pnand %p16803_p0, %p17148_p8  ;;  %p16812_p4 = por %p16811_p9, %p16810_p7 }
  0x6f   : > { %p16806_p5 = pneg %p16805_p2 }
  0x71   : > { %p16813_p10 = pnand %p16812_p4, %p16806_p5 }
  0x73   : > { %16816 = shalt.err (!%p16813_p10)
}
  0x74   : > { %s17023_s27 = smov 512   ;;  %s17024_s5 = smov 32  }
  0x75   : > { %15522 = dma.hbm_to_vmem [thread:$0]  (!%p17132_p6), %s18955_s2, 8192, %s302_s29, [#allocation7], %s17023_s27, %s17023_s27, %s17024_s5  }
  0x76   : > { %s17025_s28 = smov [#allocation11]   ;;  %s17026_s30 = smov [#allocation14]  }
  0x77   : > { %s333_s24 = sshll.u32 %s17025_s28, 4  ;;  %s360_s12 = sshll.u32 %s17026_s30, 4  ;;  %s334_s24 = int_to_ptr.vmem [resolvable:$true] %s333_s24  ;;  %s17232_s12 = int_to_ptr.vmem [resolvable:$true] %s360_s12 }
  0x78   : > { %s16817_s18 = scalar_lea.hbm %s18932_s6, 2048 }
  0x79   : > { %p16818_p11 = scmp.ne.s32.totalorder %s18932_s6, %s16817_s18  ;;  %p16824_p12 = scmp.lt.u32.totalorder %s16817_s18, %s18932_s6 }
  0x7b   : > { %p16820_p1 = pnand %p16818_p11, %p17148_p8 }
  0x7d   : > { %p16821_p3 = pneg %p16820_p1 }
  0x7f   : > { %p16826_p13 = pnand %p16824_p12, %p16821_p3 }
  0x81   : > { %16829 = shalt.err (!%p16826_p13)
}
  0x82   : > { %s16830_s27 = scalar_lea.vmem %s334_s24, 2048  ;;  %p16838_p7 = scmp.lt.s32.totalorder %s334_s24, %s334_s24 }
  0x83   : > { %p16831_p0 = scmp.ne.s32.totalorder %s334_s24, %s16830_s27  ;;  %p16839_p9 = scmp.lt.s32.totalorder %s16830_s27, %s16830_s27 }
  0x85   : > { %p16833_p2 = pnand %p16831_p0, %p17148_p8  ;;  %p16840_p4 = por %p16839_p9, %p16838_p7 }
  0x87   : > { %p16834_p5 = pneg %p16833_p2 }
  0x89   : > { %p16841_p10 = pnand %p16840_p4, %p16834_p5 }
  0x8b   : > { %16844 = shalt.err (!%p16841_p10)
}
  0x8c   : > { %s18956_s5 = smov 8   ;;  %s18957_s22 = smov 128  }
  0x8d   : > { %15528 = dma.hbm_to_vmem [thread:$0]  (!%p17132_p6), %s18932_s6, 2048, %s334_s24, [#allocation10], %s18957_s22, %s18957_s22, %s18956_s5  }
  0x8e   : > { %s16845_s18 = scalar_lea.hbm %s18934_s8, 64 }
  0x8f   : > { %p16846_p11 = scmp.ne.s32.totalorder %s18934_s8, %s16845_s18  ;;  %p16852_p12 = scmp.lt.u32.totalorder %s16845_s18, %s18934_s8 }
  0x91   : > { %p16848_p1 = pnand %p16846_p11, %p17148_p8 }
  0x93   : > { %p16849_p3 = pneg %p16848_p1 }
  0x95   : > { %p16854_p13 = pnand %p16852_p12, %p16849_p3 }
  0x97   : > { %16857 = shalt.err (!%p16854_p13)
}
  0x98   : > { %s16858_s24 = scalar_lea.vmem %s17232_s12, 64  ;;  %p16866_p7 = scmp.lt.s32.totalorder %s17232_s12, %s17232_s12 }
  0x99   : > { %p16859_p0 = scmp.ne.s32.totalorder %s17232_s12, %s16858_s24  ;;  %p16867_p9 = scmp.lt.s32.totalorder %s16858_s24, %s16858_s24 }
  0x9b   : > { %p16861_p2 = pnand %p16859_p0, %p17148_p8  ;;  %p16868_p4 = por %p16867_p9, %p16866_p7 }
  0x9d   : > { %p16862_p5 = pneg %p16861_p2 }
  0x9f   : > { %p16869_p10 = pnand %p16868_p4, %p16862_p5 }
  0xa1   : > { %16872 = shalt.err (!%p16869_p10)
}
  0xa2   : > { %15534 = dma.hbm_to_vmem [thread:$0]  (!%p17132_p6), %s18934_s8, 64, %s17232_s12, [#allocation13]  }
  0xa3   : > { %s17027_s30 = smov [#allocation15]   ;;  %s16873_s10 = scalar_lea.hbm %s18935_s9, 256 }
  0xa4   : > { %s370_s17 = sshll.u32 %s17027_s30, 4  ;;  %p16874_p11 = scmp.ne.s32.totalorder %s18935_s9, %s16873_s10  ;;  %s371_s17 = int_to_ptr.vmem [resolvable:$true] %s370_s17 }
  0xa5   : > { %p16880_p12 = scmp.lt.u32.totalorder %s16873_s10, %s18935_s9 }
  0xa6   : > { %p16876_p1 = pnand %p16874_p11, %p17148_p8 }
  0xa8   : > { %p16877_p3 = pneg %p16876_p1 }
  0xaa   : > { %p16882_p13 = pnand %p16880_p12, %p16877_p3 }
  0xac   : > { %16885 = shalt.err (!%p16882_p13)
}
  0xad   : > { %s16886_s12 = scalar_lea.vmem %s371_s17, 256  ;;  %p16894_p7 = scmp.lt.s32.totalorder %s371_s17, %s371_s17 }
  0xae   : > { %p16887_p0 = scmp.ne.s32.totalorder %s371_s17, %s16886_s12  ;;  %p16895_p9 = scmp.lt.s32.totalorder %s16886_s12, %s16886_s12 }
  0xb0   : > { %p16889_p2 = pnand %p16887_p0, %p17148_p8  ;;  %p16896_p4 = por %p16895_p9, %p16894_p7 }
  0xb2   : > { %p16890_p5 = pneg %p16889_p2 }
  0xb4   : > { %p16897_p10 = pnand %p16896_p4, %p16890_p5 }
  0xb6   : > { %16900 = shalt.err (!%p16897_p10)
}
  0xb7   : > { %15537 = dma.hbm_to_vmem [thread:$0]  (!%p17132_p6), %s18935_s9, 256, %s371_s17, [#allocation16], %s18957_s22, %s18957_s22, %s18956_s5  }
  0xb8   : > { %s12748_s23 = sadd.s32 4294967294, %s17013_s16   ;;  %s17301_s11 = sadd.s32 1, %s17013_s16  }
  0xb9   : > { %s37_s30 = sadd.s32 1, %s17009_s15  ;;  %s34_s21 = ssub.s32 %s17013_s16, %s17301_s11 }
  0xba   : > { %p44_p8 = scmp.ne.s32.totalorder %s17009_s15, %s17005_s14  ;;  %p35_p11 = scmp.eq.s32.totalorder %s34_s21, 0 }
  0xbb   : > { %p45_p1 = scmp.eq.s32.totalorder %s17013_s16, 0  ;;  %p50_p3 = scmp.ne.s32.totalorder %s17005_s14, %s17001_s13 }
  0xbc   : > { %p263_p12 = scmp.eq.s32.totalorder %s17116_s19, 1  ;;  %p18958_p0 = scmp.eq.s32.totalorder %s17116_s19, 0 }
  0xbd   : > { %s17313_s18 = scalar_select %p35_p11, %s17009_s15, %s37_s30  }
  0xbe   : > { %p46_p13 = por %p45_p1, %p44_p8  ;;  %p17317_p2 = por %p18958_p0, %p50_p3 }
  0xbf   : > { %p17321_p6 = por %p263_p12, %p44_p8  ;;  %p269_p5 = scmp.eq.s32.totalorder %s12748_s23, 1 }
  0xc0   : > { %p15553_p7 = scmp.lt.s32.totalorder %s17013_s16, 2  ;;  %s384_s25 = sand.u32 1, %s17009_s15  }
  0xc1   : > { %s18960_s17 = scalar_select %p17321_p6, 1, 0 }
  0xc2   : > { %p17327_p9 = por %p269_p5, %p50_p3  ;;  %s12758_s29 = sshll.u32 %s384_s25, 6 }
  0xc3   : > { %s13659_s24 = sshll.u32 %s17013_s16, 10  ;;  %s388_s30 = scalar_lea.vmem [#allocation3], %s12758_s29 }
  0xc4   : > { %s18961_s26 = scalar_select %p17327_p9, 1, 0 }
  0xc5   : > { %s17335_s28 = scalar_lea.hbm %s18926_s0, %s13659_s24  ;;  %s395_s21 = sshll.u32 %s388_s30, 4  ;;  %s17341_s21 = int_to_ptr.vmem [resolvable:$true] %s395_s21 }
  0xc6   : > { %p17337_p4 = pnand %p15553_p7, %p46_p13  ;;  %s17343_s1 = scalar_lea.sflag [#allocation4], %s384_s25 }
  0xc7   : > { %s16901_s2 = scalar_lea.hbm %s17335_s28, 1024  ;;  %s16906_s12 = scalar_lea.hbm %s18926_s0, 2048 }
  0xc8   : > { %p16902_p10 = scmp.ne.s32.totalorder %s17335_s28, %s16901_s2  ;;  %p16903_p8 = pneg %p17337_p4 }
  0xc9   : > { %p16907_p3 = scmp.lt.u32.totalorder %s17335_s28, %s18926_s0  ;;  %p16908_p12 = scmp.lt.u32.totalorder %s16906_s12, %s16901_s2 }
  0xca   : > { %p16904_p11 = pnand %p16903_p8, %p16902_p10  ;;  %p16910_p0 = scmp.lt.u32.totalorder %s16901_s2, %s17335_s28 }
  0xcb   : > { %p16909_p13 = por %p16908_p12, %p16907_p3 }
  0xcc   : > { %p16905_p1 = pneg %p16904_p11 }
  0xcd   : > { %p16911_p5 = por %p16910_p0, %p16909_p13 }
  0xcf   : > { %p16912_p7 = pnand %p16911_p5, %p16905_p1 }
  0xd1   : > { %16915 = shalt.err (!%p16912_p7)
}
  0xd2   : > { %s16916_s25 = scalar_lea.vmem %s17341_s21, 1024  ;;  %s17028_s29 = smov [#allocation3]  }
  0xd3   : > { %p16917_p10 = scmp.ne.s32.totalorder %s17341_s21, %s16916_s25  ;;  %s16921_s24 = sshll.u32 %s17028_s29, 4  ;;  %s16922_s24 = int_to_ptr.vmem [resolvable:$false] %s16921_s24 }
  0xd4   : > { %s16923_s27 = scalar_lea.vmem %s16922_s24, 2048  ;;  %p16924_p6 = scmp.lt.s32.totalorder %s17341_s21, %s16922_s24 }
  0xd5   : > { %p16919_p11 = pnand %p16917_p10, %p16903_p8  ;;  %p16925_p3 = scmp.lt.s32.totalorder %s16923_s27, %s16916_s25 }
  0xd7   : > { %p16920_p9 = pneg %p16919_p11  ;;  %p16926_p12 = por %p16925_p3, %p16924_p6 }
  0xd9   : > { %p16927_p13 = pnand %p16926_p12, %p16920_p9 }
  0xdb   : > { %16930 = shalt.err (!%p16927_p13)
}
  0xdc   : > { %15541 = dma.hbm_to_vmem [thread:$0]  (!%p17337_p4), %s17335_s28, 1024, %s17341_s21, %s17343_s1, %s18957_s22, %s18957_s22, %s18956_s5  }
  0xdd   : > { %p18963_p8 = scmp.ne.s32.totalorder %s18951_s20, 0 }
  0xde   : > { %s17377_s2 = sand.u32 (!%p18963_p8), 1, %s17005_s14  }
  0xdf   : > { %407 = sbr.rel (%p18963_p8) target bundleno = 6886 (0x1ae6), region = 60  ;;  %s12762_s12 = sshll.u32 (!%p18963_p8), %s17377_s2, 6 }
  0xe0   : > { %s410_s30 = scalar_lea.sflag (!%p18963_p8), [#allocation4], %s17377_s2  ;;  %s17383_s23 = scalar_lea.vmem (!%p18963_p8), [#allocation3], %s12762_s12 }
  0xe6   : > { %16976 = dma.done.wait (%p17317_p2), %s410_s30, 1024  }
  0xe7   : > { %16978 = vsyncadd (%p17317_p2), %s410_s30, 4294966272  ;;  %p18964_p6 = scmp.eq.s32.totalorder %s17116_s19, 0 }
  0xe9   : > { %16980 = dma.done.wait (%p18964_p6), [#allocation7], 10240   ;;  %p18965_p9 = pmov %p18964_p6 }
  0xea   : > { %p18966_p4 = pmov %p18964_p6 }
  0xeb   : > { %16982 = vsyncadd (%p18965_p9), [#allocation7], 4294957056 }
  0xec   : > { %16984 = dma.done.wait (%p18966_p4), [#allocation10], 89088   ;;  %p18967_p1 = pmov %p18966_p4 }
  0xee   : > { %16986 = vsyncadd (%p18967_p1), [#allocation10], 4294878208  ;;  %p18968_p0 = pmov %p18967_p1 }
  0xf0   : > { %16988 = dma.done.wait (%p18968_p0), [#allocation13], 2112   ;;  %p18969_p5 = pmov %p18968_p0 }
  0xf1   : > { %p18970_p2 = pmov %p18968_p0 }
  0xf2   : > { %16990 = vsyncadd (%p18969_p5), [#allocation13], 4294965184 }
  0xf3   : > { %16992 = dma.done.wait (%p18970_p2), [#allocation16], 256   ;;  %p18971_p7 = pmov %p18968_p0 }
  0xf4   : > { %v17029_v0 = vmov 0   ;;  %v15617_v1 = vld [vmem:[#allocation6 + $0x4] ss:$8 sps:$4 sm:$0xff]   ;;  %v15619_v2 = vld [vmem:[#allocation6] ss:$8 sps:$4 sm:$0xff]   ;;  %v509_v8 = vlaneseq  ;;  %v481_v22 = vld [vmem:[%s17383_s23 + $0x10] sm:$0xff] }
  0xf5   : > { %16994 = vsyncadd (%p18971_p7), [#allocation16], 4294967040  ;;  %631 = vmatprep.mubr.bf16.mxu0 %v17029_v0  ;;  %599 = vmatprep.subr.bf16.mxu0 %v15617_v1  ;;  %v15620_v3 = vld [vmem:[#allocation6 + $0x14] ss:$8 sps:$4 sm:$0xff]   ;;  %v15622_v4 = vld [vmem:[#allocation6 + $0x10] ss:$8 sps:$4 sm:$0xff]  }
  0xf6   : > { %600 = vmatpush1.bf16.msra.mxu0 %v15619_v2  ;;  %v15623_v5 = vld [vmem:[#allocation6 + $0x24] ss:$8 sps:$4 sm:$0xff]   ;;  %v15625_v6 = vld [vmem:[#allocation6 + $0x20] ss:$8 sps:$4 sm:$0xff]   ;;  %v15626_v7 = vld [vmem:[#allocation6 + $0x34] ss:$8 sps:$4 sm:$0xff]  }
  0xf7   : > { %601 = vmatprep.subr.bf16.mxu0 %v15620_v3  ;;  %v15628_v9 = vld [vmem:[#allocation6 + $0x30] ss:$8 sps:$4 sm:$0xff]   ;;  %v15629_v10 = vld [vmem:[#allocation6 + $0x44] ss:$8 sps:$4 sm:$0xff]   ;;  %v15631_v11 = vld [vmem:[#allocation6 + $0x40] ss:$8 sps:$4 sm:$0xff]  }
  0xf8   : > { %v17406_v12 = vshrl.u32 %v509_v8, 7  ;;  %v15632_v13 = vld [vmem:[#allocation6 + $0x54] ss:$8 sps:$4 sm:$0xff]   ;;  %v15634_v14 = vld [vmem:[#allocation6 + $0x50] ss:$8 sps:$4 sm:$0xff]   ;;  %v479_v19 = vld [vmem:[%s17383_s23] sm:$0xff] }
  0xf9   : > { %v15635_v15 = vld [vmem:[#allocation6 + $0x64] ss:$8 sps:$4 sm:$0xff]   ;;  %v15637_v16 = vld [vmem:[#allocation6 + $0x60] ss:$8 sps:$4 sm:$0xff]   ;;  %v15638_v17 = vld [vmem:[#allocation6 + $0x74] ss:$8 sps:$4 sm:$0xff]  }
  0xfa   : > { %602 = vmatpush1.bf16.msra.mxu0 %v15622_v4  ;;  %v15640_v18 = vld [vmem:[#allocation6 + $0x70] ss:$8 sps:$4 sm:$0xff]   ;;  %v480_v20 = vld [vmem:[%s17383_s23 + $0x8] sm:$0xff]  ;;  %v483_v25 = vld [vmem:[%s17383_s23 + $0x20] sm:$0xff]  ;;  %v17433_v31 = vsub.s32 0, %v17406_v12  ;;  %v18946_v32 = vsub.s32 1, %v17406_v12 }
  0xfb   : > { %603 = vmatprep.subr.bf16.mxu0 %v15623_v5  ;;  %v17410_v21 = vpack.c.bf16 %v480_v20, %v479_v19  ;;  %v482_v23 = vld [vmem:[%s17383_s23 + $0x18] sm:$0xff]  ;;  %v484_v26 = vld [vmem:[%s17383_s23 + $0x28] sm:$0xff]  ;;  %v485_v28 = vld [vmem:[%s17383_s23 + $0x30] sm:$0xff]  ;;  %vm693_vm0 = vcmask 130048   ;;  %vm783_vm1 = vcmask 523264   ;;  %s17030_s1 = smov 112  }
  0xfc   : > { %v17416_v24 = vpack.c.bf16 %v482_v23, %v481_v22  ;;  %v17422_v27 = vpack.c.bf16 %v484_v26, %v483_v25  ;;  %v486_v29 = vld [vmem:[%s17383_s23 + $0x38] sm:$0xff]  ;;  %v507_v33 = vld [vmem:[#allocation14] ss:$2 sm:$0x3]  ;;  %s17031_s20 = smov 96   ;;  %s17032_s5 = smov 80  }
  0xfd   : > { %v17428_v30 = vpack.c.bf16 %v486_v29, %v485_v28  ;;  %v512_v34 = vrot.slane %v507_v33, %v17433_v31  ;;  %v516_v36 = vrot.slane %v507_v33, %v18946_v32  ;;  %v873_v19 = vld [vmem:[#allocation8 + $0x20] sm:$0xf]  ;;  %s17033_s22 = smov 64   ;;  %s17034_s10 = smov 48   ;;  %vm6188_vm2 = vcmask 31744  }
  0xfe   : > { %604 = vmatpush1.bf16.msra.mxu0 %v15625_v6  ;;  %v874_v20 = vld [vmem:[#allocation8 + $0x40] sm:$0xf]  ;;  %s17035_s28 = smov 32   ;;  %s17036_s21 = smov 16   ;;  %vm6201_vm3 = vcmask 1041408  }
  0xff   : > { %605 = vmatprep.subr.bf16.mxu0 %v15626_v7  ;;  %v875_v23 = vld [vmem:[#allocation8 + $0x60] sm:$0xf]  ;;  %s18859_s30 = scalar_lea.vmem [#allocation17], %s12762_s12  ;;  %s13660_s12 = sshll.u32 %s17116_s19, 10 }
 0x100   : > { %v12793_v25 = vcombine.low %v874_v20, %v875_v23  ;;  %v876_v26 = vld [vmem:[#allocation8 + $0x80] sm:$0xf]  ;;  %p18975_p11 = scmp.ne.s32.totalorder %s18960_s17, 0  ;;  %s17037_s19 = smov [#allocation17]  }
 0x101   : > { %v877_v28 = vld [vmem:[#allocation8 + $0xa0] sm:$0xf]  ;;  %s16935_s25 = sshll.u32 %s17037_s19, 4  ;;  %s16936_s25 = int_to_ptr.vmem [resolvable:$false] %s16935_s25 }
 0x102   : > { %606 = vmatpush1.bf16.msra.mxu0 %v15628_v9  ;;  %v878_v29 = vld [vmem:[#allocation8 + $0xc0] sm:$0xf]  ;;  %v12794_v33 = vcombine.low %v876_v26, %v877_v28  ;;  %s16937_s29 = scalar_lea.vmem %s16936_s25, 2048 }
 0x103   : > { %607 = vmatprep.subr.bf16.mxu0 %v15629_v10  ;;  %v16090_v32 = vld [vmem:[#allocation9 + $0x700] sm:$0xff]  }
 0x106   : > { %608 = vmatpush1.bf16.msra.mxu0 %v15631_v11 }
 0x107   : > { %609 = vmatprep.subr.bf16.mxu0 %v15632_v13 }
 0x10a   : > { %610 = vmatpush1.bf16.msra.mxu0 %v15634_v14 }
 0x10b   : > { %611 = vmatprep.subr.bf16.mxu0 %v15635_v15 }
 0x10e   : > { %612 = vmatpush1.bf16.msra.mxu0 %v15637_v16 }
 0x10f   : > { %613 = vmatprep.subr.bf16.mxu0 %v15638_v17 }
 0x112   : > { %614 = vmatpush1.bf16.msra.mxu0 %v15640_v18  ;;  %v872_v18 = vld [vmem:[#allocation8] sm:$0xf] }
 0x113   : > { %v12792_v22 = vcombine.low %v872_v18, %v873_v19 }
 0x115   : > { %632 = vmatmul.mubr.bf16.vlgmr.msra.gmra.mrb[0].mxu0 %v17410_v21  ;;  %14887 = vmatprep.subr.bf16.mxu0 %v12792_v22 }
 0x116   : > { %641 = vmatprep.mubr.bf16.mxu0 %v17029_v0  ;;  %14888 = vmatpush3.bf16.msra.mxu0 %v12792_v22 }
 0x117   : > { %14889 = vmatprep.subr.bf16.mxu0 %v12793_v25 }
 0x11a   : > { %14890 = vmatpush3.bf16.msra.mxu0 %v12793_v25 }
 0x11b   : > { %14891 = vmatprep.subr.bf16.mxu0 %v12794_v33 }
 0x11d   : > { %642 = vmatmul.mubr.bf16.gmra.mrb[4].mxu0 %v17416_v24 }
 0x11e   : > { %651 = vmatprep.mubr.bf16.mxu0 %v17029_v0  ;;  %14892 = vmatpush3.bf16.msra.mxu0 %v12794_v33 }
 0x125   : > { %652 = vmatmul.mubr.bf16.gmra.mrb[8].mxu0 %v17422_v27 }
 0x126   : > { %661 = vmatprep.mubr.bf16.mxu0 %v17029_v0 }
 0x12d   : > { %662 = vmatmul.mubr.bf16.gmra.mrb[12].mxu0 %v17428_v30 }
 0x12e   : > { %14903 = vmatprep.mubr.bf16.mxu0 %v17410_v21 }
 0x1e8   : > { %v633_v35 = vpop.f32.mrb[0].mxu0 }
 0x1e9   : > { %v635_v37 = vpop.f32.mrb[1].mxu0  ;;  %v634_v39 = vadd.f32 %v633_v35, %v512_v34  ;;  %v880_v35 = vld [vmem:[#allocation8 + $0x100] sm:$0xf] }
 0x1ea   : > { %v637_v38 = vpop.f32.mrb[2].mxu0  ;;  %v636_v42 = vadd.f32 %v635_v37, %v516_v36 }
 0x1eb   : > { %v638_v40 = vadd.f32 %v637_v38, %v512_v34  ;;  %v639_v41 = vpop.f32.mrb[3].mxu0  ;;  %v882_v38 = vld [vmem:[#allocation8 + $0x140] sm:$0xf] }
 0x1ec   : > { %v640_v43 = vadd.f32 %v639_v41, %v516_v36  ;;  %v884_v41 = vld [vmem:[#allocation8 + $0x180] sm:$0xf] }
 0x1ed   : > { %v17439_v44 = vpack.c.bf16 %v638_v40, %v634_v39  ;;  %v883_v39 = vld [vmem:[#allocation8 + $0x160] sm:$0xf] }
 0x1ee   : > { %v17441_v45 = vpack.c.bf16 %v640_v43, %v636_v42  ;;  %v885_v42 = vld [vmem:[#allocation8 + $0x1a0] sm:$0xf]  ;;  %v12797_v43 = vcombine.low %v882_v38, %v883_v39 }
 0x1ef   : > { %14879 = vmatprep.mubr.msk.bf16.mxu1 %vm693_vm0, %v17439_v44 }
 0x1f0   : > { %v643_v46 = vpop.f32.mrb[4].mxu0  ;;  %15451 = vmatprep.subr.msk.bf16.mxu1 %vm693_vm0, %v17441_v45  ;;  %v707_v47 = vsel %vm693_vm0, %v17441_v45, 0 }
 0x1f1   : > { %v645_v48 = vpop.f32.mrb[5].mxu0  ;;  %14872 = vmatpush3.bf16.xpose.msra.mxu1 %v707_v47  ;;  %v644_v50 = vadd.f32 %v643_v46, %v512_v34  ;;  %v886_v46 = vld [vmem:[#allocation8 + $0x1c0] sm:$0xf] }
 0x1f2   : > { %v647_v49 = vpop.f32.mrb[6].mxu0  ;;  %v646_v53 = vadd.f32 %v645_v48, %v516_v36  ;;  %v887_v47 = vld [vmem:[#allocation8 + $0x1e0] sm:$0xf]  ;;  %v12798_v48 = vcombine.low %v884_v41, %v885_v42 }
 0x1f3   : > { %v648_v51 = vadd.f32 %v647_v49, %v512_v34  ;;  %v649_v52 = vpop.f32.mrb[7].mxu0  ;;  %v12799_v49 = vcombine.low %v886_v46, %v887_v47 }
 0x1f4   : > { %v650_v54 = vadd.f32 %v649_v52, %v516_v36 }
 0x1f5   : > { %v17449_v55 = vpack.c.bf16 %v648_v51, %v644_v50 }
 0x1f6   : > { %v17451_v56 = vpack.c.bf16 %v650_v54, %v646_v53 }
 0x1f8   : > { %v653_v57 = vpop.f32.mrb[8].mxu0  ;;  %15452 = vmatprep.subr.msk.bf16.mxu1 %vm693_vm0, %v17451_v56  ;;  %v710_v58 = vsel %vm693_vm0, %v17451_v56, 0 }
 0x1f9   : > { %v655_v59 = vpop.f32.mrb[9].mxu0  ;;  %14874 = vmatpush3.bf16.xpose.msra.mxu1 %v710_v58  ;;  %v654_v61 = vadd.f32 %v653_v57, %v512_v34 }
 0x1fa   : > { %v657_v60 = vpop.f32.mrb[10].mxu0  ;;  %v656_v1 = vadd.f32 %v655_v59, %v516_v36 }
 0x1fb   : > { %v658_v62 = vadd.f32 %v657_v60, %v512_v34  ;;  %v659_v63 = vpop.f32.mrb[11].mxu0 }
 0x1fc   : > { %v660_v2 = vadd.f32 %v659_v63, %v516_v36 }
 0x1fd   : > { %v17457_v3 = vpack.c.bf16 %v658_v62, %v654_v61 }
 0x1fe   : > { %v17459_v4 = vpack.c.bf16 %v660_v2, %v656_v1 }
 0x200   : > { %v663_v5 = vpop.f32.mrb[12].mxu0  ;;  %15453 = vmatprep.subr.msk.bf16.mxu1 %vm693_vm0, %v17459_v4  ;;  %v713_v6 = vsel %vm693_vm0, %v17459_v4, 0 }
 0x201   : > { %v665_v7 = vpop.f32.mrb[13].mxu0  ;;  %14876 = vmatpush3.bf16.xpose.msra.mxu1 %v713_v6  ;;  %v664_v9 = vadd.f32 %v663_v5, %v512_v34 }
 0x202   : > { %v667_v8 = vpop.f32.mrb[14].mxu0  ;;  %v666_v13 = vadd.f32 %v665_v7, %v516_v36 }
 0x203   : > { %v668_v10 = vadd.f32 %v667_v8, %v512_v34  ;;  %v669_v11 = vpop.f32.mrb[15].mxu0  ;;  %v879_v34 = vld [vmem:[#allocation8 + $0xe0] sm:$0xf]  ;;  %v1295_v8 = vld [vmem:[#allocation8 + $0x4] sm:$0xf] }
 0x204   : > { %v670_v14 = vadd.f32 %v669_v11, %v516_v36  ;;  %v881_v36 = vld [vmem:[#allocation8 + $0x120] sm:$0xf]  ;;  %v12795_v37 = vcombine.low %v878_v29, %v879_v34 }
 0x205   : > { %v17465_v15 = vpack.c.bf16 %v668_v10, %v664_v9  ;;  %v12796_v40 = vcombine.low %v880_v35, %v881_v36  ;;  %v1296_v9 = vld [vmem:[#allocation8 + $0x24] sm:$0xf] }
 0x206   : > { %v17467_v16 = vpack.c.bf16 %v670_v14, %v666_v13  ;;  %14893 = vmatprep.subr.bf16.mxu0 %v12795_v37  ;;  %v12808_v10 = vcombine.low %v1295_v8, %v1296_v9  ;;  %v1301_v8 = vld [vmem:[#allocation8 + $0xc4] sm:$0xf] }
 0x207   : > { %14894 = vmatpush3.bf16.msra.mxu0 %v12795_v37  ;;  %v1302_v9 = vld [vmem:[#allocation8 + $0xe4] sm:$0xf] }
 0x208   : > { %15454 = vmatprep.subr.msk.bf16.mxu1 %vm693_vm0, %v17467_v16  ;;  %v716_v17 = vsel %vm693_vm0, %v17467_v16, 0  ;;  %14895 = vmatprep.subr.bf16.mxu0 %v12796_v40 }
 0x209   : > { %14878 = vmatpush3.bf16.xpose.msra.mxu1 %v716_v17 }
 0x20b   : > { %14896 = vmatpush3.bf16.msra.mxu0 %v12796_v40 }
 0x20c   : > { %14897 = vmatprep.subr.bf16.mxu0 %v12797_v43 }
 0x20f   : > { %14898 = vmatpush3.bf16.msra.mxu0 %v12797_v43 }
 0x210   : > { %14880 = vmatmul.mubr.msk.bf16.vlgmr.msra.gmra.mrb[0].mxu1 %vm693_vm0, %v17449_v55  ;;  %14899 = vmatprep.subr.bf16.mxu0 %v12798_v48 }
 0x211   : > { %14883 = vmatprep.mubr.msk.bf16.mxu1 %vm693_vm0, %v17457_v3 }
 0x213   : > { %14900 = vmatpush3.bf16.msra.mxu0 %v12798_v48 }
 0x214   : > { %14901 = vmatprep.subr.bf16.mxu0 %v12799_v49 }
 0x217   : > { %14902 = vmatpush3.bf16.msra.mxu0 %v12799_v49 }
 0x218   : > { %14884 = vmatmul.mubr.msk.bf16.gmra.mrb[4].mxu1 %vm693_vm0, %v17465_v15  ;;  %14943 = vmatprep.subr.bf16.mxu0 %v12808_v10 }
 0x21a   : > { %14904 = vmatmul.mubr.bf16.vlgmr.msra.gmra.mrb[16].mxu0 %v17416_v24 }
 0x21b   : > { %14907 = vmatprep.mubr.bf16.mxu0 %v17422_v27  ;;  %14944 = vmatpush3.bf16.msra.mxu0 %v12808_v10 }
 0x222   : > { %14908 = vmatmul.mubr.bf16.gmra.mrb[20].mxu0 %v17428_v30 }
 0x223   : > { %14959 = vmatprep.mubr.bf16.mxu0 %v17410_v21 }
 0x2e3   : > { %v14881_v50 = vpop.f32.mrb[0].mxu1 }
 0x2e4   : > { %v752_v51 = vpop.f32.mrb[1].mxu1  ;;  %v790_v52 = vsel %vm783_vm1, %v14881_v50, -inf }
 0x2e5   : > { %791 = vmax.xlane.f32.xlu1 %v790_v52  ;;  %v14882_v53 = vpop.f32.mrb[2].mxu1  ;;  %v784_v54 = vsel %vm783_vm1, %v752_v51, -inf }
 0x2e6   : > { %785 = vmax.xlane.f32.xlu0 %v784_v54  ;;  %v755_v57 = vpop.f32.mrb[3].mxu1  ;;  %v793_v58 = vsel %vm783_vm1, %v14882_v53, -inf  ;;  %v1297_v54 = vld [vmem:[#allocation8 + $0x44] sm:$0xf] }
 0x2e7   : > { %v787_v59 = vsel %vm783_vm1, %v755_v57, -inf }
 0x2e9   : > { %794 = vmax.xlane.f32.xlu1 %v793_v58 }
 0x2ea   : > { %788 = vmax.xlane.f32.xlu0 %v787_v59 }
 0x2eb   : > { %v14885_v60 = vpop.f32.mrb[4].mxu1 }
 0x2ec   : > { %v768_v61 = vpop.f32.mrb[5].mxu1  ;;  %v802_v5 = vsel %vm783_vm1, %v14885_v60, -inf }
 0x2ed   : > { %v17487_v62 = vpop.f32.mrb[6].mxu1  ;;  %v796_v63 = vsel %vm783_vm1, %v768_v61, -inf  ;;  %v14905_v7 = vpop.f32.mrb[16].mxu0 }
 0x2ee   : > { %797 = vmax.xlane.f32.xlu0 %v796_v63  ;;  %v17490_v1 = vpop.f32.mrb[7].mxu1  ;;  %v805_v6 = vsel %vm783_vm1, %v17487_v62, -inf  ;;  %v970_v11 = vpop.f32.mrb[17].mxu0  ;;  %v1299_v63 = vld [vmem:[#allocation8 + $0x84] sm:$0xf] }
 0x2ef   : > { %v799_v2 = vsel %vm783_vm1, %v17490_v1, -inf  ;;  %v14906_v13 = vpop.f32.mrb[18].mxu0 }
 0x2f0   : > { %800 = vmax.xlane.f32.xlu1 %v799_v2  ;;  %v1006_v14 = vpack.c.bf16 %v14906_v13, %v14905_v7  ;;  %v973_v17 = vpop.f32.mrb[19].mxu0  ;;  %v1300_v2 = vld [vmem:[#allocation8 + $0xa4] sm:$0xf] }
 0x2f1   : > { %v1005_v18 = vpack.c.bf16 %v973_v17, %v970_v11  ;;  %v12811_v11 = vcombine.low %v1301_v8, %v1302_v9  ;;  %v1303_v17 = vld [vmem:[#allocation8 + $0x104] sm:$0xf] }
 0x2f2   : > { %803 = vmax.xlane.f32.xlu0 %v802_v5  ;;  %v12810_v5 = vcombine.low %v1299_v63, %v1300_v2 }
 0x2f3   : > { %14911 = vmatprep.subr.bf16.mxu1 %v1005_v18 }
 0x2f4   : > { %806 = vmax.xlane.f32.xlu1 %v805_v6  ;;  %14912 = vmatpush3.bf16.msra.mxu1 %v1005_v18  ;;  %v1304_v18 = vld [vmem:[#allocation8 + $0x124] sm:$0xf] }
 0x2f5   : > { %14913 = vmatprep.subr.bf16.mxu1 %v1006_v14  ;;  %v14909_v6 = vpop.f32.mrb[20].mxu0 }
 0x2f6   : > { %v986_v7 = vpop.f32.mrb[21].mxu0 }
 0x2f7   : > { %v14910_v10 = vpop.f32.mrb[22].mxu0 }
 0x2f8   : > { %14914 = vmatpush3.bf16.msra.mxu1 %v1006_v14  ;;  %v989_v13 = vpop.f32.mrb[23].mxu0 }
 0x2f9   : > { %v1007_v14 = vpack.c.bf16 %v989_v13, %v986_v7 }
 0x2fb   : > { %14915 = vmatprep.subr.bf16.mxu1 %v1007_v14 }
 0x2fc   : > { %14916 = vmatpush3.bf16.msra.mxu1 %v1007_v14 }
 0x372   : > { %v792_v19 = vpop.xlane.xlu1 %791 }
 0x373   : > { %v810_v20 = vsub.f32 %v14881_v50, %v792_v19  ;;  %v786_v22 = vpop.xlane.xlu0 %785  ;;  %v12812_v19 = vcombine.low %v1303_v17, %v1304_v18 }
 0x374   : > { %v808_v23 = vsub.f32 %v752_v51, %v786_v22  ;;  %v1305_v22 = vld [vmem:[#allocation8 + $0x144] sm:$0xf] }
 0x375   : > { %v820_v25 = vmul.f32 1.442695, %v810_v20  ;;  %v1008_v20 = vpack.c.bf16 %v14910_v10, %v14909_v6 }
 0x376   : > { %v816_v26 = vmul.f32 1.442695, %v808_v23  ;;  %v795_v28 = vpop.xlane.xlu1 %794  ;;  %v1306_v23 = vld [vmem:[#allocation8 + $0x164] sm:$0xf] }
 0x377   : > { %16369 = vpow2.f32 %v820_v25  ;;  %v811_v29 = vsub.f32 %v14882_v53, %v795_v28  ;;  %v789_v33 = vpop.xlane.xlu0 %788  ;;  %14917 = vmatprep.subr.bf16.mxu1 %v1008_v20  ;;  %v12813_v25 = vcombine.low %v1305_v22, %v1306_v23  ;;  %v1308_v28 = vld [vmem:[#allocation8 + $0x1a4] sm:$0xf] }
 0x378   : > { %v809_v34 = vsub.f32 %v755_v57, %v789_v33  ;;  %16371 = vpow2.f32 %v816_v26  ;;  %v1298_v57 = vld [vmem:[#allocation8 + $0x64] sm:$0xf]  ;;  %14918 = vmatpush3.bf16.msra.mxu1 %v1008_v20 }
 0x379   : > { %v822_v35 = vmul.f32 1.442695, %v811_v29  ;;  %v12809_v59 = vcombine.low %v1297_v54, %v1298_v57  ;;  %v1307_v26 = vld [vmem:[#allocation8 + $0x184] sm:$0xf] }
 0x37a   : > { %v818_v36 = vmul.f32 1.442695, %v809_v34  ;;  %v12814_v29 = vcombine.low %v1307_v26, %v1308_v28  ;;  %v1309_v34 = vld [vmem:[#allocation8 + $0x1c4] sm:$0xf] }
 0x37b   : > { %16373 = vpow2.f32 %v822_v35  ;;  %v798_v37 = vpop.xlane.xlu0 %797  ;;  %14945 = vmatprep.subr.bf16.mxu0 %v12809_v59  ;;  %v1310_v35 = vld [vmem:[#allocation8 + $0x1e4] sm:$0xf] }
 0x37c   : > { %16375 = vpow2.f32 %v818_v36  ;;  %v812_v38 = vsub.f32 %v768_v61, %v798_v37  ;;  %14946 = vmatpush3.bf16.msra.mxu0 %v12809_v59  ;;  %v12815_v36 = vcombine.low %v1309_v34, %v1310_v35 }
 0x37d   : > { %14947 = vmatprep.subr.bf16.mxu0 %v12810_v5  ;;  %v801_v33 = vpop.xlane.xlu1 %800 }
 0x37e   : > { %v824_v42 = vmul.f32 1.442695, %v812_v38 }
 0x37f   : > { %v804_v39 = vpop.xlane.xlu0 %803 }
 0x380   : > { %v814_v40 = vsub.f32 %v14885_v60, %v804_v39  ;;  %14948 = vmatpush3.bf16.msra.mxu0 %v12810_v5  ;;  %v813_v39 = vsub.f32 %v17490_v1, %v801_v33 }
 0x381   : > { %v17497_v41 = vpop.eup %16369  ;;  %14949 = vmatprep.subr.bf16.mxu0 %v12811_v11  ;;  %v807_v37 = vpop.xlane.xlu1 %806 }
 0x382   : > { %v828_v43 = vmul.f32 1.442695, %v814_v40  ;;  %v838_v46 = vsel %vm783_vm1, %v17497_v41, 0.0  ;;  %v17501_v47 = vpop.eup %16371  ;;  %v815_v38 = vsub.f32 %v17487_v62, %v807_v37 }
 0x383   : > { %839 = vadd.xlane.f32.xlu0 %v838_v46  ;;  %v832_v49 = vsel %vm783_vm1, %v17501_v47, 0.0 }
 0x384   : > { %16377 = vpow2.f32 %v828_v43  ;;  %14950 = vmatpush3.bf16.msra.mxu0 %v12811_v11  ;;  %v830_v40 = vmul.f32 1.442695, %v815_v38 }
 0x385   : > { %v17503_v48 = vpop.eup %16373  ;;  %16379 = vpow2.f32 %v824_v42  ;;  %14951 = vmatprep.subr.bf16.mxu0 %v12812_v19  ;;  %v826_v42 = vmul.f32 1.442695, %v813_v39 }
 0x386   : > { %v841_v50 = vsel %vm783_vm1, %v17503_v48, 0.0  ;;  %v17509_v51 = vpop.eup %16375  ;;  %16381 = vpow2.f32 %v830_v40 }
 0x387   : > { %833 = vadd.xlane.f32.xlu0 %v832_v49  ;;  %842 = vadd.xlane.f32.xlu1 %v841_v50  ;;  %v835_v52 = vsel %vm783_vm1, %v17509_v51, 0.0  ;;  %16383 = vpow2.f32 %v826_v42 }
 0x388   : > { %14952 = vmatpush3.bf16.msra.mxu0 %v12812_v19 }
 0x389   : > { %14953 = vmatprep.subr.bf16.mxu0 %v12813_v25 }
 0x38b   : > { %836 = vadd.xlane.f32.xlu1 %v835_v52 }
 0x38c   : > { %14954 = vmatpush3.bf16.msra.mxu0 %v12813_v25 }
 0x38d   : > { %14955 = vmatprep.subr.bf16.mxu0 %v12814_v29 }
 0x38e   : > { %v17513_v53 = vpop.eup %16377 }
 0x38f   : > { %v850_v58 = vsel %vm783_vm1, %v17513_v53, 0.0  ;;  %v17517_v60 = vpop.eup %16379 }
 0x390   : > { %851 = vadd.xlane.f32.xlu0 %v850_v58  ;;  %v844_v61 = vsel %vm783_vm1, %v17517_v60, 0.0  ;;  %14956 = vmatpush3.bf16.msra.mxu0 %v12814_v29  ;;  %v17542_v62 = vpop.eup %16381 }
 0x391   : > { %14957 = vmatprep.subr.bf16.mxu0 %v12815_v36  ;;  %v853_v1 = vsel %vm783_vm1, %v17542_v62, 0.0  ;;  %v17546_v43 = vpop.eup %16383 }
 0x392   : > { %v847_v46 = vsel %vm783_vm1, %v17546_v43, 0.0 }
 0x394   : > { %845 = vadd.xlane.f32.xlu0 %v844_v61  ;;  %14958 = vmatpush3.bf16.msra.mxu0 %v12815_v36 }
 0x397   : > { %14960 = vmatmul.mubr.bf16.vlgmr.msra.gmra.mrb[24].mxu0 %v17416_v24 }
 0x398   : > { %14963 = vmatprep.mubr.bf16.mxu0 %v17422_v27 }
 0x39c   : > { %1112 = vrot.lane.b32.xlu1 %v17451_v56, %s17030_s1 }
 0x39f   : > { %14964 = vmatmul.mubr.bf16.gmra.mrb[28].mxu0 %v17428_v30 }
 0x3a0   : > { %1114 = vrot.lane.b32.xlu1 %v17459_v4, %s17030_s1 }
 0x3aa   : > { %1110 = vrot.lane.b32.xlu0 %v17441_v45, %s17030_s1 }
 0x3ae   : > { %1098 = vrot.lane.b32.xlu0 %v17439_v44, %s17030_s1 }
 0x3b2   : > { %1102 = vrot.lane.b32.xlu0 %v17457_v3, %s17030_s1 }
 0x3b6   : > { %1525 = vrot.lane.b32.xlu0 %v17441_v45, %s17031_s20 }
 0x3ba   : > { %1529 = vrot.lane.b32.xlu0 %v17459_v4, %s17031_s20 }
 0x3be   : > { %1517 = vrot.lane.b32.xlu0 %v17439_v44, %s17031_s20 }
 0x3c4   : > { %854 = vadd.xlane.f32.xlu1 %v853_v1 }
 0x3c8   : > { %848 = vadd.xlane.f32.xlu1 %v847_v46 }
 0x3d9   : > { %1116 = vrot.lane.b32.xlu1 %v17467_v16, %s17030_s1 }
 0x3dd   : > { %1100 = vrot.lane.b32.xlu1 %v17449_v55, %s17030_s1 }
 0x3e1   : > { %1104 = vrot.lane.b32.xlu1 %v17465_v15, %s17030_s1 }
 0x3e5   : > { %1527 = vrot.lane.b32.xlu1 %v17451_v56, %s17031_s20 }
 0x3e9   : > { %1531 = vrot.lane.b32.xlu1 %v17467_v16, %s17031_s20 }
 0x3ed   : > { %1519 = vrot.lane.b32.xlu1 %v17449_v55, %s17031_s20 }
 0x410   : > { %v840_v49 = vpop.xlane.xlu0 %839 }
 0x414   : > { %v834_v50 = vpop.xlane.xlu0 %833  ;;  %v843_v52 = vpop.xlane.xlu1 %842 }
 0x415   : > { %16385 = vrcp.f32 %v843_v52 }
 0x416   : > { %16387 = vrcp.f32 %v834_v50 }
 0x417   : > { %16389 = vrcp.f32 %v840_v49 }
 0x418   : > { %v837_v54 = vpop.xlane.xlu1 %836 }
 0x419   : > { %16391 = vrcp.f32 %v837_v54 }
 0x41c   : > { %v1113_v17 = vpop.permute.xlu1 %1112 }
 0x41d   : > { %v852_v57 = vpop.xlane.xlu0 %851 }
 0x41f   : > { %v16386_v58 = vpop.eup %16385 }
 0x420   : > { %v16388_v59 = vpop.eup %16387  ;;  %v867_v5 = vmul.f32 %v16386_v58, %v17503_v48 }
 0x421   : > { %v846_v61 = vpop.xlane.xlu0 %845  ;;  %v16390_v63 = vpop.eup %16389  ;;  %v864_v6 = vmul.f32 %v16388_v59, %v17501_v47 }
 0x422   : > { %v866_v8 = vmul.f32 %v16390_v63, %v17497_v41  ;;  %v1134_v41 = vsel %vm693_vm0, %v1113_v17, 0 }
 0x423   : > { %v16392_v2 = vpop.eup %16391 }
 0x424   : > { %v865_v7 = vmul.f32 %v16392_v2, %v17509_v51  ;;  %v1002_v11 = vpack.c.bf16 %v867_v5, %v866_v8  ;;  %v1115_v51 = vpop.permute.xlu1 %1114 }
 0x425   : > { %v1111_v9 = vpop.permute.xlu0 %1110  ;;  %v1137_v22 = vsel %vm693_vm0, %v1115_v51, 0 }
 0x426   : > { %15455 = vmatprep.subr.msk.bf16.mxu1 %vm693_vm0, %v1111_v9  ;;  %v1001_v10 = vpack.c.bf16 %v865_v7, %v864_v6  ;;  %v1131_v14 = vsel %vm693_vm0, %v1111_v9, 0 }
 0x428   : > { %14919 = vmatprep.mubr.msk.bf16.mxu1 %vm783_vm1, %v1001_v10 }
 0x429   : > { %v1099_v13 = vpop.permute.xlu0 %1098  ;;  %14920 = vmatmul.mubr.msk.bf16.vlgmr.msra.gmra.mrb[8].mxu1 %vm783_vm1, %v1002_v11 }
 0x42a   : > { %14928 = vmatpush3.bf16.xpose.msra.mxu1 %v1131_v14 }
 0x42b   : > { %15456 = vmatprep.subr.msk.bf16.mxu1 %vm693_vm0, %v1113_v17 }
 0x42d   : > { %v1103_v47 = vpop.permute.xlu0 %1102 }
 0x431   : > { %v1526_v48 = vpop.permute.xlu0 %1525 }
 0x432   : > { %14930 = vmatpush3.bf16.xpose.msra.mxu1 %v1134_v41  ;;  %15459 = vmatprep.subr.msk.bf16.mxu0 %vm693_vm0, %v1526_v48  ;;  %v1546_v18 = vsel %vm693_vm0, %v1526_v48, 0 }
 0x433   : > { %15457 = vmatprep.subr.msk.bf16.mxu1 %vm693_vm0, %v1115_v51  ;;  %14984 = vmatpush3.bf16.xpose.msra.mxu0 %v1546_v18 }
 0x435   : > { %v1530_v19 = vpop.permute.xlu0 %1529 }
 0x439   : > { %v1518_v20 = vpop.permute.xlu0 %1517 }
 0x43a   : > { %14932 = vmatpush3.bf16.xpose.msra.mxu1 %v1137_v22  ;;  %14991 = vmatprep.mubr.msk.bf16.mxu0 %vm693_vm0, %v1518_v20 }
 0x451   : > { %v855_v23 = vpop.xlane.xlu1 %854 }
 0x452   : > { %16393 = vrcp.f32 %v855_v23 }
 0x453   : > { %16395 = vrcp.f32 %v846_v61 }
 0x454   : > { %16397 = vrcp.f32 %v852_v57 }
 0x455   : > { %v849_v25 = vpop.xlane.xlu1 %848 }
 0x456   : > { %16399 = vrcp.f32 %v849_v25 }
 0x459   : > { %v1117_v26 = vpop.permute.xlu1 %1116 }
 0x45a   : > { %15458 = vmatprep.subr.msk.bf16.mxu1 %vm693_vm0, %v1117_v26  ;;  %v1140_v28 = vsel %vm693_vm0, %v1117_v26, 0 }
 0x45b   : > { %14934 = vmatpush3.bf16.xpose.msra.mxu1 %v1140_v28 }
 0x45c   : > { %v16394_v29 = vpop.eup %16393 }
 0x45d   : > { %v1101_v33 = vpop.permute.xlu1 %1100  ;;  %v16396_v34 = vpop.eup %16395  ;;  %v871_v37 = vmul.f32 %v16394_v29, %v17542_v62 }
 0x45e   : > { %v16398_v35 = vpop.eup %16397  ;;  %v868_v39 = vmul.f32 %v16396_v34, %v17517_v60 }
 0x45f   : > { %v870_v42 = vmul.f32 %v16398_v35, %v17513_v53  ;;  %v1552_v53 = vsel %vm693_vm0, %v1530_v19, 0 }
 0x460   : > { %v16400_v36 = vpop.eup %16399 }
 0x461   : > { %v1105_v38 = vpop.permute.xlu1 %1104  ;;  %v869_v40 = vmul.f32 %v16400_v36, %v17546_v43  ;;  %v1004_v46 = vpack.c.bf16 %v871_v37, %v870_v42 }
 0x463   : > { %v1003_v1 = vpack.c.bf16 %v869_v40, %v868_v39 }
 0x465   : > { %14923 = vmatprep.mubr.msk.bf16.mxu1 %vm783_vm1, %v1003_v1  ;;  %v1528_v49 = vpop.permute.xlu1 %1527 }
 0x466   : > { %14924 = vmatmul.mubr.msk.bf16.gmra.mrb[12].mxu1 %vm783_vm1, %v1004_v46  ;;  %15460 = vmatprep.subr.msk.bf16.mxu0 %vm693_vm0, %v1528_v49  ;;  %v1549_v50 = vsel %vm693_vm0, %v1528_v49, 0 }
 0x467   : > { %14935 = vmatprep.mubr.msk.bf16.mxu1 %vm693_vm0, %v1099_v13  ;;  %14986 = vmatpush3.bf16.xpose.msra.mxu0 %v1549_v50 }
 0x468   : > { %15461 = vmatprep.subr.msk.bf16.mxu0 %vm693_vm0, %v1530_v19 }
 0x469   : > { %v1532_v60 = vpop.permute.xlu1 %1531 }
 0x46a   : > { %v1555_v62 = vsel %vm693_vm0, %v1532_v60, 0  ;;  %v14961_v52 = vpop.f32.mrb[24].mxu0 }
 0x46b   : > { %v1393_v54 = vpop.f32.mrb[25].mxu0 }
 0x46c   : > { %v14962_v57 = vpop.f32.mrb[26].mxu0 }
 0x46d   : > { %v1520_v43 = vpop.permute.xlu1 %1519  ;;  %v1429_v58 = vpack.c.bf16 %v14962_v57, %v14961_v52  ;;  %v1396_v59 = vpop.f32.mrb[27].mxu0 }
 0x46e   : > { %14936 = vmatmul.mubr.msk.bf16.vlgmr.msra.gmra.mrb[16].mxu1 %vm693_vm0, %v1101_v33  ;;  %v1428_v61 = vpack.c.bf16 %v1396_v59, %v1393_v54 }
 0x46f   : > { %14939 = vmatprep.mubr.msk.bf16.mxu1 %vm693_vm0, %v1103_v47  ;;  %14988 = vmatpush3.bf16.xpose.msra.mxu0 %v1552_v53 }
 0x470   : > { %15462 = vmatprep.subr.msk.bf16.mxu0 %vm693_vm0, %v1532_v60  ;;  %14967 = vmatprep.subr.bf16.mxu1 %v1428_v61 }
 0x471   : > { %14968 = vmatpush3.bf16.msra.mxu1 %v1428_v61 }
 0x472   : > { %v14965_v63 = vpop.f32.mrb[28].mxu0  ;;  %14969 = vmatprep.subr.bf16.mxu1 %v1429_v58 }
 0x473   : > { %v1409_v2 = vpop.f32.mrb[29].mxu0 }
 0x474   : > { %v14966_v5 = vpop.f32.mrb[30].mxu0 }
 0x475   : > { %v1431_v6 = vpack.c.bf16 %v14966_v5, %v14965_v63  ;;  %v1412_v7 = vpop.f32.mrb[31].mxu0  ;;  %14970 = vmatpush3.bf16.msra.mxu1 %v1429_v58 }
 0x476   : > { %14940 = vmatmul.mubr.msk.bf16.gmra.mrb[20].mxu1 %vm693_vm0, %v1105_v38  ;;  %v1430_v8 = vpack.c.bf16 %v1412_v7, %v1409_v2 }
 0x477   : > { %14990 = vmatpush3.bf16.xpose.msra.mxu0 %v1555_v62 }
 0x478   : > { %14971 = vmatprep.subr.bf16.mxu1 %v1430_v8 }
 0x479   : > { %14972 = vmatpush3.bf16.msra.mxu1 %v1430_v8 }
 0x47a   : > { %14973 = vmatprep.subr.bf16.mxu1 %v1431_v6 }
 0x47d   : > { %14974 = vmatpush3.bf16.msra.mxu1 %v1431_v6 }
 0x47e   : > { %14992 = vmatmul.mubr.msk.bf16.vlgmr.msra.gmra.mrb[32].mxu0 %vm693_vm0, %v1520_v43 }
 0x541   : > { %v14937_v9 = vpop.f32.mrb[16].mxu1 }
 0x542   : > { %v1176_v10 = vpop.f32.mrb[17].mxu1  ;;  %v1213_v11 = vsel %vm783_vm1, %v14937_v9, -inf }
 0x543   : > { %1214 = vmax.xlane.f32.xlu0 %v1213_v11  ;;  %v14938_v13 = vpop.f32.mrb[18].mxu1  ;;  %v1207_v47 = vsel %vm783_vm1, %v1176_v10, -inf }
 0x544   : > { %v1179_v14 = vpop.f32.mrb[19].mxu1  ;;  %v1216_v51 = vsel %vm783_vm1, %v14938_v13, -inf }
 0x545   : > { %v1210_v17 = vsel %vm783_vm1, %v1179_v14, -inf }
 0x546   : > { %1211 = vmax.xlane.f32.xlu1 %v1210_v17 }
 0x547   : > { %1208 = vmax.xlane.f32.xlu0 %v1207_v47 }
 0x549   : > { %v17599_v48 = vpop.f32.mrb[20].mxu1 }
 0x54a   : > { %v1192_v41 = vpop.f32.mrb[21].mxu1  ;;  %v1225_v33 = vsel %vm783_vm1, %v17599_v48, -inf }
 0x54b   : > { %1217 = vmax.xlane.f32.xlu0 %v1216_v51  ;;  %v14942_v18 = vpop.f32.mrb[22].mxu1  ;;  %v1219_v26 = vsel %vm783_vm1, %v1192_v41, -inf }
 0x54c   : > { %v1195_v19 = vpop.f32.mrb[23].mxu1  ;;  %v1228_v28 = vsel %vm783_vm1, %v14942_v18, -inf }
 0x54d   : > { %v1222_v29 = vsel %vm783_vm1, %v1195_v19, -inf }
 0x551   : > { %v17602_v20 = vpop.f32.mrb[32].mxu0 }
 0x552   : > { %v17604_v22 = vpop.f32.mrb[33].mxu0 }
 0x553   : > { %v17606_v23 = vpop.f32.mrb[34].mxu0 }
 0x554   : > { %v17608_v25 = vpop.f32.mrb[35].mxu0 }
 0x557   : > { %1523 = vrot.lane.b32.xlu1 %v17465_v15, %s17031_s20 }
 0x561   : > { %1521 = vrot.lane.b32.xlu0 %v17457_v3, %s17031_s20 }
 0x57b   : > { %1220 = vmax.xlane.f32.xlu1 %v1219_v26 }
 0x57f   : > { %1229 = vmax.xlane.f32.xlu1 %v1228_v28 }
 0x580   : > { %1223 = vmax.xlane.f32.xlu0 %v1222_v29  ;;  %v1710_v29 = vld [vmem:[#allocation8 + $0x8] sm:$0xf] }
 0x584   : > { %1226 = vmax.xlane.f32.xlu0 %v1225_v33  ;;  %v1711_v33 = vld [vmem:[#allocation8 + $0x28] sm:$0xf] }
 0x5d0   : > { %v1215_v34 = vpop.xlane.xlu0 %1214 }
 0x5d1   : > { %v1233_v35 = vsub.f32 %v14937_v9, %v1215_v34  ;;  %v12824_v34 = vcombine.low %v1710_v29, %v1711_v33  ;;  %v1725_v29 = vld [vmem:[#allocation8 + $0x1e8] sm:$0xf] }
 0x5d3   : > { %v1212_v36 = vpop.xlane.xlu1 %1211  ;;  %v1243_v42 = vmul.f32 1.442695, %v1233_v35  ;;  %14999 = vmatprep.subr.bf16.mxu1 %v12824_v34  ;;  %v1625_v35 = vsel %vm783_vm1, %v17608_v25, -inf }
 0x5d4   : > { %v1232_v37 = vsub.f32 %v1179_v14, %v1212_v36  ;;  %v1209_v38 = vpop.xlane.xlu0 %1208  ;;  %v1628_v36 = vsel %vm783_vm1, %v17602_v20, -inf }
 0x5d5   : > { %v1231_v39 = vsub.f32 %v1176_v10, %v1209_v38  ;;  %v1631_v38 = vsel %vm783_vm1, %v17606_v23, -inf }
 0x5d6   : > { %v1241_v40 = vmul.f32 1.442695, %v1232_v37  ;;  %v1622_v37 = vsel %vm783_vm1, %v17604_v22, -inf }
 0x5d7   : > { %v1239_v1 = vmul.f32 1.442695, %v1231_v39  ;;  %v1524_v60 = vpop.permute.xlu1 %1523 }
 0x5d8   : > { %16401 = vpow2.f32 %v1241_v40  ;;  %v1218_v46 = vpop.xlane.xlu0 %1217 }
 0x5d9   : > { %16403 = vpow2.f32 %v1239_v1  ;;  %v1234_v49 = vsub.f32 %v14938_v13, %v1218_v46 }
 0x5da   : > { %16405 = vpow2.f32 %v1243_v42 }
 0x5db   : > { %v1245_v50 = vmul.f32 1.442695, %v1234_v49 }
 0x5dc   : > { %v1522_v53 = vpop.permute.xlu0 %1521 }
 0x5dd   : > { %16407 = vpow2.f32 %v1245_v50  ;;  %14995 = vmatprep.mubr.msk.bf16.mxu0 %vm693_vm0, %v1522_v53 }
 0x5de   : > { %14996 = vmatmul.mubr.msk.bf16.gmra.mrb[36].mxu0 %vm693_vm0, %v1524_v60 }
 0x5e2   : > { %v17621_v62 = vpop.eup %16401 }
 0x5e3   : > { %v17623_v43 = vpop.eup %16403  ;;  %v1258_v52 = vsel %vm783_vm1, %v17621_v62, 0.0 }
 0x5e4   : > { %1259 = vadd.xlane.f32.xlu1 %v1258_v52  ;;  %v1255_v54 = vsel %vm783_vm1, %v17623_v43, 0.0  ;;  %v17629_v57 = vpop.eup %16405 }
 0x5e5   : > { %1256 = vadd.xlane.f32.xlu0 %v1255_v54  ;;  %v1261_v59 = vsel %vm783_vm1, %v17629_v57, 0.0 }
 0x5e7   : > { %v17631_v58 = vpop.eup %16407 }
 0x5e8   : > { %v1264_v61 = vsel %vm783_vm1, %v17631_v58, 0.0 }
 0x5e9   : > { %1262 = vadd.xlane.f32.xlu0 %v1261_v59  ;;  %1265 = vadd.xlane.f32.xlu1 %v1264_v61  ;;  %v1712_v61 = vld [vmem:[#allocation8 + $0x48] sm:$0xf] }
 0x608   : > { %v1221_v63 = vpop.xlane.xlu1 %1220 }
 0x609   : > { %v1235_v2 = vsub.f32 %v1192_v41, %v1221_v63  ;;  %v1713_v63 = vld [vmem:[#allocation8 + $0x68] sm:$0xf] }
 0x60b   : > { %v1247_v5 = vmul.f32 1.442695, %v1235_v2 }
 0x60c   : > { %v1230_v6 = vpop.xlane.xlu1 %1229 }
 0x60d   : > { %16409 = vpow2.f32 %v1247_v5  ;;  %v1238_v7 = vsub.f32 %v14942_v18, %v1230_v6  ;;  %v1224_v8 = vpop.xlane.xlu0 %1223  ;;  %v1714_v5 = vld [vmem:[#allocation8 + $0x88] sm:$0xf] }
 0x60e   : > { %v1236_v9 = vsub.f32 %v1195_v19, %v1224_v8  ;;  %v1715_v6 = vld [vmem:[#allocation8 + $0xa8] sm:$0xf] }
 0x60f   : > { %v1253_v10 = vmul.f32 1.442695, %v1238_v7  ;;  %v12826_v7 = vcombine.low %v1714_v5, %v1715_v6  ;;  %v1716_v8 = vld [vmem:[#allocation8 + $0xc8] sm:$0xf] }
 0x610   : > { %v1249_v11 = vmul.f32 1.442695, %v1236_v9 }
 0x611   : > { %v1227_v13 = vpop.xlane.xlu0 %1226 }
 0x612   : > { %16411 = vpow2.f32 %v1249_v11  ;;  %v1237_v14 = vsub.f32 %v17599_v48, %v1227_v13  ;;  %v1719_v11 = vld [vmem:[#allocation8 + $0x128] sm:$0xf] }
 0x613   : > { %16413 = vpow2.f32 %v1253_v10  ;;  %v1718_v10 = vld [vmem:[#allocation8 + $0x108] sm:$0xf] }
 0x614   : > { %v1251_v17 = vmul.f32 1.442695, %v1237_v14  ;;  %v1720_v13 = vld [vmem:[#allocation8 + $0x148] sm:$0xf] }
 0x615   : > { %v1721_v14 = vld [vmem:[#allocation8 + $0x168] sm:$0xf] }
 0x616   : > { %16415 = vpow2.f32 %v1251_v17  ;;  %v12829_v17 = vcombine.low %v1720_v13, %v1721_v14 }
 0x617   : > { %v17638_v47 = vpop.eup %16409 }
 0x618   : > { %v1267_v41 = vsel %vm783_vm1, %v17638_v47, 0.0 }
 0x619   : > { %1268 = vadd.xlane.f32.xlu0 %v1267_v41  ;;  %v1722_v41 = vld [vmem:[#allocation8 + $0x188] sm:$0xf] }
 0x61c   : > { %v17642_v51 = vpop.eup %16411 }
 0x61d   : > { %v1270_v18 = vsel %vm783_vm1, %v17642_v51, 0.0  ;;  %v17646_v19 = vpop.eup %16413 }
 0x61e   : > { %1271 = vadd.xlane.f32.xlu1 %v1270_v18  ;;  %v1276_v28 = vsel %vm783_vm1, %v17646_v19, 0.0  ;;  %v1723_v18 = vld [vmem:[#allocation8 + $0x1a8] sm:$0xf] }
 0x620   : > { %v17648_v26 = vpop.eup %16415 }
 0x621   : > { %v1273_v48 = vsel %vm783_vm1, %v17648_v26, 0.0 }
 0x622   : > { %1274 = vadd.xlane.f32.xlu0 %v1273_v48  ;;  %1277 = vadd.xlane.f32.xlu1 %v1276_v28  ;;  %v12830_v48 = vcombine.low %v1722_v41, %v1723_v18  ;;  %v1724_v28 = vld [vmem:[#allocation8 + $0x1c8] sm:$0xf] }
 0x623   : > { %v12831_v33 = vcombine.low %v1724_v28, %v1725_v29 }
 0x633   : > { %1942 = vrot.lane.b32.xlu1 %v17451_v56, %s17032_s5 }
 0x637   : > { %1944 = vrot.lane.b32.xlu1 %v17459_v4, %s17032_s5 }
 0x638   : > { %1940 = vrot.lane.b32.xlu0 %v17441_v45, %s17032_s5 }
 0x63b   : > { %1946 = vrot.lane.b32.xlu1 %v17467_v16, %s17032_s5 }
 0x63c   : > { %1932 = vrot.lane.b32.xlu0 %v17439_v44, %s17032_s5 }
 0x63f   : > { %2355 = vrot.lane.b32.xlu1 %v17441_v45, %s17033_s22 }
 0x640   : > { %1934 = vrot.lane.b32.xlu0 %v17449_v55, %s17032_s5 }
 0x643   : > { %2357 = vrot.lane.b32.xlu1 %v17451_v56, %s17033_s22 }
 0x644   : > { %2359 = vrot.lane.b32.xlu0 %v17459_v4, %s17033_s22 }
 0x663   : > { %1626 = vmax.xlane.f32.xlu0 %v1625_v35 }
 0x667   : > { %1629 = vmax.xlane.f32.xlu0 %v1628_v36  ;;  %1623 = vmax.xlane.f32.xlu1 %v1622_v37 }
 0x66b   : > { %1632 = vmax.xlane.f32.xlu0 %v1631_v38 }
 0x671   : > { %v1260_v39 = vpop.xlane.xlu1 %1259 }
 0x672   : > { %16417 = vrcp.f32 %v1260_v39  ;;  %v1257_v40 = vpop.xlane.xlu0 %1256 }
 0x673   : > { %16419 = vrcp.f32 %v1257_v40 }
 0x676   : > { %v1263_v42 = vpop.xlane.xlu0 %1262  ;;  %v1266_v1 = vpop.xlane.xlu1 %1265 }
 0x677   : > { %16421 = vrcp.f32 %v1263_v42 }
 0x678   : > { %16423 = vrcp.f32 %v1266_v1  ;;  %1936 = vrot.lane.b32.xlu1 %v17457_v3, %s17032_s5 }
 0x67c   : > { %v16418_v46 = vpop.eup %16417  ;;  %2361 = vrot.lane.b32.xlu1 %v17467_v16, %s17033_s22 }
 0x67d   : > { %v16420_v49 = vpop.eup %16419  ;;  %v1288_v50 = vmul.f32 %v16418_v46, %v17621_v62 }
 0x67e   : > { %v1287_v53 = vmul.f32 %v16420_v49, %v17623_v43  ;;  %v12825_v43 = vcombine.low %v1712_v61, %v1713_v63 }
 0x680   : > { %2347 = vrot.lane.b32.xlu1 %v17439_v44, %s17033_s22  ;;  %v1424_v60 = vpack.c.bf16 %v1288_v50, %v1287_v53 }
 0x681   : > { %v16422_v52 = vpop.eup %16421  ;;  %1938 = vrot.lane.b32.xlu0 %v17465_v15, %s17032_s5  ;;  %s18974_s5 = sld [smem:[#allocation27_spill]] }
 0x682   : > { %v16424_v54 = vpop.eup %16423  ;;  %v1289_v59 = vmul.f32 %v16422_v52, %v17629_v57  ;;  %14975 = vmatprep.mubr.msk.bf16.mxu1 %vm783_vm1, %v1424_v60  ;;  %v1717_v57 = vld [vmem:[#allocation8 + $0xe8] sm:$0xf] }
 0x683   : > { %v1290_v2 = vmul.f32 %v16424_v54, %v17631_v58  ;;  %v12827_v9 = vcombine.low %v1716_v8, %v1717_v57  ;;  %v12828_v58 = vcombine.low %v1718_v10, %v1719_v11 }
 0x684   : > { %2349 = vrot.lane.b32.xlu1 %v17449_v55, %s17033_s22 }
 0x685   : > { %v1425_v62 = vpack.c.bf16 %v1290_v2, %v1289_v59 }
 0x687   : > { %14976 = vmatmul.mubr.msk.bf16.vlgmr.msra.gmra.mrb[8].mxu1 %vm783_vm1, %v1425_v62 }
 0x688   : > { %15000 = vmatpush3.bf16.msra.mxu1 %v12824_v34 }
 0x689   : > { %15001 = vmatprep.subr.bf16.mxu1 %v12825_v43 }
 0x68c   : > { %15002 = vmatpush3.bf16.msra.mxu1 %v12825_v43 }
 0x68d   : > { %15003 = vmatprep.subr.bf16.mxu1 %v12826_v7 }
 0x690   : > { %15004 = vmatpush3.bf16.msra.mxu1 %v12826_v7 }
 0x691   : > { %15005 = vmatprep.subr.bf16.mxu1 %v12827_v9 }
 0x694   : > { %15006 = vmatpush3.bf16.msra.mxu1 %v12827_v9 }
 0x695   : > { %15007 = vmatprep.subr.bf16.mxu1 %v12828_v58 }
 0x698   : > { %15008 = vmatpush3.bf16.msra.mxu1 %v12828_v58 }
 0x699   : > { %15009 = vmatprep.subr.bf16.mxu1 %v12829_v17 }
 0x69c   : > { %15010 = vmatpush3.bf16.msra.mxu1 %v12829_v17 }
 0x69d   : > { %15011 = vmatprep.subr.bf16.mxu1 %v12830_v48 }
 0x6a0   : > { %15012 = vmatpush3.bf16.msra.mxu1 %v12830_v48 }
 0x6a1   : > { %15013 = vmatprep.subr.bf16.mxu1 %v12831_v33 }
 0x6a4   : > { %15014 = vmatpush3.bf16.msra.mxu1 %v12831_v33 }
 0x6a6   : > { %v1269_v34 = vpop.xlane.xlu0 %1268 }
 0x6a7   : > { %16425 = vrcp.f32 %v1269_v34 }
 0x6ab   : > { %v1272_v35 = vpop.xlane.xlu1 %1271 }
 0x6ac   : > { %16427 = vrcp.f32 %v1272_v35 }
 0x6af   : > { %v1275_v36 = vpop.xlane.xlu0 %1274  ;;  %v1278_v37 = vpop.xlane.xlu1 %1277 }
 0x6b0   : > { %16429 = vrcp.f32 %v1275_v36 }
 0x6b1   : > { %16431 = vrcp.f32 %v1278_v37  ;;  %v17696_v38 = vpop.f32.mrb[36].mxu0  ;;  %v16426_v46 = vpop.eup %16425 }
 0x6b2   : > { %v17698_v39 = vpop.f32.mrb[37].mxu0  ;;  %v1640_v59 = vsel %vm783_vm1, %v17696_v38, -inf  ;;  %v1291_v61 = vmul.f32 %v16426_v46, %v17638_v47 }
 0x6b3   : > { %v17700_v40 = vpop.f32.mrb[38].mxu0  ;;  %v1941_v42 = vpop.permute.xlu0 %1940  ;;  %v1634_v1 = vsel %vm783_vm1, %v17698_v39, -inf }
 0x6b4   : > { %v17704_v49 = vpop.f32.mrb[39].mxu0  ;;  %1635 = vmax.xlane.f32.xlu0 %v1634_v1  ;;  %15463 = vmatprep.subr.msk.bf16.mxu0 %vm693_vm0, %v1941_v42  ;;  %v1961_v50 = vsel %vm693_vm0, %v1941_v42, 0  ;;  %v1943_v53 = vpop.permute.xlu1 %1942  ;;  %v1643_v5 = vsel %vm783_vm1, %v17700_v40, -inf }
 0x6b5   : > { %15040 = vmatpush3.bf16.xpose.msra.mxu0 %v1961_v50  ;;  %v1637_v60 = vsel %vm783_vm1, %v17704_v49, -inf  ;;  %v1964_v7 = vsel %vm693_vm0, %v1943_v53, 0 }
 0x6b6   : > { %v16428_v52 = vpop.eup %16427  ;;  %1638 = vmax.xlane.f32.xlu1 %v1637_v60  ;;  %15464 = vmatprep.subr.msk.bf16.mxu0 %vm693_vm0, %v1943_v53 }
 0x6b7   : > { %v1933_v54 = vpop.permute.xlu0 %1932  ;;  %v1292_v63 = vmul.f32 %v16428_v52, %v17642_v51 }
 0x6b8   : > { %1641 = vmax.xlane.f32.xlu0 %v1640_v59  ;;  %15047 = vmatprep.mubr.msk.bf16.mxu0 %vm693_vm0, %v1933_v54  ;;  %v1945_v8 = vpop.permute.xlu1 %1944 }
 0x6b9   : > { %v1426_v2 = vpack.c.bf16 %v1292_v63, %v1291_v61  ;;  %v1967_v57 = vsel %vm693_vm0, %v1945_v8, 0 }
 0x6ba   : > { %v16430_v62 = vpop.eup %16429 }
 0x6bb   : > { %v16432_v43 = vpop.eup %16431  ;;  %14979 = vmatprep.mubr.msk.bf16.mxu1 %vm783_vm1, %v1426_v2  ;;  %v1293_v6 = vmul.f32 %v16430_v62, %v17648_v26  ;;  %v1935_v10 = vpop.permute.xlu0 %1934 }
 0x6bc   : > { %1644 = vmax.xlane.f32.xlu0 %v1643_v5  ;;  %v1294_v47 = vmul.f32 %v16432_v43, %v17646_v19  ;;  %v1947_v9 = vpop.permute.xlu1 %1946 }
 0x6bd   : > { %15042 = vmatpush3.bf16.xpose.msra.mxu0 %v1964_v7  ;;  %v1970_v19 = vsel %vm693_vm0, %v1947_v9, 0 }
 0x6be   : > { %15465 = vmatprep.subr.msk.bf16.mxu0 %vm693_vm0, %v1945_v8  ;;  %v1427_v51 = vpack.c.bf16 %v1294_v47, %v1293_v6 }
 0x6bf   : > { %v2360_v14 = vpop.permute.xlu0 %2359 }
 0x6c0   : > { %14980 = vmatmul.mubr.msk.bf16.gmra.mrb[12].mxu1 %vm783_vm1, %v1427_v51  ;;  %v2356_v26 = vpop.permute.xlu1 %2355  ;;  %v2382_v17 = vsel %vm693_vm0, %v2360_v14, 0 }
 0x6c1   : > { %15015 = vmatprep.mubr.bf16.mxu1 %v17410_v21  ;;  %v2376_v11 = vsel %vm693_vm0, %v2356_v26, 0 }
 0x6c4   : > { %v2358_v58 = vpop.permute.xlu1 %2357 }
 0x6c5   : > { %15044 = vmatpush3.bf16.xpose.msra.mxu0 %v1967_v57  ;;  %v2379_v13 = vsel %vm693_vm0, %v2358_v58, 0 }
 0x6c6   : > { %15466 = vmatprep.subr.msk.bf16.mxu0 %vm693_vm0, %v1947_v9 }
 0x6c7   : > { %2353 = vrot.lane.b32.xlu1 %v17465_v15, %s17033_s22 }
 0x6c8   : > { %15016 = vmatmul.mubr.bf16.vlgmr.msra.gmra.mrb[24].mxu1 %v17416_v24 }
 0x6c9   : > { %15019 = vmatprep.mubr.bf16.mxu1 %v17422_v27 }
 0x6cd   : > { %15046 = vmatpush3.bf16.xpose.msra.mxu0 %v1970_v19 }
 0x6ce   : > { %15467 = vmatprep.subr.msk.bf16.mxu0 %vm693_vm0, %v2356_v26 }
 0x6d0   : > { %15020 = vmatmul.mubr.bf16.gmra.mrb[28].mxu1 %v17428_v30 }
 0x6d2   : > { %2351 = vrot.lane.b32.xlu0 %v17457_v3, %s17033_s22  ;;  %s18878_s22 = scalar_lea.hbm %s18974_s5, %s13660_s12 }
 0x6d4   : > { %15048 = vmatmul.mubr.msk.bf16.vlgmr.msra.gmra.mrb[40].mxu0 %vm693_vm0, %v1935_v10 }
 0x6d5   : > { %15096 = vmatpush3.bf16.xpose.msra.mxu0 %v2376_v11 }
 0x6d6   : > { %15468 = vmatprep.subr.msk.bf16.mxu0 %vm693_vm0, %v2358_v58 }
 0x6dd   : > { %15098 = vmatpush3.bf16.xpose.msra.mxu0 %v2379_v13 }
 0x6de   : > { %15469 = vmatprep.subr.msk.bf16.mxu0 %vm693_vm0, %v2360_v14 }
 0x6e5   : > { %15100 = vmatpush3.bf16.xpose.msra.mxu0 %v2382_v17 }
 0x6f0   : > { %v1627_v41 = vpop.xlane.xlu0 %1626 }
 0x6f1   : > { %v1647_v18 = vsub.f32 %v17608_v25, %v1627_v41  ;;  %v2540_v41 = vld [vmem:[#allocation8 + $0x10] sm:$0xf] }
 0x6f3   : > { %v1656_v48 = vmul.f32 1.442695, %v1647_v18  ;;  %v2541_v18 = vld [vmem:[#allocation8 + $0x30] sm:$0xf] }
 0x6f4   : > { %v1630_v28 = vpop.xlane.xlu0 %1629  ;;  %v1624_v29 = vpop.xlane.xlu1 %1623 }
 0x6f5   : > { %16433 = vpow2.f32 %v1656_v48  ;;  %v1648_v33 = vsub.f32 %v17602_v20, %v1630_v28  ;;  %v1646_v34 = vsub.f32 %v17604_v22, %v1624_v29  ;;  %v2542_v48 = vld [vmem:[#allocation8 + $0x50] sm:$0xf]  ;;  %v12856_v28 = vcombine.low %v2540_v41, %v2541_v18  ;;  %v2125_v41 = vld [vmem:[#allocation8 + $0xc] sm:$0xf] }
 0x6f6   : > { %v2543_v29 = vld [vmem:[#allocation8 + $0x70] sm:$0xf]  ;;  %v2126_v18 = vld [vmem:[#allocation8 + $0x2c] sm:$0xf] }
 0x6f7   : > { %v1658_v35 = vmul.f32 1.442695, %v1648_v33  ;;  %v1654_v36 = vmul.f32 1.442695, %v1646_v34  ;;  %v12857_v33 = vcombine.low %v2542_v48, %v2543_v29  ;;  %v2544_v34 = vld [vmem:[#allocation8 + $0x90] sm:$0xf] }
 0x6f8   : > { %v1633_v37 = vpop.xlane.xlu0 %1632  ;;  %v1937_v42 = vpop.permute.xlu1 %1936  ;;  %v2552_v29 = vld [vmem:[#allocation8 + $0x190] sm:$0xf] }
 0x6f9   : > { %16435 = vpow2.f32 %v1658_v35  ;;  %v1649_v1 = vsub.f32 %v17606_v23, %v1633_v37  ;;  %15051 = vmatprep.mubr.msk.bf16.mxu0 %vm693_vm0, %v1937_v42  ;;  %v2545_v35 = vld [vmem:[#allocation8 + $0xb0] sm:$0xf] }
 0x6fa   : > { %16437 = vpow2.f32 %v1654_v36  ;;  %v12858_v36 = vcombine.low %v2544_v34, %v2545_v35  ;;  %v2546_v37 = vld [vmem:[#allocation8 + $0xd0] sm:$0xf] }
 0x6fb   : > { %v1660_v46 = vmul.f32 1.442695, %v1649_v1  ;;  %v2547_v42 = vld [vmem:[#allocation8 + $0xf0] sm:$0xf] }
 0x6fc   : > { %v1939_v25 = vpop.permute.xlu0 %1938  ;;  %v2362_v50 = vpop.permute.xlu1 %2361 }
 0x6fd   : > { %16439 = vpow2.f32 %v1660_v46  ;;  %15052 = vmatmul.mubr.msk.bf16.gmra.mrb[44].mxu0 %vm693_vm0, %v1939_v25  ;;  %15470 = vmatprep.subr.msk.bf16.mxu0 %vm693_vm0, %v2362_v50  ;;  %v2385_v20 = vsel %vm693_vm0, %v2362_v50, 0  ;;  %v12859_v46 = vcombine.low %v2546_v37, %v2547_v42 }
 0x6fe   : > { %15102 = vmatpush3.bf16.xpose.msra.mxu0 %v2385_v20 }
 0x6ff   : > { %v17750_v22 = vpop.eup %16433  ;;  %15111 = vmatprep.subr.bf16.mxu0 %v12856_v28 }
 0x700   : > { %v2348_v53 = vpop.permute.xlu1 %2347  ;;  %v1673_v23 = vsel %vm783_vm1, %v17750_v22, 0.0 }
 0x701   : > { %1674 = vadd.xlane.f32.xlu0 %v1673_v23  ;;  %15103 = vmatprep.mubr.msk.bf16.mxu0 %vm693_vm0, %v2348_v53 }
 0x703   : > { %v17755_v60 = vpop.eup %16435 }
 0x704   : > { %v17757_v52 = vpop.eup %16437  ;;  %v2350_v54 = vpop.permute.xlu1 %2349  ;;  %v1676_v59 = vsel %vm783_vm1, %v17755_v60, 0.0 }
 0x705   : > { %1677 = vadd.xlane.f32.xlu0 %v1676_v59  ;;  %v1670_v61 = vsel %vm783_vm1, %v17757_v52, 0.0  ;;  %15104 = vmatmul.mubr.msk.bf16.vlgmr.msra.gmra.mrb[48].mxu0 %vm693_vm0, %v2350_v54 }
 0x706   : > { %1671 = vadd.xlane.f32.xlu1 %v1670_v61  ;;  %15112 = vmatpush3.bf16.msra.mxu0 %v12856_v28 }
 0x707   : > { %v17764_v63 = vpop.eup %16439  ;;  %15113 = vmatprep.subr.bf16.mxu0 %v12857_v33 }
 0x708   : > { %v1679_v2 = vsel %vm783_vm1, %v17764_v63, 0.0 }
 0x70a   : > { %1680 = vadd.xlane.f32.xlu1 %v1679_v2  ;;  %15114 = vmatpush3.bf16.msra.mxu0 %v12857_v33  ;;  %v2553_v33 = vld [vmem:[#allocation8 + $0x1b0] sm:$0xf] }
 0x70b   : > { %15115 = vmatprep.subr.bf16.mxu0 %v12858_v36 }
 0x70e   : > { %15116 = vmatpush3.bf16.msra.mxu0 %v12858_v36  ;;  %v12862_v36 = vcombine.low %v2552_v29, %v2553_v33 }
 0x70f   : > { %15117 = vmatprep.subr.bf16.mxu0 %v12859_v46 }
 0x712   : > { %15118 = vmatpush3.bf16.msra.mxu0 %v12859_v46  ;;  %v2554_v46 = vld [vmem:[#allocation8 + $0x1d0] sm:$0xf] }
 0x741   : > { %v1636_v62 = vpop.xlane.xlu0 %1635 }
 0x742   : > { %v1650_v43 = vsub.f32 %v17698_v39, %v1636_v62 }
 0x743   : > { %v1639_v5 = vpop.xlane.xlu1 %1638 }
 0x744   : > { %v1662_v6 = vmul.f32 1.442695, %v1650_v43  ;;  %v1651_v7 = vsub.f32 %v17704_v49, %v1639_v5 }
 0x745   : > { %v1642_v47 = vpop.xlane.xlu0 %1641 }
 0x746   : > { %16441 = vpow2.f32 %v1662_v6  ;;  %v1664_v8 = vmul.f32 1.442695, %v1651_v7  ;;  %v1652_v51 = vsub.f32 %v17696_v38, %v1642_v47  ;;  %v2548_v47 = vld [vmem:[#allocation8 + $0x110] sm:$0xf] }
 0x747   : > { %v2354_v11 = vpop.permute.xlu1 %2353 }
 0x748   : > { %16443 = vpow2.f32 %v1664_v8  ;;  %v1666_v57 = vmul.f32 1.442695, %v1652_v51  ;;  %v2549_v8 = vld [vmem:[#allocation8 + $0x130] sm:$0xf] }
 0x749   : > { %v1645_v9 = vpop.xlane.xlu0 %1644  ;;  %v12860_v51 = vcombine.low %v2548_v47, %v2549_v8  ;;  %v2134_v47 = vld [vmem:[#allocation8 + $0x12c] sm:$0xf] }
 0x74a   : > { %16445 = vpow2.f32 %v1666_v57  ;;  %v1653_v19 = vsub.f32 %v17700_v40, %v1645_v9 }
 0x74b   : > { %15119 = vmatprep.subr.bf16.mxu0 %v12860_v51 }
 0x74c   : > { %v1668_v26 = vmul.f32 1.442695, %v1653_v19  ;;  %15120 = vmatpush3.bf16.msra.mxu0 %v12860_v51  ;;  %v2135_v51 = vld [vmem:[#allocation8 + $0x14c] sm:$0xf] }
 0x74d   : > { %v2352_v10 = vpop.permute.xlu0 %2351 }
 0x74e   : > { %16447 = vpow2.f32 %v1668_v26  ;;  %15107 = vmatprep.mubr.msk.bf16.mxu0 %vm693_vm0, %v2352_v10  ;;  %v2550_v26 = vld [vmem:[#allocation8 + $0x150] sm:$0xf] }
 0x74f   : > { %15108 = vmatmul.mubr.msk.bf16.gmra.mrb[52].mxu0 %vm693_vm0, %v2354_v11  ;;  %v2551_v10 = vld [vmem:[#allocation8 + $0x170] sm:$0xf] }
 0x750   : > { %v17774_v39 = vpop.eup %16441  ;;  %15127 = vmatprep.mubr.bf16.mxu0 %v17410_v21 }
 0x751   : > { %v1682_v38 = vsel %vm783_vm1, %v17774_v39, 0.0 }
 0x752   : > { %v17779_v49 = vpop.eup %16443  ;;  %1683 = vadd.xlane.f32.xlu0 %v1682_v38 }
 0x753   : > { %v1685_v40 = vsel %vm783_vm1, %v17779_v49, 0.0 }
 0x754   : > { %v17783_v58 = vpop.eup %16445  ;;  %1686 = vadd.xlane.f32.xlu1 %v1685_v40 }
 0x755   : > { %v1688_v13 = vsel %vm783_vm1, %v17783_v58, 0.0 }
 0x756   : > { %1689 = vadd.xlane.f32.xlu0 %v1688_v13 }
 0x758   : > { %v17787_v14 = vpop.eup %16447 }
 0x759   : > { %v1691_v17 = vsel %vm783_vm1, %v17787_v14, 0.0 }
 0x75a   : > { %1692 = vadd.xlane.f32.xlu1 %v1691_v17 }
 0x78e   : > { %v1675_v1 = vpop.xlane.xlu0 %1674 }
 0x78f   : > { %16449 = vrcp.f32 %v1675_v1  ;;  %v12840_v1 = vcombine.low %v2125_v41, %v2126_v18 }
 0x792   : > { %v1678_v54 = vpop.xlane.xlu0 %1677 }
 0x793   : > { %v1672_v25 = vpop.xlane.xlu1 %1671 }
 0x794   : > { %16451 = vrcp.f32 %v1672_v25  ;;  %v2555_v25 = vld [vmem:[#allocation8 + $0x1f0] sm:$0xf] }
 0x797   : > { %v1681_v50 = vpop.xlane.xlu1 %1680 }
 0x798   : > { %16453 = vrcp.f32 %v1681_v50  ;;  %v2127_v50 = vld [vmem:[#allocation8 + $0x4c] sm:$0xf] }
 0x799   : > { %v16450_v53 = vpop.eup %16449  ;;  %16455 = vrcp.f32 %v1678_v54 }
 0x79a   : > { %v1703_v6 = vmul.f32 %v16450_v53, %v17750_v22  ;;  %v12861_v22 = vcombine.low %v2550_v26, %v2551_v10  ;;  %v12863_v53 = vcombine.low %v2554_v46, %v2555_v25  ;;  %v2138_v26 = vld [vmem:[#allocation8 + $0x1ac] sm:$0xf] }
 0x79b   : > { %v15017_v20 = vpop.f32.mrb[24].mxu1 }
 0x79c   : > { %v1808_v23 = vpop.f32.mrb[25].mxu1  ;;  %15121 = vmatprep.subr.bf16.mxu0 %v12861_v22 }
 0x79d   : > { %v15018_v59 = vpop.f32.mrb[26].mxu1  ;;  %15122 = vmatpush3.bf16.msra.mxu0 %v12861_v22 }
 0x79e   : > { %v16452_v61 = vpop.eup %16451  ;;  %v1844_v2 = vpack.c.bf16 %v15018_v59, %v15017_v20  ;;  %v1811_v62 = vpop.f32.mrb[27].mxu1  ;;  %v2128_v20 = vld [vmem:[#allocation8 + $0x6c] sm:$0xf]  ;;  %15123 = vmatprep.subr.bf16.mxu0 %v12862_v36 }
 0x79f   : > { %v1843_v43 = vpack.c.bf16 %v1811_v62, %v1808_v23  ;;  %v1702_v5 = vmul.f32 %v16452_v61, %v17757_v52  ;;  %v12841_v61 = vcombine.low %v2127_v50, %v2128_v20  ;;  %v2130_v62 = vld [vmem:[#allocation8 + $0xac] sm:$0xf] }
 0x7a1   : > { %15023 = vmatprep.subr.bf16.mxu1 %v1843_v43  ;;  %v1839_v7 = vpack.c.bf16 %v1703_v6, %v1702_v5  ;;  %15124 = vmatpush3.bf16.msra.mxu0 %v12862_v36  ;;  %v2132_v5 = vld [vmem:[#allocation8 + $0xec] sm:$0xf] }
 0x7a2   : > { %15024 = vmatpush3.bf16.msra.mxu1 %v1843_v43  ;;  %v16454_v13 = vpop.eup %16453  ;;  %15125 = vmatprep.subr.bf16.mxu0 %v12863_v53  ;;  %v2131_v43 = vld [vmem:[#allocation8 + $0xcc] sm:$0xf] }
 0x7a3   : > { %v15021_v57 = vpop.f32.mrb[28].mxu1  ;;  %15031 = vmatprep.mubr.msk.bf16.mxu1 %vm783_vm1, %v1839_v7  ;;  %15025 = vmatprep.subr.bf16.mxu1 %v1844_v2  ;;  %v16456_v34 = vpop.eup %16455  ;;  %v1705_v37 = vmul.f32 %v16454_v13, %v17764_v63  ;;  %v12843_v6 = vcombine.low %v2131_v43, %v2132_v5  ;;  %v2133_v7 = vld [vmem:[#allocation8 + $0x10c] sm:$0xf] }
 0x7a4   : > { %v1824_v9 = vpop.f32.mrb[29].mxu1  ;;  %v1704_v23 = vmul.f32 %v16456_v34, %v17755_v60  ;;  %v12844_v8 = vcombine.low %v2133_v7, %v2134_v47 }
 0x7a5   : > { %v15022_v19 = vpop.f32.mrb[30].mxu1  ;;  %15126 = vmatpush3.bf16.msra.mxu0 %v12863_v53 }
 0x7a6   : > { %v1846_v52 = vpack.c.bf16 %v15022_v19, %v15021_v57  ;;  %v1827_v11 = vpop.f32.mrb[31].mxu1  ;;  %15026 = vmatpush3.bf16.msra.mxu1 %v1844_v2  ;;  %v1840_v63 = vpack.c.bf16 %v1705_v37, %v1704_v23  ;;  %v2129_v2 = vld [vmem:[#allocation8 + $0x8c] sm:$0xf] }
 0x7a7   : > { %v1845_v38 = vpack.c.bf16 %v1827_v11, %v1824_v9  ;;  %v17794_v40 = vpop.f32.mrb[40].mxu0  ;;  %v12842_v60 = vcombine.low %v2129_v2, %v2130_v62  ;;  %v2136_v57 = vld [vmem:[#allocation8 + $0x16c] sm:$0xf] }
 0x7a8   : > { %v17796_v17 = vpop.f32.mrb[41].mxu0  ;;  %v2043_v54 = vsel %vm783_vm1, %v17794_v40, -inf  ;;  %15128 = vmatmul.mubr.bf16.vlgmr.msra.gmra.mrb[56].mxu0 %v17416_v24  ;;  %v12845_v9 = vcombine.low %v2135_v51, %v2136_v57  ;;  %v2137_v19 = vld [vmem:[#allocation8 + $0x18c] sm:$0xf] }
 0x7a9   : > { %15027 = vmatprep.subr.bf16.mxu1 %v1845_v38  ;;  %v17798_v48 = vpop.f32.mrb[42].mxu0  ;;  %v2037_v28 = vsel %vm783_vm1, %v17796_v17, -inf  ;;  %15131 = vmatprep.mubr.bf16.mxu0 %v17422_v27  ;;  %v12846_v10 = vcombine.low %v2137_v19, %v2138_v26  ;;  %v2140_v11 = vld [vmem:[#allocation8 + $0x1ec] sm:$0xf] }
 0x7aa   : > { %15028 = vmatpush3.bf16.msra.mxu1 %v1845_v38  ;;  %2038 = vmax.xlane.f32.xlu0 %v2037_v28  ;;  %v17802_v35 = vpop.f32.mrb[43].mxu0  ;;  %v2046_v59 = vsel %vm783_vm1, %v17798_v48, -inf }
 0x7ab   : > { %15029 = vmatprep.subr.bf16.mxu1 %v1846_v52  ;;  %v2040_v42 = vsel %vm783_vm1, %v17802_v35, -inf }
 0x7ac   : > { %2041 = vmax.xlane.f32.xlu1 %v2040_v42 }
 0x7ae   : > { %15030 = vmatpush3.bf16.msra.mxu1 %v1846_v52  ;;  %2044 = vmax.xlane.f32.xlu0 %v2043_v54  ;;  %v2139_v52 = vld [vmem:[#allocation8 + $0x1cc] sm:$0xf] }
 0x7af   : > { %15055 = vmatprep.subr.bf16.mxu1 %v12840_v1  ;;  %v12847_v22 = vcombine.low %v2139_v52, %v2140_v11 }
 0x7b0   : > { %2047 = vmax.xlane.f32.xlu1 %v2046_v59  ;;  %15132 = vmatmul.mubr.bf16.gmra.mrb[60].mxu0 %v17428_v30 }
 0x7b1   : > { %15032 = vmatmul.mubr.msk.bf16.vlgmr.msra.gmra.mrb[8].mxu1 %vm783_vm1, %v1840_v63  ;;  %15183 = vmatprep.mubr.bf16.mxu0 %v17410_v21 }
 0x7b2   : > { %15056 = vmatpush3.bf16.msra.mxu1 %v12840_v1 }
 0x7b3   : > { %15057 = vmatprep.subr.bf16.mxu1 %v12841_v61 }
 0x7b6   : > { %15058 = vmatpush3.bf16.msra.mxu1 %v12841_v61 }
 0x7b7   : > { %15059 = vmatprep.subr.bf16.mxu1 %v12842_v60 }
 0x7ba   : > { %15060 = vmatpush3.bf16.msra.mxu1 %v12842_v60 }
 0x7bb   : > { %15061 = vmatprep.subr.bf16.mxu1 %v12843_v6 }
 0x7be   : > { %15062 = vmatpush3.bf16.msra.mxu1 %v12843_v6 }
 0x7bf   : > { %15063 = vmatprep.subr.bf16.mxu1 %v12844_v8 }
 0x7c2   : > { %15064 = vmatpush3.bf16.msra.mxu1 %v12844_v8 }
 0x7c3   : > { %15065 = vmatprep.subr.bf16.mxu1 %v12845_v9 }
 0x7c6   : > { %15066 = vmatpush3.bf16.msra.mxu1 %v12845_v9 }
 0x7c7   : > { %15067 = vmatprep.subr.bf16.mxu1 %v12846_v10 }
 0x7ca   : > { %15068 = vmatpush3.bf16.msra.mxu1 %v12846_v10 }
 0x7cb   : > { %15069 = vmatprep.subr.bf16.mxu1 %v12847_v22 }
 0x7ce   : > { %15070 = vmatpush3.bf16.msra.mxu1 %v12847_v22 }
 0x7d0   : > { %v17817_v38 = vpop.f32.mrb[44].mxu0 }
 0x7d1   : > { %v17819_v13 = vpop.f32.mrb[45].mxu0  ;;  %v2055_v33 = vsel %vm783_vm1, %v17817_v38, -inf }
 0x7d2   : > { %v17821_v41 = vpop.f32.mrb[46].mxu0  ;;  %v2049_v18 = vsel %vm783_vm1, %v17819_v13, -inf }
 0x7d3   : > { %2050 = vmax.xlane.f32.xlu0 %v2049_v18  ;;  %v17825_v28 = vpop.f32.mrb[47].mxu0  ;;  %v2058_v36 = vsel %vm783_vm1, %v17821_v41, -inf }
 0x7d4   : > { %v2052_v29 = vsel %vm783_vm1, %v17825_v28, -inf }
 0x7d5   : > { %2053 = vmax.xlane.f32.xlu1 %v2052_v29 }
 0x7d7   : > { %2056 = vmax.xlane.f32.xlu0 %v2055_v33 }
 0x7d8   : > { %v17831_v34 = vpop.f32.mrb[48].mxu0 }
 0x7d9   : > { %v17835_v37 = vpop.f32.mrb[49].mxu0  ;;  %2059 = vmax.xlane.f32.xlu1 %v2058_v36  ;;  %v2458_v50 = vsel %vm783_vm1, %v17831_v34, -inf }
 0x7da   : > { %v17837_v42 = vpop.f32.mrb[50].mxu0  ;;  %v2452_v1 = vsel %vm783_vm1, %v17835_v37, -inf }
 0x7db   : > { %2453 = vmax.xlane.f32.xlu0 %v2452_v1  ;;  %v17841_v46 = vpop.f32.mrb[51].mxu0  ;;  %v2461_v53 = vsel %vm783_vm1, %v17837_v42, -inf }
 0x7dc   : > { %v2455_v25 = vsel %vm783_vm1, %v17841_v46, -inf }
 0x7dd   : > { %2456 = vmax.xlane.f32.xlu1 %v2455_v25 }
 0x7df   : > { %v1684_v20 = vpop.xlane.xlu0 %1683  ;;  %2459 = vmax.xlane.f32.xlu0 %v2458_v50 }
 0x7e0   : > { %16457 = vrcp.f32 %v1684_v20 }
 0x7e1   : > { %2462 = vmax.xlane.f32.xlu1 %v2461_v53  ;;  %v1687_v23 = vpop.xlane.xlu1 %1686 }
 0x7e2   : > { %16459 = vrcp.f32 %v1687_v23 }
 0x7e3   : > { %v1690_v54 = vpop.xlane.xlu0 %1689 }
 0x7e4   : > { %16461 = vrcp.f32 %v1690_v54 }
 0x7e7   : > { %v1693_v63 = vpop.xlane.xlu1 %1692 }
 0x7e8   : > { %16463 = vrcp.f32 %v1693_v63 }
 0x7ea   : > { %v16458_v59 = vpop.eup %16457 }
 0x7eb   : > { %v1706_v2 = vmul.f32 %v16458_v59, %v17774_v39 }
 0x7ec   : > { %v16460_v61 = vpop.eup %16459 }
 0x7ed   : > { %v1707_v62 = vmul.f32 %v16460_v61, %v17779_v49 }
 0x7ee   : > { %v16462_v43 = vpop.eup %16461 }
 0x7ef   : > { %v1841_v60 = vpack.c.bf16 %v1707_v62, %v1706_v2  ;;  %v1708_v6 = vmul.f32 %v16462_v43, %v17783_v58 }
 0x7f1   : > { %15035 = vmatprep.mubr.msk.bf16.mxu1 %vm783_vm1, %v1841_v60 }
 0x7f2   : > { %v16464_v5 = vpop.eup %16463 }
 0x7f3   : > { %v1709_v7 = vmul.f32 %v16464_v5, %v17787_v14 }
 0x7f5   : > { %v1842_v47 = vpack.c.bf16 %v1709_v7, %v1708_v6 }
 0x7f7   : > { %15036 = vmatmul.mubr.msk.bf16.gmra.mrb[12].mxu1 %vm783_vm1, %v1842_v47 }
 0x7f8   : > { %15071 = vmatprep.mubr.bf16.mxu1 %v17410_v21 }
 0x7ff   : > { %15072 = vmatmul.mubr.bf16.vlgmr.msra.gmra.mrb[32].mxu1 %v17416_v24 }
 0x800   : > { %15075 = vmatprep.mubr.bf16.mxu1 %v17422_v27 }
 0x807   : > { %15076 = vmatmul.mubr.bf16.gmra.mrb[36].mxu1 %v17428_v30 }
 0x822   : > { %v17859_v39 = vpop.f32.mrb[52].mxu0 }
 0x823   : > { %v17861_v49 = vpop.f32.mrb[53].mxu0  ;;  %v2470_v57 = vsel %vm783_vm1, %v17859_v39, -inf }
 0x824   : > { %v17863_v8 = vpop.f32.mrb[54].mxu0  ;;  %v2464_v58 = vsel %vm783_vm1, %v17861_v49, -inf }
 0x825   : > { %2465 = vmax.xlane.f32.xlu0 %v2464_v58  ;;  %v17867_v14 = vpop.f32.mrb[55].mxu0  ;;  %v2473_v9 = vsel %vm783_vm1, %v17863_v8, -inf }
 0x826   : > { %v2467_v51 = vsel %vm783_vm1, %v17867_v14, -inf }
 0x827   : > { %2468 = vmax.xlane.f32.xlu1 %v2467_v51 }
 0x829   : > { %2471 = vmax.xlane.f32.xlu0 %v2470_v57 }
 0x82b   : > { %2474 = vmax.xlane.f32.xlu1 %v2473_v9 }
 0x837   : > { %v2039_v19 = vpop.xlane.xlu0 %2038 }
 0x838   : > { %v2061_v26 = vsub.f32 %v17796_v17, %v2039_v19 }
 0x839   : > { %v2042_v10 = vpop.xlane.xlu1 %2041 }
 0x83a   : > { %v2069_v52 = vmul.f32 1.442695, %v2061_v26  ;;  %v2062_v11 = vsub.f32 %v17802_v35, %v2042_v10 }
 0x83b   : > { %v2045_v22 = vpop.xlane.xlu0 %2044 }
 0x83c   : > { %16465 = vpow2.f32 %v2069_v52  ;;  %v2071_v18 = vmul.f32 1.442695, %v2062_v11  ;;  %v2063_v29 = vsub.f32 %v17794_v40, %v2045_v22 }
 0x83d   : > { %v2048_v33 = vpop.xlane.xlu1 %2047 }
 0x83e   : > { %16467 = vpow2.f32 %v2071_v18  ;;  %v2073_v36 = vmul.f32 1.442695, %v2063_v29  ;;  %v2064_v1 = vsub.f32 %v17798_v48, %v2048_v33 }
 0x840   : > { %16469 = vpow2.f32 %v2073_v36  ;;  %v2075_v25 = vmul.f32 1.442695, %v2064_v1 }
 0x842   : > { %16471 = vpow2.f32 %v2075_v25 }
 0x846   : > { %v17879_v50 = vpop.eup %16465 }
 0x847   : > { %v2085_v17 = vsel %vm783_vm1, %v17879_v50, 0.0 }
 0x848   : > { %v17883_v20 = vpop.eup %16467  ;;  %2086 = vadd.xlane.f32.xlu0 %v2085_v17 }
 0x849   : > { %v2088_v35 = vsel %vm783_vm1, %v17883_v20, 0.0 }
 0x84a   : > { %v17887_v40 = vpop.eup %16469  ;;  %2089 = vadd.xlane.f32.xlu1 %v2088_v35 }
 0x84b   : > { %v2091_v48 = vsel %vm783_vm1, %v17887_v40, 0.0 }
 0x84c   : > { %v17891_v53 = vpop.eup %16471  ;;  %2092 = vadd.xlane.f32.xlu0 %v2091_v48 }
 0x84d   : > { %v2094_v23 = vsel %vm783_vm1, %v17891_v53, 0.0 }
 0x84e   : > { %2095 = vadd.xlane.f32.xlu1 %v2094_v23 }
 0x860   : > { %v2051_v54 = vpop.xlane.xlu0 %2050 }
 0x861   : > { %v2065_v63 = vsub.f32 %v17819_v13, %v2051_v54 }
 0x862   : > { %v2054_v59 = vpop.xlane.xlu1 %2053 }
 0x863   : > { %v2077_v61 = vmul.f32 1.442695, %v2065_v63  ;;  %v2066_v2 = vsub.f32 %v17825_v28, %v2054_v59 }
 0x864   : > { %v2057_v62 = vpop.xlane.xlu0 %2056 }
 0x865   : > { %16473 = vpow2.f32 %v2077_v61  ;;  %v2079_v60 = vmul.f32 1.442695, %v2066_v2  ;;  %v2067_v43 = vsub.f32 %v17817_v38, %v2057_v62 }
 0x866   : > { %v2060_v5 = vpop.xlane.xlu1 %2059 }
 0x867   : > { %16475 = vpow2.f32 %v2079_v60  ;;  %v2081_v6 = vmul.f32 1.442695, %v2067_v43  ;;  %v2068_v7 = vsub.f32 %v17821_v41, %v2060_v5 }
 0x868   : > { %v2454_v47 = vpop.xlane.xlu0 %2453 }
 0x869   : > { %16477 = vpow2.f32 %v2081_v6  ;;  %v2083_v58 = vmul.f32 1.442695, %v2068_v7  ;;  %v2476_v51 = vsub.f32 %v17835_v37, %v2454_v47 }
 0x86a   : > { %v2457_v13 = vpop.xlane.xlu1 %2456 }
 0x86b   : > { %16479 = vpow2.f32 %v2083_v58  ;;  %v2484_v57 = vmul.f32 1.442695, %v2476_v51  ;;  %v2477_v28 = vsub.f32 %v17841_v46, %v2457_v13  ;;  %v2955_v58 = vld [vmem:[#allocation8 + $0x14] sm:$0xf] }
 0x86c   : > { %v2460_v9 = vpop.xlane.xlu0 %2459  ;;  %v2956_v51 = vld [vmem:[#allocation8 + $0x34] sm:$0xf] }
 0x86d   : > { %16481 = vpow2.f32 %v2484_v57  ;;  %v2486_v19 = vmul.f32 1.442695, %v2477_v28  ;;  %v2478_v38 = vsub.f32 %v17831_v34, %v2460_v9  ;;  %v2957_v13 = vld [vmem:[#allocation8 + $0x54] sm:$0xf]  ;;  %v12872_v57 = vcombine.low %v2955_v58, %v2956_v51 }
 0x86e   : > { %v2463_v26 = vpop.xlane.xlu1 %2462  ;;  %v2958_v28 = vld [vmem:[#allocation8 + $0x74] sm:$0xf] }
 0x86f   : > { %v17902_v10 = vpop.eup %16473  ;;  %16483 = vpow2.f32 %v2486_v19  ;;  %v2488_v41 = vmul.f32 1.442695, %v2478_v38  ;;  %v2479_v52 = vsub.f32 %v17837_v42, %v2463_v26  ;;  %v12873_v9 = vcombine.low %v2957_v13, %v2958_v28  ;;  %v2959_v19 = vld [vmem:[#allocation8 + $0x94] sm:$0xf]  ;;  %15167 = vmatprep.subr.bf16.mxu0 %v12872_v57 }
 0x870   : > { %v2097_v37 = vsel %vm783_vm1, %v17902_v10, 0.0  ;;  %v2960_v38 = vld [vmem:[#allocation8 + $0xb4] sm:$0xf]  ;;  %15168 = vmatpush3.bf16.msra.mxu0 %v12872_v57 }
 0x871   : > { %v17907_v11 = vpop.eup %16475  ;;  %16485 = vpow2.f32 %v2488_v41  ;;  %v2490_v22 = vmul.f32 1.442695, %v2479_v52  ;;  %2098 = vadd.xlane.f32.xlu0 %v2097_v37  ;;  %15169 = vmatprep.subr.bf16.mxu0 %v12873_v9  ;;  %v12874_v26 = vcombine.low %v2959_v19, %v2960_v38  ;;  %v2961_v41 = vld [vmem:[#allocation8 + $0xd4] sm:$0xf] }
 0x872   : > { %v2100_v46 = vsel %vm783_vm1, %v17907_v11, 0.0  ;;  %v2962_v52 = vld [vmem:[#allocation8 + $0xf4] sm:$0xf] }
 0x873   : > { %v17911_v18 = vpop.eup %16477  ;;  %16487 = vpow2.f32 %v2490_v22  ;;  %2101 = vadd.xlane.f32.xlu1 %v2100_v46  ;;  %v12875_v37 = vcombine.low %v2961_v41, %v2962_v52  ;;  %v2963_v22 = vld [vmem:[#allocation8 + $0x114] sm:$0xf] }
 0x874   : > { %v2103_v34 = vsel %vm783_vm1, %v17911_v18, 0.0  ;;  %15170 = vmatpush3.bf16.msra.mxu0 %v12873_v9  ;;  %v2964_v46 = vld [vmem:[#allocation8 + $0x134] sm:$0xf] }
 0x875   : > { %v17915_v29 = vpop.eup %16479  ;;  %2104 = vadd.xlane.f32.xlu0 %v2103_v34  ;;  %15171 = vmatprep.subr.bf16.mxu0 %v12874_v26  ;;  %v12876_v34 = vcombine.low %v2963_v22, %v2964_v46  ;;  %v2965_v28 = vld [vmem:[#allocation8 + $0x154] sm:$0xf] }
 0x876   : > { %v2106_v42 = vsel %vm783_vm1, %v17915_v29, 0.0  ;;  %v2966_v9 = vld [vmem:[#allocation8 + $0x174] sm:$0xf] }
 0x877   : > { %v17919_v33 = vpop.eup %16481  ;;  %2107 = vadd.xlane.f32.xlu1 %v2106_v42  ;;  %v12877_v38 = vcombine.low %v2965_v28, %v2966_v9  ;;  %v2967_v46 = vld [vmem:[#allocation8 + $0x194] sm:$0xf] }
 0x878   : > { %v2500_v36 = vsel %vm783_vm1, %v17919_v33, 0.0  ;;  %15172 = vmatpush3.bf16.msra.mxu0 %v12874_v26 }
 0x879   : > { %v17923_v1 = vpop.eup %16483  ;;  %2501 = vadd.xlane.f32.xlu0 %v2500_v36  ;;  %15173 = vmatprep.subr.bf16.mxu0 %v12875_v37 }
 0x87a   : > { %v2503_v25 = vsel %vm783_vm1, %v17923_v1, 0.0 }
 0x87b   : > { %v17927_v17 = vpop.eup %16485  ;;  %2504 = vadd.xlane.f32.xlu1 %v2503_v25  ;;  %v15129_v54 = vpop.f32.mrb[56].mxu0 }
 0x87c   : > { %v2506_v35 = vsel %vm783_vm1, %v17927_v17, 0.0  ;;  %v2638_v63 = vpop.f32.mrb[57].mxu0  ;;  %15174 = vmatpush3.bf16.msra.mxu0 %v12875_v37 }
 0x87d   : > { %v17931_v48 = vpop.eup %16487  ;;  %2507 = vadd.xlane.f32.xlu0 %v2506_v35  ;;  %v15130_v59 = vpop.f32.mrb[58].mxu0  ;;  %15175 = vmatprep.subr.bf16.mxu0 %v12876_v34 }
 0x87e   : > { %v2509_v23 = vsel %vm783_vm1, %v17931_v48, 0.0  ;;  %v17935_v61 = vpack.c.bf16 %v15130_v59, %v15129_v54  ;;  %v2641_v2 = vpop.f32.mrb[59].mxu0 }
 0x87f   : > { %2510 = vadd.xlane.f32.xlu1 %v2509_v23  ;;  %v17937_v62 = vpack.c.bf16 %v2641_v2, %v2638_v63 }
 0x880   : > { %15176 = vmatpush3.bf16.msra.mxu0 %v12876_v34  ;;  %v2968_v34 = vld [vmem:[#allocation8 + $0x1b4] sm:$0xf] }
 0x881   : > { %15177 = vmatprep.subr.bf16.mxu0 %v12877_v38 }
 0x883   : > { %v15133_v60 = vpop.f32.mrb[60].mxu0 }
 0x884   : > { %v2654_v43 = vpop.f32.mrb[61].mxu0  ;;  %15178 = vmatpush3.bf16.msra.mxu0 %v12877_v38 }
 0x885   : > { %v15134_v5 = vpop.f32.mrb[62].mxu0 }
 0x886   : > { %v2657_v6 = vpop.f32.mrb[63].mxu0  ;;  %v17941_v47 = vpack.c.bf16 %v15134_v5, %v15133_v60 }
 0x887   : > { %v17939_v7 = vpack.c.bf16 %v2657_v6, %v2654_v43 }
 0x8b2   : > { %v2466_v42 = vpop.xlane.xlu0 %2465 }
 0x8b3   : > { %v2480_v36 = vsub.f32 %v17861_v49, %v2466_v42 }
 0x8b4   : > { %v2469_v25 = vpop.xlane.xlu1 %2468 }
 0x8b5   : > { %v2492_v35 = vmul.f32 1.442695, %v2480_v36  ;;  %v2481_v23 = vsub.f32 %v17867_v14, %v2469_v25  ;;  %v12878_v36 = vcombine.low %v2967_v46, %v2968_v34 }
 0x8b6   : > { %v2472_v54 = vpop.xlane.xlu0 %2471 }
 0x8b7   : > { %16489 = vpow2.f32 %v2492_v35  ;;  %v2494_v63 = vmul.f32 1.442695, %v2481_v23  ;;  %v2482_v59 = vsub.f32 %v17859_v39, %v2472_v54  ;;  %15179 = vmatprep.subr.bf16.mxu0 %v12878_v36  ;;  %v2969_v23 = vld [vmem:[#allocation8 + $0x1d4] sm:$0xf] }
 0x8b8   : > { %v2475_v2 = vpop.xlane.xlu1 %2474  ;;  %v2970_v54 = vld [vmem:[#allocation8 + $0x1f4] sm:$0xf]  ;;  %15180 = vmatpush3.bf16.msra.mxu0 %v12878_v36 }
 0x8b9   : > { %16491 = vpow2.f32 %v2494_v63  ;;  %v2496_v60 = vmul.f32 1.442695, %v2482_v59  ;;  %v2483_v43 = vsub.f32 %v17863_v8, %v2475_v2  ;;  %v12879_v2 = vcombine.low %v2969_v23, %v2970_v54 }
 0x8bb   : > { %16493 = vpow2.f32 %v2496_v60  ;;  %v2498_v5 = vmul.f32 1.442695, %v2483_v43  ;;  %15181 = vmatprep.subr.bf16.mxu0 %v12879_v2 }
 0x8bc   : > { %15182 = vmatpush3.bf16.msra.mxu0 %v12879_v2 }
 0x8bd   : > { %16495 = vpow2.f32 %v2498_v5 }
 0x8bf   : > { %15184 = vmatmul.mubr.bf16.vlgmr.msra.gmra.mrb[64].mxu0 %v17416_v24 }
 0x8c0   : > { %15187 = vmatprep.mubr.bf16.mxu0 %v17422_v27 }
 0x8c1   : > { %v17947_v6 = vpop.eup %16489 }
 0x8c2   : > { %v2512_v49 = vsel %vm783_vm1, %v17947_v6, 0.0 }
 0x8c3   : > { %v17951_v58 = vpop.eup %16491  ;;  %2513 = vadd.xlane.f32.xlu0 %v2512_v49 }
 0x8c4   : > { %v2515_v14 = vsel %vm783_vm1, %v17951_v58, 0.0 }
 0x8c5   : > { %v17955_v39 = vpop.eup %16493  ;;  %2516 = vadd.xlane.f32.xlu1 %v2515_v14 }
 0x8c6   : > { %v2518_v8 = vsel %vm783_vm1, %v17955_v39, 0.0 }
 0x8c7   : > { %v17959_v51 = vpop.eup %16495  ;;  %2519 = vadd.xlane.f32.xlu0 %v2518_v8  ;;  %15188 = vmatmul.mubr.bf16.gmra.mrb[68].mxu0 %v17428_v30 }
 0x8c8   : > { %v2521_v13 = vsel %vm783_vm1, %v17959_v51, 0.0 }
 0x8c9   : > { %2522 = vadd.xlane.f32.xlu1 %v2521_v13 }
 0x8d2   : > { %v15073_v57 = vpop.f32.mrb[32].mxu1 }
 0x8d3   : > { %v2223_v19 = vpop.f32.mrb[33].mxu1 }
 0x8d4   : > { %v15074_v26 = vpop.f32.mrb[34].mxu1 }
 0x8d5   : > { %v2087_v41 = vpop.xlane.xlu0 %2086  ;;  %v2259_v52 = vpack.c.bf16 %v15074_v26, %v15073_v57  ;;  %v2226_v37 = vpop.f32.mrb[35].mxu1 }
 0x8d6   : > { %16497 = vrcp.f32 %v2087_v41  ;;  %v2258_v22 = vpack.c.bf16 %v2226_v37, %v2223_v19 }
 0x8d7   : > { %v2090_v42 = vpop.xlane.xlu1 %2089 }
 0x8d8   : > { %16499 = vrcp.f32 %v2090_v42  ;;  %15079 = vmatprep.subr.bf16.mxu1 %v2258_v22 }
 0x8d9   : > { %v2093_v25 = vpop.xlane.xlu0 %2092  ;;  %15080 = vmatpush3.bf16.msra.mxu1 %v2258_v22 }
 0x8da   : > { %16501 = vrcp.f32 %v2093_v25  ;;  %2772 = vrot.lane.b32.xlu1 %v17451_v56, %s17034_s10  ;;  %v15077_v35 = vpop.f32.mrb[36].mxu1  ;;  %15081 = vmatprep.subr.bf16.mxu1 %v2259_v52 }
 0x8db   : > { %v2096_v63 = vpop.xlane.xlu1 %2095  ;;  %v2239_v59 = vpop.f32.mrb[37].mxu1 }
 0x8dc   : > { %16503 = vrcp.f32 %v2096_v63  ;;  %v15078_v60 = vpop.f32.mrb[38].mxu1 }
 0x8dd   : > { %2770 = vrot.lane.b32.xlu0 %v17441_v45, %s17034_s10  ;;  %v2261_v43 = vpack.c.bf16 %v15078_v60, %v15077_v35  ;;  %v2242_v5 = vpop.f32.mrb[39].mxu1  ;;  %15082 = vmatpush3.bf16.msra.mxu1 %v2259_v52 }
 0x8de   : > { %2774 = vrot.lane.b32.xlu1 %v17459_v4, %s17034_s10  ;;  %v2260_v49 = vpack.c.bf16 %v2242_v5, %v2239_v59 }
 0x8e0   : > { %v16498_v14 = vpop.eup %16497  ;;  %15083 = vmatprep.subr.bf16.mxu1 %v2260_v49 }
 0x8e1   : > { %2762 = vrot.lane.b32.xlu0 %v17439_v44, %s17034_s10  ;;  %15084 = vmatpush3.bf16.msra.mxu1 %v2260_v49  ;;  %v2117_v13 = vmul.f32 %v16498_v14, %v17879_v50 }
 0x8e2   : > { %v16500_v8 = vpop.eup %16499  ;;  %2776 = vrot.lane.b32.xlu1 %v17467_v16, %s17034_s10  ;;  %15085 = vmatprep.subr.bf16.mxu1 %v2261_v43 }
 0x8e3   : > { %v2118_v57 = vmul.f32 %v16500_v8, %v17883_v20 }
 0x8e4   : > { %v16502_v28 = vpop.eup %16501 }
 0x8e5   : > { %2766 = vrot.lane.b32.xlu0 %v17457_v3, %s17034_s10  ;;  %v2254_v9 = vpack.c.bf16 %v2118_v57, %v2117_v13  ;;  %15086 = vmatpush3.bf16.msra.mxu1 %v2261_v43  ;;  %v2119_v50 = vmul.f32 %v16502_v28, %v17887_v40 }
 0x8e6   : > { %v16504_v19 = vpop.eup %16503  ;;  %2764 = vrot.lane.b32.xlu1 %v17449_v55, %s17034_s10  ;;  %15135 = vmatprep.subr.bf16.mxu1 %v17937_v62 }
 0x8e7   : > { %v2120_v20 = vmul.f32 %v16504_v19, %v17891_v53  ;;  %15087 = vmatprep.mubr.msk.bf16.mxu1 %vm783_vm1, %v2254_v9 }
 0x8e9   : > { %v2255_v38 = vpack.c.bf16 %v2120_v20, %v2119_v50  ;;  %3185 = vrot.lane.b32.xlu0 %v17441_v45, %s17035_s28 }
 0x8ea   : > { %2768 = vrot.lane.b32.xlu1 %v17465_v15, %s17034_s10  ;;  %s18972_s10 = sld [smem:[#allocation26_spill]] }
 0x8eb   : > { %15088 = vmatmul.mubr.msk.bf16.vlgmr.msra.gmra.mrb[8].mxu1 %vm783_vm1, %v2255_v38 }
 0x8ec   : > { %15136 = vmatpush3.bf16.msra.mxu1 %v17937_v62 }
 0x8ed   : > { %3189 = vrot.lane.b32.xlu0 %v17459_v4, %s17035_s28  ;;  %15137 = vmatprep.subr.bf16.mxu1 %v17935_v61 }
 0x8ee   : > { %3187 = vrot.lane.b32.xlu1 %v17451_v56, %s17035_s28 }
 0x8f0   : > { %15138 = vmatpush3.bf16.msra.mxu1 %v17935_v61 }
 0x8f1   : > { %3177 = vrot.lane.b32.xlu0 %v17439_v44, %s17035_s28  ;;  %15139 = vmatprep.subr.bf16.mxu1 %v17939_v7 }
 0x8f2   : > { %3191 = vrot.lane.b32.xlu1 %v17467_v16, %s17035_s28 }
 0x8f4   : > { %15140 = vmatpush3.bf16.msra.mxu1 %v17939_v7 }
 0x8f5   : > { %15141 = vmatprep.subr.bf16.mxu1 %v17941_v47 }
 0x8f6   : > { %3179 = vrot.lane.b32.xlu1 %v17449_v55, %s17035_s28 }
 0x8f8   : > { %15142 = vmatpush3.bf16.msra.mxu1 %v17941_v47 }
 0x8fe   : > { %v2099_v40 = vpop.xlane.xlu0 %2098 }
 0x8ff   : > { %16505 = vrcp.f32 %v2099_v40 }
 0x900   : > { %v2102_v53 = vpop.xlane.xlu1 %2101 }
 0x901   : > { %16507 = vrcp.f32 %v2102_v53 }
 0x902   : > { %v2105_v61 = vpop.xlane.xlu0 %2104 }
 0x903   : > { %16509 = vrcp.f32 %v2105_v61 }
 0x904   : > { %v2108_v62 = vpop.xlane.xlu1 %2107 }
 0x905   : > { %16511 = vrcp.f32 %v2108_v62 }
 0x906   : > { %v2502_v26 = vpop.xlane.xlu0 %2501 }
 0x907   : > { %16513 = vrcp.f32 %v2502_v26 }
 0x908   : > { %v2505_v41 = vpop.xlane.xlu1 %2504 }
 0x909   : > { %v16506_v52 = vpop.eup %16505  ;;  %16515 = vrcp.f32 %v2505_v41 }
 0x90a   : > { %v2508_v7 = vpop.xlane.xlu0 %2507  ;;  %v2121_v46 = vmul.f32 %v16506_v52, %v17902_v10 }
 0x90b   : > { %v16508_v37 = vpop.eup %16507  ;;  %16517 = vrcp.f32 %v2508_v7 }
 0x90c   : > { %v2511_v22 = vpop.xlane.xlu1 %2510  ;;  %v2122_v47 = vmul.f32 %v16508_v37, %v17907_v11 }
 0x90d   : > { %v16510_v34 = vpop.eup %16509  ;;  %16519 = vrcp.f32 %v2511_v22 }
 0x90e   : > { %v2256_v42 = vpack.c.bf16 %v2122_v47, %v2121_v46  ;;  %v2123_v25 = vmul.f32 %v16510_v34, %v17911_v18 }
 0x90f   : > { %v16512_v36 = vpop.eup %16511 }
 0x910   : > { %15091 = vmatprep.mubr.msk.bf16.mxu1 %vm783_vm1, %v2256_v42  ;;  %v2124_v35 = vmul.f32 %v16512_v36, %v17915_v29 }
 0x911   : > { %v16514_v23 = vpop.eup %16513 }
 0x912   : > { %v2257_v54 = vpack.c.bf16 %v2124_v35, %v2123_v25  ;;  %v2532_v59 = vmul.f32 %v16514_v23, %v17919_v33 }
 0x913   : > { %v16516_v63 = vpop.eup %16515 }
 0x914   : > { %15092 = vmatmul.mubr.msk.bf16.gmra.mrb[12].mxu1 %vm783_vm1, %v2257_v54  ;;  %v2533_v10 = vmul.f32 %v16516_v63, %v17923_v1 }
 0x915   : > { %v16518_v11 = vpop.eup %16517 }
 0x916   : > { %v2669_v2 = vpack.c.bf16 %v2533_v10, %v2532_v59  ;;  %v2534_v43 = vmul.f32 %v16518_v11, %v17927_v17 }
 0x917   : > { %v16520_v60 = vpop.eup %16519 }
 0x918   : > { %v2535_v5 = vmul.f32 %v16520_v60, %v17931_v48  ;;  %15143 = vmatprep.mubr.msk.bf16.mxu1 %vm783_vm1, %v2669_v2 }
 0x91a   : > { %v2670_v18 = vpack.c.bf16 %v2535_v5, %v2534_v43 }
 0x91c   : > { %15144 = vmatmul.mubr.msk.bf16.vlgmr.msra.gmra.mrb[8].mxu1 %vm783_vm1, %v2670_v18 }
 0x950   : > { %v2514_v29 = vpop.xlane.xlu0 %2513 }
 0x951   : > { %16521 = vrcp.f32 %v2514_v29 }
 0x952   : > { %v2517_v49 = vpop.xlane.xlu1 %2516 }
 0x953   : > { %16523 = vrcp.f32 %v2517_v49 }
 0x954   : > { %v2520_v14 = vpop.xlane.xlu0 %2519 }
 0x955   : > { %16525 = vrcp.f32 %v2520_v14 }
 0x956   : > { %v2523_v33 = vpop.xlane.xlu1 %2522 }
 0x957   : > { %16527 = vrcp.f32 %v2523_v33 }
 0x958   : > { %v2771_v1 = vpop.permute.xlu0 %2770 }
 0x959   : > { %15471 = vmatprep.subr.msk.bf16.mxu1 %vm693_vm0, %v2771_v1  ;;  %v2791_v17 = vsel %vm693_vm0, %v2771_v1, 0 }
 0x95a   : > { %15152 = vmatpush3.bf16.xpose.msra.mxu1 %v2791_v17  ;;  %v2773_v48 = vpop.permute.xlu1 %2772 }
 0x95b   : > { %v16522_v8 = vpop.eup %16521  ;;  %15472 = vmatprep.subr.msk.bf16.mxu1 %vm693_vm0, %v2773_v48  ;;  %v2794_v53 = vsel %vm693_vm0, %v2773_v48, 0 }
 0x95c   : > { %v2763_v13 = vpop.permute.xlu0 %2762  ;;  %v2536_v9 = vmul.f32 %v16522_v8, %v17947_v6 }
 0x95d   : > { %v16524_v57 = vpop.eup %16523 }
 0x95e   : > { %v2775_v28 = vpop.permute.xlu1 %2774  ;;  %v2537_v19 = vmul.f32 %v16524_v57, %v17951_v58 }
 0x95f   : > { %v16526_v50 = vpop.eup %16525  ;;  %v2797_v37 = vsel %vm693_vm0, %v2775_v28, 0 }
 0x960   : > { %v2767_v20 = vpop.permute.xlu0 %2766  ;;  %v2671_v38 = vpack.c.bf16 %v2537_v19, %v2536_v9  ;;  %v2538_v62 = vmul.f32 %v16526_v50, %v17955_v39 }
 0x961   : > { %v16528_v40 = vpop.eup %16527 }
 0x962   : > { %15147 = vmatprep.mubr.msk.bf16.mxu1 %vm783_vm1, %v2671_v38  ;;  %15154 = vmatpush3.bf16.xpose.msra.mxu1 %v2794_v53  ;;  %v2777_v61 = vpop.permute.xlu1 %2776  ;;  %v2539_v26 = vmul.f32 %v16528_v40, %v17959_v51 }
 0x963   : > { %15473 = vmatprep.subr.msk.bf16.mxu1 %vm693_vm0, %v2775_v28  ;;  %v2800_v47 = vsel %vm693_vm0, %v2777_v61, 0 }
 0x964   : > { %v3186_v41 = vpop.permute.xlu0 %3185  ;;  %v2672_v6 = vpack.c.bf16 %v2539_v26, %v2538_v62 }
 0x965   : > { %15475 = vmatprep.subr.msk.bf16.mxu0 %vm693_vm0, %v3186_v41  ;;  %v3206_v58 = vsel %vm693_vm0, %v3186_v41, 0 }
 0x966   : > { %15148 = vmatmul.mubr.msk.bf16.gmra.mrb[12].mxu1 %vm783_vm1, %v2672_v6  ;;  %15208 = vmatpush3.bf16.xpose.msra.mxu0 %v3206_v58  ;;  %v2765_v52 = vpop.permute.xlu1 %2764 }
 0x967   : > { %15159 = vmatprep.mubr.msk.bf16.mxu1 %vm693_vm0, %v2763_v13 }
 0x968   : > { %v3190_v7 = vpop.permute.xlu0 %3189 }
 0x969   : > { %v3212_v34 = vsel %vm693_vm0, %v3190_v7, 0 }
 0x96a   : > { %15156 = vmatpush3.bf16.xpose.msra.mxu1 %v2797_v37  ;;  %v2769_v39 = vpop.permute.xlu1 %2768 }
 0x96b   : > { %15474 = vmatprep.subr.msk.bf16.mxu1 %vm693_vm0, %v2777_v61 }
 0x96c   : > { %v3178_v51 = vpop.permute.xlu0 %3177 }
 0x96d   : > { %15215 = vmatprep.mubr.msk.bf16.mxu0 %vm693_vm0, %v3178_v51 }
 0x96e   : > { %v3188_v22 = vpop.permute.xlu1 %3187 }
 0x96f   : > { %15476 = vmatprep.subr.msk.bf16.mxu0 %vm693_vm0, %v3188_v22  ;;  %v3209_v46 = vsel %vm693_vm0, %v3188_v22, 0 }
 0x970   : > { %15210 = vmatpush3.bf16.xpose.msra.mxu0 %v3209_v46 }
 0x971   : > { %15477 = vmatprep.subr.msk.bf16.mxu0 %vm693_vm0, %v3190_v7 }
 0x972   : > { %15158 = vmatpush3.bf16.xpose.msra.mxu1 %v2800_v47  ;;  %v3192_v42 = vpop.permute.xlu1 %3191 }
 0x973   : > { %v3215_v36 = vsel %vm693_vm0, %v3192_v42, 0 }
 0x976   : > { %v3180_v25 = vpop.permute.xlu1 %3179 }
 0x978   : > { %15212 = vmatpush3.bf16.xpose.msra.mxu0 %v3212_v34 }
 0x979   : > { %15160 = vmatmul.mubr.msk.bf16.vlgmr.msra.gmra.mrb[40].mxu1 %vm693_vm0, %v2765_v52  ;;  %15478 = vmatprep.subr.msk.bf16.mxu0 %vm693_vm0, %v3192_v42 }
 0x97a   : > { %15163 = vmatprep.mubr.msk.bf16.mxu1 %vm693_vm0, %v2767_v20 }
 0x980   : > { %15214 = vmatpush3.bf16.xpose.msra.mxu0 %v3215_v36 }
 0x981   : > { %15164 = vmatmul.mubr.msk.bf16.gmra.mrb[44].mxu1 %vm693_vm0, %v2769_v39 }
 0x987   : > { %15216 = vmatmul.mubr.msk.bf16.vlgmr.msra.gmra.mrb[72].mxu0 %vm693_vm0, %v3180_v25 }
 0x992   : > { %v15185_v35 = vpop.f32.mrb[64].mxu0 }
 0x993   : > { %v3053_v23 = vpop.f32.mrb[65].mxu0 }
 0x994   : > { %v15186_v54 = vpop.f32.mrb[66].mxu0 }
 0x995   : > { %v3089_v63 = vpack.c.bf16 %v15186_v54, %v15185_v35  ;;  %v3056_v59 = vpop.f32.mrb[67].mxu0 }
 0x996   : > { %v3088_v10 = vpack.c.bf16 %v3056_v59, %v3053_v23 }
 0x998   : > { %15191 = vmatprep.subr.bf16.mxu1 %v3088_v10 }
 0x999   : > { %15192 = vmatpush3.bf16.msra.mxu1 %v3088_v10 }
 0x99a   : > { %v15189_v11 = vpop.f32.mrb[68].mxu0  ;;  %15193 = vmatprep.subr.bf16.mxu1 %v3089_v63 }
 0x99b   : > { %v3069_v2 = vpop.f32.mrb[69].mxu0 }
 0x99c   : > { %v15190_v60 = vpop.f32.mrb[70].mxu0 }
 0x99d   : > { %v3091_v43 = vpack.c.bf16 %v15190_v60, %v15189_v11  ;;  %v3072_v5 = vpop.f32.mrb[71].mxu0  ;;  %15194 = vmatpush3.bf16.msra.mxu1 %v3089_v63 }
 0x99e   : > { %v3090_v18 = vpack.c.bf16 %v3072_v5, %v3069_v2 }
 0x9a0   : > { %15195 = vmatprep.subr.bf16.mxu1 %v3090_v18 }
 0x9a1   : > { %15196 = vmatpush3.bf16.msra.mxu1 %v3090_v18 }
 0x9a2   : > { %15197 = vmatprep.subr.bf16.mxu1 %v3091_v43 }
 0x9a5   : > { %15198 = vmatpush3.bf16.msra.mxu1 %v3091_v43 }
 0xa4c   : > { %v15161_v29 = vpop.f32.mrb[40].mxu1 }
 0xa4d   : > { %v2836_v49 = vpop.f32.mrb[41].mxu1  ;;  %v2873_v14 = vsel %vm783_vm1, %v15161_v29, -inf }
 0xa4e   : > { %2874 = vmax.xlane.f32.xlu0 %v2873_v14  ;;  %v15162_v33 = vpop.f32.mrb[42].mxu1  ;;  %v2867_v48 = vsel %vm783_vm1, %v2836_v49, -inf }
 0xa4f   : > { %v2839_v1 = vpop.f32.mrb[43].mxu1  ;;  %v2876_v57 = vsel %vm783_vm1, %v15162_v33, -inf }
 0xa50   : > { %v2870_v17 = vsel %vm783_vm1, %v2839_v1, -inf }
 0xa51   : > { %2871 = vmax.xlane.f32.xlu1 %v2870_v17 }
 0xa52   : > { %2868 = vmax.xlane.f32.xlu0 %v2867_v48 }
 0xa54   : > { %v18051_v8 = vpop.f32.mrb[44].mxu1 }
 0xa55   : > { %v2852_v13 = vpop.f32.mrb[45].mxu1  ;;  %v2885_v62 = vsel %vm783_vm1, %v18051_v8, -inf }
 0xa56   : > { %2877 = vmax.xlane.f32.xlu0 %v2876_v57  ;;  %v15166_v28 = vpop.f32.mrb[46].mxu1  ;;  %v2879_v40 = vsel %vm783_vm1, %v2852_v13, -inf }
 0xa57   : > { %v2855_v9 = vpop.f32.mrb[47].mxu1  ;;  %v2888_v53 = vsel %vm783_vm1, %v15166_v28, -inf }
 0xa58   : > { %v2882_v61 = vsel %vm783_vm1, %v2855_v9, -inf }
 0xa5a   : > { %v18054_v19 = vpop.f32.mrb[72].mxu0 }
 0xa5b   : > { %v18056_v50 = vpop.f32.mrb[73].mxu0 }
 0xa5c   : > { %v18058_v20 = vpop.f32.mrb[74].mxu0 }
 0xa5d   : > { %v18060_v38 = vpop.f32.mrb[75].mxu0 }
 0xa62   : > { %3183 = vrot.lane.b32.xlu1 %v17465_v15, %s17035_s28 }
 0xa6c   : > { %3181 = vrot.lane.b32.xlu0 %v17457_v3, %s17035_s28  ;;  %s12595_s28 = scalar_lea.sflag [#allocation5], %s17377_s2 }
 0xa86   : > { %2880 = vmax.xlane.f32.xlu1 %v2879_v40 }
 0xa8a   : > { %2889 = vmax.xlane.f32.xlu1 %v2888_v53 }
 0xa8b   : > { %2883 = vmax.xlane.f32.xlu0 %v2882_v61  ;;  %v3370_v61 = vld [vmem:[#allocation8 + $0x18] sm:$0xf] }
 0xa8f   : > { %2886 = vmax.xlane.f32.xlu0 %v2885_v62  ;;  %v3371_v62 = vld [vmem:[#allocation8 + $0x38] sm:$0xf] }
 0xadb   : > { %v2875_v26 = vpop.xlane.xlu0 %2874 }
 0xadc   : > { %v2893_v41 = vsub.f32 %v15161_v29, %v2875_v26  ;;  %v12888_v26 = vcombine.low %v3370_v61, %v3371_v62 }
 0xade   : > { %v2872_v6 = vpop.xlane.xlu1 %2871  ;;  %v2903_v39 = vmul.f32 1.442695, %v2893_v41  ;;  %15223 = vmatprep.subr.bf16.mxu1 %v12888_v26  ;;  %v3282_v41 = vsel %vm783_vm1, %v18056_v50, -inf }
 0xadf   : > { %v2892_v58 = vsub.f32 %v2839_v1, %v2872_v6  ;;  %v2869_v52 = vpop.xlane.xlu0 %2868  ;;  %v3288_v6 = vsel %vm783_vm1, %v18054_v19, -inf }
 0xae0   : > { %v2891_v7 = vsub.f32 %v2836_v49, %v2869_v52 }
 0xae1   : > { %v2901_v37 = vmul.f32 1.442695, %v2892_v58 }
 0xae2   : > { %v2899_v51 = vmul.f32 1.442695, %v2891_v7  ;;  %v3184_v42 = vpop.permute.xlu1 %3183 }
 0xae3   : > { %16529 = vpow2.f32 %v2901_v37  ;;  %v2878_v22 = vpop.xlane.xlu0 %2877 }
 0xae4   : > { %16531 = vpow2.f32 %v2899_v51  ;;  %v2894_v46 = vsub.f32 %v15162_v33, %v2878_v22 }
 0xae5   : > { %16533 = vpow2.f32 %v2903_v39 }
 0xae6   : > { %v2905_v47 = vmul.f32 1.442695, %v2894_v46 }
 0xae7   : > { %v3182_v34 = vpop.permute.xlu0 %3181 }
 0xae8   : > { %16535 = vpow2.f32 %v2905_v47  ;;  %15219 = vmatprep.mubr.msk.bf16.mxu0 %vm693_vm0, %v3182_v34  ;;  %v3373_v47 = vld [vmem:[#allocation8 + $0x78] sm:$0xf] }
 0xae9   : > { %15220 = vmatmul.mubr.msk.bf16.gmra.mrb[76].mxu0 %vm693_vm0, %v3184_v42 }
 0xaed   : > { %v18073_v36 = vpop.eup %16529 }
 0xaee   : > { %v18075_v25 = vpop.eup %16531  ;;  %v2918_v35 = vsel %vm783_vm1, %v18073_v36, 0.0 }
 0xaef   : > { %2919 = vadd.xlane.f32.xlu1 %v2918_v35  ;;  %v2915_v23 = vsel %vm783_vm1, %v18075_v25, 0.0  ;;  %v18081_v54 = vpop.eup %16533 }
 0xaf0   : > { %2916 = vadd.xlane.f32.xlu0 %v2915_v23  ;;  %v2921_v59 = vsel %vm783_vm1, %v18081_v54, 0.0  ;;  %v3375_v23 = vld [vmem:[#allocation8 + $0xb8] sm:$0xf] }
 0xaf2   : > { %v18083_v63 = vpop.eup %16535 }
 0xaf3   : > { %v2924_v10 = vsel %vm783_vm1, %v18083_v63, 0.0 }
 0xaf4   : > { %2922 = vadd.xlane.f32.xlu0 %v2921_v59  ;;  %2925 = vadd.xlane.f32.xlu1 %v2924_v10  ;;  %v3377_v59 = vld [vmem:[#allocation8 + $0xf8] sm:$0xf] }
 0xaf5   : > { %v3378_v10 = vld [vmem:[#allocation8 + $0x118] sm:$0xf] }
 0xb13   : > { %v2881_v11 = vpop.xlane.xlu1 %2880 }
 0xb14   : > { %v2895_v2 = vsub.f32 %v2852_v13, %v2881_v11  ;;  %v3379_v11 = vld [vmem:[#allocation8 + $0x138] sm:$0xf] }
 0xb16   : > { %v2907_v60 = vmul.f32 1.442695, %v2895_v2  ;;  %v12892_v2 = vcombine.low %v3378_v10, %v3379_v11 }
 0xb17   : > { %v2890_v43 = vpop.xlane.xlu1 %2889 }
 0xb18   : > { %16537 = vpow2.f32 %v2907_v60  ;;  %v2898_v5 = vsub.f32 %v15166_v28, %v2890_v43  ;;  %v2884_v18 = vpop.xlane.xlu0 %2883  ;;  %v3381_v60 = vld [vmem:[#allocation8 + $0x178] sm:$0xf] }
 0xb19   : > { %v2896_v29 = vsub.f32 %v2855_v9, %v2884_v18  ;;  %v3383_v18 = vld [vmem:[#allocation8 + $0x1b8] sm:$0xf] }
 0xb1a   : > { %v2913_v49 = vmul.f32 1.442695, %v2898_v5  ;;  %v3382_v5 = vld [vmem:[#allocation8 + $0x198] sm:$0xf] }
 0xb1b   : > { %v2909_v14 = vmul.f32 1.442695, %v2896_v29  ;;  %v12894_v29 = vcombine.low %v3382_v5, %v3383_v18 }
 0xb1c   : > { %v2887_v33 = vpop.xlane.xlu0 %2886 }
 0xb1d   : > { %16539 = vpow2.f32 %v2909_v14  ;;  %v2897_v1 = vsub.f32 %v18051_v8, %v2887_v33  ;;  %v3385_v14 = vld [vmem:[#allocation8 + $0x1f8] sm:$0xf] }
 0xb1e   : > { %16541 = vpow2.f32 %v2913_v49  ;;  %v3384_v49 = vld [vmem:[#allocation8 + $0x1d8] sm:$0xf] }
 0xb1f   : > { %v2911_v17 = vmul.f32 1.442695, %v2897_v1  ;;  %v12895_v33 = vcombine.low %v3384_v49, %v3385_v14 }
 0xb21   : > { %16543 = vpow2.f32 %v2911_v17 }
 0xb22   : > { %v18090_v48 = vpop.eup %16537 }
 0xb23   : > { %v2927_v13 = vsel %vm783_vm1, %v18090_v48, 0.0 }
 0xb24   : > { %2928 = vadd.xlane.f32.xlu0 %v2927_v13 }
 0xb27   : > { %v18094_v57 = vpop.eup %16539 }
 0xb28   : > { %v2930_v28 = vsel %vm783_vm1, %v18094_v57, 0.0  ;;  %v18098_v9 = vpop.eup %16541 }
 0xb29   : > { %2931 = vadd.xlane.f32.xlu1 %v2930_v28  ;;  %v2936_v53 = vsel %vm783_vm1, %v18098_v9, 0.0 }
 0xb2b   : > { %v18100_v40 = vpop.eup %16543 }
 0xb2c   : > { %v2933_v8 = vsel %vm783_vm1, %v18100_v40, 0.0 }
 0xb2d   : > { %2934 = vadd.xlane.f32.xlu0 %v2933_v8  ;;  %2937 = vadd.xlane.f32.xlu1 %v2936_v53 }
 0xb3e   : > { %3602 = vrot.lane.b32.xlu1 %v17451_v56, %s17036_s21  ;;  %v3291_v56 = vsel %vm783_vm1, %v18058_v20, -inf }
 0xb42   : > { %3604 = vrot.lane.b32.xlu1 %v17459_v4, %s17036_s21 }
 0xb43   : > { %3600 = vrot.lane.b32.xlu0 %v17441_v45, %s17036_s21  ;;  %v3285_v45 = vsel %vm783_vm1, %v18060_v38, -inf }
 0xb46   : > { %3606 = vrot.lane.b32.xlu1 %v17467_v16, %s17036_s21 }
 0xb47   : > { %3592 = vrot.lane.b32.xlu0 %v17439_v44, %s17036_s21 }
 0xb4a   : > { %3594 = vrot.lane.b32.xlu1 %v17449_v55, %s17036_s21 }
 0xb66   : > { %3283 = vmax.xlane.f32.xlu0 %v3282_v41 }
 0xb6a   : > { %3289 = vmax.xlane.f32.xlu0 %v3288_v6 }
 0xb6e   : > { %3292 = vmax.xlane.f32.xlu0 %v3291_v56  ;;  %3286 = vmax.xlane.f32.xlu1 %v3285_v45 }
 0xb7c   : > { %v2920_v4 = vpop.xlane.xlu1 %2919 }
 0xb7d   : > { %16545 = vrcp.f32 %v2920_v4  ;;  %v2917_v44 = vpop.xlane.xlu0 %2916 }
 0xb7e   : > { %16547 = vrcp.f32 %v2917_v44 }
 0xb7f   : > { %3598 = vrot.lane.b32.xlu1 %v17465_v15, %s17036_s21  ;;  %v3372_v15 = vld [vmem:[#allocation8 + $0x58] sm:$0xf] }
 0xb80   : > { %v12889_v35 = vcombine.low %v3372_v15, %v3373_v47 }
 0xb81   : > { %v2923_v55 = vpop.xlane.xlu0 %2922  ;;  %v2926_v16 = vpop.xlane.xlu1 %2925 }
 0xb82   : > { %16549 = vrcp.f32 %v2923_v55 }
 0xb83   : > { %16551 = vrcp.f32 %v2926_v16 }
 0xb84   : > { %3596 = vrot.lane.b32.xlu0 %v17457_v3, %s17036_s21  ;;  %v3374_v3 = vld [vmem:[#allocation8 + $0x98] sm:$0xf] }
 0xb87   : > { %v16546_v58 = vpop.eup %16545 }
 0xb88   : > { %v16548_v52 = vpop.eup %16547  ;;  %v2948_v7 = vmul.f32 %v16546_v58, %v18073_v36  ;;  %v12890_v36 = vcombine.low %v3374_v3, %v3375_v23 }
 0xb89   : > { %v2947_v37 = vmul.f32 %v16548_v52, %v18075_v25  ;;  %v3376_v25 = vld [vmem:[#allocation8 + $0xd8] sm:$0xf] }
 0xb8b   : > { %v3084_v39 = vpack.c.bf16 %v2948_v7, %v2947_v37 }
 0xb8c   : > { %v16550_v51 = vpop.eup %16549 }
 0xb8d   : > { %v16552_v22 = vpop.eup %16551  ;;  %v2949_v46 = vmul.f32 %v16550_v51, %v18081_v54  ;;  %15199 = vmatprep.mubr.msk.bf16.mxu1 %vm783_vm1, %v3084_v39  ;;  %v12891_v54 = vcombine.low %v3376_v25, %v3377_v59 }
 0xb8e   : > { %v2950_v34 = vmul.f32 %v16552_v22, %v18083_v63  ;;  %v3380_v63 = vld [vmem:[#allocation8 + $0x158] sm:$0xf] }
 0xb8f   : > { %v12893_v43 = vcombine.low %v3380_v63, %v3381_v60 }
 0xb90   : > { %v3085_v42 = vpack.c.bf16 %v2950_v34, %v2949_v46 }
 0xb92   : > { %15200 = vmatmul.mubr.msk.bf16.vlgmr.msra.gmra.mrb[8].mxu1 %vm783_vm1, %v3085_v42 }
 0xb93   : > { %15224 = vmatpush3.bf16.msra.mxu1 %v12888_v26 }
 0xb94   : > { %15225 = vmatprep.subr.bf16.mxu1 %v12889_v35 }
 0xb97   : > { %15226 = vmatpush3.bf16.msra.mxu1 %v12889_v35 }
 0xb98   : > { %15227 = vmatprep.subr.bf16.mxu1 %v12890_v36 }
 0xb9b   : > { %15228 = vmatpush3.bf16.msra.mxu1 %v12890_v36 }
 0xb9c   : > { %15229 = vmatprep.subr.bf16.mxu1 %v12891_v54 }
 0xb9f   : > { %15230 = vmatpush3.bf16.msra.mxu1 %v12891_v54 }
 0xba0   : > { %15231 = vmatprep.subr.bf16.mxu1 %v12892_v2 }
 0xba3   : > { %15232 = vmatpush3.bf16.msra.mxu1 %v12892_v2 }
 0xba4   : > { %15233 = vmatprep.subr.bf16.mxu1 %v12893_v43 }
 0xba7   : > { %15234 = vmatpush3.bf16.msra.mxu1 %v12893_v43 }
 0xba8   : > { %15235 = vmatprep.subr.bf16.mxu1 %v12894_v29 }
 0xbab   : > { %15236 = vmatpush3.bf16.msra.mxu1 %v12894_v29 }
 0xbac   : > { %15237 = vmatprep.subr.bf16.mxu1 %v12895_v33 }
 0xbaf   : > { %15238 = vmatpush3.bf16.msra.mxu1 %v12895_v33 }
 0xbb1   : > { %v2929_v1 = vpop.xlane.xlu0 %2928 }
 0xbb2   : > { %16553 = vrcp.f32 %v2929_v1 }
 0xbb6   : > { %v2932_v17 = vpop.xlane.xlu1 %2931 }
 0xbb7   : > { %16555 = vrcp.f32 %v2932_v17 }
 0xbba   : > { %v2935_v13 = vpop.xlane.xlu0 %2934  ;;  %v2938_v28 = vpop.xlane.xlu1 %2937 }
 0xbbb   : > { %16557 = vrcp.f32 %v2935_v13 }
 0xbbc   : > { %16559 = vrcp.f32 %v2938_v28  ;;  %v18128_v8 = vpop.f32.mrb[76].mxu0  ;;  %v16554_v41 = vpop.eup %16553 }
 0xbbd   : > { %v18130_v53 = vpop.f32.mrb[77].mxu0  ;;  %v2951_v58 = vmul.f32 %v16554_v41, %v18090_v48  ;;  %v3300_v7 = vsel %vm783_vm1, %v18128_v8, -inf }
 0xbbe   : > { %v18132_v61 = vpop.f32.mrb[78].mxu0  ;;  %v3601_v62 = vpop.permute.xlu0 %3600  ;;  %v3294_v26 = vsel %vm783_vm1, %v18130_v53, -inf }
 0xbbf   : > { %v18136_v6 = vpop.f32.mrb[79].mxu0  ;;  %15479 = vmatprep.subr.msk.bf16.mxu0 %vm693_vm0, %v3601_v62  ;;  %3295 = vmax.xlane.f32.xlu1 %v3294_v26  ;;  %v3621_v56 = vsel %vm693_vm0, %v3601_v62, 0  ;;  %v3603_v45 = vpop.permute.xlu1 %3602  ;;  %v3303_v16 = vsel %vm783_vm1, %v18132_v61, -inf }
 0xbc0   : > { %15264 = vmatpush3.bf16.xpose.msra.mxu0 %v3621_v56  ;;  %v3297_v4 = vsel %vm783_vm1, %v18136_v6, -inf  ;;  %v3624_v46 = vsel %vm693_vm0, %v3603_v45, 0 }
 0xbc1   : > { %v16556_v44 = vpop.eup %16555  ;;  %3298 = vmax.xlane.f32.xlu0 %v3297_v4  ;;  %15480 = vmatprep.subr.msk.bf16.mxu0 %vm693_vm0, %v3603_v45 }
 0xbc2   : > { %v3593_v55 = vpop.permute.xlu0 %3592  ;;  %v2952_v52 = vmul.f32 %v16556_v44, %v18094_v57 }
 0xbc3   : > { %15271 = vmatprep.mubr.msk.bf16.mxu0 %vm693_vm0, %v3593_v55  ;;  %3304 = vmax.xlane.f32.xlu1 %v3303_v16  ;;  %v3605_v15 = vpop.permute.xlu1 %3604 }
 0xbc4   : > { %v3086_v37 = vpack.c.bf16 %v2952_v52, %v2951_v58  ;;  %v3627_v47 = vsel %vm693_vm0, %v3605_v15, 0 }
 0xbc5   : > { %v16558_v39 = vpop.eup %16557  ;;  %3301 = vmax.xlane.f32.xlu0 %v3300_v7 }
 0xbc6   : > { %v16560_v51 = vpop.eup %16559  ;;  %15203 = vmatprep.mubr.msk.bf16.mxu1 %vm783_vm1, %v3086_v37  ;;  %v2953_v22 = vmul.f32 %v16558_v39, %v18100_v40 }
 0xbc7   : > { %v2954_v48 = vmul.f32 %v16560_v51, %v18098_v9  ;;  %v3607_v34 = vpop.permute.xlu1 %3606 }
 0xbc8   : > { %15266 = vmatpush3.bf16.xpose.msra.mxu0 %v3624_v46  ;;  %v3630_v9 = vsel %vm693_vm0, %v3607_v34, 0 }
 0xbc9   : > { %15481 = vmatprep.subr.msk.bf16.mxu0 %vm693_vm0, %v3605_v15  ;;  %v3087_v57 = vpack.c.bf16 %v2954_v48, %v2953_v22 }
 0xbcb   : > { %15204 = vmatmul.mubr.msk.bf16.gmra.mrb[12].mxu1 %vm783_vm1, %v3087_v57  ;;  %v3595_v40 = vpop.permute.xlu1 %3594 }
 0xbcc   : > { %15239 = vmatprep.mubr.bf16.mxu1 %v17410_v21 }
 0xbd0   : > { %15268 = vmatpush3.bf16.xpose.msra.mxu0 %v3627_v47 }
 0xbd1   : > { %15482 = vmatprep.subr.msk.bf16.mxu0 %vm693_vm0, %v3607_v34 }
 0xbd3   : > { %15240 = vmatmul.mubr.bf16.vlgmr.msra.gmra.mrb[48].mxu1 %v17416_v24 }
 0xbd4   : > { %15243 = vmatprep.mubr.bf16.mxu1 %v17422_v27 }
 0xbd8   : > { %15270 = vmatpush3.bf16.xpose.msra.mxu0 %v3630_v9 }
 0xbdb   : > { %15244 = vmatmul.mubr.bf16.gmra.mrb[52].mxu1 %v17428_v30 }
 0xbdf   : > { %15272 = vmatmul.mubr.msk.bf16.vlgmr.msra.gmra.mrb[80].mxu0 %vm693_vm0, %v3595_v40 }
 0xbf3   : > { %v3284_v42 = vpop.xlane.xlu0 %3283 }
 0xbf4   : > { %v3306_v35 = vsub.f32 %v18056_v50, %v3284_v42 }
 0xbf6   : > { %v3314_v3 = vmul.f32 1.442695, %v3306_v35 }
 0xbf7   : > { %v3290_v23 = vpop.xlane.xlu0 %3289 }
 0xbf8   : > { %16561 = vpow2.f32 %v3314_v3  ;;  %v3308_v36 = vsub.f32 %v18054_v19, %v3290_v23 }
 0xbfa   : > { %v3318_v25 = vmul.f32 1.442695, %v3308_v36 }
 0xbfb   : > { %v3293_v59 = vpop.xlane.xlu0 %3292  ;;  %v3287_v54 = vpop.xlane.xlu1 %3286 }
 0xbfc   : > { %16563 = vpow2.f32 %v3318_v25  ;;  %v3309_v10 = vsub.f32 %v18058_v20, %v3293_v59  ;;  %v3307_v11 = vsub.f32 %v18060_v38, %v3287_v54 }
 0xbfe   : > { %v3316_v2 = vmul.f32 1.442695, %v3307_v11  ;;  %v3320_v63 = vmul.f32 1.442695, %v3309_v10 }
 0xbff   : > { %v3597_v60 = vpop.permute.xlu0 %3596  ;;  %v3599_v43 = vpop.permute.xlu1 %3598 }
 0xc00   : > { %15275 = vmatprep.mubr.msk.bf16.mxu0 %vm693_vm0, %v3597_v60  ;;  %16565 = vpow2.f32 %v3316_v2  ;;  %v3785_v2 = vld [vmem:[#allocation8 + $0x1c] sm:$0xf] }
 0xc01   : > { %15276 = vmatmul.mubr.msk.bf16.gmra.mrb[84].mxu0 %vm693_vm0, %v3599_v43  ;;  %16567 = vpow2.f32 %v3320_v63  ;;  %v3786_v63 = vld [vmem:[#allocation8 + $0x3c] sm:$0xf] }
 0xc02   : > { %v16562_v50 = vpop.eup %16561 }
 0xc03   : > { %v3330_v19 = vsel %vm783_vm1, %v16562_v50, 0.0 }
 0xc04   : > { %3331 = vadd.xlane.f32.xlu0 %v3330_v19 }
 0xc06   : > { %v18171_v5 = vpop.eup %16563 }
 0xc07   : > { %v3336_v20 = vsel %vm783_vm1, %v18171_v5, 0.0 }
 0xc08   : > { %3337 = vadd.xlane.f32.xlu0 %v3336_v20 }
 0xc0a   : > { %v16566_v38 = vpop.eup %16565 }
 0xc0b   : > { %v3333_v18 = vsel %vm783_vm1, %v16566_v38, 0.0  ;;  %v18176_v29 = vpop.eup %16567 }
 0xc0c   : > { %3334 = vadd.xlane.f32.xlu1 %v3333_v18  ;;  %v3339_v49 = vsel %vm783_vm1, %v18176_v29, 0.0  ;;  %v12904_v18 = vcombine.low %v3785_v2, %v3786_v63 }
 0xc10   : > { %3340 = vadd.xlane.f32.xlu1 %v3339_v49  ;;  %v3787_v49 = vld [vmem:[#allocation8 + $0x5c] sm:$0xf] }
 0xc4c   : > { %v3296_v14 = vpop.xlane.xlu1 %3295 }
 0xc4d   : > { %v3310_v33 = vsub.f32 %v18130_v53, %v3296_v14  ;;  %v3788_v14 = vld [vmem:[#allocation8 + $0x7c] sm:$0xf] }
 0xc4e   : > { %v3299_v1 = vpop.xlane.xlu0 %3298 }
 0xc4f   : > { %v3322_v17 = vmul.f32 1.442695, %v3310_v33  ;;  %v3311_v13 = vsub.f32 %v18136_v6, %v3299_v1 }
 0xc50   : > { %v3305_v28 = vpop.xlane.xlu1 %3304 }
 0xc51   : > { %16569 = vpow2.f32 %v3322_v17  ;;  %v3324_v62 = vmul.f32 1.442695, %v3311_v13  ;;  %v3313_v26 = vsub.f32 %v18132_v61, %v3305_v28  ;;  %v3789_v28 = vld [vmem:[#allocation8 + $0x9c] sm:$0xf] }
 0xc52   : > { %v3302_v41 = vpop.xlane.xlu0 %3301 }
 0xc53   : > { %16571 = vpow2.f32 %v3324_v62  ;;  %v3328_v56 = vmul.f32 1.442695, %v3313_v26  ;;  %v3312_v45 = vsub.f32 %v18128_v8, %v3302_v41  ;;  %v3790_v62 = vld [vmem:[#allocation8 + $0xbc] sm:$0xf] }
 0xc54   : > { %v12906_v26 = vcombine.low %v3789_v28, %v3790_v62  ;;  %v3792_v41 = vld [vmem:[#allocation8 + $0xfc] sm:$0xf] }
 0xc55   : > { %16573 = vpow2.f32 %v3328_v56  ;;  %v3326_v4 = vmul.f32 1.442695, %v3312_v45  ;;  %v3793_v45 = vld [vmem:[#allocation8 + $0x11c] sm:$0xf] }
 0xc57   : > { %16575 = vpow2.f32 %v3326_v4  ;;  %v3794_v4 = vld [vmem:[#allocation8 + $0x13c] sm:$0xf] }
 0xc5b   : > { %v18184_v44 = vpop.eup %16569 }
 0xc5c   : > { %v3342_v53 = vsel %vm783_vm1, %v18184_v44, 0.0 }
 0xc5d   : > { %v18188_v55 = vpop.eup %16571  ;;  %3343 = vadd.xlane.f32.xlu0 %v3342_v53  ;;  %v12908_v53 = vcombine.low %v3793_v45, %v3794_v4 }
 0xc5e   : > { %v3345_v6 = vsel %vm783_vm1, %v18188_v55, 0.0 }
 0xc5f   : > { %v18192_v61 = vpop.eup %16573  ;;  %3346 = vadd.xlane.f32.xlu1 %v3345_v6  ;;  %v3795_v6 = vld [vmem:[#allocation8 + $0x15c] sm:$0xf] }
 0xc60   : > { %v3351_v58 = vsel %vm783_vm1, %v18192_v61, 0.0 }
 0xc61   : > { %v18194_v16 = vpop.eup %16575 }
 0xc62   : > { %v3348_v8 = vsel %vm783_vm1, %v18194_v16, 0.0 }
 0xc63   : > { %3349 = vadd.xlane.f32.xlu0 %v3348_v8  ;;  %3352 = vadd.xlane.f32.xlu1 %v3351_v58  ;;  %v3796_v8 = vld [vmem:[#allocation8 + $0x17c] sm:$0xf] }
 0xc64   : > { %v12909_v58 = vcombine.low %v3795_v6, %v3796_v8 }
 0xc91   : > { %v3332_v52 = vpop.xlane.xlu0 %3331 }
 0xc92   : > { %16577 = vrcp.f32 %v3332_v52  ;;  %v3797_v52 = vld [vmem:[#allocation8 + $0x19c] sm:$0xf] }
 0xc95   : > { %v3338_v57 = vpop.xlane.xlu0 %3337 }
 0xc99   : > { %v3335_v7 = vpop.xlane.xlu1 %3334 }
 0xc9a   : > { %16579 = vrcp.f32 %v3335_v7  ;;  %v3798_v7 = vld [vmem:[#allocation8 + $0x1bc] sm:$0xf] }
 0xc9c   : > { %v16578_v37 = vpop.eup %16577 }
 0xc9d   : > { %v3341_v51 = vpop.xlane.xlu1 %3340  ;;  %v3362_v46 = vmul.f32 %v16578_v37, %v16562_v50  ;;  %v12910_v37 = vcombine.low %v3797_v52, %v3798_v7 }
 0xc9e   : > { %16581 = vrcp.f32 %v3341_v51  ;;  %v3800_v51 = vld [vmem:[#allocation8 + $0x1fc] sm:$0xf] }
 0xc9f   : > { %16583 = vrcp.f32 %v3338_v57 }
 0xca4   : > { %v16580_v39 = vpop.eup %16579 }
 0xca5   : > { %v3363_v48 = vmul.f32 %v16580_v39, %v16566_v38  ;;  %v3799_v39 = vld [vmem:[#allocation8 + $0x1dc] sm:$0xf] }
 0xca6   : > { %v15241_v22 = vpop.f32.mrb[48].mxu1 }
 0xca7   : > { %v3468_v15 = vpop.f32.mrb[49].mxu1  ;;  %v3499_v34 = vpack.c.bf16 %v3363_v48, %v3362_v46 }
 0xca8   : > { %v15242_v47 = vpop.f32.mrb[50].mxu1  ;;  %v16582_v10 = vpop.eup %16581 }
 0xca9   : > { %v3504_v9 = vpack.c.bf16 %v15242_v47, %v15241_v22  ;;  %v3471_v40 = vpop.f32.mrb[51].mxu1  ;;  %15255 = vmatprep.mubr.msk.bf16.mxu1 %vm783_vm1, %v3499_v34  ;;  %v16584_v50 = vpop.eup %16583  ;;  %v3365_v20 = vmul.f32 %v16582_v10, %v18176_v29  ;;  %v12905_v29 = vcombine.low %v3787_v49, %v3788_v14  ;;  %v12911_v22 = vcombine.low %v3799_v39, %v3800_v51 }
 0xcaa   : > { %v3503_v42 = vpack.c.bf16 %v3471_v40, %v3468_v15  ;;  %v3364_v33 = vmul.f32 %v16584_v50, %v18171_v5  ;;  %v3791_v5 = vld [vmem:[#allocation8 + $0xdc] sm:$0xf] }
 0xcab   : > { %v12907_v56 = vcombine.low %v3791_v5, %v3792_v41 }
 0xcac   : > { %15247 = vmatprep.subr.bf16.mxu1 %v3503_v42  ;;  %v3500_v17 = vpack.c.bf16 %v3365_v20, %v3364_v33 }
 0xcad   : > { %15248 = vmatpush3.bf16.msra.mxu1 %v3503_v42 }
 0xcae   : > { %v15245_v35 = vpop.f32.mrb[52].mxu1  ;;  %15249 = vmatprep.subr.bf16.mxu1 %v3504_v9 }
 0xcaf   : > { %v3484_v3 = vpop.f32.mrb[53].mxu1 }
 0xcb0   : > { %v15246_v23 = vpop.f32.mrb[54].mxu1 }
 0xcb1   : > { %v3506_v36 = vpack.c.bf16 %v15246_v23, %v15245_v35  ;;  %v3487_v25 = vpop.f32.mrb[55].mxu1  ;;  %15250 = vmatpush3.bf16.msra.mxu1 %v3504_v9 }
 0xcb2   : > { %v3505_v59 = vpack.c.bf16 %v3487_v25, %v3484_v3  ;;  %v18201_v54 = vpop.f32.mrb[80].mxu0 }
 0xcb3   : > { %v18203_v11 = vpop.f32.mrb[81].mxu0  ;;  %v3703_v1 = vsel %vm783_vm1, %v18201_v54, -inf }
 0xcb4   : > { %15251 = vmatprep.subr.bf16.mxu1 %v3505_v59  ;;  %v18205_v60 = vpop.f32.mrb[82].mxu0  ;;  %v3697_v43 = vsel %vm783_vm1, %v18203_v11, -inf }
 0xcb5   : > { %15252 = vmatpush3.bf16.msra.mxu1 %v3505_v59  ;;  %v18209_v19 = vpop.f32.mrb[83].mxu0  ;;  %3698 = vmax.xlane.f32.xlu0 %v3697_v43  ;;  %v3706_v13 = vsel %vm783_vm1, %v18205_v60, -inf }
 0xcb6   : > { %15253 = vmatprep.subr.bf16.mxu1 %v3506_v36  ;;  %v3700_v38 = vsel %vm783_vm1, %v18209_v19, -inf }
 0xcb7   : > { %3701 = vmax.xlane.f32.xlu1 %v3700_v38 }
 0xcb9   : > { %15254 = vmatpush3.bf16.msra.mxu1 %v3506_v36  ;;  %3704 = vmax.xlane.f32.xlu0 %v3703_v1 }
 0xcba   : > { %15279 = vmatprep.subr.bf16.mxu1 %v12904_v18 }
 0xcbb   : > { %3707 = vmax.xlane.f32.xlu1 %v3706_v13 }
 0xcbc   : > { %15256 = vmatmul.mubr.msk.bf16.vlgmr.msra.gmra.mrb[8].mxu1 %vm783_vm1, %v3500_v17 }
 0xcbd   : > { %15280 = vmatpush3.bf16.msra.mxu1 %v12904_v18 }
 0xcbe   : > { %15281 = vmatprep.subr.bf16.mxu1 %v12905_v29 }
 0xcc1   : > { %15282 = vmatpush3.bf16.msra.mxu1 %v12905_v29 }
 0xcc2   : > { %15283 = vmatprep.subr.bf16.mxu1 %v12906_v26 }
 0xcc5   : > { %15284 = vmatpush3.bf16.msra.mxu1 %v12906_v26 }
 0xcc6   : > { %15285 = vmatprep.subr.bf16.mxu1 %v12907_v56 }
 0xcc9   : > { %15286 = vmatpush3.bf16.msra.mxu1 %v12907_v56 }
 0xcca   : > { %15287 = vmatprep.subr.bf16.mxu1 %v12908_v53 }
 0xccd   : > { %15288 = vmatpush3.bf16.msra.mxu1 %v12908_v53 }
 0xcce   : > { %15289 = vmatprep.subr.bf16.mxu1 %v12909_v58 }
 0xcd1   : > { %15290 = vmatpush3.bf16.msra.mxu1 %v12909_v58 }
 0xcd2   : > { %15291 = vmatprep.subr.bf16.mxu1 %v12910_v37 }
 0xcd4   : > { %v18220_v46 = vpop.f32.mrb[84].mxu0 }
 0xcd5   : > { %v18222_v48 = vpop.f32.mrb[85].mxu0  ;;  %15292 = vmatpush3.bf16.msra.mxu1 %v12910_v37  ;;  %v3715_v9 = vsel %vm783_vm1, %v18220_v46, -inf }
 0xcd6   : > { %v18224_v15 = vpop.f32.mrb[86].mxu0  ;;  %v3709_v57 = vsel %vm783_vm1, %v18222_v48, -inf  ;;  %15293 = vmatprep.subr.bf16.mxu1 %v12911_v22 }
 0xcd7   : > { %v18228_v47 = vpop.f32.mrb[87].mxu0  ;;  %3710 = vmax.xlane.f32.xlu0 %v3709_v57  ;;  %v3718_v40 = vsel %vm783_vm1, %v18224_v15, -inf }
 0xcd8   : > { %v3712_v34 = vsel %vm783_vm1, %v18228_v47, -inf }
 0xcd9   : > { %3713 = vmax.xlane.f32.xlu1 %v3712_v34  ;;  %15294 = vmatpush3.bf16.msra.mxu1 %v12911_v22 }
 0xcdb   : > { %3716 = vmax.xlane.f32.xlu0 %v3715_v9 }
 0xcdd   : > { %3719 = vmax.xlane.f32.xlu1 %v3718_v40 }
 0xcea   : > { %v3344_v42 = vpop.xlane.xlu0 %3343 }
 0xceb   : > { %16585 = vrcp.f32 %v3344_v42 }
 0xcec   : > { %v3347_v35 = vpop.xlane.xlu1 %3346 }
 0xced   : > { %16587 = vrcp.f32 %v3347_v35 }
 0xcf0   : > { %v3350_v3 = vpop.xlane.xlu0 %3349  ;;  %v3353_v23 = vpop.xlane.xlu1 %3352 }
 0xcf1   : > { %16589 = vrcp.f32 %v3350_v3 }
 0xcf2   : > { %16591 = vrcp.f32 %v3353_v23 }
 0xcf5   : > { %v16586_v36 = vpop.eup %16585 }
 0xcf6   : > { %v3366_v59 = vmul.f32 %v16586_v36, %v18184_v44 }
 0xcf7   : > { %v16588_v25 = vpop.eup %16587 }
 0xcf8   : > { %v3367_v10 = vmul.f32 %v16588_v25, %v18188_v55 }
 0xcfa   : > { %v3501_v2 = vpack.c.bf16 %v3367_v10, %v3366_v59 }
 0xcfb   : > { %v16590_v63 = vpop.eup %16589 }
 0xcfc   : > { %v16592_v43 = vpop.eup %16591  ;;  %15259 = vmatprep.mubr.msk.bf16.mxu1 %vm783_vm1, %v3501_v2  ;;  %v3368_v50 = vmul.f32 %v16590_v63, %v18194_v16 }
 0xcfd   : > { %v3369_v20 = vmul.f32 %v16592_v43, %v18192_v61 }
 0xcff   : > { %v3502_v38 = vpack.c.bf16 %v3369_v20, %v3368_v50 }
 0xd01   : > { %15260 = vmatmul.mubr.msk.bf16.gmra.mrb[12].mxu1 %vm783_vm1, %v3502_v38 }
 0xd02   : > { %15295 = vmatprep.mubr.bf16.mxu1 %v17410_v21 }
 0xd09   : > { %15296 = vmatmul.mubr.bf16.vlgmr.msra.gmra.mrb[56].mxu1 %v17416_v24 }
 0xd0a   : > { %15299 = vmatprep.mubr.bf16.mxu1 %v17422_v27 }
 0xd11   : > { %15300 = vmatmul.mubr.bf16.gmra.mrb[60].mxu1 %v17428_v30 }
 0xd42   : > { %v3699_v44 = vpop.xlane.xlu0 %3698 }
 0xd43   : > { %v3721_v55 = vsub.f32 %v18203_v11, %v3699_v44 }
 0xd44   : > { %v3702_v18 = vpop.xlane.xlu1 %3701 }
 0xd45   : > { %v3729_v49 = vmul.f32 1.442695, %v3721_v55  ;;  %v3722_v16 = vsub.f32 %v18209_v19, %v3702_v18 }
 0xd46   : > { %v3705_v14 = vpop.xlane.xlu0 %3704 }
 0xd47   : > { %16593 = vpow2.f32 %v3729_v49  ;;  %v3731_v61 = vmul.f32 1.442695, %v3722_v16  ;;  %v3723_v33 = vsub.f32 %v18201_v54, %v3705_v14 }
 0xd48   : > { %v3708_v1 = vpop.xlane.xlu1 %3707 }
 0xd49   : > { %16595 = vpow2.f32 %v3731_v61  ;;  %v3733_v21 = vmul.f32 1.442695, %v3723_v33  ;;  %v3724_v24 = vsub.f32 %v18205_v60, %v3708_v1 }
 0xd4b   : > { %16597 = vpow2.f32 %v3733_v21  ;;  %v3735_v27 = vmul.f32 1.442695, %v3724_v24 }
 0xd4d   : > { %16599 = vpow2.f32 %v3735_v27 }
 0xd51   : > { %v18250_v30 = vpop.eup %16593 }
 0xd52   : > { %v3745_v11 = vsel %vm783_vm1, %v18250_v30, 0.0 }
 0xd53   : > { %v18254_v17 = vpop.eup %16595  ;;  %3746 = vadd.xlane.f32.xlu0 %v3745_v11 }
 0xd54   : > { %v3748_v19 = vsel %vm783_vm1, %v18254_v17, 0.0 }
 0xd55   : > { %v18258_v54 = vpop.eup %16597  ;;  %3749 = vadd.xlane.f32.xlu1 %v3748_v19 }
 0xd56   : > { %v3751_v60 = vsel %vm783_vm1, %v18258_v54, 0.0 }
 0xd57   : > { %v18262_v13 = vpop.eup %16599  ;;  %3752 = vadd.xlane.f32.xlu0 %v3751_v60 }
 0xd58   : > { %v3754_v29 = vsel %vm783_vm1, %v18262_v13, 0.0 }
 0xd59   : > { %3755 = vadd.xlane.f32.xlu1 %v3754_v29 }
 0xd64   : > { %v3711_v28 = vpop.xlane.xlu0 %3710 }
 0xd65   : > { %v3725_v62 = vsub.f32 %v18222_v48, %v3711_v28  ;;  %v12787_v28 = vld [vmem:[#allocation15] ss:$0 sm:$0xff] }
 0xd66   : > { %v3714_v26 = vpop.xlane.xlu1 %3713 }
 0xd67   : > { %v3737_v5 = vmul.f32 1.442695, %v3725_v62  ;;  %v3726_v41 = vsub.f32 %v18228_v47, %v3714_v26  ;;  %v16689_v62 = vld [vmem:[%s17383_s23] sm:$0xff] }
 0xd68   : > { %v3717_v56 = vpop.xlane.xlu0 %3716  ;;  %v685_v26 = vadd.f32 %v16689_v62, %v12787_v28 }
 0xd69   : > { %16601 = vpow2.f32 %v3737_v5  ;;  %v3739_v45 = vmul.f32 1.442695, %v3726_v41  ;;  %v3727_v4 = vsub.f32 %v18220_v46, %v3717_v56  ;;  %v16690_v41 = vld [vmem:[%s17383_s23 + $0x8] sm:$0xff] }
 0xd6a   : > { %v3720_v53 = vpop.xlane.xlu1 %3719  ;;  %v686_v56 = vadd.f32 %v16690_v41, %v12787_v28 }
 0xd6b   : > { %16603 = vpow2.f32 %v3739_v45  ;;  %v3741_v6 = vmul.f32 1.442695, %v3727_v4  ;;  %v3728_v8 = vsub.f32 %v18224_v15, %v3720_v53  ;;  %v16691_v4 = vld [vmem:[%s17383_s23 + $0x10] sm:$0xff] }
 0xd6c   : > { %v687_v53 = vadd.f32 %v16691_v4, %v12787_v28 }
 0xd6d   : > { %16605 = vpow2.f32 %v3741_v6  ;;  %v3743_v58 = vmul.f32 1.442695, %v3728_v8 }
 0xd6f   : > { %16607 = vpow2.f32 %v3743_v58 }
 0xd73   : > { %v16602_v52 = vpop.eup %16601 }
 0xd74   : > { %v3757_v7 = vsel %vm783_vm1, %v16602_v52, 0.0 }
 0xd75   : > { %v16604_v37 = vpop.eup %16603  ;;  %3758 = vadd.xlane.f32.xlu0 %v3757_v7 }
 0xd76   : > { %v3760_v39 = vsel %vm783_vm1, %v16604_v37, 0.0 }
 0xd77   : > { %v18272_v51 = vpop.eup %16605  ;;  %3761 = vadd.xlane.f32.xlu1 %v3760_v39 }
 0xd78   : > { %v3763_v22 = vsel %vm783_vm1, %v18272_v51, 0.0 }
 0xd79   : > { %v16608_v46 = vpop.eup %16607  ;;  %3764 = vadd.xlane.f32.xlu0 %v3763_v22  ;;  %v16693_v22 = vld [vmem:[%s17383_s23 + $0x20] sm:$0xff] }
 0xd7a   : > { %v3766_v48 = vsel %vm783_vm1, %v16608_v46, 0.0 }
 0xd7b   : > { %3767 = vadd.xlane.f32.xlu1 %v3766_v48 }
 0xddc   : > { %v15297_v15 = vpop.f32.mrb[56].mxu1 }
 0xddd   : > { %v3883_v57 = vpop.f32.mrb[57].mxu1 }
 0xdde   : > { %v15298_v47 = vpop.f32.mrb[58].mxu1 }
 0xddf   : > { %v3919_v34 = vpack.c.bf16 %v15298_v47, %v15297_v15  ;;  %v3886_v9 = vpop.f32.mrb[59].mxu1  ;;  %v16694_v15 = vld [vmem:[%s17383_s23 + $0x28] sm:$0xff] }
 0xde0   : > { %v3747_v40 = vpop.xlane.xlu0 %3746  ;;  %v3918_v42 = vpack.c.bf16 %v3886_v9, %v3883_v57  ;;  %v690_v57 = vadd.f32 %v16694_v15, %v12787_v28  ;;  %v15663_v15 = vld [vmem:[#allocation9 + $0x118] sm:$0xff]  }
 0xde1   : > { %16609 = vrcp.f32 %v3747_v40 }
 0xde2   : > { %v3750_v35 = vpop.xlane.xlu1 %3749  ;;  %15303 = vmatprep.subr.bf16.mxu1 %v3918_v42 }
 0xde3   : > { %16611 = vrcp.f32 %v3750_v35  ;;  %15304 = vmatpush3.bf16.msra.mxu1 %v3918_v42 }
 0xde4   : > { %v3753_v3 = vpop.xlane.xlu0 %3752  ;;  %v15301_v23 = vpop.f32.mrb[60].mxu1  ;;  %15305 = vmatprep.subr.bf16.mxu1 %v3919_v34 }
 0xde5   : > { %16613 = vrcp.f32 %v3753_v3  ;;  %v3899_v36 = vpop.f32.mrb[61].mxu1  ;;  %v16696_v3 = vld [vmem:[%s17383_s23 + $0x38] sm:$0xff] }
 0xde6   : > { %v3756_v25 = vpop.xlane.xlu1 %3755  ;;  %v15302_v59 = vpop.f32.mrb[62].mxu1 }
 0xde7   : > { %16615 = vrcp.f32 %v3756_v25  ;;  %v3921_v10 = vpack.c.bf16 %v15302_v59, %v15301_v23  ;;  %v3902_v2 = vpop.f32.mrb[63].mxu1  ;;  %15306 = vmatpush3.bf16.msra.mxu1 %v3919_v34  ;;  %v16695_v34 = vld [vmem:[%s17383_s23 + $0x30] sm:$0xff]  ;;  %v692_v23 = vadd.f32 %v16696_v3, %v12787_v28  ;;  %v15679_v3 = vld [vmem:[#allocation9 + $0x138] sm:$0xff]  }
 0xde8   : > { %v3920_v63 = vpack.c.bf16 %v3902_v2, %v3899_v36  ;;  %v691_v9 = vadd.f32 %v16695_v34, %v12787_v28  ;;  %v15668_v34 = vld [vmem:[#allocation9 + $0xe0] sm:$0xff]  }
 0xdea   : > { %15307 = vmatprep.subr.bf16.mxu1 %v3920_v63 }
 0xdeb   : > { %v16610_v43 = vpop.eup %16609  ;;  %15308 = vmatpush3.bf16.msra.mxu1 %v3920_v63 }
 0xdec   : > { %15309 = vmatprep.subr.bf16.mxu1 %v3921_v10  ;;  %v3777_v20 = vmul.f32 %v16610_v43, %v18250_v30 }
 0xded   : > { %v16612_v50 = vpop.eup %16611 }
 0xdee   : > { %v3778_v38 = vmul.f32 %v16612_v50, %v18254_v17 }
 0xdef   : > { %v16614_v44 = vpop.eup %16613  ;;  %15310 = vmatpush3.bf16.msra.mxu1 %v3921_v10  ;;  %v15641_v10 = vld [vmem:[#allocation9] sm:$0xff]  }
 0xdf0   : > { %v3914_v55 = vpack.c.bf16 %v3778_v38, %v3777_v20  ;;  %v3779_v49 = vmul.f32 %v16614_v44, %v18258_v54  ;;  %15319 = vmatprep.subr.bf16.mxu0 %v15641_v10 }
 0xdf1   : > { %v16616_v18 = vpop.eup %16615  ;;  %15320 = vmatpush3.bf16.msra.mxu0 %v15641_v10 }
 0xdf2   : > { %v3780_v16 = vmul.f32 %v16616_v18, %v18262_v13  ;;  %15311 = vmatprep.mubr.msk.bf16.mxu1 %vm783_vm1, %v3914_v55 }
 0xdf4   : > { %v3915_v14 = vpack.c.bf16 %v3780_v16, %v3779_v49 }
 0xdf6   : > { %15312 = vmatmul.mubr.msk.bf16.vlgmr.msra.gmra.mrb[8].mxu1 %vm783_vm1, %v3915_v14 }
 0xe02   : > { %v3759_v61 = vpop.xlane.xlu0 %3758 }
 0xe03   : > { %16617 = vrcp.f32 %v3759_v61 }
 0xe04   : > { %v3762_v33 = vpop.xlane.xlu1 %3761 }
 0xe05   : > { %16619 = vrcp.f32 %v3762_v33 }
 0xe06   : > { %v3765_v1 = vpop.xlane.xlu0 %3764 }
 0xe07   : > { %16621 = vrcp.f32 %v3765_v1 }
 0xe08   : > { %v3768_v21 = vpop.xlane.xlu1 %3767 }
 0xe09   : > { %16623 = vrcp.f32 %v3768_v21 }
 0xe0d   : > { %v16618_v24 = vpop.eup %16617 }
 0xe0e   : > { %v3781_v30 = vmul.f32 %v16618_v24, %v16602_v52  ;;  %v16692_v52 = vld [vmem:[%s17383_s23 + $0x18] sm:$0xff]  ;;  %v15642_v24 = vld [vmem:[#allocation9 + $0x8] sm:$0xff]   ;;  %s12608_s23 = sshll.u32 %s18859_s30, 4  ;;  %s18880_s23 = int_to_ptr.vmem [resolvable:$true] %s12608_s23 }
 0xe0f   : > { %v16620_v27 = vpop.eup %16619  ;;  %v688_v7 = vadd.f32 %v16692_v52, %v12787_v28  ;;  %15321 = vmatprep.subr.bf16.mxu0 %v15642_v24  ;;  %v15648_v52 = vld [vmem:[#allocation9 + $0x38] sm:$0xff]   ;;  %s16931_s21 = scalar_lea.vmem %s18880_s23, 1024  ;;  %p16938_p13 = scmp.lt.s32.totalorder %s18880_s23, %s16936_s25 }
 0xe10   : > { %v3782_v11 = vmul.f32 %v16620_v27, %v16604_v37  ;;  %15322 = vmatpush3.bf16.msra.mxu0 %v15642_v24  ;;  %v15643_v27 = vld [vmem:[#allocation9 + $0x10] sm:$0xff]   ;;  %v18329_v24 = vld [vmem:[#allocation15 + $0x2] ss:$0 sm:$0xff]  ;;  %p16932_p10 = scmp.ne.s32.totalorder %s18880_s23, %s16931_s21  ;;  %p16939_p8 = scmp.lt.s32.totalorder %s16937_s29, %s16931_s21 }
 0xe11   : > { %v16622_v17 = vpop.eup %16621  ;;  %15323 = vmatprep.subr.bf16.mxu0 %v15643_v27 }
 0xe12   : > { %v3916_v19 = vpack.c.bf16 %v3782_v11, %v3781_v30  ;;  %v3783_v60 = vmul.f32 %v16622_v17, %v18272_v51  ;;  %v15644_v30 = vld [vmem:[#allocation9 + $0x18] sm:$0xff]   ;;  %v15645_v11 = vld [vmem:[#allocation9 + $0x20] sm:$0xff]   ;;  %p16933_p3 = pnand %p16932_p10, %p18975_p11  ;;  %p16940_p6 = por %p16939_p8, %p16938_p13 }
 0xe13   : > { %v16624_v54 = vpop.eup %16623 }
 0xe14   : > { %15315 = vmatprep.mubr.msk.bf16.mxu1 %vm783_vm1, %v3916_v19  ;;  %v3784_v13 = vmul.f32 %v16624_v54, %v16608_v46  ;;  %v689_v46 = vadd.f32 %v16693_v22, %v12787_v28  ;;  %15324 = vmatpush3.bf16.msra.mxu0 %v15643_v27  ;;  %v15656_v22 = vld [vmem:[#allocation9 + $0xc8] sm:$0xff]   ;;  %p16934_p12 = pneg %p16933_p3 }
 0xe15   : > { %15325 = vmatprep.subr.bf16.mxu0 %v15644_v30 }
 0xe16   : > { %v3917_v29 = vpack.c.bf16 %v3784_v13, %v3783_v60  ;;  %p16941_p9 = pnand %p16940_p6, %p16934_p12 }
 0xe18   : > { %15316 = vmatmul.mubr.msk.bf16.gmra.mrb[12].mxu1 %vm783_vm1, %v3917_v29  ;;  %15326 = vmatpush3.bf16.msra.mxu0 %v15644_v30  ;;  %v15646_v29 = vld [vmem:[#allocation9 + $0x28] sm:$0xff]  }
 0xe19   : > { %15327 = vmatprep.subr.bf16.mxu0 %v15645_v11 }
 0xe1c   : > { %15328 = vmatpush3.bf16.msra.mxu0 %v15645_v11 }
 0xe1d   : > { %15329 = vmatprep.subr.bf16.mxu0 %v15646_v29 }
 0xe20   : > { %15330 = vmatpush3.bf16.msra.mxu0 %v15646_v29 }
 0xec9   : > { %v15313_v5 = vpop.f32.mrb[8].mxu1 }
 0xeca   : > { %v3968_v45 = vpop.f32.mrb[9].mxu1  ;;  %v15363_v39 = vadd.f32 %v15313_v5, %v687_v53  ;;  %v15647_v53 = vld [vmem:[#allocation9 + $0x30] sm:$0xff]  }
 0xecb   : > { %v15364_v6 = vadd.f32 %v3968_v45, %v685_v26  ;;  %v15314_v8 = vpop.f32.mrb[10].mxu1  ;;  %15331 = vmatprep.subr.bf16.mxu0 %v15647_v53 }
 0xecc   : > { %v3971_v58 = vpop.f32.mrb[11].mxu1  ;;  %v15365_v51 = vadd.f32 %v15314_v8, %v688_v7  ;;  %15332 = vmatpush3.bf16.msra.mxu0 %v15647_v53  ;;  %v15649_v7 = vld [vmem:[#allocation9 + $0x80] sm:$0xff]   ;;  %v15657_v53 = vld [vmem:[#allocation9 + $0x90] sm:$0xff]  }
 0xecd   : > { %v15366_v37 = vadd.f32 %v3971_v58, %v686_v56  ;;  %4009 = vadd.xlane.f32.xlu0 %v15364_v6  ;;  %15333 = vmatprep.subr.bf16.mxu0 %v15648_v52 }
 0xecf   : > { %4011 = vadd.xlane.f32.xlu1 %v15366_v37 }
 0xed0   : > { %15334 = vmatpush3.bf16.msra.mxu0 %v15648_v52  ;;  %v15658_v52 = vld [vmem:[#allocation9 + $0x50] sm:$0xff]  }
 0xed1   : > { %4013 = vadd.xlane.f32.xlu0 %v15363_v39  ;;  %13897 = vmatprep.subr.bf16.mxu0 %v15649_v7 }
 0xed3   : > { %4015 = vadd.xlane.f32.xlu1 %v15365_v51 }
 0xeeb   : > { %v15317_v48 = vpop.f32.mrb[12].mxu1 }
 0xeec   : > { %v3984_v47 = vpop.f32.mrb[13].mxu1  ;;  %v15367_v25 = vadd.f32 %v15317_v48, %v691_v9  ;;  %v15660_v48 = vld [vmem:[#allocation9 + $0xd0] sm:$0xff]   ;;  %v15671_v9 = vld [vmem:[#allocation9 + $0x128] sm:$0xff]  }
 0xeed   : > { %v15368_v40 = vadd.f32 %v3984_v47, %v689_v46  ;;  %v15318_v42 = vpop.f32.mrb[14].mxu1  ;;  %v15659_v46 = vld [vmem:[#allocation9 + $0x110] sm:$0xff]   ;;  %v15667_v47 = vld [vmem:[#allocation9 + $0x120] sm:$0xff]  }
 0xeee   : > { %v3987_v35 = vpop.f32.mrb[15].mxu1  ;;  %v15369_v59 = vadd.f32 %v15318_v42, %v692_v23  ;;  %v15675_v42 = vld [vmem:[#allocation9 + $0x130] sm:$0xff]   ;;  %v15680_v23 = vld [vmem:[#allocation9 + $0xf8] sm:$0xff]  }
 0xeef   : > { %v15370_v36 = vadd.f32 %v3987_v35, %v690_v57  ;;  %4017 = vadd.xlane.f32.xlu0 %v15368_v40  ;;  %v15664_v57 = vld [vmem:[#allocation9 + $0xd8] sm:$0xff]   ;;  %v15676_v35 = vld [vmem:[#allocation9 + $0xf0] sm:$0xff]  }
 0xef1   : > { %4019 = vadd.xlane.f32.xlu1 %v15370_v36 }
 0xef3   : > { %4021 = vadd.xlane.f32.xlu0 %v15367_v25 }
 0xef5   : > { %4023 = vadd.xlane.f32.xlu1 %v15369_v59 }
 0xf5a   : > { %v4010_v2 = vpop.xlane.xlu0 %4009 }
 0xf5b   : > { %v4026_v63 = vmul.f32 0.0078125, %v4010_v2 }
 0xf5c   : > { %v4012_v43 = vpop.xlane.xlu1 %4011 }
 0xf5d   : > { %v18294_v50 = vsub.f32 %v15364_v6, %v4026_v63  ;;  %v4027_v20 = vmul.f32 0.0078125, %v4012_v43 }
 0xf5e   : > { %v4014_v38 = vpop.xlane.xlu0 %4013 }
 0xf5f   : > { %v18296_v44 = vsub.f32 %v15366_v37, %v4027_v20  ;;  %v4028_v55 = vmul.f32 0.0078125, %v4014_v38  ;;  %v4042_v18 = vmul.f32 %v18294_v50, %v18294_v50  ;;  %v15651_v37 = vld [vmem:[#allocation9 + $0x100] sm:$0xff]  }
 0xf60   : > { %v4016_v49 = vpop.xlane.xlu1 %4015  ;;  %13919 = vmatprep.subr.bf16.mxu1 %v15651_v37  ;;  %v15661_v37 = vld [vmem:[#allocation9 + $0x98] sm:$0xff]  }
 0xf61   : > { %v18300_v16 = vsub.f32 %v15363_v39, %v4028_v55  ;;  %v4029_v14 = vmul.f32 0.0078125, %v4016_v49  ;;  %4050 = vadd.xlane.f32.xlu0 %v4042_v18  ;;  %v4043_v61 = vmul.f32 %v18296_v44, %v18296_v44  ;;  %v15652_v39 = vld [vmem:[#allocation9 + $0xc0] sm:$0xff]  }
 0xf62   : > { %13920 = vmatpush3.bf16.msra.mxu1 %v15652_v39 }
 0xf63   : > { %v18304_v33 = vsub.f32 %v15365_v51, %v4029_v14  ;;  %4052 = vadd.xlane.f32.xlu1 %v4043_v61  ;;  %v4044_v1 = vmul.f32 %v18300_v16, %v18300_v16  ;;  %v15655_v51 = vld [vmem:[#allocation9 + $0x108] sm:$0xff]   ;;  %v18326_v61 = vld [vmem:[#allocation15 + $0x1] ss:$0 sm:$0xff] }
 0xf64   : > { %13921 = vmatprep.subr.bf16.mxu1 %v15655_v51 }
 0xf65   : > { %4054 = vadd.xlane.f32.xlu0 %v4044_v1  ;;  %v4045_v21 = vmul.f32 %v18304_v33, %v18304_v33 }
 0xf66   : > { %13922 = vmatpush3.bf16.msra.mxu1 %v15656_v22 }
 0xf67   : > { %4056 = vadd.xlane.f32.xlu1 %v4045_v21  ;;  %13923 = vmatprep.subr.bf16.mxu1 %v15659_v46 }
 0xf6a   : > { %13924 = vmatpush3.bf16.msra.mxu1 %v15660_v48 }
 0xf6b   : > { %13925 = vmatprep.subr.bf16.mxu1 %v15663_v15  ;;  %v15662_v15 = vld [vmem:[#allocation9 + $0x58] sm:$0xff]  }
 0xf6e   : > { %13926 = vmatpush3.bf16.msra.mxu1 %v15664_v57 }
 0xf6f   : > { %13927 = vmatprep.subr.bf16.mxu1 %v15667_v47  ;;  %v15665_v47 = vld [vmem:[#allocation9 + $0xa0] sm:$0xff]  }
 0xf72   : > { %13928 = vmatpush3.bf16.msra.mxu1 %v15668_v34 }
 0xf73   : > { %13929 = vmatprep.subr.bf16.mxu1 %v15671_v9 }
 0xf7c   : > { %v4018_v17 = vpop.xlane.xlu0 %4017 }
 0xf7d   : > { %v4030_v19 = vmul.f32 0.0078125, %v4018_v17 }
 0xf7e   : > { %v4020_v54 = vpop.xlane.xlu1 %4019 }
 0xf7f   : > { %v18310_v60 = vsub.f32 %v15368_v40, %v4030_v19  ;;  %v4031_v13 = vmul.f32 0.0078125, %v4020_v54  ;;  %v15672_v40 = vld [vmem:[#allocation9 + $0xe8] sm:$0xff]  }
 0xf80   : > { %v4022_v28 = vpop.xlane.xlu0 %4021  ;;  %13930 = vmatpush3.bf16.msra.mxu1 %v15672_v40 }
 0xf81   : > { %v18312_v62 = vsub.f32 %v15370_v36, %v4031_v13  ;;  %v4032_v26 = vmul.f32 0.0078125, %v4022_v28  ;;  %v4046_v5 = vmul.f32 %v18310_v60, %v18310_v60  ;;  %13931 = vmatprep.subr.bf16.mxu1 %v15675_v42  ;;  %v15666_v42 = vld [vmem:[#allocation9 + $0x60] sm:$0xff]  }
 0xf82   : > { %v4024_v41 = vpop.xlane.xlu1 %4023 }
 0xf83   : > { %v18316_v56 = vsub.f32 %v15367_v25, %v4032_v26  ;;  %v4033_v45 = vmul.f32 0.0078125, %v4024_v41  ;;  %4058 = vadd.xlane.f32.xlu0 %v4046_v5  ;;  %v4047_v4 = vmul.f32 %v18312_v62, %v18312_v62  ;;  %v15650_v41 = vld [vmem:[#allocation9 + $0x40] sm:$0xff]  }
 0xf84   : > { %13932 = vmatpush3.bf16.msra.mxu1 %v15676_v35  ;;  %v15669_v35 = vld [vmem:[#allocation9 + $0xa8] sm:$0xff]  }
 0xf85   : > { %v18320_v6 = vsub.f32 %v15369_v59, %v4033_v45  ;;  %4060 = vadd.xlane.f32.xlu1 %v4047_v4  ;;  %v4048_v8 = vmul.f32 %v18316_v56, %v18316_v56  ;;  %13933 = vmatprep.subr.bf16.mxu1 %v15679_v3  ;;  %v15653_v4 = vld [vmem:[#allocation9 + $0x88] sm:$0xff]  }
 0xf86   : > { %v15670_v3 = vld [vmem:[#allocation9 + $0x68] sm:$0xff]  }
 0xf87   : > { %4062 = vadd.xlane.f32.xlu0 %v4048_v8  ;;  %v4049_v58 = vmul.f32 %v18320_v6, %v18320_v6 }
 0xf88   : > { %13934 = vmatpush3.bf16.msra.mxu1 %v15680_v23  ;;  %v15673_v23 = vld [vmem:[#allocation9 + $0xb0] sm:$0xff]  }
 0xf89   : > { %4064 = vadd.xlane.f32.xlu1 %v4049_v58 }
 0xfee   : > { %v4051_v36 = vpop.xlane.xlu0 %4050 }
 0xfef   : > { %v4066_v25 = vmul.f32 0.0078125, %v4051_v36 }
 0xff0   : > { %v4053_v59 = vpop.xlane.xlu1 %4052 }
 0xff1   : > { %v4074_v10 = vadd.f32 1e-05, %v4066_v25  ;;  %v4067_v2 = vmul.f32 0.0078125, %v4053_v59 }
 0xff2   : > { %v4055_v63 = vpop.xlane.xlu0 %4054 }
 0xff3   : > { %16625 = vrsqrt.f32 %v4074_v10  ;;  %v4075_v43 = vadd.f32 1e-05, %v4067_v2  ;;  %v4068_v20 = vmul.f32 0.0078125, %v4055_v63  ;;  %v15674_v10 = vld [vmem:[#allocation9 + $0x70] sm:$0xff]  }
 0xff4   : > { %v4057_v38 = vpop.xlane.xlu1 %4056 }
 0xff5   : > { %16627 = vrsqrt.f32 %v4075_v43  ;;  %v4076_v55 = vadd.f32 1e-05, %v4068_v20  ;;  %v4069_v18 = vmul.f32 0.0078125, %v4057_v38  ;;  %v15677_v43 = vld [vmem:[#allocation9 + $0xb8] sm:$0xff]  }
 0xff7   : > { %16629 = vrsqrt.f32 %v4076_v55  ;;  %v4077_v49 = vadd.f32 1e-05, %v4069_v18 }
 0xff9   : > { %16631 = vrsqrt.f32 %v4077_v49 }
 0xffd   : > { %v16626_v14 = vpop.eup %16625 }
 0xffe   : > { %v4090_v1 = vmul.f32 %v16626_v14, %v18294_v50  ;;  %v15678_v14 = vld [vmem:[#allocation9 + $0x78] sm:$0xff]  }
 0xfff   : > { %v16628_v21 = vpop.eup %16627 }
0x1000   : > { %v4091_v27 = vmul.f32 %v16628_v21, %v18296_v44  ;;  %v4102_v30 = vmul.f32 %v18326_v61, %v4090_v1  ;;  %v15681_v21 = vld [vmem:[#allocation9 + $0x200] sm:$0xff]  }
0x1001   : > { %v16630_v11 = vpop.eup %16629 }
0x1002   : > { %v4092_v17 = vmul.f32 %v16630_v11, %v18300_v16  ;;  %v4103_v19 = vmul.f32 %v18326_v61, %v4091_v27  ;;  %v4114_v54 = vadd.f32 %v18329_v24, %v4102_v30 }
0x1003   : > { %v16632_v13 = vpop.eup %16631 }
0x1004   : > { %v4104_v29 = vmul.f32 %v18326_v61, %v4092_v17  ;;  %v4093_v28 = vmul.f32 %v16632_v13, %v18304_v33  ;;  %v4115_v50 = vadd.f32 %v18329_v24, %v4103_v19  ;;  %4122 = vst [vmem:[#allocation2] sm:$0xff] %v4114_v54  ;;  %v15654_v33 = vld [vmem:[#allocation9 + $0x48] sm:$0xff]  }
0x1006   : > { %v4116_v26 = vadd.f32 %v18329_v24, %v4104_v29  ;;  %v4105_v44 = vmul.f32 %v18326_v61, %v4093_v28  ;;  %4123 = vst [vmem:[#allocation2 + $0x8] sm:$0xff] %v4115_v50  ;;  %v4130_v5 = vpack.c.bf16 %v4115_v50, %v4114_v54 }
0x1008   : > { %4124 = vst [vmem:[#allocation2 + $0x10] sm:$0xff] %v4116_v26  ;;  %v4117_v16 = vadd.f32 %v18329_v24, %v4105_v44  ;;  %15335 = vmatprep.mubr.bf16.mxu0 %v4130_v5 }
0x100a   : > { %4125 = vst [vmem:[#allocation2 + $0x18] sm:$0xff] %v4117_v16  ;;  %v4131_v45 = vpack.c.bf16 %v4117_v16, %v4116_v26 }
0x100c   : > { %15336 = vmatmul.mubr.bf16.vlgmr.msra.gmra.mrb[88].mxu0 %v4131_v45 }
0x100d   : > { %13898 = vmatpush3.bf16.msra.mxu0 %v15650_v41 }
0x100e   : > { %13899 = vmatprep.subr.bf16.mxu0 %v15653_v4 }
0x100f   : > { %v4748_v17 = vld [vmem:[#allocation2 + $0x3] ss:$16 sm:$0x3] }
0x1010   : > { %v4059_v8 = vpop.xlane.xlu0 %4058 }
0x1011   : > { %v4070_v58 = vmul.f32 0.0078125, %v4059_v8  ;;  %13900 = vmatpush3.bf16.msra.mxu0 %v15654_v33  ;;  %v4272_v54 = vld [vmem:[#allocation2 + $0x1] ss:$4 sm:$0xff]  ;;  %v4280_v13 = vld [vmem:[#allocation2 + $0x3] ss:$4 sm:$0xff] }
0x1012   : > { %v4061_v7 = vpop.xlane.xlu1 %4060  ;;  %13901 = vmatprep.subr.bf16.mxu0 %v15657_v53  ;;  %v4268_v29 = vld [vmem:[#allocation2] ss:$4 sm:$0xff]  ;;  %v4276_v41 = vld [vmem:[#allocation2 + $0x2] ss:$4 sm:$0xff] }
0x1013   : > { %v4078_v39 = vadd.f32 1e-05, %v4070_v58  ;;  %v4071_v51 = vmul.f32 0.0078125, %v4061_v7  ;;  %v15683_v33 = vld [vmem:[#allocation9 + $0x208] sm:$0xff]   ;;  %v15685_v58 = vld [vmem:[#allocation9 + $0x210] sm:$0xff]   ;;  %v15687_v7 = vld [vmem:[#allocation9 + $0x218] sm:$0xff]  }
0x1014   : > { %v4063_v22 = vpop.xlane.xlu0 %4062  ;;  %v15684_v8 = vld [vmem:[#allocation9 + $0x1c8] sm:$0xff]  }
0x1015   : > { %16633 = vrsqrt.f32 %v4078_v39  ;;  %v4079_v46 = vadd.f32 1e-05, %v4071_v51  ;;  %v4072_v48 = vmul.f32 0.0078125, %v4063_v22  ;;  %13902 = vmatpush3.bf16.msra.mxu0 %v15658_v52  ;;  %v15686_v52 = vld [vmem:[#allocation9 + $0x1d0] sm:$0xff]   ;;  %v15689_v39 = vld [vmem:[#allocation9 + $0x220] sm:$0xff]   ;;  %v15691_v22 = vld [vmem:[#allocation9 + $0x228] sm:$0xff]  }
0x1016   : > { %v4065_v57 = vpop.xlane.xlu1 %4064  ;;  %13903 = vmatprep.subr.bf16.mxu0 %v15661_v37  ;;  %v15688_v37 = vld [vmem:[#allocation9 + $0x1d8] sm:$0xff]   ;;  %v15690_v51 = vld [vmem:[#allocation9 + $0x1e0] sm:$0xff]  }
0x1017   : > { %16635 = vrsqrt.f32 %v4079_v46  ;;  %v4080_v34 = vadd.f32 1e-05, %v4072_v48  ;;  %v4073_v9 = vmul.f32 0.0078125, %v4065_v57  ;;  %v15692_v46 = vld [vmem:[#allocation9 + $0x1e8] sm:$0xff]   ;;  %v15693_v48 = vld [vmem:[#allocation9 + $0x230] sm:$0xff]   ;;  %v15695_v57 = vld [vmem:[#allocation9 + $0x238] sm:$0xff]  }
0x1019   : > { %16637 = vrsqrt.f32 %v4080_v34  ;;  %v4081_v40 = vadd.f32 1e-05, %v4073_v9  ;;  %13904 = vmatpush3.bf16.msra.mxu0 %v15662_v15  ;;  %v15694_v15 = vld [vmem:[#allocation9 + $0x1f0] sm:$0xff]   ;;  %v15696_v9 = vld [vmem:[#allocation9 + $0x1f8] sm:$0xff]  }
0x101a   : > { %13905 = vmatprep.subr.bf16.mxu0 %v15665_v47 }
0x101b   : > { %16639 = vrsqrt.f32 %v4081_v40  ;;  %v4745_v40 = vld [vmem:[#allocation2 + $0x2] ss:$16 sm:$0x3] }
0x101d   : > { %13906 = vmatpush3.bf16.msra.mxu0 %v15666_v42 }
0x101e   : > { %13907 = vmatprep.subr.bf16.mxu0 %v15669_v35  ;;  %v15697_v35 = vld [vmem:[#allocation9 + $0x300] sm:$0xff]  }
0x101f   : > { %v16634_v36 = vpop.eup %16633 }
0x1020   : > { %v4094_v25 = vmul.f32 %v16634_v36, %v18310_v60  ;;  %v15698_v36 = vld [vmem:[#allocation9 + $0x2c0] sm:$0xff]  }
0x1021   : > { %v16636_v59 = vpop.eup %16635  ;;  %13908 = vmatpush3.bf16.msra.mxu0 %v15670_v3  ;;  %v4764_v3 = vld [vmem:[#allocation2 + $0x7] ss:$16 sm:$0x3] }
0x1022   : > { %v4095_v2 = vmul.f32 %v16636_v59, %v18312_v62  ;;  %v4106_v63 = vmul.f32 %v18326_v61, %v4094_v25  ;;  %13909 = vmatprep.subr.bf16.mxu0 %v15673_v23  ;;  %v15699_v59 = vld [vmem:[#allocation9 + $0x308] sm:$0xff]  }
0x1023   : > { %v16638_v20 = vpop.eup %16637 }
0x1024   : > { %v4096_v38 = vmul.f32 %v16638_v20, %v18316_v56  ;;  %v4107_v55 = vmul.f32 %v18326_v61, %v4095_v2  ;;  %v4118_v18 = vadd.f32 %v18329_v24, %v4106_v63  ;;  %v15700_v2 = vld [vmem:[#allocation9 + $0x2c8] sm:$0xff]   ;;  %v15701_v63 = vld [vmem:[#allocation9 + $0x310] sm:$0xff]   ;;  %v15703_v20 = vld [vmem:[#allocation9 + $0x318] sm:$0xff]  }
0x1025   : > { %v16640_v49 = vpop.eup %16639  ;;  %13910 = vmatpush3.bf16.msra.mxu0 %v15674_v10 }
0x1026   : > { %v4097_v60 = vmul.f32 %v16640_v49, %v18320_v6  ;;  %v4119_v1 = vadd.f32 %v18329_v24, %v4107_v55  ;;  %4126 = vst [vmem:[#allocation2 + $0x20] sm:$0xff] %v4118_v18  ;;  %v4108_v62 = vmul.f32 %v18326_v61, %v4096_v38  ;;  %13911 = vmatprep.subr.bf16.mxu0 %v15677_v43  ;;  %v15702_v43 = vld [vmem:[#allocation9 + $0x2d0] sm:$0xff]   ;;  %v15704_v38 = vld [vmem:[#allocation9 + $0x2d8] sm:$0xff]   ;;  %v15705_v55 = vld [vmem:[#allocation9 + $0x320] sm:$0xff]  }
0x1027   : > { %v15707_v49 = vld [vmem:[#allocation9 + $0x328] sm:$0xff]  }
0x1028   : > { %4127 = vst [vmem:[#allocation2 + $0x28] sm:$0xff] %v4119_v1  ;;  %v4132_v27 = vpack.c.bf16 %v4119_v1, %v4118_v18  ;;  %v4109_v56 = vmul.f32 %v18326_v61, %v4097_v60  ;;  %v4120_v30 = vadd.f32 %v18329_v24, %v4108_v62  ;;  %v15706_v18 = vld [vmem:[#allocation9 + $0x2e0] sm:$0xff]   ;;  %v15709_v60 = vld [vmem:[#allocation9 + $0x330] sm:$0xff]   ;;  %v15711_v62 = vld [vmem:[#allocation9 + $0x338] sm:$0xff]  }
0x1029   : > { %13912 = vmatpush3.bf16.msra.mxu0 %v15678_v14  ;;  %v15708_v14 = vld [vmem:[#allocation9 + $0x2e8] sm:$0xff]   ;;  %v15710_v1 = vld [vmem:[#allocation9 + $0x2f0] sm:$0xff]  }
0x102a   : > { %15339 = vmatprep.mubr.bf16.mxu0 %v4132_v27  ;;  %v4121_v11 = vadd.f32 %v18329_v24, %v4109_v56  ;;  %4128 = vst [vmem:[#allocation2 + $0x30] sm:$0xff] %v4120_v30  ;;  %13968 = vmatprep.subr.bf16.mxu0 %v15681_v21  ;;  %v15682_v24 = vld [vmem:[#allocation9 + $0x1c0] sm:$0xff]   ;;  %v15712_v56 = vld [vmem:[#allocation9 + $0x2f8] sm:$0xff]  }
0x102c   : > { %4129 = vst [vmem:[#allocation2 + $0x38] sm:$0xff] %v4121_v11  ;;  %v4133_v6 = vpack.c.bf16 %v4121_v11, %v4120_v30  ;;  %v4760_v30 = vld [vmem:[#allocation2 + $0x6] ss:$16 sm:$0x3] }
0x102e   : > { %15340 = vmatmul.mubr.bf16.gmra.mrb[92].mxu0 %v4133_v6  ;;  %v15713_v6 = vld [vmem:[#allocation9 + $0x400] sm:$0xff]  }
0x1031   : > { %v4749_v19 = vld [vmem:[#allocation2 + $0x3] ss:$16 sm:$0xc]  ;;  %v4746_v47 = vld [vmem:[#allocation2 + $0x2] ss:$16 sm:$0xc] }
0x1032   : > { %v4750_v28 = vor.u32 %v4749_v19, %v4748_v17  ;;  %v4765_v34 = vld [vmem:[#allocation2 + $0x7] ss:$16 sm:$0xc]  ;;  %v4747_v42 = vor.u32 %v4746_v47, %v4745_v40  ;;  %v4761_v21 = vld [vmem:[#allocation2 + $0x6] ss:$16 sm:$0xc] }
0x1033   : > { %v4274_v50 = vld [vmem:[#allocation2 + $0x21] ss:$4 sm:$0xff]  ;;  %v4282_v26 = vld [vmem:[#allocation2 + $0x23] ss:$4 sm:$0xff]  ;;  %v4270_v61 = vld [vmem:[#allocation2 + $0x20] ss:$4 sm:$0xff]  ;;  %v4766_v23 = vor.u32 %v4765_v34, %v4764_v3  ;;  %v4762_v11 = vor.u32 %v4761_v21, %v4760_v30 }
0x1034   : > { %v4284_v44 = vpack.c.bf16 %v4274_v50, %v4272_v54  ;;  %v4286_v5 = vpack.c.bf16 %v4282_v26, %v4280_v13  ;;  %v4283_v16 = vpack.c.bf16 %v4270_v61, %v4268_v29  ;;  %v4278_v45 = vld [vmem:[#allocation2 + $0x22] ss:$4 sm:$0xff]  ;;  %v18354_v53 = vpack.c.bf16 %v4750_v28, %v4750_v28  ;;  %v4781_v27 = vld [vmem:[#allocation2 + $0xb] ss:$16 sm:$0xc] }
0x1035   : > { %v4285_v4 = vpack.c.bf16 %v4278_v45, %v4276_v41  ;;  %v18357_v25 = vpack.c.bf16 %v4747_v42, %v4747_v42  ;;  %v18359_v10 = vpack.c.bf16 %v4766_v23, %v4766_v23  ;;  %v4780_v17 = vld [vmem:[#allocation2 + $0xb] ss:$16 sm:$0x3]  ;;  %v15714_v54 = vld [vmem:[#allocation9 + $0x3c0] sm:$0xff]   ;;  %v18363_v13 = vpack.c.bf16 %v4762_v11, %v4762_v11  ;;  %v15717_v26 = vld [vmem:[#allocation9 + $0x410] sm:$0xff]  }
0x1036   : > { %4575 = vmatprep.mubr.bf16.mxu0 %v4284_v44  ;;  %4616 = vmatprep.mubr.bf16.mxu1 %v4286_v5  ;;  %v4782_v19 = vor.u32 %v4781_v27, %v4780_v17  ;;  %v15715_v29 = vld [vmem:[#allocation9 + $0x408] sm:$0xff]   ;;  %v15718_v61 = vld [vmem:[#allocation9 + $0x3d0] sm:$0xff]   ;;  %v15719_v44 = vld [vmem:[#allocation9 + $0x418] sm:$0xff]  }
0x1037   : > { %4576 = vmatmul.mubr.bf16.vlgmr.msra.gmra.mrb[96].mxu0 %v4283_v16  ;;  %4617 = vmatmul.mubr.bf16.vlgmr.msra.gmra.mrb[64].mxu1 %v4285_v4  ;;  %v15716_v50 = vld [vmem:[#allocation9 + $0x3c8] sm:$0xff]   ;;  %v15720_v5 = vld [vmem:[#allocation9 + $0x3d8] sm:$0xff]   ;;  %v15721_v16 = vld [vmem:[#allocation9 + $0x420] sm:$0xff]  }
0x1038   : > { %13969 = vmatpush3.bf16.msra.mxu0 %v15682_v24  ;;  %5911 = vmatprep.mubr.bf16.mxu0 %v18354_v53  ;;  %v18365_v28 = vpack.c.bf16 %v4782_v19, %v4782_v19  ;;  %v15722_v41 = vld [vmem:[#allocation9 + $0x3e0] sm:$0xff]   ;;  %v15723_v45 = vld [vmem:[#allocation9 + $0x428] sm:$0xff]   ;;  %v15725_v4 = vld [vmem:[#allocation9 + $0x430] sm:$0xff]  }
0x1039   : > { %13970 = vmatprep.subr.bf16.mxu0 %v15683_v33  ;;  %v15724_v24 = vld [vmem:[#allocation9 + $0x3e8] sm:$0xff]   ;;  %v15726_v33 = vld [vmem:[#allocation9 + $0x3f0] sm:$0xff]   ;;  %v15745_v47 = vld [vmem:[%s18930_s4] sm:$0xff]  }
0x103a   : > { %15345 = vmatprep.mubr.msk.bf16.mxu1 %vm693_vm0, %v15745_v47  ;;  %v15733_v40 = vld [vmem:[#allocation9 + $0x510] sm:$0xff]   ;;  %v15736_v3 = vld [vmem:[#allocation9 + $0x4d8] sm:$0xff]   ;;  %v15737_v23 = vld [vmem:[#allocation9 + $0x520] sm:$0xff]  }
0x103b   : > { %v15734_v42 = vld [vmem:[#allocation9 + $0x4d0] sm:$0xff]   ;;  %v15755_v47 = vld [vmem:[#allocation9 + $0x198] sm:$0xff]  }
0x103c   : > { %13971 = vmatpush3.bf16.msra.mxu0 %v15684_v8  ;;  %v15727_v8 = vld [vmem:[#allocation9 + $0x438] sm:$0xff]  }
0x103d   : > { %13972 = vmatprep.subr.bf16.mxu0 %v15685_v58  ;;  %v4777_v58 = vld [vmem:[#allocation2 + $0xa] ss:$16 sm:$0xc] }
0x1040   : > { %13973 = vmatpush3.bf16.msra.mxu0 %v15686_v52  ;;  %v4797_v52 = vld [vmem:[#allocation2 + $0xf] ss:$16 sm:$0xc] }
0x1041   : > { %13974 = vmatprep.subr.bf16.mxu0 %v15687_v7  ;;  %v15728_v7 = vld [vmem:[#allocation9 + $0x3f8] sm:$0xff]  }
0x1044   : > { %13975 = vmatpush3.bf16.msra.mxu0 %v15688_v37  ;;  %v4776_v37 = vld [vmem:[#allocation2 + $0xa] ss:$16 sm:$0x3] }
0x1045   : > { %13976 = vmatprep.subr.bf16.mxu0 %v15689_v39  ;;  %v4778_v39 = vor.u32 %v4777_v58, %v4776_v37  ;;  %v15748_v58 = vld [vmem:[#allocation9 + $0x140] sm:$0xff]  }
0x1046   : > { %v4743_v37 = vld [vmem:[#allocation2 + $0x1] ss:$16 sm:$0xc] }
0x1048   : > { %13977 = vmatpush3.bf16.msra.mxu0 %v15690_v51  ;;  %v15729_v51 = vld [vmem:[#allocation9 + $0x500] sm:$0xff]  }
0x1049   : > { %13978 = vmatprep.subr.bf16.mxu0 %v15691_v22  ;;  %v4796_v22 = vld [vmem:[#allocation2 + $0xf] ss:$16 sm:$0x3] }
0x104c   : > { %13979 = vmatpush3.bf16.msra.mxu0 %v15692_v46  ;;  %v4798_v46 = vor.u32 %v4797_v52, %v4796_v22  ;;  %v15751_v52 = vld [vmem:[%s18930_s4 + $0x10] sm:$0xff]  }
0x104d   : > { %13980 = vmatprep.subr.bf16.mxu0 %v15693_v48  ;;  %v15730_v48 = vld [vmem:[#allocation9 + $0x4c0] sm:$0xff]  }
0x104e   : > { %v18374_v34 = vpack.c.bf16 %v4798_v46, %v4798_v46  ;;  %v4742_v22 = vld [vmem:[#allocation2 + $0x1] ss:$16 sm:$0x3] }
0x104f   : > { %v4744_v46 = vor.u32 %v4743_v37, %v4742_v22  ;;  %v15777_v37 = vld [vmem:[#allocation9 + $0x2b0] sm:$0xff]  }
0x1050   : > { %13981 = vmatpush3.bf16.msra.mxu0 %v15694_v15  ;;  %v18369_v15 = vpack.c.bf16 %v4778_v39, %v4778_v39  ;;  %v15750_v39 = vld [vmem:[#allocation9 + $0x148] sm:$0xff]  }
0x1051   : > { %13982 = vmatprep.subr.bf16.mxu0 %v15695_v57  ;;  %v15731_v57 = vld [vmem:[#allocation9 + $0x508] sm:$0xff]  }
0x1054   : > { %13983 = vmatpush3.bf16.msra.mxu0 %v15696_v9  ;;  %v15732_v9 = vld [vmem:[#allocation9 + $0x4c8] sm:$0xff]  }
0x1055   : > { %14012 = vmatprep.subr.bf16.mxu0 %v15697_v35  ;;  %v15735_v35 = vld [vmem:[#allocation9 + $0x518] sm:$0xff]  }
0x1057   : > { %5912 = vmatmul.mubr.bf16.vlgmr.msra.gmra.mrb[100].mxu0 %v18357_v25 }
0x1058   : > { %14013 = vmatpush3.bf16.msra.mxu0 %v15698_v36  ;;  %5991 = vmatprep.mubr.bf16.mxu0 %v18359_v10  ;;  %v15738_v36 = vld [vmem:[#allocation9 + $0x4e0] sm:$0xff]  }
0x1059   : > { %14014 = vmatprep.subr.bf16.mxu0 %v15699_v59  ;;  %v15739_v59 = vld [vmem:[#allocation9 + $0x528] sm:$0xff]  }
0x105c   : > { %14015 = vmatpush3.bf16.msra.mxu0 %v15700_v2  ;;  %v15740_v2 = vld [vmem:[#allocation9 + $0x4e8] sm:$0xff]  }
0x105d   : > { %14016 = vmatprep.subr.bf16.mxu0 %v15701_v63  ;;  %v15741_v63 = vld [vmem:[#allocation9 + $0x530] sm:$0xff]  }
0x1060   : > { %14017 = vmatpush3.bf16.msra.mxu0 %v15702_v43  ;;  %v15742_v43 = vld [vmem:[#allocation9 + $0x4f0] sm:$0xff]  }
0x1061   : > { %14018 = vmatprep.subr.bf16.mxu0 %v15703_v20  ;;  %v15743_v20 = vld [vmem:[#allocation9 + $0x538] sm:$0xff]  }
0x1064   : > { %14019 = vmatpush3.bf16.msra.mxu0 %v15704_v38  ;;  %v4793_v38 = vld [vmem:[#allocation2 + $0xe] ss:$16 sm:$0xc] }
0x1065   : > { %14020 = vmatprep.subr.bf16.mxu0 %v15705_v55  ;;  %v15744_v55 = vld [vmem:[#allocation9 + $0x4f8] sm:$0xff]  }
0x1068   : > { %14021 = vmatpush3.bf16.msra.mxu0 %v15706_v18  ;;  %v4792_v18 = vld [vmem:[#allocation2 + $0xe] ss:$16 sm:$0x3] }
0x1069   : > { %14022 = vmatprep.subr.bf16.mxu0 %v15707_v49  ;;  %v4794_v49 = vor.u32 %v4793_v38, %v4792_v18  ;;  %v15762_v38 = vld [vmem:[#allocation9 + $0x170] sm:$0xff]  }
0x106a   : > { %v4740_v18 = vld [vmem:[#allocation2] ss:$16 sm:$0xc] }
0x106c   : > { %14023 = vmatpush3.bf16.msra.mxu0 %v15708_v14  ;;  %v18379_v14 = vpack.c.bf16 %v4794_v49, %v4794_v49  ;;  %v4757_v49 = vld [vmem:[#allocation2 + $0x5] ss:$16 sm:$0xc] }
0x106d   : > { %14024 = vmatprep.subr.bf16.mxu0 %v15709_v60 }
0x1070   : > { %14025 = vmatpush3.bf16.msra.mxu0 %v15710_v1 }
0x1071   : > { %14026 = vmatprep.subr.bf16.mxu0 %v15711_v62 }
0x1074   : > { %14027 = vmatpush3.bf16.msra.mxu0 %v15712_v56 }
0x1075   : > { %14056 = vmatprep.subr.bf16.mxu0 %v15713_v6 }
0x1077   : > { %5992 = vmatmul.mubr.bf16.vlgmr.msra.gmra.mrb[104].mxu0 %v18363_v13 }
0x1078   : > { %14057 = vmatpush3.bf16.msra.mxu0 %v15714_v54  ;;  %6071 = vmatprep.mubr.bf16.mxu0 %v18365_v28 }
0x1079   : > { %14058 = vmatprep.subr.bf16.mxu0 %v15715_v29 }
0x107c   : > { %14059 = vmatpush3.bf16.msra.mxu0 %v15716_v50 }
0x107d   : > { %14060 = vmatprep.subr.bf16.mxu0 %v15717_v26 }
0x1080   : > { %14061 = vmatpush3.bf16.msra.mxu0 %v15718_v61 }
0x1081   : > { %14062 = vmatprep.subr.bf16.mxu0 %v15719_v44 }
0x1084   : > { %14063 = vmatpush3.bf16.msra.mxu0 %v15720_v5 }
0x1085   : > { %14064 = vmatprep.subr.bf16.mxu0 %v15721_v16 }
0x1088   : > { %14065 = vmatpush3.bf16.msra.mxu0 %v15722_v41 }
0x1089   : > { %14066 = vmatprep.subr.bf16.mxu0 %v15723_v45 }
0x108c   : > { %14067 = vmatpush3.bf16.msra.mxu0 %v15724_v24 }
0x108d   : > { %14068 = vmatprep.subr.bf16.mxu0 %v15725_v4 }
0x1090   : > { %14069 = vmatpush3.bf16.msra.mxu0 %v15726_v33  ;;  %v15747_v33 = vld [vmem:[#allocation9 + $0x180] sm:$0xff]  }
0x1091   : > { %14070 = vmatprep.subr.bf16.mxu0 %v15727_v8  ;;  %v15746_v8 = vld [vmem:[%s18930_s4 + $0x8] sm:$0xff]  }
0x1094   : > { %14071 = vmatpush3.bf16.msra.mxu0 %v15728_v7  ;;  %v15749_v7 = vld [vmem:[#allocation9 + $0x188] sm:$0xff]  }
0x1095   : > { %14100 = vmatprep.subr.bf16.mxu0 %v15729_v51  ;;  %v15753_v51 = vld [vmem:[#allocation9 + $0x190] sm:$0xff]  }
0x1097   : > { %6072 = vmatmul.mubr.bf16.vlgmr.msra.gmra.mrb[108].mxu0 %v18369_v15 }
0x1098   : > { %14101 = vmatpush3.bf16.msra.mxu0 %v15730_v48  ;;  %6151 = vmatprep.mubr.bf16.mxu0 %v18374_v34  ;;  %v15752_v48 = vld [vmem:[%s18930_s4 + $0x18] sm:$0xff]  }
0x1099   : > { %14102 = vmatprep.subr.bf16.mxu0 %v15731_v57  ;;  %v15754_v57 = vld [vmem:[#allocation9 + $0x150] sm:$0xff]  }
0x109c   : > { %14103 = vmatpush3.bf16.msra.mxu0 %v15732_v9  ;;  %v18409_v9 = vpack.c.bf16 %v4744_v46, %v4744_v46 }
0x109d   : > { %14104 = vmatprep.subr.bf16.mxu0 %v15733_v40  ;;  %v15756_v40 = vld [vmem:[#allocation9 + $0x158] sm:$0xff]  }
0x10a0   : > { %14105 = vmatpush3.bf16.msra.mxu0 %v15734_v42  ;;  %v15757_v42 = vld [vmem:[#allocation9 + $0x1a0] sm:$0xff]  }
0x10a1   : > { %14106 = vmatprep.subr.bf16.mxu0 %v15735_v35  ;;  %v15758_v35 = vld [vmem:[#allocation9 + $0x160] sm:$0xff]  }
0x10a4   : > { %14107 = vmatpush3.bf16.msra.mxu0 %v15736_v3  ;;  %v15759_v3 = vld [vmem:[#allocation9 + $0x1a8] sm:$0xff]  }
0x10a5   : > { %14108 = vmatprep.subr.bf16.mxu0 %v15737_v23  ;;  %v15760_v23 = vld [vmem:[#allocation9 + $0x168] sm:$0xff]  }
0x10a8   : > { %14109 = vmatpush3.bf16.msra.mxu0 %v15738_v36 }
0x10a9   : > { %14110 = vmatprep.subr.bf16.mxu0 %v15739_v59  ;;  %v15761_v59 = vld [vmem:[#allocation9 + $0x1b0] sm:$0xff]  }
0x10ac   : > { %14111 = vmatpush3.bf16.msra.mxu0 %v15740_v2 }
0x10ad   : > { %14112 = vmatprep.subr.bf16.mxu0 %v15741_v63 }
0x10b0   : > { %14113 = vmatpush3.bf16.msra.mxu0 %v15742_v43 }
0x10b1   : > { %14114 = vmatprep.subr.bf16.mxu0 %v15743_v20 }
0x10b4   : > { %14115 = vmatpush3.bf16.msra.mxu0 %v15744_v55  ;;  %v15763_v55 = vld [vmem:[#allocation9 + $0x1b8] sm:$0xff]  }
0x10b7   : > { %6152 = vmatmul.mubr.bf16.vlgmr.msra.gmra.mrb[112].mxu0 %v18379_v14 }
0x10df   : > { %v18382_v60 = vpop.f32.mrb[88].mxu0 }
0x10e0   : > { %v18384_v1 = vpop.f32.mrb[89].mxu0 }
0x10e1   : > { %v18386_v62 = vpop.f32.mrb[90].mxu0 }
0x10e2   : > { %v18388_v21 = vpop.f32.mrb[91].mxu0 }
0x1101   : > { %v18390_v27 = vpop.f32.mrb[92].mxu0 }
0x1102   : > { %v18392_v56 = vpop.f32.mrb[93].mxu0 }
0x1103   : > { %v18394_v30 = vpop.f32.mrb[94].mxu0 }
0x1104   : > { %v18396_v11 = vpop.f32.mrb[95].mxu0 }
0x110a   : > { %v13913_v6 = vpop.f32.mrb[96].mxu0  ;;  %v13935_v17 = vpop.f32.mrb[64].mxu1 }
0x110b   : > { %v13914_v19 = vpop.f32.mrb[97].mxu0  ;;  %v13936_v54 = vpop.f32.mrb[65].mxu1 }
0x110c   : > { %v13915_v29 = vadd.f32 %v13914_v19, %v13913_v6  ;;  %v13937_v50 = vadd.f32 %v13936_v54, %v13935_v17  ;;  %v13916_v26 = vpop.f32.mrb[98].mxu0  ;;  %v13938_v61 = vpop.f32.mrb[66].mxu1  ;;  %v15764_v6 = vld [vmem:[#allocation9 + $0x178] sm:$0xff]   ;;  %v4739_v17 = vld [vmem:[#allocation2] ss:$16 sm:$0x3] }
0x110d   : > { %v13917_v44 = vpop.f32.mrb[99].mxu0  ;;  %v13939_v5 = vpop.f32.mrb[67].mxu1  ;;  %v4741_v19 = vor.u32 %v4740_v18, %v4739_v17  ;;  %v15765_v54 = vld [vmem:[#allocation9 + $0x280] sm:$0xff]   ;;  %v15785_v18 = vld [vmem:[#allocation9 + $0x390] sm:$0xff]   ;;  %v15788_v17 = vld [vmem:[#allocation9 + $0x358] sm:$0xff]  }
0x110e   : > { %v4619_v16 = vadd.f32 %v13937_v50, %v13915_v29  ;;  %v13918_v41 = vadd.f32 %v13917_v44, %v13916_v26  ;;  %v13940_v45 = vadd.f32 %v13939_v5, %v13938_v61  ;;  %v4756_v29 = vld [vmem:[#allocation2 + $0x5] ss:$16 sm:$0x3]  ;;  %v15767_v44 = vld [vmem:[#allocation9 + $0x288] sm:$0xff]  }
0x110f   : > { %v4758_v50 = vor.u32 %v4757_v49, %v4756_v29  ;;  %v15766_v26 = vld [vmem:[#allocation9 + $0x240] sm:$0xff]   ;;  %v18415_v61 = vpack.c.bf16 %v4741_v19, %v4741_v19  ;;  %v15786_v49 = vld [vmem:[#allocation9 + $0x350] sm:$0xff]   ;;  %v15791_v29 = vld [vmem:[#allocation9 + $0x3a8] sm:$0xff]  }
0x1110   : > { %v4622_v24 = vadd.f32 %v13940_v45, %v13918_v41  ;;  %v15769_v41 = vld [vmem:[#allocation9 + $0x290] sm:$0xff]   ;;  %v15789_v19 = vld [vmem:[#allocation9 + $0x3a0] sm:$0xff]  }
0x1111   : > { %v18417_v5 = vpack.c.bf16 %v4758_v50, %v4758_v50  ;;  %v15770_v45 = vld [vmem:[#allocation9 + $0x250] sm:$0xff]   ;;  %v15792_v50 = vld [vmem:[#allocation9 + $0x368] sm:$0xff]  }
0x1112   : > { %v4633_v4 = vpack.c.bf16 %v4622_v24, %v4619_v16  ;;  %v15768_v16 = vld [vmem:[#allocation9 + $0x248] sm:$0xff]   ;;  %v15771_v24 = vld [vmem:[#allocation9 + $0x298] sm:$0xff]  }
0x1114   : > { %15343 = vmatprep.subr.bf16.mxu1 %v4633_v4 }
0x1115   : > { %15344 = vmatpush3.bf16.msra.mxu1 %v4633_v4  ;;  %v15772_v4 = vld [vmem:[#allocation9 + $0x258] sm:$0xff]  }
0x1116   : > { %13946 = vmatprep.subr.bf16.mxu1 %v15747_v33  ;;  %v15773_v33 = vld [vmem:[#allocation9 + $0x2a0] sm:$0xff]  }
0x1118   : > { %15346 = vmatmul.mubr.msk.bf16.vlgmr.msra.gmra.mrb[68].mxu1 %vm693_vm0, %v15746_v8  ;;  %v15774_v8 = vld [vmem:[#allocation9 + $0x260] sm:$0xff]  }
0x1119   : > { %13947 = vmatpush3.bf16.msra.mxu1 %v15748_v58  ;;  %15349 = vmatprep.mubr.msk.bf16.mxu1 %vm693_vm0, %v15751_v52  ;;  %v15775_v58 = vld [vmem:[#allocation9 + $0x2a8] sm:$0xff]  }
0x111a   : > { %13948 = vmatprep.subr.bf16.mxu1 %v15749_v7  ;;  %v15776_v52 = vld [vmem:[#allocation9 + $0x268] sm:$0xff]  }
0x111d   : > { %13949 = vmatpush3.bf16.msra.mxu1 %v15750_v39 }
0x111e   : > { %13950 = vmatprep.subr.bf16.mxu1 %v15753_v51 }
0x1120   : > { %15350 = vmatmul.mubr.msk.bf16.gmra.mrb[72].mxu1 %vm693_vm0, %v15752_v48  ;;  %v15778_v48 = vld [vmem:[#allocation9 + $0x270] sm:$0xff]  }
0x1121   : > { %13951 = vmatpush3.bf16.msra.mxu1 %v15754_v57  ;;  %5871 = vmatprep.mubr.bf16.mxu1 %v18409_v9  ;;  %v15779_v57 = vld [vmem:[#allocation9 + $0x2b8] sm:$0xff]  }
0x1122   : > { %13952 = vmatprep.subr.bf16.mxu1 %v15755_v47  ;;  %v4753_v47 = vld [vmem:[#allocation2 + $0x4] ss:$16 sm:$0xc] }
0x1125   : > { %13953 = vmatpush3.bf16.msra.mxu1 %v15756_v40  ;;  %v4773_v40 = vld [vmem:[#allocation2 + $0x9] ss:$16 sm:$0xc] }
0x1126   : > { %13954 = vmatprep.subr.bf16.mxu1 %v15757_v42  ;;  %v15780_v42 = vld [vmem:[#allocation9 + $0x278] sm:$0xff]  }
0x1129   : > { %13955 = vmatpush3.bf16.msra.mxu1 %v15758_v35  ;;  %v4752_v35 = vld [vmem:[#allocation2 + $0x4] ss:$16 sm:$0x3] }
0x112a   : > { %v13984_v36 = vpop.f32.mrb[100].mxu0  ;;  %13956 = vmatprep.subr.bf16.mxu1 %v15759_v3  ;;  %v4754_v3 = vor.u32 %v4753_v47, %v4752_v35  ;;  %v15799_v47 = vld [vmem:[#allocation9 + $0x488] sm:$0xff]   ;;  %v15801_v35 = vld [vmem:[#allocation9 + $0x490] sm:$0xff]  }
0x112b   : > { %v13985_v2 = vpop.f32.mrb[101].mxu0 }
0x112c   : > { %v18413_v63 = vadd.f32 %v13985_v2, %v13984_v36  ;;  %v13987_v43 = vpop.f32.mrb[102].mxu0  ;;  %v4772_v36 = vld [vmem:[#allocation2 + $0x9] ss:$16 sm:$0x3]  ;;  %v15782_v2 = vld [vmem:[#allocation9 + $0x340] sm:$0xff]  }
0x112d   : > { %v13988_v20 = vpop.f32.mrb[103].mxu0  ;;  %13957 = vmatpush3.bf16.msra.mxu1 %v15760_v23  ;;  %v15781_v23 = vld [vmem:[#allocation9 + $0x380] sm:$0xff]   ;;  %v18423_v43 = vpack.c.bf16 %v4754_v3, %v4754_v3  ;;  %v15802_v3 = vld [vmem:[#allocation9 + $0x450] sm:$0xff]  }
0x112e   : > { %13958 = vmatprep.subr.bf16.mxu1 %v15761_v59  ;;  %v4774_v59 = vor.u32 %v4773_v40, %v4772_v36  ;;  %v15783_v20 = vld [vmem:[#allocation9 + $0x388] sm:$0xff]   ;;  %v15804_v36 = vld [vmem:[#allocation9 + $0x458] sm:$0xff]  }
0x1131   : > { %13959 = vmatpush3.bf16.msra.mxu1 %v15762_v38  ;;  %v18425_v38 = vpack.c.bf16 %v4774_v59, %v4774_v59  ;;  %v15805_v59 = vld [vmem:[#allocation9 + $0x4a0] sm:$0xff]  }
0x1132   : > { %13960 = vmatprep.subr.bf16.mxu1 %v15763_v55  ;;  %v15784_v55 = vld [vmem:[#allocation9 + $0x348] sm:$0xff]  }
0x1135   : > { %13961 = vmatpush3.bf16.msra.mxu1 %v15764_v6  ;;  %v15787_v6 = vld [vmem:[#allocation9 + $0x398] sm:$0xff]  }
0x1136   : > { %13990 = vmatprep.subr.bf16.mxu1 %v15765_v54  ;;  %v15790_v54 = vld [vmem:[#allocation9 + $0x360] sm:$0xff]  }
0x1138   : > { %5872 = vmatmul.mubr.bf16.vlgmr.msra.gmra.mrb[76].mxu1 %v18415_v61 }
0x1139   : > { %13991 = vmatpush3.bf16.msra.mxu1 %v15766_v26  ;;  %5951 = vmatprep.mubr.bf16.mxu1 %v18417_v5 }
0x113a   : > { %13992 = vmatprep.subr.bf16.mxu1 %v15767_v44  ;;  %v15793_v44 = vld [vmem:[#allocation9 + $0x3b0] sm:$0xff]  }
0x113d   : > { %13993 = vmatpush3.bf16.msra.mxu1 %v15768_v16 }
0x113e   : > { %13994 = vmatprep.subr.bf16.mxu1 %v15769_v41 }
0x1141   : > { %13995 = vmatpush3.bf16.msra.mxu1 %v15770_v45 }
0x1142   : > { %13996 = vmatprep.subr.bf16.mxu1 %v15771_v24 }
0x1145   : > { %13997 = vmatpush3.bf16.msra.mxu1 %v15772_v4  ;;  %v15794_v4 = vld [vmem:[#allocation9 + $0x370] sm:$0xff]  }
0x1146   : > { %13998 = vmatprep.subr.bf16.mxu1 %v15773_v33  ;;  %v15795_v33 = vld [vmem:[#allocation9 + $0x3b8] sm:$0xff]  }
0x1149   : > { %13999 = vmatpush3.bf16.msra.mxu1 %v15774_v8  ;;  %v4769_v8 = vld [vmem:[#allocation2 + $0x8] ss:$16 sm:$0xc] }
0x114a   : > { %v14028_v7 = vpop.f32.mrb[104].mxu0  ;;  %14000 = vmatprep.subr.bf16.mxu1 %v15775_v58  ;;  %v4789_v58 = vld [vmem:[#allocation2 + $0xd] ss:$16 sm:$0xc] }
0x114b   : > { %v14029_v39 = vpop.f32.mrb[105].mxu0 }
0x114c   : > { %v18421_v51 = vadd.f32 %v14029_v39, %v14028_v7  ;;  %v14031_v22 = vpop.f32.mrb[106].mxu0  ;;  %v4768_v7 = vld [vmem:[#allocation2 + $0x8] ss:$16 sm:$0x3]  ;;  %v15797_v39 = vld [vmem:[#allocation9 + $0x480] sm:$0xff]  }
0x114d   : > { %v14032_v46 = vpop.f32.mrb[107].mxu0  ;;  %14001 = vmatpush3.bf16.msra.mxu1 %v15776_v52  ;;  %v15796_v52 = vld [vmem:[#allocation9 + $0x378] sm:$0xff]  }
0x114e   : > { %14002 = vmatprep.subr.bf16.mxu1 %v15777_v37  ;;  %v4770_v37 = vor.u32 %v4769_v8, %v4768_v7  ;;  %v4788_v22 = vld [vmem:[#allocation2 + $0xd] ss:$16 sm:$0x3]  ;;  %v15817_v7 = vld [vmem:[#allocation9 + $0x990] sm:$0xff]  }
0x114f   : > { %v4790_v46 = vor.u32 %v4789_v58, %v4788_v22  ;;  %v15815_v8 = vld [vmem:[#allocation9 + $0x988] sm:$0xff]   ;;  %v6794_v58 = vshrl.u32 %v18409_v9, 16  ;;  %v15820_v22 = vld [vmem:[#allocation9 + $0x958] sm:$0xff]  }
0x1151   : > { %14003 = vmatpush3.bf16.msra.mxu1 %v15778_v48  ;;  %v15798_v48 = vld [vmem:[#allocation9 + $0x440] sm:$0xff]   ;;  %v18433_v40 = vpack.c.bf16 %v4790_v46, %v4790_v46 }
0x1152   : > { %14004 = vmatprep.subr.bf16.mxu1 %v15779_v57  ;;  %v18431_v57 = vpack.c.bf16 %v4770_v37, %v4770_v37  ;;  %v15818_v37 = vld [vmem:[#allocation9 + $0x950] sm:$0xff]   ;;  %v15821_v46 = vld [vmem:[#allocation9 + $0x9a0] sm:$0xff]  }
0x1155   : > { %14005 = vmatpush3.bf16.msra.mxu1 %v15780_v42  ;;  %v15800_v42 = vld [vmem:[#allocation9 + $0x448] sm:$0xff]  }
0x1156   : > { %14034 = vmatprep.subr.bf16.mxu1 %v15781_v23  ;;  %v15803_v23 = vld [vmem:[#allocation9 + $0x498] sm:$0xff]  }
0x1158   : > { %5952 = vmatmul.mubr.bf16.vlgmr.msra.gmra.mrb[80].mxu1 %v18423_v43 }
0x1159   : > { %14035 = vmatpush3.bf16.msra.mxu1 %v15782_v2  ;;  %6031 = vmatprep.mubr.bf16.mxu1 %v18425_v38  ;;  %v15806_v2 = vld [vmem:[#allocation9 + $0x460] sm:$0xff]  }
0x115a   : > { %14036 = vmatprep.subr.bf16.mxu1 %v15783_v20  ;;  %v15807_v20 = vld [vmem:[#allocation9 + $0x4a8] sm:$0xff]  }
0x115d   : > { %14037 = vmatpush3.bf16.msra.mxu1 %v15784_v55  ;;  %v15808_v55 = vld [vmem:[#allocation9 + $0x468] sm:$0xff]  }
0x115e   : > { %14038 = vmatprep.subr.bf16.mxu1 %v15785_v18 }
0x1161   : > { %14039 = vmatpush3.bf16.msra.mxu1 %v15786_v49  ;;  %v15809_v49 = vld [vmem:[#allocation9 + $0x4b0] sm:$0xff]  }
0x1162   : > { %14040 = vmatprep.subr.bf16.mxu1 %v15787_v6 }
0x1165   : > { %14041 = vmatpush3.bf16.msra.mxu1 %v15788_v17 }
0x1166   : > { %14042 = vmatprep.subr.bf16.mxu1 %v15789_v19 }
0x1169   : > { %14043 = vmatpush3.bf16.msra.mxu1 %v15790_v54 }
0x116a   : > { %v14072_v26 = vpop.f32.mrb[108].mxu0  ;;  %14044 = vmatprep.subr.bf16.mxu1 %v15791_v29  ;;  %v15810_v29 = vld [vmem:[#allocation9 + $0x470] sm:$0xff]  }
0x116b   : > { %v14073_v16 = vpop.f32.mrb[109].mxu0 }
0x116c   : > { %v18429_v41 = vadd.f32 %v14073_v16, %v14072_v26  ;;  %v14075_v45 = vpop.f32.mrb[110].mxu0  ;;  %v4785_v26 = vld [vmem:[#allocation2 + $0xc] ss:$16 sm:$0xc] }
0x116d   : > { %v14076_v24 = vpop.f32.mrb[111].mxu0  ;;  %14045 = vmatpush3.bf16.msra.mxu1 %v15792_v50  ;;  %v15811_v50 = vld [vmem:[#allocation9 + $0x4b8] sm:$0xff]  }
0x116e   : > { %14046 = vmatprep.subr.bf16.mxu1 %v15793_v44  ;;  %v15812_v44 = vld [vmem:[#allocation9 + $0x478] sm:$0xff]   ;;  %v15813_v24 = vld [vmem:[#allocation9 + $0x980] sm:$0xff]  }
0x116f   : > { %v4784_v16 = vld [vmem:[#allocation2 + $0xc] ss:$16 sm:$0x3] }
0x1170   : > { %v4786_v45 = vor.u32 %v4785_v26, %v4784_v16  ;;  %v15838_v26 = vld [vmem:[#allocation9 + $0xa60] sm:$0xff]   ;;  %v15840_v16 = vld [vmem:[#allocation9 + $0xa68] sm:$0xff]  }
0x1171   : > { %14047 = vmatpush3.bf16.msra.mxu1 %v15794_v4  ;;  %v15814_v4 = vld [vmem:[#allocation9 + $0x940] sm:$0xff]  }
0x1172   : > { %14048 = vmatprep.subr.bf16.mxu1 %v15795_v33  ;;  %v18439_v33 = vpack.c.bf16 %v4786_v45, %v4786_v45  ;;  %v15841_v45 = vld [vmem:[#allocation9 + $0xab0] sm:$0xff]  }
0x1175   : > { %14049 = vmatpush3.bf16.msra.mxu1 %v15796_v52  ;;  %v15816_v52 = vld [vmem:[#allocation9 + $0x948] sm:$0xff]  }
0x1176   : > { %14078 = vmatprep.subr.bf16.mxu1 %v15797_v39  ;;  %v15819_v39 = vld [vmem:[#allocation9 + $0x998] sm:$0xff]  }
0x1178   : > { %6032 = vmatmul.mubr.bf16.vlgmr.msra.gmra.mrb[84].mxu1 %v18431_v57 }
0x1179   : > { %14079 = vmatpush3.bf16.msra.mxu1 %v15798_v48  ;;  %6111 = vmatprep.mubr.bf16.mxu1 %v18433_v40  ;;  %v15822_v48 = vld [vmem:[#allocation9 + $0x960] sm:$0xff]  }
0x117a   : > { %14080 = vmatprep.subr.bf16.mxu1 %v15799_v47  ;;  %v15823_v47 = vld [vmem:[#allocation9 + $0x9a8] sm:$0xff]  }
0x117d   : > { %14081 = vmatpush3.bf16.msra.mxu1 %v15800_v42  ;;  %v15824_v42 = vld [vmem:[#allocation9 + $0x968] sm:$0xff]  }
0x117e   : > { %14082 = vmatprep.subr.bf16.mxu1 %v15801_v35  ;;  %v15825_v35 = vld [vmem:[#allocation9 + $0x9b0] sm:$0xff]  }
0x1181   : > { %14083 = vmatpush3.bf16.msra.mxu1 %v15802_v3  ;;  %v15826_v3 = vld [vmem:[#allocation9 + $0x970] sm:$0xff]  }
0x1182   : > { %14084 = vmatprep.subr.bf16.mxu1 %v15803_v23  ;;  %v15827_v23 = vld [vmem:[#allocation9 + $0x9b8] sm:$0xff]  }
0x1185   : > { %14085 = vmatpush3.bf16.msra.mxu1 %v15804_v36  ;;  %v15828_v36 = vld [vmem:[#allocation9 + $0x978] sm:$0xff]  }
0x1186   : > { %14086 = vmatprep.subr.bf16.mxu1 %v15805_v59  ;;  %v15829_v59 = vld [vmem:[#allocation9 + $0xa80] sm:$0xff]  }
0x1189   : > { %14087 = vmatpush3.bf16.msra.mxu1 %v15806_v2  ;;  %v15830_v2 = vld [vmem:[#allocation9 + $0xa40] sm:$0xff]  }
0x118a   : > { %v14116_v18 = vpop.f32.mrb[112].mxu0  ;;  %14088 = vmatprep.subr.bf16.mxu1 %v15807_v20  ;;  %v6791_v20 = vshrl.u32 %v18415_v61, 16 }
0x118b   : > { %v14117_v6 = vpop.f32.mrb[113].mxu0 }
0x118c   : > { %v18437_v17 = vadd.f32 %v14117_v6, %v14116_v18  ;;  %v14119_v19 = vpop.f32.mrb[114].mxu0  ;;  %v6806_v18 = vshrl.u32 %v18417_v5, 16  ;;  %v15833_v6 = vld [vmem:[#allocation9 + $0xa90] sm:$0xff]  }
0x118d   : > { %v14120_v54 = vpop.f32.mrb[115].mxu0  ;;  %14089 = vmatpush3.bf16.msra.mxu1 %v15808_v55  ;;  %v15831_v55 = vld [vmem:[#allocation9 + $0xa88] sm:$0xff]   ;;  %v15834_v19 = vld [vmem:[#allocation9 + $0xa50] sm:$0xff]  }
0x118e   : > { %14090 = vmatprep.subr.bf16.mxu1 %v15809_v49  ;;  %v15832_v49 = vld [vmem:[#allocation9 + $0xa48] sm:$0xff]   ;;  %v15835_v54 = vld [vmem:[#allocation9 + $0xa98] sm:$0xff]  }
0x1191   : > { %14091 = vmatpush3.bf16.msra.mxu1 %v15810_v29  ;;  %v15836_v29 = vld [vmem:[#allocation9 + $0xa58] sm:$0xff]  }
0x1192   : > { %14092 = vmatprep.subr.bf16.mxu1 %v15811_v50  ;;  %v15837_v50 = vld [vmem:[#allocation9 + $0xaa0] sm:$0xff]  }
0x1195   : > { %14093 = vmatpush3.bf16.msra.mxu1 %v15812_v44  ;;  %v15839_v44 = vld [vmem:[#allocation9 + $0xaa8] sm:$0xff]  }
0x1196   : > { %14127 = vmatprep.subr.bf16.mxu1 %v15813_v24  ;;  %v15842_v24 = vld [vmem:[#allocation9 + $0xa70] sm:$0xff]  }
0x1198   : > { %6112 = vmatmul.mubr.bf16.vlgmr.msra.gmra.mrb[88].mxu1 %v18439_v33 }
0x1199   : > { %14128 = vmatpush3.bf16.msra.mxu1 %v15814_v4  ;;  %7654 = vmatprep.mubr.bf16.mxu1 %v6794_v58  ;;  %v15843_v4 = vld [vmem:[#allocation9 + $0xab8] sm:$0xff]  }
0x119a   : > { %14129 = vmatprep.subr.bf16.mxu1 %v15815_v8  ;;  %v15844_v8 = vld [vmem:[#allocation9 + $0xa78] sm:$0xff]  }
0x119d   : > { %14130 = vmatpush3.bf16.msra.mxu1 %v15816_v52  ;;  %v15845_v52 = vld [vmem:[#allocation9 + $0xb80] sm:$0xff]  }
0x119e   : > { %14131 = vmatprep.subr.bf16.mxu1 %v15817_v7  ;;  %v15846_v7 = vld [vmem:[#allocation9 + $0xb40] sm:$0xff]  }
0x11a1   : > { %14132 = vmatpush3.bf16.msra.mxu1 %v15818_v37  ;;  %v6803_v37 = vshrl.u32 %v18423_v43, 16 }
0x11a2   : > { %14133 = vmatprep.subr.bf16.mxu1 %v15819_v39  ;;  %v15847_v39 = vld [vmem:[#allocation9 + $0xb88] sm:$0xff]  }
0x11a5   : > { %14134 = vmatpush3.bf16.msra.mxu1 %v15820_v22  ;;  %v6818_v22 = vshrl.u32 %v18425_v38, 16 }
0x11a6   : > { %14135 = vmatprep.subr.bf16.mxu1 %v15821_v46  ;;  %v15848_v46 = vld [vmem:[#allocation9 + $0xb48] sm:$0xff]  }
0x11a9   : > { %14136 = vmatpush3.bf16.msra.mxu1 %v15822_v48  ;;  %v15849_v48 = vld [vmem:[#allocation9 + $0xb90] sm:$0xff]  }
0x11aa   : > { %14137 = vmatprep.subr.bf16.mxu1 %v15823_v47  ;;  %v15850_v47 = vld [vmem:[#allocation9 + $0xb50] sm:$0xff]  }
0x11ad   : > { %14138 = vmatpush3.bf16.msra.mxu1 %v15824_v42  ;;  %v15851_v42 = vld [vmem:[#allocation9 + $0xb98] sm:$0xff]  }
0x11ae   : > { %14139 = vmatprep.subr.bf16.mxu1 %v15825_v35  ;;  %v15852_v35 = vld [vmem:[#allocation9 + $0xb58] sm:$0xff]  }
0x11b1   : > { %14140 = vmatpush3.bf16.msra.mxu1 %v15826_v3  ;;  %v15853_v3 = vld [vmem:[#allocation9 + $0xba0] sm:$0xff]  }
0x11b2   : > { %14141 = vmatprep.subr.bf16.mxu1 %v15827_v23  ;;  %v15854_v23 = vld [vmem:[#allocation9 + $0xb60] sm:$0xff]  }
0x11b5   : > { %14142 = vmatpush3.bf16.msra.mxu1 %v15828_v36  ;;  %v15855_v36 = vld [vmem:[#allocation9 + $0xba8] sm:$0xff]  }
0x11b6   : > { %14171 = vmatprep.subr.bf16.mxu1 %v15829_v59  ;;  %v12918_v59 = vld [vmem:[#allocation15 + $0x3] ss:$0 sm:$0xff] }
0x11b8   : > { %7655 = vmatmul.mubr.bf16.vlgmr.msra.gmra.mrb[92].mxu1 %v6791_v20 }
0x11b9   : > { %14172 = vmatpush3.bf16.msra.mxu1 %v15830_v2  ;;  %7734 = vmatprep.mubr.bf16.mxu1 %v6806_v18  ;;  %v15856_v2 = vld [vmem:[#allocation9 + $0xb68] sm:$0xff]  }
0x11ba   : > { %14173 = vmatprep.subr.bf16.mxu1 %v15831_v55  ;;  %v4246_v55 = vadd.f32 %v18382_v60, %v12918_v59 }
0x11bd   : > { %14174 = vmatpush3.bf16.msra.mxu1 %v15832_v49  ;;  %v15857_v49 = vld [vmem:[#allocation9 + $0xbb0] sm:$0xff]  }
0x11be   : > { %14175 = vmatprep.subr.bf16.mxu1 %v15833_v6  ;;  %v4238_v6 = vadd.f32 %v12918_v59, %v18384_v1  ;;  %v15860_v1 = vld [vmem:[#allocation9 + $0xb78] sm:$0xff]  }
0x11c1   : > { %14176 = vmatpush3.bf16.msra.mxu1 %v15834_v19 }
0x11c2   : > { %14177 = vmatprep.subr.bf16.mxu1 %v15835_v54  ;;  %v4249_v54 = vadd.f32 %v18386_v62, %v12918_v59  ;;  %v4262_v62 = vadd.f32 %v18390_v27, %v12918_v59 }
0x11c5   : > { %14178 = vmatpush3.bf16.msra.mxu1 %v15836_v29 }
0x11c6   : > { %14179 = vmatprep.subr.bf16.mxu1 %v15837_v50 }
0x11c9   : > { %14180 = vmatpush3.bf16.msra.mxu1 %v15838_v26  ;;  %v4241_v26 = vadd.f32 %v12918_v59, %v18388_v21  ;;  %v4254_v21 = vadd.f32 %v12918_v59, %v18392_v56  ;;  %v15863_v56 = vld [vmem:[#allocation9 + $0xc88] sm:$0xff]  }
0x11ca   : > { %14181 = vmatprep.subr.bf16.mxu1 %v15839_v44 }
0x11cd   : > { %14182 = vmatpush3.bf16.msra.mxu1 %v15840_v16 }
0x11ce   : > { %14183 = vmatprep.subr.bf16.mxu1 %v15841_v45  ;;  %v15858_v45 = vld [vmem:[#allocation9 + $0xb70] sm:$0xff]  }
0x11d1   : > { %14184 = vmatpush3.bf16.msra.mxu1 %v15842_v24 }
0x11d2   : > { %14185 = vmatprep.subr.bf16.mxu1 %v15843_v4  ;;  %v15859_v4 = vld [vmem:[#allocation9 + $0xbb8] sm:$0xff]  }
0x11d5   : > { %14186 = vmatpush3.bf16.msra.mxu1 %v15844_v8 }
0x11d6   : > { %14215 = vmatprep.subr.bf16.mxu1 %v15845_v52  ;;  %v15861_v52 = vld [vmem:[#allocation9 + $0xc80] sm:$0xff]  }
0x11d8   : > { %7735 = vmatmul.mubr.bf16.vlgmr.msra.gmra.mrb[96].mxu1 %v6803_v37 }
0x11d9   : > { %14216 = vmatpush3.bf16.msra.mxu1 %v15846_v7  ;;  %7814 = vmatprep.mubr.bf16.mxu1 %v6818_v22 }
0x11da   : > { %14217 = vmatprep.subr.bf16.mxu1 %v15847_v39  ;;  %v4265_v39 = vadd.f32 %v18394_v30, %v12918_v59  ;;  %v15925_v30 = vld [vmem:[%s18972_s10] sm:$0xff]  }
0x11db   : > { %15355 = vmatprep.mubr.msk.bf16.mxu0 %vm6188_vm2, %v15925_v30  ;;  %v15881_v30 = vld [vmem:[#allocation9 + $0x590] sm:$0xff]  }
0x11dd   : > { %14218 = vmatpush3.bf16.msra.mxu1 %v15848_v46 }
0x11de   : > { %14219 = vmatprep.subr.bf16.mxu1 %v15849_v48 }
0x11e1   : > { %14220 = vmatpush3.bf16.msra.mxu1 %v15850_v47  ;;  %v4257_v47 = vadd.f32 %v12918_v59, %v18396_v11  ;;  %v6830_v11 = vshrl.u32 %v18433_v40, 16  ;;  %v15864_v59 = vld [vmem:[#allocation9 + $0xc48] sm:$0xff]  }
0x11e2   : > { %14221 = vmatprep.subr.bf16.mxu1 %v15851_v42 }
0x11e5   : > { %14222 = vmatpush3.bf16.msra.mxu1 %v15852_v35 }
0x11e6   : > { %14223 = vmatprep.subr.bf16.mxu1 %v15853_v3  ;;  %v15862_v3 = vld [vmem:[#allocation9 + $0xc40] sm:$0xff]  }
0x11e9   : > { %14224 = vmatpush3.bf16.msra.mxu1 %v15854_v23 }
0x11ea   : > { %14225 = vmatprep.subr.bf16.mxu1 %v15855_v36  ;;  %v6815_v36 = vshrl.u32 %v18431_v57, 16 }
0x11eb   : > { %v15347_v19 = vpop.f32.mrb[68].mxu1 }
0x11ec   : > { %v18460_v29 = vadd.f32 %v15347_v19, %v4246_v55  ;;  %v4700_v50 = vpop.f32.mrb[69].mxu1  ;;  %v15865_v55 = vld [vmem:[#allocation9 + $0xc90] sm:$0xff]   ;;  %v15868_v19 = vld [vmem:[#allocation9 + $0xc58] sm:$0xff]  }
0x11ed   : > { %v18463_v44 = vadd.f32 %v4700_v50, %v4238_v6  ;;  %v15348_v16 = vpop.f32.mrb[70].mxu1  ;;  %14226 = vmatpush3.bf16.msra.mxu1 %v15856_v2  ;;  %v15867_v6 = vld [vmem:[#allocation9 + $0xc98] sm:$0xff]   ;;  %v15870_v50 = vld [vmem:[#allocation9 + $0xc60] sm:$0xff]  }
0x11ee   : > { %v18465_v24 = vadd.f32 %v15348_v16, %v4249_v54  ;;  %v4703_v60 = vpop.f32.mrb[71].mxu1  ;;  %14227 = vmatprep.subr.bf16.mxu1 %v15857_v49  ;;  %v15866_v49 = vld [vmem:[#allocation9 + $0xc50] sm:$0xff]   ;;  %v15869_v54 = vld [vmem:[#allocation9 + $0xca0] sm:$0xff]   ;;  %v15872_v16 = vld [vmem:[#allocation9 + $0xc68] sm:$0xff]  }
0x11ef   : > { %v18467_v8 = vadd.f32 %v4703_v60, %v4241_v26  ;;  %v15871_v26 = vld [vmem:[#allocation9 + $0xca8] sm:$0xff]  }
0x11f1   : > { %14228 = vmatpush3.bf16.msra.mxu1 %v15858_v45  ;;  %v15873_v45 = vld [vmem:[#allocation9 + $0xcb0] sm:$0xff]  }
0x11f2   : > { %14229 = vmatprep.subr.bf16.mxu1 %v15859_v4 }
0x11f3   : > { %v15351_v7 = vpop.f32.mrb[72].mxu1 }
0x11f4   : > { %v18472_v46 = vadd.f32 %v15351_v7, %v4262_v62  ;;  %v4716_v48 = vpop.f32.mrb[73].mxu1  ;;  %v15875_v7 = vld [vmem:[#allocation9 + $0xcb8] sm:$0xff]  }
0x11f5   : > { %v18475_v42 = vadd.f32 %v4716_v48, %v4254_v21  ;;  %v15352_v35 = vpop.f32.mrb[74].mxu1  ;;  %14230 = vmatpush3.bf16.msra.mxu1 %v15860_v1  ;;  %v15876_v48 = vld [vmem:[#allocation9 + $0xc78] sm:$0xff]  }
0x11f6   : > { %v18477_v23 = vadd.f32 %v15352_v35, %v4265_v39  ;;  %v4719_v27 = vpop.f32.mrb[75].mxu1  ;;  %14259 = vmatprep.subr.bf16.mxu1 %v15861_v52  ;;  %v15874_v52 = vld [vmem:[#allocation9 + $0xc70] sm:$0xff]   ;;  %v15878_v35 = vld [vmem:[#allocation9 + $0x540] sm:$0xff]  }
0x11f7   : > { %v18483_v2 = vadd.f32 %v4719_v27, %v4257_v47  ;;  %v15877_v47 = vld [vmem:[#allocation9 + $0x580] sm:$0xff]   ;;  %v15879_v27 = vld [vmem:[#allocation9 + $0x588] sm:$0xff]  }
0x11f8   : > { %7815 = vmatmul.mubr.bf16.vlgmr.msra.gmra.mrb[100].mxu1 %v6815_v36 }
0x11f9   : > { %14260 = vmatpush3.bf16.msra.mxu1 %v15862_v3  ;;  %7894 = vmatprep.mubr.bf16.mxu1 %v6830_v11  ;;  %v6827_v3 = vshrl.u32 %v18439_v33, 16 }
0x11fa   : > { %14261 = vmatprep.subr.bf16.mxu1 %v15863_v56  ;;  %v15880_v56 = vld [vmem:[#allocation9 + $0x548] sm:$0xff]  }
0x11fd   : > { %14262 = vmatpush3.bf16.msra.mxu1 %v15864_v59  ;;  %v15883_v59 = vld [vmem:[#allocation9 + $0x598] sm:$0xff]  }
0x11fe   : > { %14263 = vmatprep.subr.bf16.mxu1 %v15865_v55  ;;  %v15884_v55 = vld [vmem:[#allocation9 + $0x558] sm:$0xff]  }
0x1201   : > { %14264 = vmatpush3.bf16.msra.mxu1 %v15866_v49  ;;  %v15885_v49 = vld [vmem:[#allocation9 + $0x5a0] sm:$0xff]  }
0x1202   : > { %14265 = vmatprep.subr.bf16.mxu1 %v15867_v6  ;;  %v15886_v6 = vld [vmem:[#allocation9 + $0x560] sm:$0xff]  }
0x1205   : > { %14266 = vmatpush3.bf16.msra.mxu1 %v15868_v19  ;;  %v15887_v19 = vld [vmem:[#allocation9 + $0x5a8] sm:$0xff]  }
0x1206   : > { %14267 = vmatprep.subr.bf16.mxu1 %v15869_v54  ;;  %v15888_v54 = vld [vmem:[#allocation9 + $0x568] sm:$0xff]  }
0x1209   : > { %14268 = vmatpush3.bf16.msra.mxu1 %v15870_v50  ;;  %v15889_v50 = vld [vmem:[#allocation9 + $0x5b0] sm:$0xff]  }
0x120a   : > { %14269 = vmatprep.subr.bf16.mxu1 %v15871_v26 }
0x120b   : > { %v13962_v60 = vpop.f32.mrb[76].mxu1 }
0x120c   : > { %v13963_v4 = vpop.f32.mrb[77].mxu1 }
0x120d   : > { %v13964_v1 = vadd.f32 %v13963_v4, %v13962_v60  ;;  %v13965_v62 = vpop.f32.mrb[78].mxu1  ;;  %14270 = vmatpush3.bf16.msra.mxu1 %v15872_v16  ;;  %v15890_v4 = vld [vmem:[#allocation9 + $0x570] sm:$0xff]  }
0x120e   : > { %v13966_v21 = vpop.f32.mrb[79].mxu1  ;;  %14271 = vmatprep.subr.bf16.mxu1 %v15873_v45  ;;  %v15891_v62 = vld [vmem:[#allocation9 + $0x5b8] sm:$0xff]  }
0x120f   : > { %v5914_v39 = vadd.f32 %v18413_v63, %v13964_v1  ;;  %v15882_v63 = vld [vmem:[#allocation9 + $0x550] sm:$0xff]   ;;  %v15892_v21 = vld [vmem:[#allocation9 + $0x578] sm:$0xff]  }
0x1211   : > { %14272 = vmatpush3.bf16.msra.mxu1 %v15874_v52 }
0x1212   : > { %14273 = vmatprep.subr.bf16.mxu1 %v15875_v7 }
0x1215   : > { %14274 = vmatpush3.bf16.msra.mxu1 %v15876_v48  ;;  %v15893_v48 = vld [vmem:[#allocation9 + $0x680] sm:$0xff]  }
0x1216   : > { %14303 = vmatprep.subr.bf16.mxu1 %v15877_v47  ;;  %v15894_v47 = vld [vmem:[#allocation9 + $0x640] sm:$0xff]  }
0x1218   : > { %7895 = vmatmul.mubr.bf16.vlgmr.msra.gmra.mrb[104].mxu1 %v6827_v3 }
0x1219   : > { %14304 = vmatpush3.bf16.msra.mxu1 %v15878_v35  ;;  %8742 = vmatprep.mubr.bf16.mxu1 %v18409_v9  ;;  %v15895_v35 = vld [vmem:[#allocation9 + $0x688] sm:$0xff]  }
0x121a   : > { %14305 = vmatprep.subr.bf16.mxu1 %v15879_v27  ;;  %v15896_v27 = vld [vmem:[#allocation9 + $0x648] sm:$0xff]  }
0x121d   : > { %14306 = vmatpush3.bf16.msra.mxu1 %v15880_v56  ;;  %v15897_v56 = vld [vmem:[#allocation9 + $0x690] sm:$0xff]  }
0x121e   : > { %14307 = vmatprep.subr.bf16.mxu1 %v15881_v30  ;;  %v15899_v30 = vld [vmem:[#allocation9 + $0x698] sm:$0xff]  }
0x1221   : > { %14308 = vmatpush3.bf16.msra.mxu1 %v15882_v63  ;;  %v15901_v63 = vld [vmem:[#allocation9 + $0x6a0] sm:$0xff]  }
0x1222   : > { %14309 = vmatprep.subr.bf16.mxu1 %v15883_v59  ;;  %v15902_v59 = vld [vmem:[#allocation9 + $0x660] sm:$0xff]  }
0x1225   : > { %14310 = vmatpush3.bf16.msra.mxu1 %v15884_v55  ;;  %v15903_v55 = vld [vmem:[#allocation9 + $0x6a8] sm:$0xff]  }
0x1226   : > { %14311 = vmatprep.subr.bf16.mxu1 %v15885_v49  ;;  %v15904_v49 = vld [vmem:[#allocation9 + $0x668] sm:$0xff]  }
0x1229   : > { %14312 = vmatpush3.bf16.msra.mxu1 %v15886_v6  ;;  %v15905_v6 = vld [vmem:[#allocation9 + $0x6b0] sm:$0xff]  }
0x122a   : > { %14313 = vmatprep.subr.bf16.mxu1 %v15887_v19 }
0x122b   : > { %v14006_v26 = vpop.f32.mrb[80].mxu1 }
0x122c   : > { %v14007_v16 = vpop.f32.mrb[81].mxu1 }
0x122d   : > { %v14008_v45 = vadd.f32 %v14007_v16, %v14006_v26  ;;  %v14009_v60 = vpop.f32.mrb[82].mxu1  ;;  %14314 = vmatpush3.bf16.msra.mxu1 %v15888_v54  ;;  %v15906_v16 = vld [vmem:[#allocation9 + $0x670] sm:$0xff]  }
0x122e   : > { %v14010_v1 = vpop.f32.mrb[83].mxu1  ;;  %14315 = vmatprep.subr.bf16.mxu1 %v15889_v50  ;;  %v15907_v60 = vld [vmem:[#allocation9 + $0x6b8] sm:$0xff]  }
0x122f   : > { %v5954_v52 = vadd.f32 %v14008_v45, %v5914_v39  ;;  %v15898_v39 = vld [vmem:[#allocation9 + $0x650] sm:$0xff]   ;;  %v15908_v1 = vld [vmem:[#allocation9 + $0x678] sm:$0xff]  }
0x1231   : > { %14316 = vmatpush3.bf16.msra.mxu1 %v15890_v4  ;;  %v5994_v7 = vadd.f32 %v18421_v51, %v5954_v52  ;;  %v15900_v51 = vld [vmem:[#allocation9 + $0x658] sm:$0xff]   ;;  %v15909_v52 = vld [vmem:[#allocation9 + $0x780] sm:$0xff]  }
0x1232   : > { %14317 = vmatprep.subr.bf16.mxu1 %v15891_v62 }
0x1235   : > { %14318 = vmatpush3.bf16.msra.mxu1 %v15892_v21  ;;  %v15910_v21 = vld [vmem:[#allocation9 + $0x740] sm:$0xff]  }
0x1236   : > { %14347 = vmatprep.subr.bf16.mxu1 %v15893_v48  ;;  %v15911_v48 = vld [vmem:[#allocation9 + $0x788] sm:$0xff]  }
0x1238   : > { %8743 = vmatmul.mubr.bf16.vlgmr.msra.gmra.mrb[108].mxu1 %v18415_v61 }
0x1239   : > { %14348 = vmatpush3.bf16.msra.mxu1 %v15894_v47  ;;  %8822 = vmatprep.mubr.bf16.mxu1 %v18417_v5  ;;  %v15912_v47 = vld [vmem:[#allocation9 + $0x748] sm:$0xff]  }
0x123a   : > { %14349 = vmatprep.subr.bf16.mxu1 %v15895_v35  ;;  %v15913_v35 = vld [vmem:[#allocation9 + $0x790] sm:$0xff]  }
0x123d   : > { %14350 = vmatpush3.bf16.msra.mxu1 %v15896_v27  ;;  %v15915_v27 = vld [vmem:[#allocation9 + $0x798] sm:$0xff]  }
0x123e   : > { %14351 = vmatprep.subr.bf16.mxu1 %v15897_v56  ;;  %v15917_v56 = vld [vmem:[#allocation9 + $0x7a0] sm:$0xff]  }
0x1241   : > { %14352 = vmatpush3.bf16.msra.mxu1 %v15898_v39  ;;  %v15918_v39 = vld [vmem:[#allocation9 + $0x760] sm:$0xff]  }
0x1242   : > { %14353 = vmatprep.subr.bf16.mxu1 %v15899_v30  ;;  %v15919_v30 = vld [vmem:[#allocation9 + $0x7a8] sm:$0xff]  }
0x1245   : > { %14354 = vmatpush3.bf16.msra.mxu1 %v15900_v51  ;;  %v15920_v51 = vld [vmem:[#allocation9 + $0x768] sm:$0xff]  }
0x1246   : > { %14355 = vmatprep.subr.bf16.mxu1 %v15901_v63  ;;  %v15921_v63 = vld [vmem:[#allocation9 + $0x7b0] sm:$0xff]  }
0x1249   : > { %14356 = vmatpush3.bf16.msra.mxu1 %v15902_v59 }
0x124a   : > { %14357 = vmatprep.subr.bf16.mxu1 %v15903_v55 }
0x124b   : > { %v14050_v19 = vpop.f32.mrb[84].mxu1 }
0x124c   : > { %v14051_v54 = vpop.f32.mrb[85].mxu1 }
0x124d   : > { %v14052_v50 = vadd.f32 %v14051_v54, %v14050_v19  ;;  %v14053_v26 = vpop.f32.mrb[86].mxu1  ;;  %14358 = vmatpush3.bf16.msra.mxu1 %v15904_v49  ;;  %v15922_v19 = vld [vmem:[#allocation9 + $0x770] sm:$0xff]  }
0x124e   : > { %v14054_v45 = vpop.f32.mrb[87].mxu1  ;;  %14359 = vmatprep.subr.bf16.mxu1 %v15905_v6 }
0x124f   : > { %v6034_v4 = vadd.f32 %v14052_v50, %v5994_v7  ;;  %v15914_v7 = vld [vmem:[#allocation9 + $0x750] sm:$0xff]   ;;  %v15923_v50 = vld [vmem:[#allocation9 + $0x7b8] sm:$0xff]  }
0x1250   : > { %v15924_v45 = vld [vmem:[#allocation9 + $0x778] sm:$0xff]  }
0x1251   : > { %14360 = vmatpush3.bf16.msra.mxu1 %v15906_v16  ;;  %v6074_v62 = vadd.f32 %v18429_v41, %v6034_v4  ;;  %v15916_v41 = vld [vmem:[#allocation9 + $0x758] sm:$0xff]  }
0x1252   : > { %14361 = vmatprep.subr.bf16.mxu1 %v15907_v60  ;;  %v15926_v60 = vld [vmem:[#allocation9 + $0x880] sm:$0xff]  }
0x1255   : > { %14362 = vmatpush3.bf16.msra.mxu1 %v15908_v1  ;;  %v15928_v1 = vld [vmem:[#allocation9 + $0xa00] sm:$0xff]  }
0x1256   : > { %14391 = vmatprep.subr.bf16.mxu1 %v15909_v52 }
0x1258   : > { %8823 = vmatmul.mubr.bf16.vlgmr.msra.gmra.mrb[112].mxu1 %v18423_v43 }
0x1259   : > { %14392 = vmatpush3.bf16.msra.mxu1 %v15910_v21  ;;  %8902 = vmatprep.mubr.bf16.mxu1 %v18425_v38  ;;  %v15927_v21 = vld [vmem:[%s18972_s10 + $0x8] sm:$0xff]  }
0x125a   : > { %14393 = vmatprep.subr.bf16.mxu1 %v15911_v48  ;;  %v15929_v48 = vld [vmem:[#allocation9 + $0x840] sm:$0xff]  }
0x125d   : > { %14394 = vmatpush3.bf16.msra.mxu1 %v15912_v47  ;;  %v15932_v47 = vld [vmem:[#allocation9 + $0xa08] sm:$0xff]  }
0x125e   : > { %14395 = vmatprep.subr.bf16.mxu1 %v15913_v35  ;;  %v15935_v35 = vld [vmem:[%s18972_s10 + $0x10] sm:$0xff]  }
0x1261   : > { %14396 = vmatpush3.bf16.msra.mxu1 %v15914_v7  ;;  %v15933_v7 = vld [vmem:[#allocation9 + $0x848] sm:$0xff]  }
0x1262   : > { %14397 = vmatprep.subr.bf16.mxu1 %v15915_v27  ;;  %v15934_v27 = vld [vmem:[#allocation9 + $0x9c8] sm:$0xff]  }
0x1265   : > { %14398 = vmatpush3.bf16.msra.mxu1 %v15916_v41  ;;  %v15936_v41 = vld [vmem:[#allocation9 + $0x890] sm:$0xff]  }
0x1266   : > { %14399 = vmatprep.subr.bf16.mxu1 %v15917_v56  ;;  %v15938_v56 = vld [vmem:[#allocation9 + $0xa10] sm:$0xff]  }
0x1269   : > { %14400 = vmatpush3.bf16.msra.mxu1 %v15918_v39  ;;  %v15937_v39 = vld [vmem:[%s18972_s10 + $0x18] sm:$0xff]  }
0x126a   : > { %14401 = vmatprep.subr.bf16.mxu1 %v15919_v30  ;;  %v15939_v30 = vld [vmem:[#allocation9 + $0x850] sm:$0xff]  }
0x126b   : > { %v14094_v59 = vpop.f32.mrb[88].mxu1 }
0x126c   : > { %v14095_v55 = vpop.f32.mrb[89].mxu1 }
0x126d   : > { %v14096_v49 = vadd.f32 %v14095_v55, %v14094_v59  ;;  %v14097_v6 = vpop.f32.mrb[90].mxu1  ;;  %14402 = vmatpush3.bf16.msra.mxu1 %v15920_v51  ;;  %v15940_v51 = vld [vmem:[#allocation9 + $0x9d0] sm:$0xff]   ;;  %v15942_v59 = vld [vmem:[#allocation9 + $0xa18] sm:$0xff]   ;;  %v6800_v55 = vshrl.u32 %v18354_v53, 16 }
0x126e   : > { %v14098_v54 = vpop.f32.mrb[91].mxu1  ;;  %14403 = vmatprep.subr.bf16.mxu1 %v15921_v63  ;;  %v15941_v63 = vld [vmem:[#allocation9 + $0x898] sm:$0xff]  }
0x126f   : > { %v6114_v26 = vadd.f32 %v14096_v49, %v6074_v62  ;;  %v15930_v62 = vld [vmem:[#allocation9 + $0x9c0] sm:$0xff]   ;;  %v15943_v49 = vld [vmem:[#allocation9 + $0x858] sm:$0xff]  }
0x1270   : > { %v15944_v6 = vld [vmem:[#allocation9 + $0x9d8] sm:$0xff]   ;;  %v15946_v54 = vld [vmem:[#allocation9 + $0xa20] sm:$0xff]  }
0x1271   : > { %v6154_v16 = vadd.f32 %v18437_v17, %v6114_v26  ;;  %14404 = vmatpush3.bf16.msra.mxu1 %v15922_v19  ;;  %v15931_v17 = vld [vmem:[#allocation9 + $0x888] sm:$0xff]   ;;  %v15945_v19 = vld [vmem:[#allocation9 + $0x8a0] sm:$0xff]  }
0x1272   : > { %14405 = vmatprep.subr.bf16.mxu1 %v15923_v50  ;;  %v15947_v50 = vld [vmem:[#allocation9 + $0x860] sm:$0xff]  }
0x1273   : > { %v6167_v4 = vpack.c.bf16 %v6154_v16, %v6154_v16  ;;  %v15948_v26 = vld [vmem:[#allocation9 + $0x9e0] sm:$0xff]   ;;  %v15949_v16 = vld [vmem:[#allocation9 + $0x8a8] sm:$0xff]  }
0x1275   : > { %15483 = vmatprep.subr.msk.bf16.mxu0 %vm6201_vm3, %v6167_v4  ;;  %14406 = vmatpush3.bf16.msra.mxu1 %v15924_v45  ;;  %v6203_v52 = vsel %vm6201_vm3, %v6167_v4, 0  ;;  %v15950_v45 = vld [vmem:[#allocation9 + $0xa28] sm:$0xff]  }
0x1276   : > { %15354 = vmatpush3.bf16.msra.mxu0 %v6203_v52  ;;  %14435 = vmatprep.subr.bf16.mxu1 %v15926_v60  ;;  %v15951_v60 = vld [vmem:[#allocation9 + $0x868] sm:$0xff]  }
0x1277   : > { %14149 = vmatprep.subr.bf16.mxu0 %v15928_v1  ;;  %v15952_v4 = vld [vmem:[#allocation9 + $0x9e8] sm:$0xff]   ;;  %v15953_v1 = vld [vmem:[#allocation9 + $0x8b0] sm:$0xff]  }
0x1278   : > { %8903 = vmatmul.mubr.bf16.vlgmr.msra.gmra.mrb[116].mxu1 %v18431_v57 }
0x1279   : > { %15356 = vmatmul.mubr.msk.bf16.vlgmr.msra.gmra.mrb[116].mxu0 %vm6188_vm2, %v15927_v21  ;;  %14436 = vmatpush3.bf16.msra.mxu1 %v15929_v48  ;;  %v15954_v21 = vld [vmem:[#allocation9 + $0xa30] sm:$0xff]  }
0x127a   : > { %8982 = vmatprep.mubr.bf16.mxu1 %v18433_v40  ;;  %14150 = vmatpush3.bf16.msra.mxu0 %v15930_v62 }
0x127b   : > { %14437 = vmatprep.subr.bf16.mxu1 %v15931_v17  ;;  %14151 = vmatprep.subr.bf16.mxu0 %v15932_v47  ;;  %v15955_v47 = vld [vmem:[#allocation9 + $0x870] sm:$0xff]  }
0x127c   : > { %15359 = vmatprep.mubr.msk.bf16.mxu0 %vm6188_vm2, %v15935_v35 }
0x127d   : > { %14438 = vmatpush3.bf16.msra.mxu1 %v15933_v7  ;;  %v15956_v7 = vld [vmem:[#allocation9 + $0x9f0] sm:$0xff]  }
0x127e   : > { %14152 = vmatpush3.bf16.msra.mxu0 %v15934_v27  ;;  %14439 = vmatprep.subr.bf16.mxu1 %v15936_v41  ;;  %v15957_v27 = vld [vmem:[#allocation9 + $0x8b8] sm:$0xff]  }
0x127f   : > { %14153 = vmatprep.subr.bf16.mxu0 %v15938_v56  ;;  %v15958_v41 = vld [vmem:[#allocation9 + $0xa38] sm:$0xff]  }
0x1280   : > { %v15959_v56 = vld [vmem:[#allocation9 + $0x878] sm:$0xff]  }
0x1281   : > { %15360 = vmatmul.mubr.msk.bf16.gmra.mrb[120].mxu0 %vm6188_vm2, %v15937_v39  ;;  %14440 = vmatpush3.bf16.msra.mxu1 %v15939_v30  ;;  %v15960_v39 = vld [vmem:[#allocation9 + $0x9f8] sm:$0xff]   ;;  %v15961_v30 = vld [vmem:[#allocation9 + $0xd80] sm:$0xff]  }
0x1282   : > { %14154 = vmatpush3.bf16.msra.mxu0 %v15940_v51  ;;  %7694 = vmatprep.mubr.bf16.mxu0 %v6800_v55  ;;  %v15962_v51 = vld [vmem:[#allocation9 + $0xb00] sm:$0xff]  }
0x1283   : > { %14441 = vmatprep.subr.bf16.mxu1 %v15941_v63  ;;  %14155 = vmatprep.subr.bf16.mxu0 %v15942_v59  ;;  %v15963_v63 = vld [vmem:[#allocation9 + $0xd40] sm:$0xff]  }
0x1284   : > { %v15964_v59 = vld [vmem:[#allocation9 + $0xac0] sm:$0xff]  }
0x1285   : > { %14442 = vmatpush3.bf16.msra.mxu1 %v15943_v49  ;;  %v6797_v49 = vshrl.u32 %v18357_v25, 16 }
0x1286   : > { %14156 = vmatpush3.bf16.msra.mxu0 %v15944_v6  ;;  %14443 = vmatprep.subr.bf16.mxu1 %v15945_v19  ;;  %v15965_v6 = vld [vmem:[#allocation9 + $0xd88] sm:$0xff]   ;;  %v9303_v19 = vrot.slane %v18409_v9, 1  ;;  %v16100_v9 = vld [vmem:[#allocation9 + $0x6d0] sm:$0xff]  }
0x1287   : > { %14157 = vmatprep.subr.bf16.mxu0 %v15946_v54  ;;  %v15966_v54 = vld [vmem:[#allocation9 + $0xb08] sm:$0xff]  }
0x1289   : > { %14444 = vmatpush3.bf16.msra.mxu1 %v15947_v50  ;;  %v6812_v50 = vshrl.u32 %v18359_v10, 16 }
0x128a   : > { %14158 = vmatpush3.bf16.msra.mxu0 %v15948_v26  ;;  %14445 = vmatprep.subr.bf16.mxu1 %v15949_v16  ;;  %v15967_v26 = vld [vmem:[#allocation9 + $0xd48] sm:$0xff]  }
0x128b   : > { %v14143_v52 = vpop.f32.mrb[92].mxu1  ;;  %14159 = vmatprep.subr.bf16.mxu0 %v15950_v45  ;;  %v15968_v16 = vld [vmem:[#allocation9 + $0xac8] sm:$0xff]   ;;  %v15969_v45 = vld [vmem:[#allocation9 + $0xd90] sm:$0xff]  }
0x128c   : > { %v14144_v48 = vpop.f32.mrb[93].mxu1 }
0x128d   : > { %v18520_v62 = vadd.f32 %v14144_v48, %v14143_v52  ;;  %v14146_v17 = vpop.f32.mrb[94].mxu1  ;;  %14446 = vmatpush3.bf16.msra.mxu1 %v15951_v60  ;;  %v15970_v60 = vld [vmem:[#allocation9 + $0xb10] sm:$0xff]   ;;  %v15973_v52 = vld [vmem:[#allocation9 + $0xd98] sm:$0xff]  }
0x128e   : > { %v14147_v35 = vpop.f32.mrb[95].mxu1  ;;  %14160 = vmatpush3.bf16.msra.mxu0 %v15952_v4  ;;  %14447 = vmatprep.subr.bf16.mxu1 %v15953_v1  ;;  %v15971_v4 = vld [vmem:[#allocation9 + $0xd50] sm:$0xff]   ;;  %v15975_v48 = vld [vmem:[#allocation9 + $0xd58] sm:$0xff]  }
0x128f   : > { %14161 = vmatprep.subr.bf16.mxu0 %v15954_v21  ;;  %v15972_v1 = vld [vmem:[#allocation9 + $0xad0] sm:$0xff]   ;;  %v15974_v21 = vld [vmem:[#allocation9 + $0xb18] sm:$0xff]   ;;  %v15978_v35 = vld [vmem:[#allocation9 + $0xb20] sm:$0xff]  }
0x1290   : > { %v15976_v17 = vld [vmem:[#allocation9 + $0xad8] sm:$0xff]  }
0x1291   : > { %14448 = vmatpush3.bf16.msra.mxu1 %v15955_v47  ;;  %v15977_v47 = vld [vmem:[#allocation9 + $0xda0] sm:$0xff]  }
0x1292   : > { %14162 = vmatpush3.bf16.msra.mxu0 %v15956_v7  ;;  %14449 = vmatprep.subr.bf16.mxu1 %v15957_v27  ;;  %v15979_v7 = vld [vmem:[#allocation9 + $0xd60] sm:$0xff]  }
0x1293   : > { %14163 = vmatprep.subr.bf16.mxu0 %v15958_v41  ;;  %v15980_v27 = vld [vmem:[#allocation9 + $0xae0] sm:$0xff]   ;;  %v15981_v41 = vld [vmem:[#allocation9 + $0xda8] sm:$0xff]  }
0x1295   : > { %14450 = vmatpush3.bf16.msra.mxu1 %v15959_v56  ;;  %v15982_v56 = vld [vmem:[#allocation9 + $0xb28] sm:$0xff]  }
0x1296   : > { %14164 = vmatpush3.bf16.msra.mxu0 %v15960_v39  ;;  %14479 = vmatprep.subr.bf16.mxu1 %v15961_v30  ;;  %v15983_v39 = vld [vmem:[#allocation9 + $0xd68] sm:$0xff]  }
0x1297   : > { %14193 = vmatprep.subr.bf16.mxu0 %v15962_v51  ;;  %v15984_v30 = vld [vmem:[#allocation9 + $0xae8] sm:$0xff]   ;;  %v15985_v51 = vld [vmem:[#allocation9 + $0xdb0] sm:$0xff]  }
0x1298   : > { %8983 = vmatmul.mubr.bf16.vlgmr.msra.gmra.mrb[120].mxu1 %v18439_v33 }
0x1299   : > { %7695 = vmatmul.mubr.bf16.vlgmr.msra.gmra.mrb[124].mxu0 %v6797_v49  ;;  %14480 = vmatpush3.bf16.msra.mxu1 %v15963_v63 }
0x129a   : > { %10134 = vmatprep.mubr.bf16.mxu1 %v9303_v19  ;;  %14194 = vmatpush3.bf16.msra.mxu0 %v15964_v59  ;;  %v15986_v59 = vld [vmem:[#allocation9 + $0xb30] sm:$0xff]  }
0x129b   : > { %7774 = vmatprep.mubr.bf16.mxu0 %v6812_v50  ;;  %14481 = vmatprep.subr.bf16.mxu1 %v15965_v6 }
0x129c   : > { %14195 = vmatprep.subr.bf16.mxu0 %v15966_v54 }
0x129d   : > { %14482 = vmatpush3.bf16.msra.mxu1 %v15967_v26  ;;  %v15987_v26 = vld [vmem:[#allocation9 + $0xd70] sm:$0xff]  }
0x129e   : > { %14196 = vmatpush3.bf16.msra.mxu0 %v15968_v16  ;;  %14483 = vmatprep.subr.bf16.mxu1 %v15969_v45  ;;  %v15988_v45 = vld [vmem:[#allocation9 + $0xaf0] sm:$0xff]  }
0x129f   : > { %14197 = vmatprep.subr.bf16.mxu0 %v15970_v60  ;;  %v15989_v60 = vld [vmem:[#allocation9 + $0xdb8] sm:$0xff]  }
0x12a1   : > { %14484 = vmatpush3.bf16.msra.mxu1 %v15971_v4  ;;  %v15990_v4 = vld [vmem:[#allocation9 + $0xb38] sm:$0xff]  }
0x12a2   : > { %14198 = vmatpush3.bf16.msra.mxu0 %v15972_v1  ;;  %14485 = vmatprep.subr.bf16.mxu1 %v15973_v52  ;;  %v15991_v1 = vld [vmem:[#allocation9 + $0xd78] sm:$0xff]  }
0x12a3   : > { %14199 = vmatprep.subr.bf16.mxu0 %v15974_v21  ;;  %v15992_v52 = vld [vmem:[#allocation9 + $0xaf8] sm:$0xff]   ;;  %v15993_v21 = vld [vmem:[#allocation9 + $0xe80] sm:$0xff]  }
0x12a5   : > { %14486 = vmatpush3.bf16.msra.mxu1 %v15975_v48  ;;  %v15994_v48 = vld [vmem:[#allocation9 + $0xc00] sm:$0xff]  }
0x12a6   : > { %14200 = vmatpush3.bf16.msra.mxu0 %v15976_v17  ;;  %14487 = vmatprep.subr.bf16.mxu1 %v15977_v47  ;;  %v15995_v17 = vld [vmem:[#allocation9 + $0xe40] sm:$0xff]   ;;  %v9302_v47 = vrot.slane %v18415_v61, 1  ;;  %v16130_v61 = vld [vmem:[#allocation9 + $0x810] sm:$0xff]  }
0x12a7   : > { %14201 = vmatprep.subr.bf16.mxu0 %v15978_v35  ;;  %v15996_v35 = vld [vmem:[#allocation9 + $0xbc0] sm:$0xff]  }
0x12a9   : > { %14488 = vmatpush3.bf16.msra.mxu1 %v15979_v7  ;;  %v6809_v7 = vshrl.u32 %v18363_v13, 16 }
0x12aa   : > { %14202 = vmatpush3.bf16.msra.mxu0 %v15980_v27  ;;  %14489 = vmatprep.subr.bf16.mxu1 %v15981_v41  ;;  %v15997_v27 = vld [vmem:[#allocation9 + $0xe88] sm:$0xff]   ;;  %v9307_v41 = vrot.slane %v18417_v5, 1  ;;  %v16132_v5 = vld [vmem:[#allocation9 + $0x7d0] sm:$0xff]  }
0x12ab   : > { %v14187_v63 = vpop.f32.mrb[96].mxu1  ;;  %14203 = vmatprep.subr.bf16.mxu0 %v15982_v56  ;;  %v15998_v56 = vld [vmem:[#allocation9 + $0xc08] sm:$0xff]  }
0x12ac   : > { %v14188_v6 = vpop.f32.mrb[97].mxu1 }
0x12ad   : > { %v18530_v19 = vadd.f32 %v14188_v6, %v14187_v63  ;;  %v14190_v54 = vpop.f32.mrb[98].mxu1  ;;  %14490 = vmatpush3.bf16.msra.mxu1 %v15983_v39  ;;  %v6824_v39 = vshrl.u32 %v18365_v28, 16  ;;  %v16001_v63 = vld [vmem:[#allocation9 + $0xe90] sm:$0xff]  }
0x12ae   : > { %v14191_v16 = vpop.f32.mrb[99].mxu1  ;;  %14204 = vmatpush3.bf16.msra.mxu0 %v15984_v30  ;;  %14491 = vmatprep.subr.bf16.mxu1 %v15985_v51  ;;  %v15999_v30 = vld [vmem:[#allocation9 + $0xe48] sm:$0xff]   ;;  %v16003_v6 = vld [vmem:[#allocation9 + $0xe50] sm:$0xff]  }
0x12af   : > { %14205 = vmatprep.subr.bf16.mxu0 %v15986_v59  ;;  %v16000_v51 = vld [vmem:[#allocation9 + $0xbc8] sm:$0xff]   ;;  %v16002_v59 = vld [vmem:[#allocation9 + $0xc10] sm:$0xff]   ;;  %v16006_v16 = vld [vmem:[#allocation9 + $0xc18] sm:$0xff]  }
0x12b0   : > { %v16004_v54 = vld [vmem:[#allocation9 + $0xbd0] sm:$0xff]  }
0x12b1   : > { %14492 = vmatpush3.bf16.msra.mxu1 %v15987_v26  ;;  %v16005_v26 = vld [vmem:[#allocation9 + $0xe98] sm:$0xff]  }
0x12b2   : > { %14206 = vmatpush3.bf16.msra.mxu0 %v15988_v45  ;;  %14493 = vmatprep.subr.bf16.mxu1 %v15989_v60  ;;  %v16007_v45 = vld [vmem:[#allocation9 + $0xe58] sm:$0xff]  }
0x12b3   : > { %14207 = vmatprep.subr.bf16.mxu0 %v15990_v4  ;;  %v16008_v60 = vld [vmem:[#allocation9 + $0xbd8] sm:$0xff]   ;;  %v16009_v4 = vld [vmem:[#allocation9 + $0xea0] sm:$0xff]  }
0x12b5   : > { %14494 = vmatpush3.bf16.msra.mxu1 %v15991_v1  ;;  %v16010_v1 = vld [vmem:[#allocation9 + $0xc20] sm:$0xff]  }
0x12b6   : > { %14208 = vmatpush3.bf16.msra.mxu0 %v15992_v52  ;;  %14523 = vmatprep.subr.bf16.mxu1 %v15993_v21  ;;  %v16011_v52 = vld [vmem:[#allocation9 + $0xe60] sm:$0xff]  }
0x12b7   : > { %14237 = vmatprep.subr.bf16.mxu0 %v15994_v48  ;;  %v16012_v21 = vld [vmem:[#allocation9 + $0xbe0] sm:$0xff]   ;;  %v16013_v48 = vld [vmem:[#allocation9 + $0xea8] sm:$0xff]  }
0x12b8   : > { %10135 = vmatmul.mubr.bf16.vlgmr.msra.gmra.mrb[124].mxu1 %v9302_v47  ;;  %v16015_v47 = vld [vmem:[#allocation9 + $0xe68] sm:$0xff]  }
0x12b9   : > { %7775 = vmatmul.mubr.bf16.vlgmr.msra.gmra.mrb[128].mxu0 %v6809_v7  ;;  %14524 = vmatpush3.bf16.msra.mxu1 %v15995_v17  ;;  %v16014_v17 = vld [vmem:[#allocation9 + $0xc28] sm:$0xff]  }
0x12ba   : > { %10214 = vmatprep.mubr.bf16.mxu1 %v9307_v41  ;;  %14238 = vmatpush3.bf16.msra.mxu0 %v15996_v35  ;;  %v16016_v35 = vld [vmem:[#allocation9 + $0xbe8] sm:$0xff]  }
0x12bb   : > { %7854 = vmatprep.mubr.bf16.mxu0 %v6824_v39  ;;  %14525 = vmatprep.subr.bf16.mxu1 %v15997_v27  ;;  %v16017_v27 = vld [vmem:[#allocation9 + $0xeb0] sm:$0xff]  }
0x12bc   : > { %14239 = vmatprep.subr.bf16.mxu0 %v15998_v56  ;;  %v16018_v56 = vld [vmem:[#allocation9 + $0xc30] sm:$0xff]  }
0x12bd   : > { %14526 = vmatpush3.bf16.msra.mxu1 %v15999_v30 }
0x12be   : > { %14240 = vmatpush3.bf16.msra.mxu0 %v16000_v51  ;;  %14527 = vmatprep.subr.bf16.mxu1 %v16001_v63 }
0x12bf   : > { %14241 = vmatprep.subr.bf16.mxu0 %v16002_v59  ;;  %v16019_v59 = vld [vmem:[#allocation9 + $0xe70] sm:$0xff]  }
0x12c1   : > { %14528 = vmatpush3.bf16.msra.mxu1 %v16003_v6 }
0x12c2   : > { %14242 = vmatpush3.bf16.msra.mxu0 %v16004_v54  ;;  %14529 = vmatprep.subr.bf16.mxu1 %v16005_v26  ;;  %v16020_v54 = vld [vmem:[#allocation9 + $0xbf0] sm:$0xff]   ;;  %v16021_v26 = vld [vmem:[#allocation9 + $0xeb8] sm:$0xff]  }
0x12c3   : > { %14243 = vmatprep.subr.bf16.mxu0 %v16006_v16  ;;  %v16022_v16 = vld [vmem:[#allocation9 + $0xc38] sm:$0xff]  }
0x12c5   : > { %14530 = vmatpush3.bf16.msra.mxu1 %v16007_v45  ;;  %v16023_v45 = vld [vmem:[#allocation9 + $0xe78] sm:$0xff]  }
0x12c6   : > { %14244 = vmatpush3.bf16.msra.mxu0 %v16008_v60  ;;  %14531 = vmatprep.subr.bf16.mxu1 %v16009_v4  ;;  %v16024_v60 = vld [vmem:[#allocation9 + $0xbf8] sm:$0xff]   ;;  %v16025_v4 = vld [vmem:[#allocation9 + $0xf80] sm:$0xff]  }
0x12c7   : > { %14245 = vmatprep.subr.bf16.mxu0 %v16010_v1  ;;  %v16026_v1 = vld [vmem:[#allocation9 + $0xd00] sm:$0xff]  }
0x12c9   : > { %14532 = vmatpush3.bf16.msra.mxu1 %v16011_v52  ;;  %v16027_v52 = vld [vmem:[#allocation9 + $0xf40] sm:$0xff]  }
0x12ca   : > { %14246 = vmatpush3.bf16.msra.mxu0 %v16012_v21  ;;  %14533 = vmatprep.subr.bf16.mxu1 %v16013_v48  ;;  %v9306_v21 = vrot.slane %v18423_v43, 1  ;;  %v16028_v48 = vld [vmem:[#allocation9 + $0xcc0] sm:$0xff]   ;;  %v16159_v43 = vld [vmem:[#allocation9 + $0x1348] sm:$0xff]  }
0x12cb   : > { %v14231_v41 = vpop.f32.mrb[100].mxu1  ;;  %14247 = vmatprep.subr.bf16.mxu0 %v16014_v17  ;;  %v6821_v17 = vshrl.u32 %v18369_v15, 16 }
0x12cc   : > { %v14232_v30 = vpop.f32.mrb[101].mxu1 }
0x12cd   : > { %v18540_v51 = vadd.f32 %v14232_v30, %v14231_v41  ;;  %v14234_v63 = vpop.f32.mrb[102].mxu1  ;;  %14534 = vmatpush3.bf16.msra.mxu1 %v16015_v47  ;;  %v16029_v47 = vld [vmem:[#allocation9 + $0xf88] sm:$0xff]   ;;  %v6836_v41 = vshrl.u32 %v18374_v34, 16 }
0x12ce   : > { %v14235_v6 = vpop.f32.mrb[103].mxu1  ;;  %14248 = vmatpush3.bf16.msra.mxu0 %v16016_v35  ;;  %14535 = vmatprep.subr.bf16.mxu1 %v16017_v27  ;;  %v9311_v35 = vrot.slane %v18425_v38, 1  ;;  %v16030_v27 = vld [vmem:[#allocation9 + $0xd08] sm:$0xff]   ;;  %v16033_v63 = vld [vmem:[#allocation9 + $0xf90] sm:$0xff]  }
0x12cf   : > { %14249 = vmatprep.subr.bf16.mxu0 %v16018_v56  ;;  %v16031_v56 = vld [vmem:[#allocation9 + $0xf48] sm:$0xff]   ;;  %v16035_v6 = vld [vmem:[#allocation9 + $0xf50] sm:$0xff]  }
0x12d0   : > { %v16032_v30 = vld [vmem:[#allocation9 + $0xcc8] sm:$0xff]   ;;  %v16164_v38 = vld [vmem:[#allocation9 + $0x8d0] sm:$0xff]  }
0x12d1   : > { %14536 = vmatpush3.bf16.msra.mxu1 %v16019_v59  ;;  %v16034_v59 = vld [vmem:[#allocation9 + $0xd10] sm:$0xff]  }
0x12d2   : > { %14250 = vmatpush3.bf16.msra.mxu0 %v16020_v54  ;;  %14537 = vmatprep.subr.bf16.mxu1 %v16021_v26  ;;  %v16036_v54 = vld [vmem:[#allocation9 + $0xcd0] sm:$0xff]   ;;  %v16037_v26 = vld [vmem:[#allocation9 + $0xf98] sm:$0xff]  }
0x12d3   : > { %14251 = vmatprep.subr.bf16.mxu0 %v16022_v16  ;;  %v16038_v16 = vld [vmem:[#allocation9 + $0xd18] sm:$0xff]  }
0x12d5   : > { %14538 = vmatpush3.bf16.msra.mxu1 %v16023_v45  ;;  %v16039_v45 = vld [vmem:[#allocation9 + $0xf58] sm:$0xff]  }
0x12d6   : > { %14252 = vmatpush3.bf16.msra.mxu0 %v16024_v60  ;;  %14567 = vmatprep.subr.bf16.mxu1 %v16025_v4  ;;  %v16040_v60 = vld [vmem:[#allocation9 + $0xcd8] sm:$0xff]   ;;  %v16041_v4 = vld [vmem:[#allocation9 + $0xfa0] sm:$0xff]  }
0x12d7   : > { %14281 = vmatprep.subr.bf16.mxu0 %v16026_v1  ;;  %v16042_v1 = vld [vmem:[#allocation9 + $0xd20] sm:$0xff]  }
0x12d8   : > { %10215 = vmatmul.mubr.bf16.vlgmr.msra.gmra.mrb[128].mxu1 %v9306_v21  ;;  %v16044_v21 = vld [vmem:[#allocation9 + $0xce0] sm:$0xff]  }
0x12d9   : > { %7855 = vmatmul.mubr.bf16.vlgmr.msra.gmra.mrb[132].mxu0 %v6821_v17  ;;  %14568 = vmatpush3.bf16.msra.mxu1 %v16027_v52  ;;  %v16043_v52 = vld [vmem:[#allocation9 + $0xf60] sm:$0xff]  }
0x12da   : > { %10294 = vmatprep.mubr.bf16.mxu1 %v9311_v35  ;;  %14282 = vmatpush3.bf16.msra.mxu0 %v16028_v48  ;;  %v16045_v48 = vld [vmem:[#allocation9 + $0xfa8] sm:$0xff]  }
0x12db   : > { %7934 = vmatprep.mubr.bf16.mxu0 %v6836_v41  ;;  %14569 = vmatprep.subr.bf16.mxu1 %v16029_v47  ;;  %v16046_v47 = vld [vmem:[#allocation9 + $0xd28] sm:$0xff]  }
0x12dc   : > { %14283 = vmatprep.subr.bf16.mxu0 %v16030_v27  ;;  %v16047_v35 = vld [vmem:[#allocation9 + $0xf68] sm:$0xff]  }
0x12dd   : > { %14570 = vmatpush3.bf16.msra.mxu1 %v16031_v56  ;;  %v16048_v27 = vld [vmem:[#allocation9 + $0xce8] sm:$0xff]   ;;  %v16049_v56 = vld [vmem:[#allocation9 + $0xfb0] sm:$0xff]  }
0x12de   : > { %14284 = vmatpush3.bf16.msra.mxu0 %v16032_v30  ;;  %14571 = vmatprep.subr.bf16.mxu1 %v16033_v63  ;;  %v16050_v63 = vld [vmem:[#allocation9 + $0xd30] sm:$0xff]  }
0x12df   : > { %14285 = vmatprep.subr.bf16.mxu0 %v16034_v59 }
0x12e1   : > { %14572 = vmatpush3.bf16.msra.mxu1 %v16035_v6 }
0x12e2   : > { %14286 = vmatpush3.bf16.msra.mxu0 %v16036_v54  ;;  %14573 = vmatprep.subr.bf16.mxu1 %v16037_v26  ;;  %v16051_v26 = vld [vmem:[#allocation9 + $0xf70] sm:$0xff]  }
0x12e3   : > { %14287 = vmatprep.subr.bf16.mxu0 %v16038_v16 }
0x12e5   : > { %14574 = vmatpush3.bf16.msra.mxu1 %v16039_v45  ;;  %v16052_v45 = vld [vmem:[#allocation9 + $0xcf0] sm:$0xff]  }
0x12e6   : > { %14288 = vmatpush3.bf16.msra.mxu0 %v16040_v60  ;;  %14575 = vmatprep.subr.bf16.mxu1 %v16041_v4  ;;  %v16053_v60 = vld [vmem:[#allocation9 + $0xfb8] sm:$0xff]  }
0x12e7   : > { %14289 = vmatprep.subr.bf16.mxu0 %v16042_v1  ;;  %v16054_v4 = vld [vmem:[#allocation9 + $0xd38] sm:$0xff]  }
0x12e8   : > { %v16055_v1 = vld [vmem:[#allocation9 + $0xf78] sm:$0xff]  }
0x12e9   : > { %14576 = vmatpush3.bf16.msra.mxu1 %v16043_v52  ;;  %v16056_v52 = vld [vmem:[#allocation9 + $0xcf8] sm:$0xff]  }
0x12ea   : > { %14290 = vmatpush3.bf16.msra.mxu0 %v16044_v21  ;;  %14577 = vmatprep.subr.bf16.mxu1 %v16045_v48  ;;  %v16057_v21 = vld [vmem:[#allocation9 + $0x1080] sm:$0xff]  }
0x12eb   : > { %v14275_v30 = vpop.f32.mrb[104].mxu1  ;;  %14291 = vmatprep.subr.bf16.mxu0 %v16046_v47  ;;  %v16058_v48 = vld [vmem:[#allocation9 + $0x600] sm:$0xff]  }
0x12ec   : > { %v14276_v59 = vpop.f32.mrb[105].mxu1  ;;  %v16059_v47 = vld [vmem:[#allocation9 + $0x1040] sm:$0xff]  }
0x12ed   : > { %v18550_v6 = vadd.f32 %v14276_v59, %v14275_v30  ;;  %v14278_v54 = vpop.f32.mrb[106].mxu1  ;;  %14578 = vmatpush3.bf16.msra.mxu1 %v16047_v35  ;;  %v9310_v35 = vrot.slane %v18431_v57, 1  ;;  %v16061_v30 = vld [vmem:[#allocation9 + $0x1088] sm:$0xff]   ;;  %v16193_v57 = vld [vmem:[#allocation9 + $0x1490] sm:$0xff]  }
0x12ee   : > { %v14279_v16 = vpop.f32.mrb[107].mxu1  ;;  %14292 = vmatpush3.bf16.msra.mxu0 %v16048_v27  ;;  %14579 = vmatprep.subr.bf16.mxu1 %v16049_v56  ;;  %v16060_v27 = vld [vmem:[#allocation9 + $0x5c0] sm:$0xff]   ;;  %v6833_v56 = vshrl.u32 %v18379_v14, 16  ;;  %v16062_v59 = vld [vmem:[#allocation9 + $0x608] sm:$0xff]  }
0x12ef   : > { %14293 = vmatprep.subr.bf16.mxu0 %v16050_v63  ;;  %v9315_v63 = vrot.slane %v18433_v40, 1  ;;  %v16063_v54 = vld [vmem:[#allocation9 + $0x1048] sm:$0xff]   ;;  %v16065_v16 = vld [vmem:[#allocation9 + $0x1090] sm:$0xff]  }
0x12f0   : > { %v16196_v40 = vld [vmem:[#allocation9 + $0xdd0] sm:$0xff]  }
0x12f1   : > { %14580 = vmatpush3.bf16.msra.mxu1 %v16051_v26  ;;  %v16064_v26 = vld [vmem:[#allocation9 + $0x5c8] sm:$0xff]  }
0x12f2   : > { %14294 = vmatpush3.bf16.msra.mxu0 %v16052_v45  ;;  %14581 = vmatprep.subr.bf16.mxu1 %v16053_v60  ;;  %v16066_v45 = vld [vmem:[#allocation9 + $0x610] sm:$0xff]  }
0x12f3   : > { %14295 = vmatprep.subr.bf16.mxu0 %v16054_v4  ;;  %v16067_v60 = vld [vmem:[#allocation9 + $0x1050] sm:$0xff]  }
0x12f4   : > { %v16068_v4 = vld [vmem:[#allocation9 + $0x5d0] sm:$0xff]  }
0x12f5   : > { %14582 = vmatpush3.bf16.msra.mxu1 %v16055_v1  ;;  %v16069_v1 = vld [vmem:[#allocation9 + $0x1098] sm:$0xff]  }
0x12f6   : > { %14296 = vmatpush3.bf16.msra.mxu0 %v16056_v52  ;;  %14611 = vmatprep.subr.bf16.mxu1 %v16057_v21  ;;  %v16070_v52 = vld [vmem:[#allocation9 + $0x618] sm:$0xff]  }
0x12f7   : > { %14325 = vmatprep.subr.bf16.mxu0 %v16058_v48  ;;  %v16071_v21 = vld [vmem:[#allocation9 + $0x1058] sm:$0xff]  }
0x12f8   : > { %10295 = vmatmul.mubr.bf16.vlgmr.msra.gmra.mrb[132].mxu1 %v9310_v35  ;;  %v16072_v48 = vld [vmem:[#allocation9 + $0x5d8] sm:$0xff]   ;;  %v16074_v35 = vld [vmem:[#allocation9 + $0x620] sm:$0xff]  }
0x12f9   : > { %7935 = vmatmul.mubr.bf16.vlgmr.msra.gmra.mrb[136].mxu0 %v6833_v56  ;;  %14612 = vmatpush3.bf16.msra.mxu1 %v16059_v47  ;;  %v16073_v47 = vld [vmem:[#allocation9 + $0x10a0] sm:$0xff]  }
0x12fa   : > { %10374 = vmatprep.mubr.bf16.mxu1 %v9315_v63  ;;  %14326 = vmatpush3.bf16.msra.mxu0 %v16060_v27  ;;  %v16075_v27 = vld [vmem:[#allocation9 + $0x1060] sm:$0xff]   ;;  %v16077_v63 = vld [vmem:[#allocation9 + $0x10a8] sm:$0xff]  }
0x12fb   : > { %8782 = vmatprep.mubr.bf16.mxu0 %v18354_v53  ;;  %14613 = vmatprep.subr.bf16.mxu1 %v16061_v30  ;;  %v16076_v30 = vld [vmem:[#allocation9 + $0x5e0] sm:$0xff]  }
0x12fc   : > { %14327 = vmatprep.subr.bf16.mxu0 %v16062_v59  ;;  %v16078_v59 = vld [vmem:[#allocation9 + $0x628] sm:$0xff]  }
0x12fd   : > { %14614 = vmatpush3.bf16.msra.mxu1 %v16063_v54  ;;  %v16079_v54 = vld [vmem:[#allocation9 + $0x1068] sm:$0xff]  }
0x12fe   : > { %14328 = vmatpush3.bf16.msra.mxu0 %v16064_v26  ;;  %14615 = vmatprep.subr.bf16.mxu1 %v16065_v16  ;;  %v16080_v26 = vld [vmem:[#allocation9 + $0x5e8] sm:$0xff]   ;;  %v16081_v16 = vld [vmem:[#allocation9 + $0x10b0] sm:$0xff]  }
0x12ff   : > { %14329 = vmatprep.subr.bf16.mxu0 %v16066_v45 }
0x1301   : > { %14616 = vmatpush3.bf16.msra.mxu1 %v16067_v60  ;;  %v16082_v60 = vld [vmem:[#allocation9 + $0x630] sm:$0xff]  }
0x1302   : > { %14330 = vmatpush3.bf16.msra.mxu0 %v16068_v4  ;;  %14617 = vmatprep.subr.bf16.mxu1 %v16069_v1 }
0x1303   : > { %14331 = vmatprep.subr.bf16.mxu0 %v16070_v52 }
0x1305   : > { %14618 = vmatpush3.bf16.msra.mxu1 %v16071_v21  ;;  %v16083_v21 = vld [vmem:[#allocation9 + $0x1070] sm:$0xff]  }
0x1306   : > { %14332 = vmatpush3.bf16.msra.mxu0 %v16072_v48  ;;  %14619 = vmatprep.subr.bf16.mxu1 %v16073_v47  ;;  %v16084_v47 = vld [vmem:[#allocation9 + $0x5f0] sm:$0xff]  }
0x1307   : > { %14333 = vmatprep.subr.bf16.mxu0 %v16074_v35  ;;  %v16085_v35 = vld [vmem:[#allocation9 + $0x10b8] sm:$0xff]  }
0x1309   : > { %14620 = vmatpush3.bf16.msra.mxu1 %v16075_v27  ;;  %v16086_v27 = vld [vmem:[#allocation9 + $0x638] sm:$0xff]  }
0x130a   : > { %14334 = vmatpush3.bf16.msra.mxu0 %v16076_v30  ;;  %14621 = vmatprep.subr.bf16.mxu1 %v16077_v63  ;;  %v16087_v30 = vld [vmem:[#allocation9 + $0x1078] sm:$0xff]  }
0x130b   : > { %v14319_v45 = vpop.f32.mrb[108].mxu1  ;;  %14335 = vmatprep.subr.bf16.mxu0 %v16078_v59  ;;  %v16088_v63 = vld [vmem:[#allocation9 + $0x5f8] sm:$0xff]   ;;  %v16089_v59 = vld [vmem:[#allocation9 + $0x1180] sm:$0xff]  }
0x130c   : > { %v14320_v4 = vpop.f32.mrb[109].mxu1 }
0x130d   : > { %v18558_v1 = vadd.f32 %v14320_v4, %v14319_v45  ;;  %v14322_v52 = vpop.f32.mrb[110].mxu1  ;;  %14622 = vmatpush3.bf16.msra.mxu1 %v16079_v54  ;;  %v16091_v45 = vld [vmem:[#allocation9 + $0x1140] sm:$0xff]   ;;  %v9314_v54 = vrot.slane %v18439_v33, 1  ;;  %v16094_v4 = vld [vmem:[#allocation9 + $0x708] sm:$0xff]   ;;  %v16223_v33 = vld [vmem:[#allocation9 + $0xf18] sm:$0xff]  }
0x130e   : > { %v14323_v48 = vpop.f32.mrb[111].mxu1  ;;  %14336 = vmatpush3.bf16.msra.mxu0 %v16080_v26  ;;  %14623 = vmatprep.subr.bf16.mxu1 %v16081_v16  ;;  %v16092_v26 = vld [vmem:[#allocation9 + $0x6c0] sm:$0xff]   ;;  %v16093_v16 = vld [vmem:[#allocation9 + $0x1188] sm:$0xff]  }
0x130f   : > { %14337 = vmatprep.subr.bf16.mxu0 %v16082_v60  ;;  %v10680_v60 = vrot.slane %v6794_v58, 1  ;;  %v16095_v52 = vld [vmem:[#allocation9 + $0x1148] sm:$0xff]   ;;  %v16097_v48 = vld [vmem:[#allocation9 + $0x1190] sm:$0xff]   ;;  %v16101_v58 = vld [vmem:[#allocation9 + $0x1198] sm:$0xff]  }
0x1311   : > { %14624 = vmatpush3.bf16.msra.mxu1 %v16083_v21  ;;  %v16096_v21 = vld [vmem:[#allocation9 + $0x6c8] sm:$0xff]  }
0x1312   : > { %14338 = vmatpush3.bf16.msra.mxu0 %v16084_v47  ;;  %14625 = vmatprep.subr.bf16.mxu1 %v16085_v35  ;;  %v16098_v47 = vld [vmem:[#allocation9 + $0x710] sm:$0xff]   ;;  %v16102_v35 = vld [vmem:[#allocation9 + $0x718] sm:$0xff]  }
0x1313   : > { %14339 = vmatprep.subr.bf16.mxu0 %v16086_v27  ;;  %v16103_v27 = vld [vmem:[#allocation9 + $0x1158] sm:$0xff]  }
0x1315   : > { %14626 = vmatpush3.bf16.msra.mxu1 %v16087_v30  ;;  %v16104_v30 = vld [vmem:[#allocation9 + $0x6d8] sm:$0xff]  }
0x1316   : > { %14340 = vmatpush3.bf16.msra.mxu0 %v16088_v63  ;;  %14655 = vmatprep.subr.bf16.mxu1 %v16089_v59  ;;  %v16105_v63 = vld [vmem:[#allocation9 + $0x11a0] sm:$0xff]  }
0x1317   : > { %14369 = vmatprep.subr.bf16.mxu0 %v16090_v32  ;;  %v16099_v32 = vld [vmem:[#allocation9 + $0x1150] sm:$0xff]   ;;  %v16106_v59 = vld [vmem:[#allocation9 + $0x720] sm:$0xff]  }
0x1318   : > { %10375 = vmatmul.mubr.bf16.vlgmr.msra.gmra.mrb[136].mxu1 %v9314_v54  ;;  %v16108_v54 = vld [vmem:[#allocation9 + $0x6e0] sm:$0xff]  }
0x1319   : > { %8783 = vmatmul.mubr.bf16.vlgmr.msra.gmra.mrb[140].mxu0 %v18357_v25  ;;  %14656 = vmatpush3.bf16.msra.mxu1 %v16091_v45  ;;  %v16107_v45 = vld [vmem:[#allocation9 + $0x1160] sm:$0xff]  }
0x131a   : > { %11511 = vmatprep.mubr.bf16.mxu1 %v10680_v60  ;;  %14370 = vmatpush3.bf16.msra.mxu0 %v16092_v26  ;;  %v16109_v26 = vld [vmem:[#allocation9 + $0x11a8] sm:$0xff]  }
0x131b   : > { %8862 = vmatprep.mubr.bf16.mxu0 %v18359_v10  ;;  %14657 = vmatprep.subr.bf16.mxu1 %v16093_v16  ;;  %v16110_v16 = vld [vmem:[#allocation9 + $0x728] sm:$0xff]  }
0x131c   : > { %14371 = vmatprep.subr.bf16.mxu0 %v16094_v4  ;;  %v16111_v60 = vld [vmem:[#allocation9 + $0x1168] sm:$0xff]  }
0x131d   : > { %14658 = vmatpush3.bf16.msra.mxu1 %v16095_v52  ;;  %v16112_v4 = vld [vmem:[#allocation9 + $0x6e8] sm:$0xff]   ;;  %v16113_v52 = vld [vmem:[#allocation9 + $0x11b0] sm:$0xff]  }
0x131e   : > { %14372 = vmatpush3.bf16.msra.mxu0 %v16096_v21  ;;  %14659 = vmatprep.subr.bf16.mxu1 %v16097_v48  ;;  %v16114_v48 = vld [vmem:[#allocation9 + $0x730] sm:$0xff]  }
0x131f   : > { %14373 = vmatprep.subr.bf16.mxu0 %v16098_v47 }
0x1321   : > { %14660 = vmatpush3.bf16.msra.mxu1 %v16099_v32 }
0x1322   : > { %14374 = vmatpush3.bf16.msra.mxu0 %v16100_v9  ;;  %14661 = vmatprep.subr.bf16.mxu1 %v16101_v58  ;;  %v16115_v58 = vld [vmem:[#allocation9 + $0x1170] sm:$0xff]  }
0x1323   : > { %14375 = vmatprep.subr.bf16.mxu0 %v16102_v35 }
0x1325   : > { %14662 = vmatpush3.bf16.msra.mxu1 %v16103_v27  ;;  %v16116_v27 = vld [vmem:[#allocation9 + $0x6f0] sm:$0xff]  }
0x1326   : > { %14376 = vmatpush3.bf16.msra.mxu0 %v16104_v30  ;;  %14663 = vmatprep.subr.bf16.mxu1 %v16105_v63  ;;  %v16117_v30 = vld [vmem:[#allocation9 + $0x11b8] sm:$0xff]  }
0x1327   : > { %14377 = vmatprep.subr.bf16.mxu0 %v16106_v59  ;;  %v16118_v63 = vld [vmem:[#allocation9 + $0x738] sm:$0xff]  }
0x1328   : > { %v16119_v59 = vld [vmem:[#allocation9 + $0x1178] sm:$0xff]  }
0x1329   : > { %14664 = vmatpush3.bf16.msra.mxu1 %v16107_v45  ;;  %v16120_v45 = vld [vmem:[#allocation9 + $0x6f8] sm:$0xff]  }
0x132a   : > { %14378 = vmatpush3.bf16.msra.mxu0 %v16108_v54  ;;  %14665 = vmatprep.subr.bf16.mxu1 %v16109_v26  ;;  %v16121_v54 = vld [vmem:[#allocation9 + $0x1280] sm:$0xff]  }
0x132b   : > { %v14363_v21 = vpop.f32.mrb[112].mxu1  ;;  %14379 = vmatprep.subr.bf16.mxu0 %v16110_v16  ;;  %v16122_v26 = vld [vmem:[#allocation9 + $0x800] sm:$0xff]  }
0x132c   : > { %v14364_v47 = vpop.f32.mrb[113].mxu1  ;;  %v16123_v16 = vld [vmem:[#allocation9 + $0x1240] sm:$0xff]  }
0x132d   : > { %v18565_v32 = vadd.f32 %v14364_v47, %v14363_v21  ;;  %v14366_v9 = vpop.f32.mrb[114].mxu1  ;;  %14666 = vmatpush3.bf16.msra.mxu1 %v16111_v60  ;;  %v10679_v60 = vrot.slane %v6791_v20, 1  ;;  %v10684_v21 = vrot.slane %v6806_v18, 1  ;;  %v16127_v47 = vld [vmem:[#allocation9 + $0x1248] sm:$0xff]   ;;  %v16131_v20 = vld [vmem:[#allocation9 + $0x1250] sm:$0xff]   ;;  %v16133_v18 = vld [vmem:[#allocation9 + $0x1298] sm:$0xff]  }
0x132e   : > { %v14367_v35 = vpop.f32.mrb[115].mxu1  ;;  %14380 = vmatpush3.bf16.msra.mxu0 %v16112_v4  ;;  %14667 = vmatprep.subr.bf16.mxu1 %v16113_v52  ;;  %v16124_v4 = vld [vmem:[#allocation9 + $0x7c0] sm:$0xff]   ;;  %v16125_v52 = vld [vmem:[#allocation9 + $0x1288] sm:$0xff]  }
0x132f   : > { %14381 = vmatprep.subr.bf16.mxu0 %v16114_v48  ;;  %v16126_v48 = vld [vmem:[#allocation9 + $0x808] sm:$0xff]   ;;  %v16134_v35 = vld [vmem:[#allocation9 + $0x818] sm:$0xff]  }
0x1330   : > { %v16128_v9 = vld [vmem:[#allocation9 + $0x7c8] sm:$0xff]  }
0x1331   : > { %14668 = vmatpush3.bf16.msra.mxu1 %v16115_v58  ;;  %v16129_v58 = vld [vmem:[#allocation9 + $0x1290] sm:$0xff]  }
0x1332   : > { %14382 = vmatpush3.bf16.msra.mxu0 %v16116_v27  ;;  %14669 = vmatprep.subr.bf16.mxu1 %v16117_v30  ;;  %v16135_v27 = vld [vmem:[#allocation9 + $0x1258] sm:$0xff]  }
0x1333   : > { %14383 = vmatprep.subr.bf16.mxu0 %v16118_v63  ;;  %v16136_v30 = vld [vmem:[#allocation9 + $0x7d8] sm:$0xff]   ;;  %v16137_v63 = vld [vmem:[#allocation9 + $0x12a0] sm:$0xff]  }
0x1335   : > { %14670 = vmatpush3.bf16.msra.mxu1 %v16119_v59  ;;  %v16138_v59 = vld [vmem:[#allocation9 + $0x820] sm:$0xff]  }
0x1336   : > { %14384 = vmatpush3.bf16.msra.mxu0 %v16120_v45  ;;  %14699 = vmatprep.subr.bf16.mxu1 %v16121_v54  ;;  %v16139_v45 = vld [vmem:[#allocation9 + $0x1260] sm:$0xff]  }
0x1337   : > { %14413 = vmatprep.subr.bf16.mxu0 %v16122_v26  ;;  %v16140_v54 = vld [vmem:[#allocation9 + $0x7e0] sm:$0xff]   ;;  %v16141_v26 = vld [vmem:[#allocation9 + $0x12a8] sm:$0xff]  }
0x1338   : > { %11512 = vmatmul.mubr.bf16.vlgmr.msra.gmra.mrb[140].mxu1 %v10679_v60  ;;  %v16143_v60 = vld [vmem:[#allocation9 + $0x1268] sm:$0xff]  }
0x1339   : > { %8863 = vmatmul.mubr.bf16.vlgmr.msra.gmra.mrb[144].mxu0 %v18363_v13  ;;  %14700 = vmatpush3.bf16.msra.mxu1 %v16123_v16  ;;  %v16142_v16 = vld [vmem:[#allocation9 + $0x828] sm:$0xff]  }
0x133a   : > { %11591 = vmatprep.mubr.bf16.mxu1 %v10684_v21  ;;  %14414 = vmatpush3.bf16.msra.mxu0 %v16124_v4  ;;  %v16144_v4 = vld [vmem:[#allocation9 + $0x7e8] sm:$0xff]  }
0x133b   : > { %8942 = vmatprep.mubr.bf16.mxu0 %v18365_v28  ;;  %14701 = vmatprep.subr.bf16.mxu1 %v16125_v52  ;;  %v16145_v52 = vld [vmem:[#allocation9 + $0x12b0] sm:$0xff]  }
0x133c   : > { %14415 = vmatprep.subr.bf16.mxu0 %v16126_v48  ;;  %v16146_v48 = vld [vmem:[#allocation9 + $0x830] sm:$0xff]  }
0x133d   : > { %14702 = vmatpush3.bf16.msra.mxu1 %v16127_v47 }
0x133e   : > { %14416 = vmatpush3.bf16.msra.mxu0 %v16128_v9  ;;  %14703 = vmatprep.subr.bf16.mxu1 %v16129_v58 }
0x133f   : > { %14417 = vmatprep.subr.bf16.mxu0 %v16130_v61 }
0x1341   : > { %14704 = vmatpush3.bf16.msra.mxu1 %v16131_v20 }
0x1342   : > { %14418 = vmatpush3.bf16.msra.mxu0 %v16132_v5  ;;  %14705 = vmatprep.subr.bf16.mxu1 %v16133_v18  ;;  %v16147_v18 = vld [vmem:[#allocation9 + $0x1270] sm:$0xff]  }
0x1343   : > { %14419 = vmatprep.subr.bf16.mxu0 %v16134_v35 }
0x1345   : > { %14706 = vmatpush3.bf16.msra.mxu1 %v16135_v27 }
0x1346   : > { %14420 = vmatpush3.bf16.msra.mxu0 %v16136_v30  ;;  %14707 = vmatprep.subr.bf16.mxu1 %v16137_v63  ;;  %v16148_v63 = vld [vmem:[#allocation9 + $0x7f0] sm:$0xff]  }
0x1347   : > { %14421 = vmatprep.subr.bf16.mxu0 %v16138_v59  ;;  %v16149_v59 = vld [vmem:[#allocation9 + $0x12b8] sm:$0xff]  }
0x1349   : > { %14708 = vmatpush3.bf16.msra.mxu1 %v16139_v45 }
0x134a   : > { %14422 = vmatpush3.bf16.msra.mxu0 %v16140_v54  ;;  %14709 = vmatprep.subr.bf16.mxu1 %v16141_v26  ;;  %v16150_v54 = vld [vmem:[#allocation9 + $0x838] sm:$0xff]  }
0x134b   : > { %v14407_v21 = vpop.f32.mrb[116].mxu1  ;;  %14423 = vmatprep.subr.bf16.mxu0 %v16142_v16  ;;  %v16151_v16 = vld [vmem:[#allocation9 + $0x1278] sm:$0xff]  }
0x134c   : > { %v15357_v47 = vpop.f32.mrb[116].mxu0  ;;  %v14408_v9 = vpop.f32.mrb[117].mxu1 }
0x134d   : > { %v18574_v58 = vadd.f32 %v15357_v47, %v18460_v29  ;;  %v18576_v61 = vadd.f32 %v14408_v9, %v14407_v21  ;;  %v6239_v20 = vpop.f32.mrb[117].mxu0  ;;  %v14410_v5 = vpop.f32.mrb[118].mxu1  ;;  %14710 = vmatpush3.bf16.msra.mxu1 %v16143_v60  ;;  %v16153_v60 = vld [vmem:[#allocation9 + $0x1380] sm:$0xff]   ;;  %v10683_v9 = vrot.slane %v6803_v37, 1  ;;  %v16160_v37 = vld [vmem:[#allocation9 + $0x8c8] sm:$0xff]  }
0x134e   : > { %v18579_v35 = vadd.f32 %v6239_v20, %v18463_v44  ;;  %v15358_v27 = vpop.f32.mrb[118].mxu0  ;;  %v14411_v30 = vpop.f32.mrb[119].mxu1  ;;  %14424 = vmatpush3.bf16.msra.mxu0 %v16144_v4  ;;  %14711 = vmatprep.subr.bf16.mxu1 %v16145_v52  ;;  %v16152_v44 = vld [vmem:[#allocation9 + $0x7f8] sm:$0xff]   ;;  %v16154_v4 = vld [vmem:[#allocation9 + $0x900] sm:$0xff]  }
0x134f   : > { %v18582_v45 = vadd.f32 %v15358_v27, %v18465_v24  ;;  %v6242_v29 = vpop.f32.mrb[119].mxu0  ;;  %14425 = vmatprep.subr.bf16.mxu0 %v16146_v48  ;;  %v16155_v47 = vld [vmem:[#allocation9 + $0x1340] sm:$0xff]   ;;  %v16158_v30 = vld [vmem:[#allocation9 + $0x908] sm:$0xff]  }
0x1350   : > { %v18585_v26 = vadd.f32 %v6242_v29, %v18467_v8  ;;  %v16156_v20 = vld [vmem:[#allocation9 + $0x8c0] sm:$0xff]   ;;  %v16167_v29 = vld [vmem:[#allocation9 + $0x1358] sm:$0xff]  }
0x1351   : > { %14712 = vmatpush3.bf16.msra.mxu1 %v16147_v18 }
0x1352   : > { %14426 = vmatpush3.bf16.msra.mxu0 %v16148_v63  ;;  %14713 = vmatprep.subr.bf16.mxu1 %v16149_v59  ;;  %v16162_v63 = vld [vmem:[#allocation9 + $0x910] sm:$0xff]   ;;  %v16166_v59 = vld [vmem:[#allocation9 + $0x918] sm:$0xff]  }
0x1353   : > { %14427 = vmatprep.subr.bf16.mxu0 %v16150_v54  ;;  %v16168_v54 = vld [vmem:[#allocation9 + $0x8d8] sm:$0xff]  }
0x1354   : > { %v15361_v52 = vpop.f32.mrb[120].mxu0 }
0x1355   : > { %v18588_v21 = vadd.f32 %v15361_v52, %v18472_v46  ;;  %v6255_v24 = vpop.f32.mrb[121].mxu0  ;;  %14714 = vmatpush3.bf16.msra.mxu1 %v16151_v16  ;;  %v16157_v46 = vld [vmem:[#allocation9 + $0x1388] sm:$0xff]   ;;  %v16169_v16 = vld [vmem:[#allocation9 + $0x13a0] sm:$0xff]  }
0x1356   : > { %v18591_v48 = vadd.f32 %v6255_v24, %v18475_v42  ;;  %v15362_v8 = vpop.f32.mrb[122].mxu0  ;;  %14428 = vmatpush3.bf16.msra.mxu0 %v16152_v44  ;;  %14743 = vmatprep.subr.bf16.mxu1 %v16153_v60  ;;  %v10688_v42 = vrot.slane %v6818_v22, 1  ;;  %v16165_v22 = vld [vmem:[#allocation9 + $0x1398] sm:$0xff]   ;;  %v16170_v44 = vld [vmem:[#allocation9 + $0x920] sm:$0xff]   ;;  %v16173_v52 = vld [vmem:[#allocation9 + $0x13a8] sm:$0xff]  }
0x1357   : > { %v18596_v5 = vadd.f32 %v15362_v8, %v18477_v23  ;;  %v6258_v18 = vpop.f32.mrb[123].mxu0  ;;  %14457 = vmatprep.subr.bf16.mxu0 %v16154_v4  ;;  %v16161_v23 = vld [vmem:[#allocation9 + $0x1390] sm:$0xff]   ;;  %v16171_v60 = vld [vmem:[#allocation9 + $0x1360] sm:$0xff]   ;;  %v16174_v24 = vld [vmem:[#allocation9 + $0x928] sm:$0xff]  }
0x1358   : > { %v18599_v27 = vadd.f32 %v6258_v18, %v18483_v2  ;;  %11592 = vmatmul.mubr.bf16.vlgmr.msra.gmra.mrb[144].mxu1 %v10683_v9  ;;  %v16163_v2 = vld [vmem:[#allocation9 + $0x1350] sm:$0xff]   ;;  %v16172_v4 = vld [vmem:[#allocation9 + $0x8e0] sm:$0xff]   ;;  %v16176_v8 = vld [vmem:[#allocation9 + $0x8e8] sm:$0xff]  }
0x1359   : > { %8943 = vmatmul.mubr.bf16.vlgmr.msra.gmra.mrb[148].mxu0 %v18369_v15  ;;  %14744 = vmatpush3.bf16.msra.mxu1 %v16155_v47  ;;  %v16175_v47 = vld [vmem:[#allocation9 + $0x1368] sm:$0xff]   ;;  %v16177_v9 = vld [vmem:[#allocation9 + $0x13b0] sm:$0xff]  }
0x135a   : > { %11671 = vmatprep.mubr.bf16.mxu1 %v10688_v42  ;;  %14458 = vmatpush3.bf16.msra.mxu0 %v16156_v20  ;;  %v16178_v18 = vld [vmem:[#allocation9 + $0x930] sm:$0xff]  }
0x135b   : > { %9022 = vmatprep.mubr.bf16.mxu0 %v18374_v34  ;;  %14745 = vmatprep.subr.bf16.mxu1 %v16157_v46 }
0x135c   : > { %14459 = vmatprep.subr.bf16.mxu0 %v16158_v30 }
0x135d   : > { %14746 = vmatpush3.bf16.msra.mxu1 %v16159_v43 }
0x135e   : > { %14460 = vmatpush3.bf16.msra.mxu0 %v16160_v37  ;;  %14747 = vmatprep.subr.bf16.mxu1 %v16161_v23  ;;  %v16179_v23 = vld [vmem:[#allocation9 + $0x1370] sm:$0xff]  }
0x135f   : > { %14461 = vmatprep.subr.bf16.mxu0 %v16162_v63 }
0x1361   : > { %14748 = vmatpush3.bf16.msra.mxu1 %v16163_v2 }
0x1362   : > { %14462 = vmatpush3.bf16.msra.mxu0 %v16164_v38  ;;  %14749 = vmatprep.subr.bf16.mxu1 %v16165_v22  ;;  %v16180_v22 = vld [vmem:[#allocation9 + $0x8f0] sm:$0xff]  }
0x1363   : > { %14463 = vmatprep.subr.bf16.mxu0 %v16166_v59  ;;  %v16181_v59 = vld [vmem:[#allocation9 + $0x13b8] sm:$0xff]  }
0x1365   : > { %14750 = vmatpush3.bf16.msra.mxu1 %v16167_v29 }
0x1366   : > { %14464 = vmatpush3.bf16.msra.mxu0 %v16168_v54  ;;  %14751 = vmatprep.subr.bf16.mxu1 %v16169_v16  ;;  %v16182_v54 = vld [vmem:[#allocation9 + $0x938] sm:$0xff]  }
0x1367   : > { %14465 = vmatprep.subr.bf16.mxu0 %v16170_v44  ;;  %v16183_v44 = vld [vmem:[#allocation9 + $0x1378] sm:$0xff]  }
0x1369   : > { %14752 = vmatpush3.bf16.msra.mxu1 %v16171_v60  ;;  %v16184_v60 = vld [vmem:[#allocation9 + $0x8f8] sm:$0xff]  }
0x136a   : > { %14466 = vmatpush3.bf16.msra.mxu0 %v16172_v4  ;;  %14753 = vmatprep.subr.bf16.mxu1 %v16173_v52  ;;  %v16185_v4 = vld [vmem:[#allocation9 + $0x1480] sm:$0xff]  }
0x136b   : > { %v14451_v20 = vpop.f32.mrb[120].mxu1  ;;  %14467 = vmatprep.subr.bf16.mxu0 %v16174_v24  ;;  %v16186_v24 = vld [vmem:[#allocation9 + $0xe00] sm:$0xff]  }
0x136c   : > { %v14165_v46 = vpop.f32.mrb[124].mxu0  ;;  %v14452_v42 = vpop.f32.mrb[121].mxu1 }
0x136d   : > { %v18605_v30 = vadd.f32 %v14452_v42, %v14451_v20  ;;  %v14166_v43 = vpop.f32.mrb[125].mxu0  ;;  %v14454_v37 = vpop.f32.mrb[122].mxu1  ;;  %14754 = vmatpush3.bf16.msra.mxu1 %v16175_v47  ;;  %v16187_v47 = vld [vmem:[#allocation9 + $0x1440] sm:$0xff]   ;;  %v10692_v20 = vrot.slane %v6830_v11, 1  ;;  %v16192_v42 = vld [vmem:[#allocation9 + $0xdc8] sm:$0xff]   ;;  %v16197_v11 = vld [vmem:[#allocation9 + $0x1498] sm:$0xff]  }
0x136e   : > { %v14167_v63 = vadd.f32 %v14166_v43, %v14165_v46  ;;  %v14168_v2 = vpop.f32.mrb[126].mxu0  ;;  %v14455_v38 = vpop.f32.mrb[123].mxu1  ;;  %14468 = vmatpush3.bf16.msra.mxu0 %v16176_v8  ;;  %14755 = vmatprep.subr.bf16.mxu1 %v16177_v9  ;;  %v10687_v8 = vrot.slane %v6815_v36, 1  ;;  %v16188_v9 = vld [vmem:[#allocation9 + $0xdc0] sm:$0xff]   ;;  %v16191_v46 = vld [vmem:[#allocation9 + $0x1448] sm:$0xff]   ;;  %v16194_v36 = vld [vmem:[#allocation9 + $0xe10] sm:$0xff]  }
0x136f   : > { %v14169_v29 = vpop.f32.mrb[127].mxu0  ;;  %14469 = vmatprep.subr.bf16.mxu0 %v16178_v18  ;;  %v16190_v18 = vld [vmem:[#allocation9 + $0xe08] sm:$0xff]   ;;  %v16195_v43 = vld [vmem:[#allocation9 + $0x1450] sm:$0xff]   ;;  %v16198_v37 = vld [vmem:[#allocation9 + $0xe18] sm:$0xff]  }
0x1370   : > { %v7697_v16 = vadd.f32 %v14167_v63, %v18520_v62  ;;  %v16189_v62 = vld [vmem:[#allocation9 + $0x1488] sm:$0xff]   ;;  %v16200_v63 = vld [vmem:[#allocation9 + $0xdd8] sm:$0xff]   ;;  %v16201_v2 = vld [vmem:[#allocation9 + $0x14a0] sm:$0xff]  }
0x1371   : > { %14756 = vmatpush3.bf16.msra.mxu1 %v16179_v23  ;;  %v16199_v23 = vld [vmem:[#allocation9 + $0x1458] sm:$0xff]   ;;  %v16202_v38 = vld [vmem:[#allocation9 + $0xe20] sm:$0xff]   ;;  %v16205_v29 = vld [vmem:[#allocation9 + $0x14a8] sm:$0xff]  }
0x1372   : > { %14470 = vmatpush3.bf16.msra.mxu0 %v16180_v22  ;;  %14757 = vmatprep.subr.bf16.mxu1 %v16181_v59  ;;  %v18609_v52 = vadd.f32 %v18530_v19, %v7697_v16  ;;  %v9305_v19 = vrot.slane %v18354_v53, 1  ;;  %v16203_v22 = vld [vmem:[#allocation9 + $0x1460] sm:$0xff]   ;;  %v16207_v16 = vld [vmem:[#allocation9 + $0x1468] sm:$0xff]  }
0x1373   : > { %14471 = vmatprep.subr.bf16.mxu0 %v16182_v54  ;;  %v16204_v59 = vld [vmem:[#allocation9 + $0xde0] sm:$0xff]   ;;  %v16206_v54 = vld [vmem:[#allocation9 + $0xe28] sm:$0xff]  }
0x1374   : > { %v16276_v53 = vld [vmem:[#allocation9 + $0x11e8] sm:$0xff]  }
0x1375   : > { %14758 = vmatpush3.bf16.msra.mxu1 %v16183_v44  ;;  %v16208_v44 = vld [vmem:[#allocation9 + $0xde8] sm:$0xff]  }
0x1376   : > { %14472 = vmatpush3.bf16.msra.mxu0 %v16184_v60  ;;  %14787 = vmatprep.subr.bf16.mxu1 %v16185_v4  ;;  %v16209_v60 = vld [vmem:[#allocation9 + $0x14b0] sm:$0xff]  }
0x1377   : > { %14501 = vmatprep.subr.bf16.mxu0 %v16186_v24  ;;  %v16210_v24 = vld [vmem:[#allocation9 + $0xe30] sm:$0xff]  }
0x1378   : > { %11672 = vmatmul.mubr.bf16.vlgmr.msra.gmra.mrb[148].mxu1 %v10687_v8 }
0x1379   : > { %9023 = vmatmul.mubr.bf16.vlgmr.msra.gmra.mrb[152].mxu0 %v18379_v14  ;;  %14788 = vmatpush3.bf16.msra.mxu1 %v16187_v47 }
0x137a   : > { %11751 = vmatprep.mubr.bf16.mxu1 %v10692_v20  ;;  %14502 = vmatpush3.bf16.msra.mxu0 %v16188_v9 }
0x137b   : > { %10174 = vmatprep.mubr.bf16.mxu0 %v9305_v19  ;;  %14789 = vmatprep.subr.bf16.mxu1 %v16189_v62 }
0x137c   : > { %14503 = vmatprep.subr.bf16.mxu0 %v16190_v18  ;;  %v16211_v18 = vld [vmem:[#allocation9 + $0x1470] sm:$0xff]  }
0x137d   : > { %14790 = vmatpush3.bf16.msra.mxu1 %v16191_v46 }
0x137e   : > { %14504 = vmatpush3.bf16.msra.mxu0 %v16192_v42  ;;  %14791 = vmatprep.subr.bf16.mxu1 %v16193_v57  ;;  %v16212_v57 = vld [vmem:[#allocation9 + $0xdf0] sm:$0xff]  }
0x137f   : > { %14505 = vmatprep.subr.bf16.mxu0 %v16194_v36  ;;  %v16213_v36 = vld [vmem:[#allocation9 + $0x14b8] sm:$0xff]  }
0x1381   : > { %14792 = vmatpush3.bf16.msra.mxu1 %v16195_v43 }
0x1382   : > { %14506 = vmatpush3.bf16.msra.mxu0 %v16196_v40  ;;  %14793 = vmatprep.subr.bf16.mxu1 %v16197_v11  ;;  %v16214_v40 = vld [vmem:[#allocation9 + $0xe38] sm:$0xff]  }
0x1383   : > { %14507 = vmatprep.subr.bf16.mxu0 %v16198_v37  ;;  %v16215_v37 = vld [vmem:[#allocation9 + $0x1478] sm:$0xff]  }
0x1385   : > { %14794 = vmatpush3.bf16.msra.mxu1 %v16199_v23  ;;  %v16216_v23 = vld [vmem:[#allocation9 + $0xdf8] sm:$0xff]  }
0x1386   : > { %14508 = vmatpush3.bf16.msra.mxu0 %v16200_v63  ;;  %14795 = vmatprep.subr.bf16.mxu1 %v16201_v2  ;;  %v16217_v2 = vld [vmem:[#allocation9 + $0xf00] sm:$0xff]  }
0x1387   : > { %14509 = vmatprep.subr.bf16.mxu0 %v16202_v38  ;;  %v10691_v38 = vrot.slane %v6827_v3, 1  ;;  %v16224_v3 = vld [vmem:[#allocation9 + $0xed8] sm:$0xff]  }
0x1389   : > { %14796 = vmatpush3.bf16.msra.mxu1 %v16203_v22  ;;  %v16218_v22 = vld [vmem:[#allocation9 + $0xec0] sm:$0xff]  }
0x138a   : > { %14510 = vmatpush3.bf16.msra.mxu0 %v16204_v59  ;;  %14797 = vmatprep.subr.bf16.mxu1 %v16205_v29  ;;  %v9304_v59 = vrot.slane %v18357_v25, 1  ;;  %v16219_v29 = vld [vmem:[#allocation9 + $0xf08] sm:$0xff]   ;;  %v16289_v25 = vld [vmem:[#allocation9 + $0x1320] sm:$0xff]  }
0x138b   : > { %v14495_v4 = vpop.f32.mrb[124].mxu1  ;;  %14511 = vmatprep.subr.bf16.mxu0 %v16206_v54  ;;  %v16221_v54 = vld [vmem:[#allocation9 + $0xf10] sm:$0xff]  }
0x138c   : > { %v14209_v47 = vpop.f32.mrb[128].mxu0  ;;  %v14496_v8 = vpop.f32.mrb[125].mxu1 }
0x138d   : > { %v18617_v9 = vadd.f32 %v14496_v8, %v14495_v4  ;;  %v14210_v62 = vpop.f32.mrb[129].mxu0  ;;  %v14498_v20 = vpop.f32.mrb[126].mxu1  ;;  %14798 = vmatpush3.bf16.msra.mxu1 %v16207_v16  ;;  %v16222_v16 = vld [vmem:[#allocation9 + $0xed0] sm:$0xff]   ;;  %v16227_v4 = vld [vmem:[#allocation9 + $0xf28] sm:$0xff]  }
0x138e   : > { %v14211_v19 = vadd.f32 %v14210_v62, %v14209_v47  ;;  %v14212_v46 = vpop.f32.mrb[130].mxu0  ;;  %v14499_v42 = vpop.f32.mrb[127].mxu1  ;;  %14512 = vmatpush3.bf16.msra.mxu0 %v16208_v44  ;;  %14799 = vmatprep.subr.bf16.mxu1 %v16209_v60  ;;  %v16225_v44 = vld [vmem:[#allocation9 + $0xf20] sm:$0xff]   ;;  %v16229_v8 = vld [vmem:[#allocation9 + $0xf30] sm:$0xff]  }
0x138f   : > { %v14213_v43 = vpop.f32.mrb[131].mxu0  ;;  %14513 = vmatprep.subr.bf16.mxu0 %v16210_v24  ;;  %v16226_v60 = vld [vmem:[#allocation9 + $0xee0] sm:$0xff]   ;;  %v16228_v24 = vld [vmem:[#allocation9 + $0xee8] sm:$0xff]  }
0x1390   : > { %v7777_v11 = vadd.f32 %v14211_v19, %v18609_v52  ;;  %v9309_v52 = vrot.slane %v18359_v10, 1  ;;  %v16230_v43 = vld [vmem:[#allocation9 + $0xef0] sm:$0xff]   ;;  %v16292_v10 = vld [vmem:[#allocation9 + $0x12e8] sm:$0xff]  }
0x1391   : > { %14800 = vmatpush3.bf16.msra.mxu1 %v16211_v18 }
0x1392   : > { %14514 = vmatpush3.bf16.msra.mxu0 %v16212_v57  ;;  %14801 = vmatprep.subr.bf16.mxu1 %v16213_v36  ;;  %v7817_v63 = vadd.f32 %v18540_v51, %v7777_v11  ;;  %v16220_v51 = vld [vmem:[#allocation9 + $0xec8] sm:$0xff]   ;;  %v16231_v11 = vld [vmem:[#allocation9 + $0xf38] sm:$0xff]  }
0x1393   : > { %14515 = vmatprep.subr.bf16.mxu0 %v16214_v40 }
0x1395   : > { %14802 = vmatpush3.bf16.msra.mxu1 %v16215_v37 }
0x1396   : > { %14516 = vmatpush3.bf16.msra.mxu0 %v16216_v23  ;;  %v16232_v23 = vld [vmem:[#allocation9 + $0xef8] sm:$0xff]  }
0x1397   : > { %14545 = vmatprep.subr.bf16.mxu0 %v16217_v2 }
0x1398   : > { %11752 = vmatmul.mubr.bf16.vlgmr.msra.gmra.mrb[152].mxu1 %v10691_v38  ;;  %v16233_v38 = vld [vmem:[#allocation9 + $0x1000] sm:$0xff]  }
0x1399   : > { %10175 = vmatmul.mubr.bf16.vlgmr.msra.gmra.mrb[156].mxu0 %v9304_v59  ;;  %12201 = vmatprep.mubr.bf16.mxu1 %v17029_v0  ;;  %v9308_v59 = vrot.slane %v18363_v13, 1  ;;  %v16305_v13 = vld [vmem:[#allocation9 + $0x1420] sm:$0xff]  }
0x139a   : > { %14546 = vmatpush3.bf16.msra.mxu0 %v16218_v22  ;;  %10254 = vmatprep.mubr.bf16.mxu0 %v9309_v52  ;;  %v16234_v22 = vld [vmem:[#allocation9 + $0xfc0] sm:$0xff]   ;;  %v9313_v52 = vrot.slane %v18365_v28, 1  ;;  %v16308_v28 = vld [vmem:[#allocation9 + $0x13e8] sm:$0xff]  }
0x139b   : > { %14547 = vmatprep.subr.bf16.mxu0 %v16219_v29  ;;  %v16235_v29 = vld [vmem:[#allocation9 + $0x1008] sm:$0xff]  }
0x139e   : > { %14548 = vmatpush3.bf16.msra.mxu0 %v16220_v51  ;;  %v16236_v51 = vld [vmem:[#allocation9 + $0xfc8] sm:$0xff]  }
0x139f   : > { %14549 = vmatprep.subr.bf16.mxu0 %v16221_v54  ;;  %v16238_v54 = vld [vmem:[#allocation9 + $0xfd0] sm:$0xff]  }
0x13a2   : > { %14550 = vmatpush3.bf16.msra.mxu0 %v16222_v16  ;;  %v16240_v16 = vld [vmem:[#allocation9 + $0xfd8] sm:$0xff]  }
0x13a3   : > { %14551 = vmatprep.subr.bf16.mxu0 %v16223_v33  ;;  %v16241_v33 = vld [vmem:[#allocation9 + $0x1020] sm:$0xff]  }
0x13a6   : > { %14552 = vmatpush3.bf16.msra.mxu0 %v16224_v3  ;;  %v16242_v3 = vld [vmem:[#allocation9 + $0xfe0] sm:$0xff]  }
0x13a7   : > { %14553 = vmatprep.subr.bf16.mxu0 %v16225_v44  ;;  %v16243_v44 = vld [vmem:[#allocation9 + $0x1028] sm:$0xff]  }
0x13aa   : > { %14554 = vmatpush3.bf16.msra.mxu0 %v16226_v60  ;;  %v16244_v60 = vld [vmem:[#allocation9 + $0xfe8] sm:$0xff]  }
0x13ab   : > { %v14539_v47 = vpop.f32.mrb[128].mxu1  ;;  %14555 = vmatprep.subr.bf16.mxu0 %v16227_v4 }
0x13ac   : > { %v14253_v62 = vpop.f32.mrb[132].mxu0  ;;  %v14540_v20 = vpop.f32.mrb[129].mxu1 }
0x13ad   : > { %v18626_v18 = vadd.f32 %v14540_v20, %v14539_v47  ;;  %v14254_v19 = vpop.f32.mrb[133].mxu0  ;;  %v14542_v46 = vpop.f32.mrb[130].mxu1 }
0x13ae   : > { %v14255_v42 = vadd.f32 %v14254_v19, %v14253_v62  ;;  %v14256_v57 = vpop.f32.mrb[134].mxu0  ;;  %v14543_v36 = vpop.f32.mrb[131].mxu1  ;;  %14556 = vmatpush3.bf16.msra.mxu0 %v16228_v24  ;;  %v16245_v24 = vld [vmem:[#allocation9 + $0x1030] sm:$0xff]  }
0x13af   : > { %v14257_v40 = vpop.f32.mrb[135].mxu0  ;;  %14557 = vmatprep.subr.bf16.mxu0 %v16229_v8  ;;  %v16246_v36 = vld [vmem:[#allocation9 + $0xff0] sm:$0xff]  }
0x13b0   : > { %v7857_v37 = vadd.f32 %v14255_v42, %v7817_v63  ;;  %v16237_v63 = vld [vmem:[#allocation9 + $0x1010] sm:$0xff]   ;;  %v16247_v40 = vld [vmem:[#allocation9 + $0x1038] sm:$0xff]  }
0x13b2   : > { %14558 = vmatpush3.bf16.msra.mxu0 %v16230_v43  ;;  %v7897_v2 = vadd.f32 %v18550_v6, %v7857_v37  ;;  %v16239_v6 = vld [vmem:[#allocation9 + $0x1018] sm:$0xff]  }
0x13b3   : > { %14559 = vmatprep.subr.bf16.mxu0 %v16231_v11  ;;  %v16248_v37 = vld [vmem:[#allocation9 + $0xff8] sm:$0xff]  }
0x13b6   : > { %14560 = vmatpush3.bf16.msra.mxu0 %v16232_v23 }
0x13b7   : > { %14589 = vmatprep.subr.bf16.mxu0 %v16233_v38  ;;  %v16249_v38 = vld [vmem:[#allocation9 + $0x1100] sm:$0xff]  }
0x13b9   : > { %10255 = vmatmul.mubr.bf16.vlgmr.msra.gmra.mrb[160].mxu0 %v9308_v59  ;;  %v9312_v59 = vrot.slane %v18369_v15, 1  ;;  %v16321_v15 = vld [vmem:[#allocation9 + $0x1520] sm:$0xff]  }
0x13ba   : > { %14590 = vmatpush3.bf16.msra.mxu0 %v16234_v22  ;;  %10334 = vmatprep.mubr.bf16.mxu0 %v9313_v52  ;;  %v16250_v22 = vld [vmem:[#allocation9 + $0x10c0] sm:$0xff]   ;;  %v9317_v52 = vrot.slane %v18374_v34, 1  ;;  %v16324_v34 = vld [vmem:[#allocation9 + $0x14e8] sm:$0xff]  }
0x13bb   : > { %14591 = vmatprep.subr.bf16.mxu0 %v16235_v29  ;;  %v16251_v29 = vld [vmem:[#allocation9 + $0x1108] sm:$0xff]  }
0x13be   : > { %14592 = vmatpush3.bf16.msra.mxu0 %v16236_v51  ;;  %v16252_v51 = vld [vmem:[#allocation9 + $0x10c8] sm:$0xff]  }
0x13bf   : > { %14593 = vmatprep.subr.bf16.mxu0 %v16237_v63  ;;  %v16254_v63 = vld [vmem:[#allocation9 + $0x10d0] sm:$0xff]  }
0x13c2   : > { %14594 = vmatpush3.bf16.msra.mxu0 %v16238_v54  ;;  %v16256_v54 = vld [vmem:[#allocation9 + $0x10d8] sm:$0xff]  }
0x13c3   : > { %14595 = vmatprep.subr.bf16.mxu0 %v16239_v6  ;;  %v16257_v6 = vld [vmem:[#allocation9 + $0x1120] sm:$0xff]  }
0x13c6   : > { %14596 = vmatpush3.bf16.msra.mxu0 %v16240_v16  ;;  %v16258_v16 = vld [vmem:[#allocation9 + $0x10e0] sm:$0xff]  }
0x13c7   : > { %14597 = vmatprep.subr.bf16.mxu0 %v16241_v33  ;;  %v16259_v33 = vld [vmem:[#allocation9 + $0x1128] sm:$0xff]  }
0x13ca   : > { %14598 = vmatpush3.bf16.msra.mxu0 %v16242_v3  ;;  %v16260_v3 = vld [vmem:[#allocation9 + $0x10e8] sm:$0xff]  }
0x13cb   : > { %v14583_v4 = vpop.f32.mrb[132].mxu1  ;;  %14599 = vmatprep.subr.bf16.mxu0 %v16243_v44 }
0x13cc   : > { %v14297_v47 = vpop.f32.mrb[136].mxu0  ;;  %v14584_v8 = vpop.f32.mrb[133].mxu1 }
0x13cd   : > { %v18631_v62 = vadd.f32 %v14584_v8, %v14583_v4  ;;  %v14298_v20 = vpop.f32.mrb[137].mxu0  ;;  %v14586_v19 = vpop.f32.mrb[134].mxu1 }
0x13ce   : > { %v14299_v46 = vadd.f32 %v14298_v20, %v14297_v47  ;;  %v14300_v42 = vpop.f32.mrb[138].mxu0  ;;  %v14587_v57 = vpop.f32.mrb[135].mxu1  ;;  %14600 = vmatpush3.bf16.msra.mxu0 %v16244_v60  ;;  %v16261_v60 = vld [vmem:[#allocation9 + $0x1130] sm:$0xff]  }
0x13cf   : > { %v14301_v43 = vpop.f32.mrb[139].mxu0  ;;  %14601 = vmatprep.subr.bf16.mxu0 %v16245_v24  ;;  %v16262_v57 = vld [vmem:[#allocation9 + $0x10f0] sm:$0xff]  }
0x13d0   : > { %v7937_v11 = vadd.f32 %v14299_v46, %v7897_v2  ;;  %v16253_v2 = vld [vmem:[#allocation9 + $0x1110] sm:$0xff]   ;;  %v16263_v43 = vld [vmem:[#allocation9 + $0x1138] sm:$0xff]  }
0x13d2   : > { %14602 = vmatpush3.bf16.msra.mxu0 %v16246_v36  ;;  %v8745_v23 = vadd.f32 %v18558_v1, %v7937_v11  ;;  %v16255_v1 = vld [vmem:[#allocation9 + $0x1118] sm:$0xff]  }
0x13d3   : > { %14603 = vmatprep.subr.bf16.mxu0 %v16247_v40  ;;  %v16264_v11 = vld [vmem:[#allocation9 + $0x10f8] sm:$0xff]  }
0x13d6   : > { %14604 = vmatpush3.bf16.msra.mxu0 %v16248_v37 }
0x13d7   : > { %14633 = vmatprep.subr.bf16.mxu0 %v16249_v38  ;;  %v16265_v38 = vld [vmem:[#allocation9 + $0x1200] sm:$0xff]  }
0x13d9   : > { %10335 = vmatmul.mubr.bf16.vlgmr.msra.gmra.mrb[164].mxu0 %v9312_v59  ;;  %v9316_v59 = vrot.slane %v18379_v14, 1 }
0x13da   : > { %14634 = vmatpush3.bf16.msra.mxu0 %v16250_v22  ;;  %10414 = vmatprep.mubr.bf16.mxu0 %v9317_v52  ;;  %v16266_v22 = vld [vmem:[#allocation9 + $0x11c0] sm:$0xff]   ;;  %v10682_v52 = vrot.slane %v6800_v55, 1 }
0x13db   : > { %14635 = vmatprep.subr.bf16.mxu0 %v16251_v29  ;;  %v16267_v29 = vld [vmem:[#allocation9 + $0x1208] sm:$0xff]  }
0x13de   : > { %14636 = vmatpush3.bf16.msra.mxu0 %v16252_v51  ;;  %v16268_v51 = vld [vmem:[#allocation9 + $0x11c8] sm:$0xff]  }
0x13df   : > { %14637 = vmatprep.subr.bf16.mxu0 %v16253_v2  ;;  %v16270_v2 = vld [vmem:[#allocation9 + $0x11d0] sm:$0xff]  }
0x13e2   : > { %14638 = vmatpush3.bf16.msra.mxu0 %v16254_v63  ;;  %v16272_v63 = vld [vmem:[#allocation9 + $0x11d8] sm:$0xff]  }
0x13e3   : > { %14639 = vmatprep.subr.bf16.mxu0 %v16255_v1  ;;  %v16273_v1 = vld [vmem:[#allocation9 + $0x1220] sm:$0xff]  }
0x13e6   : > { %14640 = vmatpush3.bf16.msra.mxu0 %v16256_v54  ;;  %v16274_v54 = vld [vmem:[#allocation9 + $0x11e0] sm:$0xff]  }
0x13e7   : > { %14641 = vmatprep.subr.bf16.mxu0 %v16257_v6  ;;  %v16275_v6 = vld [vmem:[#allocation9 + $0x1228] sm:$0xff]  }
0x13ea   : > { %14642 = vmatpush3.bf16.msra.mxu0 %v16258_v16  ;;  %v16277_v16 = vld [vmem:[#allocation9 + $0x1230] sm:$0xff]  }
0x13eb   : > { %v14627_v44 = vpop.f32.mrb[136].mxu1  ;;  %14643 = vmatprep.subr.bf16.mxu0 %v16259_v33 }
0x13ec   : > { %v14341_v4 = vpop.f32.mrb[140].mxu0  ;;  %v14628_v24 = vpop.f32.mrb[137].mxu1 }
0x13ed   : > { %v18636_v47 = vadd.f32 %v14628_v24, %v14627_v44  ;;  %v14342_v8 = vpop.f32.mrb[141].mxu0  ;;  %v14630_v20 = vpop.f32.mrb[138].mxu1 }
0x13ee   : > { %v14343_v19 = vadd.f32 %v14342_v8, %v14341_v4  ;;  %v14344_v46 = vpop.f32.mrb[142].mxu0  ;;  %v14631_v42 = vpop.f32.mrb[139].mxu1  ;;  %14644 = vmatpush3.bf16.msra.mxu0 %v16260_v3 }
0x13ef   : > { %v14345_v36 = vpop.f32.mrb[143].mxu0  ;;  %14645 = vmatprep.subr.bf16.mxu0 %v16261_v60  ;;  %v16279_v42 = vld [vmem:[#allocation9 + $0x1238] sm:$0xff]  }
0x13f0   : > { %v8785_v40 = vadd.f32 %v14343_v19, %v8745_v23  ;;  %v16269_v23 = vld [vmem:[#allocation9 + $0x1210] sm:$0xff]   ;;  %v16280_v36 = vld [vmem:[#allocation9 + $0x11f8] sm:$0xff]  }
0x13f1   : > { %v16278_v19 = vld [vmem:[#allocation9 + $0x11f0] sm:$0xff]  }
0x13f2   : > { %14646 = vmatpush3.bf16.msra.mxu0 %v16262_v57  ;;  %v8825_v37 = vadd.f32 %v18565_v32, %v8785_v40  ;;  %v16271_v32 = vld [vmem:[#allocation9 + $0x1218] sm:$0xff]   ;;  %v16281_v40 = vld [vmem:[#allocation9 + $0x1300] sm:$0xff]  }
0x13f3   : > { %14647 = vmatprep.subr.bf16.mxu0 %v16263_v43 }
0x13f6   : > { %14648 = vmatpush3.bf16.msra.mxu0 %v16264_v11  ;;  %v16282_v11 = vld [vmem:[#allocation9 + $0x12c0] sm:$0xff]  }
0x13f7   : > { %14677 = vmatprep.subr.bf16.mxu0 %v16265_v38  ;;  %v10681_v38 = vrot.slane %v6797_v49, 1  ;;  %v16290_v49 = vld [vmem:[#allocation9 + $0x12e0] sm:$0xff]  }
0x13f9   : > { %10415 = vmatmul.mubr.bf16.vlgmr.msra.gmra.mrb[168].mxu0 %v9316_v59  ;;  %v10686_v59 = vrot.slane %v6812_v50, 1 }
0x13fa   : > { %14678 = vmatpush3.bf16.msra.mxu0 %v16266_v22  ;;  %11551 = vmatprep.mubr.bf16.mxu0 %v10682_v52  ;;  %v16283_v22 = vld [vmem:[#allocation9 + $0x1308] sm:$0xff]   ;;  %v16287_v52 = vld [vmem:[#allocation9 + $0x1318] sm:$0xff]  }
0x13fb   : > { %14679 = vmatprep.subr.bf16.mxu0 %v16267_v29  ;;  %v16285_v29 = vld [vmem:[#allocation9 + $0x1310] sm:$0xff]  }
0x13fe   : > { %14680 = vmatpush3.bf16.msra.mxu0 %v16268_v51  ;;  %v16288_v51 = vld [vmem:[#allocation9 + $0x12d8] sm:$0xff]  }
0x13ff   : > { %14681 = vmatprep.subr.bf16.mxu0 %v16269_v23  ;;  %v16291_v23 = vld [vmem:[#allocation9 + $0x1328] sm:$0xff]  }
0x1402   : > { %14682 = vmatpush3.bf16.msra.mxu0 %v16270_v2  ;;  %v16293_v2 = vld [vmem:[#allocation9 + $0x1330] sm:$0xff]  }
0x1403   : > { %14683 = vmatprep.subr.bf16.mxu0 %v16271_v32 }
0x1406   : > { %14684 = vmatpush3.bf16.msra.mxu0 %v16272_v63 }
0x1407   : > { %14685 = vmatprep.subr.bf16.mxu0 %v16273_v1 }
0x140a   : > { %14686 = vmatpush3.bf16.msra.mxu0 %v16274_v54 }
0x140b   : > { %v14671_v55 = vpop.f32.mrb[140].mxu1  ;;  %14687 = vmatprep.subr.bf16.mxu0 %v16275_v6 }
0x140c   : > { %v14385_v33 = vpop.f32.mrb[144].mxu0  ;;  %v14672_v3 = vpop.f32.mrb[141].mxu1 }
0x140d   : > { %v18642_v44 = vadd.f32 %v14672_v3, %v14671_v55  ;;  %v14386_v60 = vpop.f32.mrb[145].mxu0  ;;  %v14674_v4 = vpop.f32.mrb[142].mxu1 }
0x140e   : > { %v14387_v24 = vadd.f32 %v14386_v60, %v14385_v33  ;;  %v14388_v8 = vpop.f32.mrb[146].mxu0  ;;  %v14675_v20 = vpop.f32.mrb[143].mxu1  ;;  %14688 = vmatpush3.bf16.msra.mxu0 %v16276_v53  ;;  %v16294_v33 = vld [vmem:[#allocation9 + $0x12f0] sm:$0xff]   ;;  %v16295_v60 = vld [vmem:[#allocation9 + $0x1338] sm:$0xff]  }
0x140f   : > { %v14389_v46 = vpop.f32.mrb[147].mxu0  ;;  %14689 = vmatprep.subr.bf16.mxu0 %v16277_v16  ;;  %v16297_v20 = vld [vmem:[#allocation9 + $0x1400] sm:$0xff]  }
0x1410   : > { %v8865_v57 = vadd.f32 %v14387_v24, %v8825_v37  ;;  %v16284_v37 = vld [vmem:[#allocation9 + $0x12c8] sm:$0xff]   ;;  %v16296_v24 = vld [vmem:[#allocation9 + $0x12f8] sm:$0xff]   ;;  %v10685_v46 = vrot.slane %v6809_v7, 1  ;;  %v16306_v7 = vld [vmem:[#allocation9 + $0x13e0] sm:$0xff]  }
0x1412   : > { %14690 = vmatpush3.bf16.msra.mxu0 %v16278_v19  ;;  %v8905_v43 = vadd.f32 %v18576_v61, %v8865_v57  ;;  %v16286_v61 = vld [vmem:[#allocation9 + $0x12d0] sm:$0xff]   ;;  %v16298_v19 = vld [vmem:[#allocation9 + $0x13c0] sm:$0xff]   ;;  %v10690_v57 = vrot.slane %v6824_v39, 1 }
0x1413   : > { %14691 = vmatprep.subr.bf16.mxu0 %v16279_v42  ;;  %v16299_v42 = vld [vmem:[#allocation9 + $0x1408] sm:$0xff]  }
0x1416   : > { %14692 = vmatpush3.bf16.msra.mxu0 %v16280_v36  ;;  %v16300_v36 = vld [vmem:[#allocation9 + $0x13c8] sm:$0xff]  }
0x1417   : > { %14721 = vmatprep.subr.bf16.mxu0 %v16281_v40  ;;  %v16303_v40 = vld [vmem:[#allocation9 + $0x1418] sm:$0xff]  }
0x1419   : > { %11552 = vmatmul.mubr.bf16.vlgmr.msra.gmra.mrb[172].mxu0 %v10681_v38  ;;  %v16307_v38 = vld [vmem:[#allocation9 + $0x1428] sm:$0xff]  }
0x141a   : > { %14722 = vmatpush3.bf16.msra.mxu0 %v16282_v11  ;;  %11631 = vmatprep.mubr.bf16.mxu0 %v10686_v59  ;;  %v16304_v11 = vld [vmem:[#allocation9 + $0x13d8] sm:$0xff]  }
0x141b   : > { %14723 = vmatprep.subr.bf16.mxu0 %v16283_v22  ;;  %v16309_v22 = vld [vmem:[#allocation9 + $0x1430] sm:$0xff]  }
0x141e   : > { %14724 = vmatpush3.bf16.msra.mxu0 %v16284_v37 }
0x141f   : > { %14725 = vmatprep.subr.bf16.mxu0 %v16285_v29 }
0x1422   : > { %14726 = vmatpush3.bf16.msra.mxu0 %v16286_v61 }
0x1423   : > { %14727 = vmatprep.subr.bf16.mxu0 %v16287_v52 }
0x1426   : > { %14728 = vmatpush3.bf16.msra.mxu0 %v16288_v51 }
0x1427   : > { %14729 = vmatprep.subr.bf16.mxu0 %v16289_v25 }
0x142a   : > { %14730 = vmatpush3.bf16.msra.mxu0 %v16290_v49 }
0x142b   : > { %v14715_v50 = vpop.f32.mrb[144].mxu1  ;;  %14731 = vmatprep.subr.bf16.mxu0 %v16291_v23  ;;  %v16310_v23 = vld [vmem:[#allocation9 + $0x13f0] sm:$0xff]  }
0x142c   : > { %v14429_v32 = vpop.f32.mrb[148].mxu0  ;;  %v14716_v63 = vpop.f32.mrb[145].mxu1 }
0x142d   : > { %v18649_v1 = vadd.f32 %v14716_v63, %v14715_v50  ;;  %v14430_v54 = vpop.f32.mrb[149].mxu0  ;;  %v14718_v6 = vpop.f32.mrb[146].mxu1  ;;  %v16311_v50 = vld [vmem:[#allocation9 + $0x1438] sm:$0xff]   ;;  %v16313_v63 = vld [vmem:[#allocation9 + $0x1500] sm:$0xff]  }
0x142e   : > { %v14431_v53 = vadd.f32 %v14430_v54, %v14429_v32  ;;  %v14432_v55 = vpop.f32.mrb[150].mxu0  ;;  %v14719_v16 = vpop.f32.mrb[147].mxu1  ;;  %14732 = vmatpush3.bf16.msra.mxu0 %v16292_v10  ;;  %v16312_v32 = vld [vmem:[#allocation9 + $0x13f8] sm:$0xff]   ;;  %v16314_v54 = vld [vmem:[#allocation9 + $0x14c0] sm:$0xff]   ;;  %v10689_v6 = vrot.slane %v6821_v17, 1 }
0x142f   : > { %v14433_v3 = vpop.f32.mrb[151].mxu0  ;;  %14733 = vmatprep.subr.bf16.mxu0 %v16293_v2  ;;  %v10694_v55 = vrot.slane %v6836_v41, 1  ;;  %v16316_v16 = vld [vmem:[#allocation9 + $0x14c8] sm:$0xff]   ;;  %v16322_v17 = vld [vmem:[#allocation9 + $0x14e0] sm:$0xff]  }
0x1430   : > { %v8945_v4 = vadd.f32 %v14431_v53, %v8905_v43  ;;  %v16301_v43 = vld [vmem:[#allocation9 + $0x1410] sm:$0xff]   ;;  %v16315_v53 = vld [vmem:[#allocation9 + $0x1508] sm:$0xff]  }
0x1431   : > { %v16318_v3 = vld [vmem:[#allocation9 + $0x14d0] sm:$0xff]  }
0x1432   : > { %14734 = vmatpush3.bf16.msra.mxu0 %v16294_v33  ;;  %v8985_v8 = vadd.f32 %v18605_v30, %v8945_v4  ;;  %v16302_v30 = vld [vmem:[#allocation9 + $0x13d0] sm:$0xff]   ;;  %v16320_v4 = vld [vmem:[#allocation9 + $0x14d8] sm:$0xff]  }
0x1433   : > { %14735 = vmatprep.subr.bf16.mxu0 %v16295_v60  ;;  %v16317_v33 = vld [vmem:[#allocation9 + $0x1510] sm:$0xff]   ;;  %v16319_v60 = vld [vmem:[#allocation9 + $0x1518] sm:$0xff]  }
0x1436   : > { %14736 = vmatpush3.bf16.msra.mxu0 %v16296_v24  ;;  %v16323_v24 = vld [vmem:[#allocation9 + $0x1528] sm:$0xff]  }
0x1437   : > { %14765 = vmatprep.subr.bf16.mxu0 %v16297_v20 }
0x1439   : > { %11632 = vmatmul.mubr.bf16.vlgmr.msra.gmra.mrb[176].mxu0 %v10685_v46 }
0x143a   : > { %14766 = vmatpush3.bf16.msra.mxu0 %v16298_v19  ;;  %11711 = vmatprep.mubr.bf16.mxu0 %v10690_v57 }
0x143b   : > { %14767 = vmatprep.subr.bf16.mxu0 %v16299_v42 }
0x143e   : > { %14768 = vmatpush3.bf16.msra.mxu0 %v16300_v36 }
0x143f   : > { %14769 = vmatprep.subr.bf16.mxu0 %v16301_v43 }
0x1442   : > { %14770 = vmatpush3.bf16.msra.mxu0 %v16302_v30 }
0x1443   : > { %14771 = vmatprep.subr.bf16.mxu0 %v16303_v40  ;;  %v16326_v40 = vld [vmem:[#allocation9 + $0x14f0] sm:$0xff]  }
0x1446   : > { %14772 = vmatpush3.bf16.msra.mxu0 %v16304_v11 }
0x1447   : > { %14773 = vmatprep.subr.bf16.mxu0 %v16305_v13  ;;  %v16327_v13 = vld [vmem:[#allocation9 + $0x1538] sm:$0xff]  }
0x144a   : > { %14774 = vmatpush3.bf16.msra.mxu0 %v16306_v7 }
0x144b   : > { %v14759_v39 = vpop.f32.mrb[148].mxu1  ;;  %14775 = vmatprep.subr.bf16.mxu0 %v16307_v38  ;;  %v16328_v38 = vld [vmem:[#allocation9 + $0x14f8] sm:$0xff]  }
0x144c   : > { %v14473_v59 = vpop.f32.mrb[152].mxu0  ;;  %v14760_v37 = vpop.f32.mrb[149].mxu1 }
0x144d   : > { %v18656_v29 = vadd.f32 %v14760_v37, %v14759_v39  ;;  %v14474_v61 = vpop.f32.mrb[153].mxu0  ;;  %v14762_v52 = vpop.f32.mrb[150].mxu1  ;;  %v10693_v39 = vrot.slane %v6833_v56, 1 }
0x144e   : > { %v14475_v51 = vadd.f32 %v14474_v61, %v14473_v59  ;;  %v14476_v25 = vpop.f32.mrb[154].mxu0  ;;  %v14763_v49 = vpop.f32.mrb[151].mxu1  ;;  %14776 = vmatpush3.bf16.msra.mxu0 %v16308_v28 }
0x144f   : > { %v14477_v10 = vpop.f32.mrb[155].mxu0  ;;  %14777 = vmatprep.subr.bf16.mxu0 %v16309_v22 }
0x1450   : > { %v18658_v2 = vadd.f32 %v14475_v51, %v8985_v8  ;;  %v16325_v8 = vld [vmem:[#allocation9 + $0x1530] sm:$0xff]  }
0x1452   : > { %14778 = vmatpush3.bf16.msra.mxu0 %v16310_v23 }
0x1453   : > { %14779 = vmatprep.subr.bf16.mxu0 %v16311_v50 }
0x1456   : > { %14780 = vmatpush3.bf16.msra.mxu0 %v16312_v32 }
0x1457   : > { %14809 = vmatprep.subr.bf16.mxu0 %v16313_v63 }
0x1459   : > { %11712 = vmatmul.mubr.bf16.vlgmr.msra.gmra.mrb[180].mxu0 %v10689_v6 }
0x145a   : > { %14810 = vmatpush3.bf16.msra.mxu0 %v16314_v54  ;;  %11791 = vmatprep.mubr.bf16.mxu0 %v10694_v55 }
0x145b   : > { %14811 = vmatprep.subr.bf16.mxu0 %v16315_v53 }
0x145e   : > { %14812 = vmatpush3.bf16.msra.mxu0 %v16316_v16 }
0x145f   : > { %14813 = vmatprep.subr.bf16.mxu0 %v16317_v33 }
0x1462   : > { %14814 = vmatpush3.bf16.msra.mxu0 %v16318_v3 }
0x1463   : > { %14815 = vmatprep.subr.bf16.mxu0 %v16319_v60 }
0x1466   : > { %14816 = vmatpush3.bf16.msra.mxu0 %v16320_v4 }
0x1467   : > { %14817 = vmatprep.subr.bf16.mxu0 %v16321_v15 }
0x146a   : > { %14818 = vmatpush3.bf16.msra.mxu0 %v16322_v17 }
0x146b   : > { %v14803_v41 = vpop.f32.mrb[152].mxu1  ;;  %14819 = vmatprep.subr.bf16.mxu0 %v16323_v24 }
0x146c   : > { %v14517_v20 = vpop.f32.mrb[156].mxu0  ;;  %v14804_v19 = vpop.f32.mrb[153].mxu1 }
0x146d   : > { %v14805_v46 = vadd.f32 %v14804_v19, %v14803_v41  ;;  %v14518_v42 = vpop.f32.mrb[157].mxu0  ;;  %v14806_v57 = vpop.f32.mrb[154].mxu1 }
0x146e   : > { %v14519_v36 = vadd.f32 %v14518_v42, %v14517_v20  ;;  %v14520_v43 = vpop.f32.mrb[158].mxu0  ;;  %v14807_v30 = vpop.f32.mrb[155].mxu1  ;;  %14820 = vmatpush3.bf16.msra.mxu0 %v16324_v34 }
0x146f   : > { %v14521_v11 = vpop.f32.mrb[159].mxu0  ;;  %14821 = vmatprep.subr.bf16.mxu0 %v16325_v8 }
0x1470   : > { %v10177_v7 = vadd.f32 %v14519_v36, %v18617_v9 }
0x1472   : > { %14822 = vmatpush3.bf16.msra.mxu0 %v16326_v40  ;;  %v10217_v28 = vadd.f32 %v18626_v18, %v10177_v7 }
0x1473   : > { %14823 = vmatprep.subr.bf16.mxu0 %v16327_v13 }
0x1476   : > { %14824 = vmatpush3.bf16.msra.mxu0 %v16328_v38 }
0x1479   : > { %11792 = vmatmul.mubr.bf16.vlgmr.msra.gmra.mrb[184].mxu0 %v10693_v39 }
0x148c   : > { %v14561_v22 = vpop.f32.mrb[160].mxu0 }
0x148d   : > { %v14562_v59 = vpop.f32.mrb[161].mxu0 }
0x148e   : > { %v14563_v37 = vadd.f32 %v14562_v59, %v14561_v22  ;;  %v14564_v61 = vpop.f32.mrb[162].mxu0 }
0x148f   : > { %v14565_v52 = vpop.f32.mrb[163].mxu0 }
0x1490   : > { %v10257_v51 = vadd.f32 %v14563_v37, %v10217_v28 }
0x1492   : > { %v10297_v25 = vadd.f32 %v18631_v62, %v10257_v51  ;;  %v18683_v51 = vld [vmem:[#allocation2 + $0x8] sm:$0xff] }
0x14ac   : > { %v14605_v49 = vpop.f32.mrb[164].mxu0 }
0x14ad   : > { %v14606_v9 = vpop.f32.mrb[165].mxu0 }
0x14ae   : > { %v14607_v23 = vadd.f32 %v14606_v9, %v14605_v49  ;;  %v14608_v10 = vpop.f32.mrb[166].mxu0  ;;  %v18686_v49 = vld [vmem:[#allocation2] sm:$0xff] }
0x14af   : > { %v14609_v50 = vpop.f32.mrb[167].mxu0 }
0x14b0   : > { %v10337_v18 = vadd.f32 %v14607_v23, %v10297_v25  ;;  %v18701_v23 = vld [vmem:[#allocation2 + $0x30] sm:$0xff]  ;;  %v18704_v50 = vld [vmem:[#allocation2 + $0x38] sm:$0xff] }
0x14b2   : > { %v10377_v32 = vadd.f32 %v18636_v47, %v10337_v18 }
0x14cc   : > { %v14649_v63 = vpop.f32.mrb[168].mxu0 }
0x14cd   : > { %v14650_v14 = vpop.f32.mrb[169].mxu0 }
0x14ce   : > { %v14651_v56 = vadd.f32 %v14650_v14, %v14649_v63  ;;  %v14652_v54 = vpop.f32.mrb[170].mxu0 }
0x14cf   : > { %v14653_v6 = vpop.f32.mrb[171].mxu0 }
0x14d0   : > { %v10417_v53 = vadd.f32 %v14651_v56, %v10377_v32 }
0x14d2   : > { %v10422_v55 = vadd.f32 %v10417_v53, %v18658_v2 }
0x14ec   : > { %v14693_v16 = vpop.f32.mrb[172].mxu0 }
0x14ed   : > { %v14694_v33 = vpop.f32.mrb[173].mxu0 }
0x14ee   : > { %v14695_v3 = vadd.f32 %v14694_v33, %v14693_v16  ;;  %v14696_v62 = vpop.f32.mrb[174].mxu0 }
0x14ef   : > { %v14697_v60 = vpop.f32.mrb[175].mxu0 }
0x14f0   : > { %v11554_v4 = vadd.f32 %v14695_v3, %v18642_v44 }
0x14f2   : > { %v11594_v15 = vadd.f32 %v18649_v1, %v11554_v4 }
0x150c   : > { %v14737_v17 = vpop.f32.mrb[176].mxu0 }
0x150d   : > { %v14738_v24 = vpop.f32.mrb[177].mxu0 }
0x150e   : > { %v14739_v47 = vadd.f32 %v14738_v24, %v14737_v17  ;;  %v14740_v34 = vpop.f32.mrb[178].mxu0 }
0x150f   : > { %v14741_v41 = vpop.f32.mrb[179].mxu0 }
0x1510   : > { %v11634_v8 = vadd.f32 %v14739_v47, %v11594_v15 }
0x1512   : > { %v11674_v20 = vadd.f32 %v18656_v29, %v11634_v8 }
0x152c   : > { %v14781_v19 = vpop.f32.mrb[180].mxu0 }
0x152d   : > { %v14782_v42 = vpop.f32.mrb[181].mxu0 }
0x152e   : > { %v14783_v2 = vadd.f32 %v14782_v42, %v14781_v19  ;;  %v14784_v57 = vpop.f32.mrb[182].mxu0 }
0x152f   : > { %v14785_v36 = vpop.f32.mrb[183].mxu0 }
0x1530   : > { %v11714_v43 = vadd.f32 %v14783_v2, %v11674_v20 }
0x1532   : > { %v11754_v30 = vadd.f32 %v14805_v46, %v11714_v43 }
0x154c   : > { %v14825_v40 = vpop.f32.mrb[184].mxu0 }
0x154d   : > { %v14826_v11 = vpop.f32.mrb[185].mxu0 }
0x154e   : > { %v14827_v44 = vadd.f32 %v14826_v11, %v14825_v40  ;;  %v14828_v13 = vpop.f32.mrb[186].mxu0 }
0x154f   : > { %v14829_v1 = vpop.f32.mrb[187].mxu0 }
0x1550   : > { %v11794_v7 = vadd.f32 %v14827_v44, %v11754_v30 }
0x1552   : > { %v11799_v38 = vadd.f32 %v11794_v7, %v10422_v55 }
0x1554   : > { %v11803_v28 = vrot.slane %v11799_v38, %v17433_v31 }
0x1556   : > { %v11805_v39 = vadd.f32 %v11803_v28, %v18585_v26  ;;  %v11804_v29 = vadd.f32 %v11803_v28, %v18579_v35  ;;  %v11807_v22 = vadd.f32 %v11803_v28, %v18582_v45  ;;  %v11806_v59 = vadd.f32 %v11803_v28, %v18574_v58  ;;  %v18689_v45 = vld [vmem:[#allocation2 + $0x18] sm:$0xff]  ;;  %v18692_v26 = vld [vmem:[#allocation2 + $0x10] sm:$0xff] }
0x1557   : > { %v11808_v37 = vadd.f32 %v11803_v28, %v18591_v48  ;;  %v11809_v46 = vadd.f32 %v11803_v28, %v18599_v27  ;;  %v11810_v61 = vadd.f32 %v11803_v28, %v18588_v21  ;;  %v11811_v52 = vadd.f32 %v11803_v28, %v18596_v5  ;;  %v18695_v48 = vld [vmem:[#allocation2 + $0x20] sm:$0xff]  ;;  %v18698_v27 = vld [vmem:[#allocation2 + $0x28] sm:$0xff] }
0x1558   : > { %v11813_v25 = vadd.f32 %v18683_v51, %v11805_v39  ;;  %v11812_v35 = vadd.f32 %v18686_v49, %v11804_v29  ;;  %v11815_v58 = vadd.f32 %v18689_v45, %v11807_v22  ;;  %v11814_v21 = vadd.f32 %v18692_v26, %v11806_v59 }
0x1559   : > { %v11816_v5 = vadd.f32 %v18695_v48, %v11808_v37  ;;  %v11817_v9 = vadd.f32 %v18698_v27, %v11809_v46  ;;  %v11818_v10 = vadd.f32 %v18701_v23, %v11810_v61  ;;  %v11819_v18 = vadd.f32 %v18704_v50, %v11811_v52 }
0x155a   : > { %11824 = vadd.xlane.f32.xlu1 %v11813_v25  ;;  %11822 = vadd.xlane.f32.xlu0 %v11812_v35 }
0x155e   : > { %11828 = vadd.xlane.f32.xlu1 %v11815_v58  ;;  %11826 = vadd.xlane.f32.xlu0 %v11814_v21 }
0x1562   : > { %11830 = vadd.xlane.f32.xlu0 %v11816_v5  ;;  %11832 = vadd.xlane.f32.xlu1 %v11817_v9 }
0x1566   : > { %11834 = vadd.xlane.f32.xlu0 %v11818_v10  ;;  %11836 = vadd.xlane.f32.xlu1 %v11819_v18 }
0x15e7   : > { %v11825_v32 = vpop.xlane.xlu1 %11824  ;;  %v11823_v63 = vpop.xlane.xlu0 %11822 }
0x15e8   : > { %v11839_v14 = vmul.f32 0.0078125, %v11825_v32  ;;  %v11838_v56 = vmul.f32 0.0078125, %v11823_v63 }
0x15ea   : > { %v18707_v54 = vsub.f32 %v11813_v25, %v11839_v14  ;;  %v18709_v6 = vsub.f32 %v11812_v35, %v11838_v56 }
0x15eb   : > { %v11829_v53 = vpop.xlane.xlu1 %11828  ;;  %v11827_v55 = vpop.xlane.xlu0 %11826 }
0x15ec   : > { %v11841_v16 = vmul.f32 0.0078125, %v11829_v53  ;;  %v11840_v33 = vmul.f32 0.0078125, %v11827_v55  ;;  %v11854_v3 = vmul.f32 %v18709_v6, %v18709_v6  ;;  %v11855_v62 = vmul.f32 %v18707_v54, %v18707_v54  ;;  %v13615_v53 = vld [vmem:[#allocation15 + $0x4] ss:$0 sm:$0xff] }
0x15ee   : > { %v18715_v60 = vsub.f32 %v11815_v58, %v11841_v16  ;;  %v18717_v4 = vsub.f32 %v11814_v21, %v11840_v33  ;;  %11862 = vadd.xlane.f32.xlu0 %v11854_v3  ;;  %11864 = vadd.xlane.f32.xlu1 %v11855_v62  ;;  %v13616_v33 = vld [vmem:[#allocation15 + $0x5] ss:$0 sm:$0xff] }
0x15ef   : > { %v11831_v15 = vpop.xlane.xlu0 %11830  ;;  %v11833_v17 = vpop.xlane.xlu1 %11832 }
0x15f0   : > { %v11842_v24 = vmul.f32 0.0078125, %v11831_v15  ;;  %v11843_v47 = vmul.f32 0.0078125, %v11833_v17  ;;  %v11856_v34 = vmul.f32 %v18717_v4, %v18717_v4  ;;  %v11857_v41 = vmul.f32 %v18715_v60, %v18715_v60 }
0x15f2   : > { %v18723_v8 = vsub.f32 %v11816_v5, %v11842_v24  ;;  %v18725_v20 = vsub.f32 %v11817_v9, %v11843_v47  ;;  %11866 = vadd.xlane.f32.xlu0 %v11856_v34  ;;  %11868 = vadd.xlane.f32.xlu1 %v11857_v41 }
0x15f3   : > { %v11835_v19 = vpop.xlane.xlu0 %11834  ;;  %v11837_v42 = vpop.xlane.xlu1 %11836 }
0x15f4   : > { %v11844_v2 = vmul.f32 0.0078125, %v11835_v19  ;;  %v11845_v57 = vmul.f32 0.0078125, %v11837_v42  ;;  %v11858_v36 = vmul.f32 %v18723_v8, %v18723_v8  ;;  %v11859_v43 = vmul.f32 %v18725_v20, %v18725_v20 }
0x15f6   : > { %v18731_v30 = vsub.f32 %v11818_v10, %v11844_v2  ;;  %v18733_v40 = vsub.f32 %v11819_v18, %v11845_v57  ;;  %11870 = vadd.xlane.f32.xlu0 %v11858_v36  ;;  %11872 = vadd.xlane.f32.xlu1 %v11859_v43 }
0x15f8   : > { %v11860_v11 = vmul.f32 %v18731_v30, %v18731_v30  ;;  %v11861_v44 = vmul.f32 %v18733_v40, %v18733_v40 }
0x15fa   : > { %11874 = vadd.xlane.f32.xlu0 %v11860_v11  ;;  %11876 = vadd.xlane.f32.xlu1 %v11861_v44 }
0x167b   : > { %v11863_v13 = vpop.xlane.xlu0 %11862  ;;  %v11865_v1 = vpop.xlane.xlu1 %11864 }
0x167c   : > { %v11878_v7 = vmul.f32 0.0078125, %v11863_v13  ;;  %v11879_v38 = vmul.f32 0.0078125, %v11865_v1 }
0x167e   : > { %v11886_v28 = vadd.f32 1e-05, %v11878_v7  ;;  %v11887_v39 = vadd.f32 1e-05, %v11879_v38 }
0x167f   : > { %v11867_v29 = vpop.xlane.xlu0 %11866  ;;  %v11869_v22 = vpop.xlane.xlu1 %11868 }
0x1680   : > { %16641 = vrsqrt.f32 %v11886_v28  ;;  %v11880_v59 = vmul.f32 0.0078125, %v11867_v29  ;;  %v11881_v37 = vmul.f32 0.0078125, %v11869_v22 }
0x1681   : > { %16643 = vrsqrt.f32 %v11887_v39 }
0x1682   : > { %v11888_v46 = vadd.f32 1e-05, %v11880_v59  ;;  %v11889_v61 = vadd.f32 1e-05, %v11881_v37 }
0x1683   : > { %v11871_v52 = vpop.xlane.xlu0 %11870  ;;  %v11873_v25 = vpop.xlane.xlu1 %11872 }
0x1684   : > { %16645 = vrsqrt.f32 %v11888_v46  ;;  %v11882_v35 = vmul.f32 0.0078125, %v11871_v52  ;;  %v11883_v58 = vmul.f32 0.0078125, %v11873_v25  ;;  %v16334_v52 = vld [vmem:[#allocation11 + $0x14] ss:$8 sps:$4 sm:$0xff]  }
0x1685   : > { %16647 = vrsqrt.f32 %v11889_v61  ;;  %v16331_v61 = vld [vmem:[#allocation11 + $0x4] ss:$8 sps:$4 sm:$0xff]  }
0x1686   : > { %v11890_v21 = vadd.f32 1e-05, %v11882_v35  ;;  %v11891_v5 = vadd.f32 1e-05, %v11883_v58  ;;  %12169 = vmatprep.subr.bf16.mxu1 %v16331_v61 }
0x1687   : > { %v11875_v9 = vpop.xlane.xlu0 %11874  ;;  %v11877_v10 = vpop.xlane.xlu1 %11876 }
0x1688   : > { %16649 = vrsqrt.f32 %v11890_v21  ;;  %v11884_v18 = vmul.f32 0.0078125, %v11875_v9  ;;  %v11885_v32 = vmul.f32 0.0078125, %v11877_v10 }
0x1689   : > { %16651 = vrsqrt.f32 %v11891_v5 }
0x168a   : > { %v16642_v63 = vpop.eup %16641  ;;  %v11892_v14 = vadd.f32 1e-05, %v11884_v18  ;;  %v11893_v56 = vadd.f32 1e-05, %v11885_v32 }
0x168b   : > { %v16644_v55 = vpop.eup %16643  ;;  %v11902_v16 = vmul.f32 %v16642_v63, %v18709_v6 }
0x168c   : > { %16653 = vrsqrt.f32 %v11892_v14  ;;  %v11903_v3 = vmul.f32 %v16644_v55, %v18707_v54 }
0x168d   : > { %16655 = vrsqrt.f32 %v11893_v56  ;;  %v11914_v62 = vmul.f32 %v13615_v53, %v11902_v16 }
0x168e   : > { %v16646_v15 = vpop.eup %16645  ;;  %v11915_v17 = vmul.f32 %v13615_v53, %v11903_v3 }
0x168f   : > { %v16648_v24 = vpop.eup %16647  ;;  %v11926_v47 = vadd.f32 %v13616_v33, %v11914_v62  ;;  %v11904_v34 = vmul.f32 %v16646_v15, %v18717_v4 }
0x1690   : > { %v11927_v41 = vadd.f32 %v13616_v33, %v11915_v17  ;;  %v11905_v19 = vmul.f32 %v16648_v24, %v18715_v60 }
0x1691   : > { %v11934_v42 = vadd.f32 %v18686_v49, %v11926_v47  ;;  %v11916_v2 = vmul.f32 %v13615_v53, %v11904_v34 }
0x1692   : > { %v16650_v57 = vpop.eup %16649  ;;  %v11935_v6 = vadd.f32 %v18683_v51, %v11927_v41  ;;  %v11917_v36 = vmul.f32 %v13615_v53, %v11905_v19 }
0x1693   : > { %v16652_v43 = vpop.eup %16651  ;;  %11944 = vadd.xlane.f32.xlu0 %v11934_v42  ;;  %v11928_v54 = vadd.f32 %v13616_v33, %v11916_v2  ;;  %v11906_v11 = vmul.f32 %v16650_v57, %v18723_v8 }
0x1694   : > { %11946 = vadd.xlane.f32.xlu1 %v11935_v6  ;;  %v11929_v44 = vadd.f32 %v13616_v33, %v11917_v36  ;;  %v11907_v13 = vmul.f32 %v16652_v43, %v18725_v20  ;;  %v16338_v43 = vld [vmem:[#allocation11 + $0x30] ss:$8 sps:$4 sm:$0xff]  }
0x1695   : > { %v11936_v4 = vadd.f32 %v18692_v26, %v11928_v54  ;;  %v11918_v1 = vmul.f32 %v13615_v53, %v11906_v11  ;;  %v16340_v54 = vld [vmem:[#allocation11 + $0x34] ss:$8 sps:$4 sm:$0xff]   ;;  %v16343_v11 = vld [vmem:[#allocation11 + $0x44] ss:$8 sps:$4 sm:$0xff]  }
0x1696   : > { %v16654_v60 = vpop.eup %16653  ;;  %v11937_v49 = vadd.f32 %v18689_v45, %v11929_v44  ;;  %v11919_v7 = vmul.f32 %v13615_v53, %v11907_v13  ;;  %v16341_v44 = vld [vmem:[#allocation11 + $0x40] ss:$8 sps:$4 sm:$0xff]   ;;  %v16346_v13 = vld [vmem:[#allocation11 + $0x54] ss:$8 sps:$4 sm:$0xff]  }
0x1697   : > { %v16656_v38 = vpop.eup %16655  ;;  %11948 = vadd.xlane.f32.xlu0 %v11936_v4  ;;  %v11930_v51 = vadd.f32 %v13616_v33, %v11918_v1  ;;  %v11908_v28 = vmul.f32 %v16654_v60, %v18731_v30  ;;  %v16329_v30 = vld [vmem:[#allocation11] ss:$8 sps:$4 sm:$0xff]   ;;  %v16349_v1 = vld [vmem:[#allocation11 + $0x64] ss:$8 sps:$4 sm:$0xff]  }
0x1698   : > { %11950 = vadd.xlane.f32.xlu1 %v11937_v49  ;;  %v11931_v39 = vadd.f32 %v13616_v33, %v11919_v7  ;;  %v11909_v8 = vmul.f32 %v16656_v38, %v18733_v40  ;;  %12170 = vmatpush1.bf16.msra.mxu1 %v16329_v30  ;;  %v16337_v40 = vld [vmem:[#allocation11 + $0x24] ss:$8 sps:$4 sm:$0xff]   ;;  %v16347_v60 = vld [vmem:[#allocation11 + $0x60] ss:$8 sps:$4 sm:$0xff]   ;;  %v16350_v7 = vld [vmem:[#allocation11 + $0x70] ss:$8 sps:$4 sm:$0xff]  }
0x1699   : > { %v11938_v29 = vadd.f32 %v18695_v48, %v11930_v51  ;;  %v11920_v22 = vmul.f32 %v13615_v53, %v11908_v28  ;;  %v16332_v48 = vld [vmem:[#allocation11 + $0x10] ss:$8 sps:$4 sm:$0xff]   ;;  %12171 = vmatprep.subr.bf16.mxu1 %v16334_v52  ;;  %v16353_v38 = vld [vmem:[#allocation12 + $0x40] sm:$0xff]   ;;  %v16355_v28 = vld [vmem:[#allocation12 + $0x48] sm:$0xff]  }
0x169a   : > { %v11939_v20 = vadd.f32 %v18698_v27, %v11931_v39  ;;  %v11921_v26 = vmul.f32 %v13615_v53, %v11909_v8  ;;  %v16335_v27 = vld [vmem:[#allocation11 + $0x20] ss:$8 sps:$4 sm:$0xff]   ;;  %14831 = vmatprep.subr.bf16.mxu0 %v16353_v38  ;;  %v16357_v8 = vld [vmem:[#allocation12 + $0x50] sm:$0xff]  }
0x169b   : > { %11952 = vadd.xlane.f32.xlu0 %v11938_v29  ;;  %v11932_v59 = vadd.f32 %v13616_v33, %v11920_v22  ;;  %v16354_v51 = vld [vmem:[#allocation12] sm:$0xff]   ;;  %v16356_v39 = vld [vmem:[#allocation12 + $0x8] sm:$0xff]   ;;  %v16359_v22 = vld [vmem:[#allocation12 + $0x58] sm:$0xff]  }
0x169c   : > { %11954 = vadd.xlane.f32.xlu1 %v11939_v20  ;;  %v11933_v45 = vadd.f32 %v13616_v33, %v11921_v26  ;;  %12172 = vmatpush1.bf16.msra.mxu1 %v16332_v48  ;;  %v16361_v26 = vld [vmem:[#allocation12 + $0x60] sm:$0xff]  }
0x169d   : > { %v11940_v37 = vadd.f32 %v18701_v23, %v11932_v59  ;;  %12173 = vmatprep.subr.bf16.mxu1 %v16337_v40  ;;  %14832 = vmatpush3.bf16.msra.mxu0 %v16354_v51  ;;  %v16362_v59 = vld [vmem:[#allocation12 + $0x20] sm:$0xff]  }
0x169e   : > { %v11941_v46 = vadd.f32 %v18704_v50, %v11933_v45  ;;  %14833 = vmatprep.subr.bf16.mxu0 %v16355_v28  ;;  %v16363_v45 = vld [vmem:[#allocation12 + $0x68] sm:$0xff]  }
0x169f   : > { %11956 = vadd.xlane.f32.xlu0 %v11940_v37 }
0x16a0   : > { %11958 = vadd.xlane.f32.xlu1 %v11941_v46  ;;  %12174 = vmatpush1.bf16.msra.mxu1 %v16335_v27 }
0x16a1   : > { %12175 = vmatprep.subr.bf16.mxu1 %v16340_v54  ;;  %14834 = vmatpush3.bf16.msra.mxu0 %v16356_v39 }
0x16a2   : > { %14835 = vmatprep.subr.bf16.mxu0 %v16357_v8 }
0x16a4   : > { %12176 = vmatpush1.bf16.msra.mxu1 %v16338_v43 }
0x16a5   : > { %12177 = vmatprep.subr.bf16.mxu1 %v16343_v11 }
0x16a8   : > { %12178 = vmatpush1.bf16.msra.mxu1 %v16341_v44 }
0x16a9   : > { %12179 = vmatprep.subr.bf16.mxu1 %v16346_v13 }
0x1720   : > { %v11945_v25 = vpop.xlane.xlu0 %11944 }
0x1721   : > { %v11960_v35 = vmul.f32 0.0078125, %v11945_v25  ;;  %v11947_v58 = vpop.xlane.xlu1 %11946 }
0x1722   : > { %v11961_v23 = vmul.f32 0.0078125, %v11947_v58 }
0x1723   : > { %v18755_v21 = vsub.f32 %v11934_v42, %v11960_v35 }
0x1724   : > { %v18757_v50 = vsub.f32 %v11935_v6, %v11961_v23  ;;  %v11949_v5 = vpop.xlane.xlu0 %11948 }
0x1725   : > { %v11962_v9 = vmul.f32 0.0078125, %v11949_v5  ;;  %v11951_v10 = vpop.xlane.xlu1 %11950  ;;  %v11976_v18 = vmul.f32 %v18755_v21, %v18755_v21 }
0x1726   : > { %v11963_v32 = vmul.f32 0.0078125, %v11951_v10  ;;  %v11977_v63 = vmul.f32 %v18757_v50, %v18757_v50 }
0x1727   : > { %v18763_v14 = vsub.f32 %v11936_v4, %v11962_v9  ;;  %11984 = vadd.xlane.f32.xlu0 %v11976_v18  ;;  %v16344_v4 = vld [vmem:[#allocation11 + $0x50] ss:$8 sps:$4 sm:$0xff]  }
0x1728   : > { %v18765_v56 = vsub.f32 %v11937_v49, %v11963_v32  ;;  %11986 = vadd.xlane.f32.xlu1 %v11977_v63  ;;  %v11953_v53 = vpop.xlane.xlu0 %11952  ;;  %12180 = vmatpush1.bf16.msra.mxu1 %v16344_v4  ;;  %v16352_v49 = vld [vmem:[#allocation11 + $0x74] ss:$8 sps:$4 sm:$0xff]  }
0x1729   : > { %v11964_v55 = vmul.f32 0.0078125, %v11953_v53  ;;  %v11955_v16 = vpop.xlane.xlu1 %11954  ;;  %v11978_v33 = vmul.f32 %v18763_v14, %v18763_v14  ;;  %12181 = vmatprep.subr.bf16.mxu1 %v16349_v1 }
0x172a   : > { %v11965_v3 = vmul.f32 0.0078125, %v11955_v16  ;;  %v11979_v62 = vmul.f32 %v18765_v56, %v18765_v56 }
0x172b   : > { %v18771_v15 = vsub.f32 %v11938_v29, %v11964_v55  ;;  %11988 = vadd.xlane.f32.xlu0 %v11978_v33  ;;  %v16358_v29 = vld [vmem:[#allocation12 + $0x10] sm:$0xff]  }
0x172c   : > { %v18773_v17 = vsub.f32 %v11939_v20, %v11965_v3  ;;  %11990 = vadd.xlane.f32.xlu1 %v11979_v62  ;;  %v11957_v24 = vpop.xlane.xlu0 %11956  ;;  %12182 = vmatpush1.bf16.msra.mxu1 %v16347_v60  ;;  %v16360_v20 = vld [vmem:[#allocation12 + $0x18] sm:$0xff]   ;;  %v13617_v62 = vld [vmem:[#allocation15 + $0x6] ss:$0 sm:$0xff] }
0x172d   : > { %v11966_v47 = vmul.f32 0.0078125, %v11957_v24  ;;  %v11959_v34 = vpop.xlane.xlu1 %11958  ;;  %v11980_v41 = vmul.f32 %v18771_v15, %v18771_v15  ;;  %12183 = vmatprep.subr.bf16.mxu1 %v16352_v49  ;;  %14836 = vmatpush3.bf16.msra.mxu0 %v16358_v29 }
0x172e   : > { %v11967_v19 = vmul.f32 0.0078125, %v11959_v34  ;;  %v11981_v42 = vmul.f32 %v18773_v17, %v18773_v17  ;;  %14837 = vmatprep.subr.bf16.mxu0 %v16359_v22 }
0x172f   : > { %v18779_v2 = vsub.f32 %v11940_v37, %v11966_v47  ;;  %11992 = vadd.xlane.f32.xlu0 %v11980_v41 }
0x1730   : > { %v18781_v57 = vsub.f32 %v11941_v46, %v11967_v19  ;;  %11994 = vadd.xlane.f32.xlu1 %v11981_v42  ;;  %12184 = vmatpush1.bf16.msra.mxu1 %v16350_v7  ;;  %v13618_v19 = vld [vmem:[#allocation15 + $0x7] ss:$0 sm:$0xff] }
0x1731   : > { %v11982_v6 = vmul.f32 %v18779_v2, %v18779_v2  ;;  %14838 = vmatpush3.bf16.msra.mxu0 %v16360_v20 }
0x1732   : > { %v11983_v36 = vmul.f32 %v18781_v57, %v18781_v57  ;;  %14839 = vmatprep.subr.bf16.mxu0 %v16361_v26 }
0x1733   : > { %11996 = vadd.xlane.f32.xlu0 %v11982_v6 }
0x1734   : > { %11998 = vadd.xlane.f32.xlu1 %v11983_v36 }
0x1735   : > { %14840 = vmatpush3.bf16.msra.mxu0 %v16362_v59 }
0x1736   : > { %14841 = vmatprep.subr.bf16.mxu0 %v16363_v45 }
0x17b4   : > { %v11985_v37 = vpop.xlane.xlu0 %11984 }
0x17b5   : > { %v12000_v46 = vmul.f32 0.0078125, %v11985_v37  ;;  %v11987_v30 = vpop.xlane.xlu1 %11986 }
0x17b6   : > { %v12001_v61 = vmul.f32 0.0078125, %v11987_v30 }
0x17b7   : > { %v12008_v52 = vadd.f32 1e-05, %v12000_v46 }
0x17b8   : > { %v12009_v48 = vadd.f32 1e-05, %v12001_v61  ;;  %v11989_v40 = vpop.xlane.xlu0 %11988  ;;  %v16364_v61 = vld [vmem:[#allocation12 + $0x28] sm:$0xff]  }
0x17b9   : > { %16657 = vrsqrt.f32 %v12008_v52  ;;  %v12002_v27 = vmul.f32 0.0078125, %v11989_v40  ;;  %v11991_v25 = vpop.xlane.xlu1 %11990  ;;  %14842 = vmatpush3.bf16.msra.mxu0 %v16364_v61  ;;  %v16367_v52 = vld [vmem:[#allocation12 + $0x78] sm:$0xff]   ;;  %v12077_v40 = vld [vmem:[#allocation14 + $0x1] ss:$2 sm:$0x3] }
0x17ba   : > { %16659 = vrsqrt.f32 %v12009_v48  ;;  %v12003_v35 = vmul.f32 0.0078125, %v11991_v25  ;;  %v16368_v48 = vld [vmem:[#allocation12 + $0x38] sm:$0xff]  }
0x17bb   : > { %v12010_v58 = vadd.f32 1e-05, %v12002_v27  ;;  %v18973_v27 = vsub.s32 1, %v17406_v12 }
0x17bc   : > { %v12011_v23 = vadd.f32 1e-05, %v12003_v35  ;;  %v11993_v5 = vpop.xlane.xlu0 %11992 }
0x17bd   : > { %16661 = vrsqrt.f32 %v12010_v58  ;;  %v12004_v9 = vmul.f32 0.0078125, %v11993_v5  ;;  %v11995_v10 = vpop.xlane.xlu1 %11994  ;;  %v12086_v25 = vrot.slane %v12077_v40, %v18973_v27 }
0x17be   : > { %16663 = vrsqrt.f32 %v12011_v23  ;;  %v12005_v18 = vmul.f32 0.0078125, %v11995_v10 }
0x17bf   : > { %v12012_v32 = vadd.f32 1e-05, %v12004_v9 }
0x17c0   : > { %v12013_v63 = vadd.f32 1e-05, %v12005_v18  ;;  %v11997_v53 = vpop.xlane.xlu0 %11996 }
0x17c1   : > { %16665 = vrsqrt.f32 %v12012_v32  ;;  %v12006_v55 = vmul.f32 0.0078125, %v11997_v53  ;;  %v11999_v16 = vpop.xlane.xlu1 %11998 }
0x17c2   : > { %16667 = vrsqrt.f32 %v12013_v63  ;;  %v12007_v33 = vmul.f32 0.0078125, %v11999_v16 }
0x17c3   : > { %v16658_v3 = vpop.eup %16657  ;;  %v12014_v41 = vadd.f32 1e-05, %v12006_v55 }
0x17c4   : > { %v16660_v24 = vpop.eup %16659  ;;  %v12024_v47 = vmul.f32 %v16658_v3, %v18755_v21  ;;  %v12015_v42 = vadd.f32 1e-05, %v12007_v33 }
0x17c5   : > { %v12025_v34 = vmul.f32 %v16660_v24, %v18757_v50  ;;  %16669 = vrsqrt.f32 %v12014_v41 }
0x17c6   : > { %v12036_v6 = vmul.f32 %v13617_v62, %v12024_v47  ;;  %16671 = vrsqrt.f32 %v12015_v42 }
0x17c7   : > { %v16662_v36 = vpop.eup %16661  ;;  %v12037_v43 = vmul.f32 %v13617_v62, %v12025_v34 }
0x17c8   : > { %v16664_v54 = vpop.eup %16663  ;;  %v18789_v11 = vadd.f32 %v13618_v19, %v12036_v6  ;;  %v12026_v44 = vmul.f32 %v16662_v36, %v18763_v14 }
0x17c9   : > { %v18792_v13 = vadd.f32 %v13618_v19, %v12037_v43  ;;  %v12027_v4 = vmul.f32 %v16664_v54, %v18765_v56 }
0x17ca   : > { %v12038_v1 = vmul.f32 %v13617_v62, %v12026_v44 }
0x17cb   : > { %v16666_v21 = vpop.eup %16665  ;;  %v12056_v50 = vpack.c.bf16 %v18792_v13, %v18789_v11  ;;  %v12039_v60 = vmul.f32 %v13617_v62, %v12027_v4 }
0x17cc   : > { %v16668_v49 = vpop.eup %16667  ;;  %v18798_v7 = vadd.f32 %v13618_v19, %v12038_v1  ;;  %v12028_v14 = vmul.f32 %v16666_v21, %v18771_v15 }
0x17cd   : > { %12202 = vmatmul.mubr.bf16.vlgmr.msra.gmra.mrb[156].mxu1 %v12056_v50  ;;  %v18800_v38 = vadd.f32 %v13618_v19, %v12039_v60  ;;  %v12029_v51 = vmul.f32 %v16668_v49, %v18773_v17 }
0x17ce   : > { %12211 = vmatprep.mubr.bf16.mxu1 %v17029_v0  ;;  %v12040_v39 = vmul.f32 %v13617_v62, %v12028_v14 }
0x17cf   : > { %v16670_v56 = vpop.eup %16669  ;;  %v12057_v28 = vpack.c.bf16 %v18800_v38, %v18798_v7  ;;  %v12041_v8 = vmul.f32 %v13617_v62, %v12029_v51 }
0x17d0   : > { %v16672_v29 = vpop.eup %16671  ;;  %v18807_v22 = vadd.f32 %v13618_v19, %v12040_v39  ;;  %v12030_v26 = vmul.f32 %v16670_v56, %v18779_v2  ;;  %v16365_v2 = vld [vmem:[#allocation12 + $0x70] sm:$0xff]  }
0x17d1   : > { %v18809_v20 = vadd.f32 %v13618_v19, %v12041_v8  ;;  %v12031_v15 = vmul.f32 %v16672_v29, %v18781_v57  ;;  %v16366_v57 = vld [vmem:[#allocation12 + $0x30] sm:$0xff]   ;;  %14843 = vmatprep.subr.bf16.mxu0 %v16365_v2 }
0x17d2   : > { %v12042_v59 = vmul.f32 %v13617_v62, %v12030_v26  ;;  %14844 = vmatpush3.bf16.msra.mxu0 %v16366_v57 }
0x17d3   : > { %v12058_v17 = vpack.c.bf16 %v18809_v20, %v18807_v22  ;;  %v12043_v45 = vmul.f32 %v13617_v62, %v12031_v15  ;;  %14845 = vmatprep.subr.bf16.mxu0 %v16367_v52 }
0x17d4   : > { %v18816_v37 = vadd.f32 %v13618_v19, %v12042_v59 }
0x17d5   : > { %12212 = vmatmul.mubr.bf16.gmra.mrb[160].mxu1 %v12057_v28  ;;  %v18818_v46 = vadd.f32 %v13618_v19, %v12043_v45 }
0x17d6   : > { %12221 = vmatprep.mubr.bf16.mxu1 %v17029_v0  ;;  %14846 = vmatpush3.bf16.msra.mxu0 %v16368_v48 }
0x17d7   : > { %v12059_v30 = vpack.c.bf16 %v18818_v46, %v18816_v37 }
0x17dd   : > { %12222 = vmatmul.mubr.bf16.gmra.mrb[164].mxu1 %v12058_v17 }
0x17de   : > { %12231 = vmatprep.mubr.bf16.mxu1 %v17029_v0  ;;  %v12082_v0 = vrot.slane %v12077_v40, %v17433_v31 }
0x17e5   : > { %12232 = vmatmul.mubr.bf16.gmra.mrb[168].mxu1 %v12059_v30 }
0x18a0   : > { %v12203_v35 = vpop.f32.mrb[156].mxu1 }
0x18a1   : > { %v12204_v58 = vadd.f32 %v12203_v35, %v12082_v0  ;;  %v12205_v23 = vpop.f32.mrb[157].mxu1 }
0x18a2   : > { %v12206_v5 = vadd.f32 %v12205_v23, %v12086_v25  ;;  %v12207_v9 = vpop.f32.mrb[158].mxu1 }
0x18a3   : > { %v12208_v10 = vadd.f32 %v12207_v9, %v12082_v0  ;;  %v12209_v18 = vpop.f32.mrb[159].mxu1  ;;  %v12242_v63 = vmax.f32 %v12204_v58, 0.0 }
0x18a4   : > { %v12210_v32 = vadd.f32 %v12209_v18, %v12086_v25  ;;  %v12243_v55 = vmax.f32 %v12206_v5, 0.0  ;;  %v13635_v5 = vld [vmem:[#allocation15 + $0x8] ss:$0 sm:$0xff] }
0x18a5   : > { %v12244_v53 = vmax.f32 %v12208_v10, 0.0 }
0x18a6   : > { %v12245_v16 = vmax.f32 %v12210_v32, 0.0 }
0x18a7   : > { %v12258_v33 = vpack.c.bf16 %v12244_v53, %v12242_v63 }
0x18a8   : > { %v12259_v3 = vpack.c.bf16 %v12245_v16, %v12243_v55  ;;  %v12213_v62 = vpop.f32.mrb[160].mxu1 }
0x18a9   : > { %v12214_v24 = vadd.f32 %v12213_v62, %v12082_v0  ;;  %v12215_v31 = vpop.f32.mrb[161].mxu1 }
0x18aa   : > { %v12216_v47 = vadd.f32 %v12215_v31, %v12086_v25  ;;  %v12217_v12 = vpop.f32.mrb[162].mxu1  ;;  %12431 = vmatprep.mubr.bf16.mxu0 %v12259_v3 }
0x18ab   : > { %v12218_v34 = vadd.f32 %v12217_v12, %v12082_v0  ;;  %v12219_v41 = vpop.f32.mrb[163].mxu1  ;;  %12432 = vmatmul.mubr.bf16.vlgmr.msra.gmra.mrb[188].mxu0 %v12258_v33  ;;  %v12246_v42 = vmax.f32 %v12214_v24, 0.0 }
0x18ac   : > { %v12220_v19 = vadd.f32 %v12219_v41, %v12086_v25  ;;  %v12247_v36 = vmax.f32 %v12216_v47, 0.0 }
0x18ad   : > { %v12248_v6 = vmax.f32 %v12218_v34, 0.0 }
0x18ae   : > { %v12249_v43 = vmax.f32 %v12220_v19, 0.0 }
0x18af   : > { %v12260_v54 = vpack.c.bf16 %v12248_v6, %v12246_v42 }
0x18b0   : > { %v12261_v44 = vpack.c.bf16 %v12249_v43, %v12247_v36  ;;  %v12223_v4 = vpop.f32.mrb[164].mxu1 }
0x18b1   : > { %v12224_v21 = vadd.f32 %v12223_v4, %v12082_v0  ;;  %v12225_v50 = vpop.f32.mrb[165].mxu1 }
0x18b2   : > { %v12226_v1 = vadd.f32 %v12225_v50, %v12086_v25  ;;  %v12227_v60 = vpop.f32.mrb[166].mxu1  ;;  %12439 = vmatprep.mubr.bf16.mxu0 %v12261_v44 }
0x18b3   : > { %v12228_v49 = vadd.f32 %v12227_v60, %v12082_v0  ;;  %v12229_v14 = vpop.f32.mrb[167].mxu1  ;;  %12440 = vmatmul.mubr.bf16.gmra.mrb[192].mxu0 %v12260_v54  ;;  %v12250_v56 = vmax.f32 %v12224_v21, 0.0 }
0x18b4   : > { %v12230_v51 = vadd.f32 %v12229_v14, %v12086_v25  ;;  %v12251_v39 = vmax.f32 %v12226_v1, 0.0 }
0x18b5   : > { %v12252_v28 = vmax.f32 %v12228_v49, 0.0 }
0x18b6   : > { %v12253_v8 = vmax.f32 %v12230_v51, 0.0 }
0x18b7   : > { %v12262_v29 = vpack.c.bf16 %v12252_v28, %v12250_v56 }
0x18b8   : > { %v12263_v26 = vpack.c.bf16 %v12253_v8, %v12251_v39  ;;  %v12233_v15 = vpop.f32.mrb[168].mxu1 }
0x18b9   : > { %v12234_v17 = vadd.f32 %v12233_v15, %v12082_v0  ;;  %v12235_v59 = vpop.f32.mrb[169].mxu1 }
0x18ba   : > { %v12236_v45 = vadd.f32 %v12235_v59, %v12086_v25  ;;  %v12237_v30 = vpop.f32.mrb[170].mxu1  ;;  %12447 = vmatprep.mubr.bf16.mxu0 %v12263_v26 }
0x18bb   : > { %v12238_v61 = vadd.f32 %v12237_v30, %v12082_v0  ;;  %v12239_v2 = vpop.f32.mrb[171].mxu1  ;;  %12448 = vmatmul.mubr.bf16.gmra.mrb[196].mxu0 %v12262_v29  ;;  %v12254_v52 = vmax.f32 %v12234_v17, 0.0 }
0x18bc   : > { %v12240_v57 = vadd.f32 %v12239_v2, %v12086_v25  ;;  %v12255_v40 = vmax.f32 %v12236_v45, 0.0 }
0x18bd   : > { %v12256_v48 = vmax.f32 %v12238_v61, 0.0 }
0x18be   : > { %v12257_v27 = vmax.f32 %v12240_v57, 0.0 }
0x18bf   : > { %v12264_v35 = vpack.c.bf16 %v12256_v48, %v12254_v52 }
0x18c0   : > { %v12265_v58 = vpack.c.bf16 %v12257_v27, %v12255_v40 }
0x18c2   : > { %12455 = vmatprep.mubr.bf16.mxu0 %v12265_v58 }
0x18c3   : > { %12456 = vmatmul.mubr.bf16.gmra.mrb[200].mxu0 %v12264_v35 }
0x197e   : > { %v14847_v23 = vpop.f32.mrb[188].mxu0 }
0x197f   : > { %v14848_v9 = vpop.f32.mrb[189].mxu0 }
0x1980   : > { %v14849_v10 = vadd.f32 %v14848_v9, %v14847_v23  ;;  %v14850_v18 = vpop.f32.mrb[190].mxu0 }
0x1981   : > { %v14851_v32 = vpop.f32.mrb[191].mxu0 }
0x1982   : > { %v12434_v63 = vadd.f32 %v14849_v10, %v13635_v5  ;;  %v14852_v53 = vadd.f32 %v14851_v32, %v14850_v18 }
0x1984   : > { %v12437_v0 = vadd.f32 %v14852_v53, %v13635_v5  ;;  %v12464_v55 = vadd.f32 %v12434_v63, %v18789_v11 }
0x1986   : > { %12474 = vadd.xlane.f32.xlu0 %v12464_v55  ;;  %v14853_v25 = vpop.f32.mrb[192].mxu0  ;;  %v12465_v16 = vadd.f32 %v12437_v0, %v18792_v13 }
0x1987   : > { %v14854_v33 = vpop.f32.mrb[193].mxu0 }
0x1988   : > { %v14855_v3 = vadd.f32 %v14854_v33, %v14853_v25  ;;  %12476 = vadd.xlane.f32.xlu1 %v12465_v16  ;;  %v14856_v62 = vpop.f32.mrb[194].mxu0 }
0x1989   : > { %v14857_v24 = vpop.f32.mrb[195].mxu0 }
0x198a   : > { %v12442_v31 = vadd.f32 %v14855_v3, %v13635_v5  ;;  %v14858_v47 = vadd.f32 %v14857_v24, %v14856_v62 }
0x198c   : > { %v12445_v12 = vadd.f32 %v14858_v47, %v13635_v5  ;;  %v12466_v34 = vadd.f32 %v12442_v31, %v18798_v7 }
0x198e   : > { %12478 = vadd.xlane.f32.xlu0 %v12466_v34  ;;  %v14859_v41 = vpop.f32.mrb[196].mxu0  ;;  %v12467_v19 = vadd.f32 %v12445_v12, %v18800_v38 }
0x198f   : > { %v14860_v42 = vpop.f32.mrb[197].mxu0 }
0x1990   : > { %v14861_v11 = vadd.f32 %v14860_v42, %v14859_v41  ;;  %12480 = vadd.xlane.f32.xlu1 %v12467_v19  ;;  %v14862_v6 = vpop.f32.mrb[198].mxu0  ;;  %v13652_v42 = vld [vmem:[#allocation15 + $0x9] ss:$0 sm:$0xff] }
0x1991   : > { %v14863_v36 = vpop.f32.mrb[199].mxu0 }
0x1992   : > { %v12450_v13 = vadd.f32 %v14861_v11, %v13635_v5  ;;  %v14864_v43 = vadd.f32 %v14863_v36, %v14862_v6 }
0x1994   : > { %v12453_v54 = vadd.f32 %v14864_v43, %v13635_v5  ;;  %v12468_v44 = vadd.f32 %v12450_v13, %v18807_v22  ;;  %v13653_v13 = vld [vmem:[#allocation15 + $0xa] ss:$0 sm:$0xff] }
0x1996   : > { %12482 = vadd.xlane.f32.xlu0 %v12468_v44  ;;  %v14865_v4 = vpop.f32.mrb[200].mxu0  ;;  %v12469_v21 = vadd.f32 %v12453_v54, %v18809_v20 }
0x1997   : > { %v14866_v50 = vpop.f32.mrb[201].mxu0 }
0x1998   : > { %v14867_v7 = vadd.f32 %v14866_v50, %v14865_v4  ;;  %12484 = vadd.xlane.f32.xlu1 %v12469_v21  ;;  %v14868_v1 = vpop.f32.mrb[202].mxu0 }
0x1999   : > { %v14869_v60 = vpop.f32.mrb[203].mxu0 }
0x199a   : > { %v12458_v38 = vadd.f32 %v14867_v7, %v13635_v5  ;;  %v14870_v49 = vadd.f32 %v14869_v60, %v14868_v1 }
0x199c   : > { %v12461_v14 = vadd.f32 %v14870_v49, %v13635_v5  ;;  %v12470_v51 = vadd.f32 %v12458_v38, %v18816_v37 }
0x199e   : > { %12486 = vadd.xlane.f32.xlu0 %v12470_v51  ;;  %v12471_v56 = vadd.f32 %v12461_v14, %v18818_v46 }
0x19a0   : > { %12488 = vadd.xlane.f32.xlu1 %v12471_v56 }
0x1a13   : > { %v12475_v28 = vpop.xlane.xlu0 %12474 }
0x1a14   : > { %v12490_v22 = vmul.f32 0.0078125, %v12475_v28 }
0x1a15   : > { %v12477_v39 = vpop.xlane.xlu1 %12476 }
0x1a16   : > { %v12498_v8 = vsub.f32 %v12464_v55, %v12490_v22  ;;  %v12491_v29 = vmul.f32 0.0078125, %v12477_v39 }
0x1a18   : > { %v12499_v20 = vsub.f32 %v12465_v16, %v12491_v29  ;;  %v12506_v26 = vmul.f32 %v12498_v8, %v12498_v8 }
0x1a1a   : > { %12514 = vadd.xlane.f32.xlu0 %v12506_v26  ;;  %v12507_v15 = vmul.f32 %v12499_v20, %v12499_v20 }
0x1a1b   : > { %v12479_v17 = vpop.xlane.xlu0 %12478 }
0x1a1c   : > { %v12492_v59 = vmul.f32 0.0078125, %v12479_v17  ;;  %12516 = vadd.xlane.f32.xlu1 %v12507_v15 }
0x1a1d   : > { %v12481_v45 = vpop.xlane.xlu1 %12480 }
0x1a1e   : > { %v18833_v30 = vsub.f32 %v12466_v34, %v12492_v59  ;;  %v12493_v37 = vmul.f32 0.0078125, %v12481_v45 }
0x1a20   : > { %v18835_v61 = vsub.f32 %v12467_v19, %v12493_v37  ;;  %v12508_v46 = vmul.f32 %v18833_v30, %v18833_v30 }
0x1a22   : > { %12518 = vadd.xlane.f32.xlu0 %v12508_v46  ;;  %v12509_v2 = vmul.f32 %v18835_v61, %v18835_v61 }
0x1a23   : > { %v12483_v57 = vpop.xlane.xlu0 %12482 }
0x1a24   : > { %v12494_v52 = vmul.f32 0.0078125, %v12483_v57  ;;  %12520 = vadd.xlane.f32.xlu1 %v12509_v2 }
0x1a25   : > { %v12485_v48 = vpop.xlane.xlu1 %12484 }
0x1a26   : > { %v18841_v40 = vsub.f32 %v12468_v44, %v12494_v52  ;;  %v12495_v27 = vmul.f32 0.0078125, %v12485_v48 }
0x1a28   : > { %v18843_v35 = vsub.f32 %v12469_v21, %v12495_v27  ;;  %v12510_v58 = vmul.f32 %v18841_v40, %v18841_v40 }
0x1a2a   : > { %12522 = vadd.xlane.f32.xlu0 %v12510_v58  ;;  %v12511_v23 = vmul.f32 %v18843_v35, %v18843_v35 }
0x1a2b   : > { %v12487_v5 = vpop.xlane.xlu0 %12486 }
0x1a2c   : > { %v12496_v9 = vmul.f32 0.0078125, %v12487_v5  ;;  %12524 = vadd.xlane.f32.xlu1 %v12511_v23 }
0x1a2d   : > { %v12489_v10 = vpop.xlane.xlu1 %12488 }
0x1a2e   : > { %v18849_v18 = vsub.f32 %v12470_v51, %v12496_v9  ;;  %v12497_v32 = vmul.f32 0.0078125, %v12489_v10 }
0x1a30   : > { %v18851_v63 = vsub.f32 %v12471_v56, %v12497_v32  ;;  %v12512_v53 = vmul.f32 %v18849_v18, %v18849_v18 }
0x1a32   : > { %12526 = vadd.xlane.f32.xlu0 %v12512_v53  ;;  %v12513_v0 = vmul.f32 %v18851_v63, %v18851_v63 }
0x1a34   : > { %12528 = vadd.xlane.f32.xlu1 %v12513_v0 }
0x1aa7   : > { %v12515_v55 = vpop.xlane.xlu0 %12514 }
0x1aa8   : > { %v12530_v25 = vmul.f32 0.0078125, %v12515_v55 }
0x1aa9   : > { %v12517_v16 = vpop.xlane.xlu1 %12516 }
0x1aaa   : > { %v12538_v33 = vadd.f32 1e-05, %v12530_v25  ;;  %v12531_v3 = vmul.f32 0.0078125, %v12517_v16 }
0x1aac   : > { %16673 = vrsqrt.f32 %v12538_v33  ;;  %v12539_v62 = vadd.f32 1e-05, %v12531_v3 }
0x1aae   : > { %16675 = vrsqrt.f32 %v12539_v62 }
0x1aaf   : > { %v12519_v24 = vpop.xlane.xlu0 %12518 }
0x1ab0   : > { %v12532_v31 = vmul.f32 0.0078125, %v12519_v24 }
0x1ab1   : > { %v12521_v47 = vpop.xlane.xlu1 %12520 }
0x1ab2   : > { %v12540_v12 = vadd.f32 1e-05, %v12532_v31  ;;  %v12533_v34 = vmul.f32 0.0078125, %v12521_v47 }
0x1ab4   : > { %16677 = vrsqrt.f32 %v12540_v12  ;;  %v12541_v41 = vadd.f32 1e-05, %v12533_v34 }
0x1ab6   : > { %v16674_v19 = vpop.eup %16673  ;;  %16679 = vrsqrt.f32 %v12541_v41 }
0x1ab7   : > { %v12554_v11 = vmul.f32 %v16674_v19, %v12498_v8  ;;  %v12523_v6 = vpop.xlane.xlu0 %12522 }
0x1ab8   : > { %v16676_v36 = vpop.eup %16675  ;;  %v12534_v43 = vmul.f32 0.0078125, %v12523_v6 }
0x1ab9   : > { %v12566_v54 = vmul.f32 %v13652_v42, %v12554_v11  ;;  %v12555_v44 = vmul.f32 %v16676_v36, %v12499_v20  ;;  %v12525_v4 = vpop.xlane.xlu1 %12524 }
0x1aba   : > { %v12542_v21 = vadd.f32 1e-05, %v12534_v43  ;;  %v12535_v50 = vmul.f32 0.0078125, %v12525_v4 }
0x1abb   : > { %v12578_v7 = vadd.f32 %v13653_v13, %v12566_v54  ;;  %v12567_v1 = vmul.f32 %v13652_v42, %v12555_v44 }
0x1abc   : > { %16681 = vrsqrt.f32 %v12542_v21  ;;  %v12543_v60 = vadd.f32 1e-05, %v12535_v50 }
0x1abd   : > { %12586 = vst [vmem:[%s18859_s30] sm:$0xff] %v12578_v7  ;;  %v12579_v38 = vadd.f32 %v13653_v13, %v12567_v1 }
0x1abe   : > { %v16678_v49 = vpop.eup %16677  ;;  %16683 = vrsqrt.f32 %v12543_v60 }
0x1abf   : > { %12587 = vst [vmem:[%s18859_s30 + $0x8] sm:$0xff] %v12579_v38  ;;  %v12556_v14 = vmul.f32 %v16678_v49, %v18833_v30  ;;  %v12527_v51 = vpop.xlane.xlu0 %12526 }
0x1ac0   : > { %v16680_v56 = vpop.eup %16679  ;;  %v12536_v28 = vmul.f32 0.0078125, %v12527_v51 }
0x1ac1   : > { %v12568_v22 = vmul.f32 %v13652_v42, %v12556_v14  ;;  %v12557_v39 = vmul.f32 %v16680_v56, %v18835_v61  ;;  %v12529_v8 = vpop.xlane.xlu1 %12528 }
0x1ac2   : > { %v12544_v29 = vadd.f32 1e-05, %v12536_v28  ;;  %v12537_v20 = vmul.f32 0.0078125, %v12529_v8 }
0x1ac3   : > { %v12580_v26 = vadd.f32 %v13653_v13, %v12568_v22  ;;  %v12569_v15 = vmul.f32 %v13652_v42, %v12557_v39 }
0x1ac4   : > { %16685 = vrsqrt.f32 %v12544_v29  ;;  %v12545_v17 = vadd.f32 1e-05, %v12537_v20 }
0x1ac5   : > { %12588 = vst [vmem:[%s18859_s30 + $0x10] sm:$0xff] %v12580_v26  ;;  %v12581_v59 = vadd.f32 %v13653_v13, %v12569_v15 }
0x1ac6   : > { %v16682_v45 = vpop.eup %16681  ;;  %16687 = vrsqrt.f32 %v12545_v17 }
0x1ac7   : > { %12589 = vst [vmem:[%s18859_s30 + $0x18] sm:$0xff] %v12581_v59  ;;  %v12558_v30 = vmul.f32 %v16682_v45, %v18841_v40 }
0x1ac8   : > { %v16684_v37 = vpop.eup %16683 }
0x1ac9   : > { %v12570_v61 = vmul.f32 %v13652_v42, %v12558_v30  ;;  %v12559_v46 = vmul.f32 %v16684_v37, %v18843_v35 }
0x1acb   : > { %v12582_v2 = vadd.f32 %v13653_v13, %v12570_v61  ;;  %v12571_v57 = vmul.f32 %v13652_v42, %v12559_v46 }
0x1acd   : > { %12590 = vst [vmem:[%s18859_s30 + $0x20] sm:$0xff] %v12582_v2  ;;  %v12583_v52 = vadd.f32 %v13653_v13, %v12571_v57 }
0x1ace   : > { %v16686_v48 = vpop.eup %16685 }
0x1acf   : > { %12591 = vst [vmem:[%s18859_s30 + $0x28] sm:$0xff] %v12583_v52  ;;  %v12560_v27 = vmul.f32 %v16686_v48, %v18849_v18 }
0x1ad0   : > { %v16688_v58 = vpop.eup %16687 }
0x1ad1   : > { %v12572_v23 = vmul.f32 %v13652_v42, %v12560_v27  ;;  %v12561_v40 = vmul.f32 %v16688_v58, %v18851_v63 }
0x1ad3   : > { %v12584_v5 = vadd.f32 %v13653_v13, %v12572_v23  ;;  %v12573_v35 = vmul.f32 %v13652_v42, %v12561_v40 }
0x1ad5   : > { %12592 = vst [vmem:[%s18859_s30 + $0x30] sm:$0xff] %v12584_v5  ;;  %v12585_v9 = vadd.f32 %v13653_v13, %v12573_v35 }
0x1ad7   : > { %12593 = vst [vmem:[%s18859_s30 + $0x38] sm:$0xff] %v12585_v9 }
0x1ad8   : > { %16944 = shalt.err (!%p16941_p9)
}
0x1ad9   : > { %s16945_s24 = scalar_lea.hbm %s18878_s22, 1024  ;;  %s16949_s12 = scalar_lea.hbm %s18974_s5, 2048 }
0x1ada   : > { %p16946_p4 = scmp.ne.s32.totalorder %s18878_s22, %s16945_s24  ;;  %p16950_p5 = scmp.lt.u32.totalorder %s18878_s22, %s18974_s5 }
0x1adb   : > { %p16951_p2 = scmp.lt.u32.totalorder %s16949_s12, %s16945_s24  ;;  %p16953_p10 = scmp.lt.u32.totalorder %s16945_s24, %s18878_s22 }
0x1adc   : > { %p16947_p1 = pnand %p16946_p4, %p18975_p11 }
0x1add   : > { %p16952_p7 = por %p16951_p2, %p16950_p5 }
0x1ade   : > { %p16948_p0 = pneg %p16947_p1 }
0x1adf   : > { %p16954_p3 = por %p16953_p10, %p16952_p7 }
0x1ae1   : > { %p16955_p12 = pnand %p16954_p3, %p16948_p0 }
0x1ae3   : > { %16958 = shalt.err (!%p16955_p12)
}
0x1ae4   : > { %s17038_s21 = smov 128   ;;  %s17039_s19 = smov 8  }
0x1ae5   : > { %15514 = dma.vmem_to_hbm [thread:$0]  (%p18975_p11), %s18880_s23, 1024, %s18878_s22, %s12595_s28, %s17038_s21, %s17038_s21, %s17039_s19  }
0x1ae6 PF: > { %s12623_s25 = sand.u32 1, %s17001_s13   ;;  %p18976_p13 = scmp.ne.s32.totalorder %s18961_s26, 0 }
0x1ae7   : > { %p18977_p8 = scmp.ge.s32.totalorder %s17013_s16, 2  ;;  %s12624_s29 = scalar_lea.sflag [#allocation5], %s12623_s25 }
0x1ae9   : > { %p15543_p6 = pnand %p18977_p8, %p18976_p13 }
0x1aeb   : > { %16996 = dma.done.wait (!%p15543_p6), %s12624_s29, 1024  }
0x1aec   : > { %16998 = vsyncadd (!%p15543_p6), %s12624_s29, 4294966272  ;;  %p27_p9 = scmp.ge.s32.totalorder %s17301_s11, 4   ;;  %s18978_s13 = smov %s17005_s14 }
0x1aed   : > { %s18979_s14 = smov %s17009_s15  ;;  %s18980_s15 = smov %s17313_s18 }
0x1aee   : > { %s18981_s16 = smov %s17301_s11  ;;  %29 = sbr.rel (!%p27_p9) target bundleno = 14 (0xe), region = 153 }
0x1af5   :  { %12629 = vsyncpa [#allocation4], 1 }
0x1af6   :  { %12631 = vsyncpa [#allocation4 + $0x1], 1 }
0x1af7   :  { %12632 = vsyncpa [#allocation7], 1 }
0x1af8   :  { %12633 = vsyncpa [#allocation10], 1 }
0x1af9   :  { %12634 = vsyncpa [#allocation13], 1 }
0x1afa   :  { %12635 = vsyncpa [#allocation16], 1 }
0x1afb   :  { %12636 = vsyncpa [#allocation5], 1 }
0x1afc   :  { %12638 = vsyncpa [#allocation5 + $0x1], 1 }

</bundles_post_ra>
